<compile_context>
chip_gen: v7x
topology: tpu7x:2x2x1
jax: 0.10.0
libtpu: 0.0.40
codegen_flags: <defaults>
</compile_context>

<pallas_src>
import functools

import jax
import jax.numpy as jnp
from jax.experimental import pallas as pl
from jax.experimental.pallas import tpu as pltpu

BN_EPS = 1e-3               # videoseal ConvBNRelu: nn.BatchNorm2d(out, eps=1e-3)
MM_DTYPE = jnp.bfloat16     # matmul operand dtype (f32 accumulation everywhere)

# ----------------------------------------------------------------------------
# Exact-erf GELU built from Mosaic-friendly ops (Abramowitz & Stegun 7.1.26,
# |erf error| < 1.5e-7 -> numerically equivalent to torch nn.GELU()).
# ----------------------------------------------------------------------------
_INV_SQRT2 = 0.7071067811865476
_ERF_P = 0.3275911
_ERF_A = (0.254829592, -0.284496736, 1.421413741, -1.453152027, 1.061405429)


def _erf(x):
    a1, a2, a3, a4, a5 = _ERF_A
    a = jnp.abs(x)
    t = 1.0 / (1.0 + _ERF_P * a)
    poly = ((((a5 * t + a4) * t + a3) * t + a2) * t + a1) * t
    y = 1.0 - poly * jnp.exp(-a * a)
    return jnp.where(x < 0.0, -y, y)


def _gelu_exact(x):
    return 0.5 * x * (1.0 + _erf(x * _INV_SQRT2))


# ----------------------------------------------------------------------------
# Fused Pallas kernel: full HiddenEncoder forward for one batch element.
# Layout: channels on sublanes, flat padded frame (H+2)*(W+2) padded up to a
# multiple of 128 on the lane axis; the 1-pixel zero halo lives in the frame.
# ----------------------------------------------------------------------------
def _hidden_encoder_kernel(*refs, num_blocks, Wp, mm_dtype):
    msgs_ref, imgs_ref, mask_ref = refs[0], refs[1], refs[2]
    p = 3
    conv_layers = [tuple(refs[p + 3 * i:p + 3 * i + 3]) for i in range(num_blocks)]
    p += 3 * num_blocks
    wac_ref, sac_ref, bac_ref = refs[p], refs[p + 1], refs[p + 2]
    p += 3
    wmsg_ref = refs[p]
    p += 1
    wf_ref, bf_ref = refs[p], refs[p + 1]
    p += 2
    out_ref = refs[p]

    S_pad = mask_ref.shape[1]
    mask = mask_ref[...]                       # (1, S_pad): 1 on HxW interior

    def tap(x, delta):
        """tap[p] = x[p + delta] (static lane roll).  Wrapped lanes only land
        on halo/pad output positions, which the mask multiply re-zeroes."""
        if delta == 0:
            return x
        return pltpu.roll(x, shift=(-delta) % S_pad, axis=1)

    def conv3x3_acc(x_f32, w_ref):
        """'same' 3x3 conv as 9 accumulating MXU dots (no im2col patch).

        x_f32:  (Cin, S_pad) f32 with a zero halo.
        w_ref:  (9, Cout, Cin) weights, tap-major (t = ky*3 + kx).
        Rolls whichever side has fewer rows: the input taps (Cin < Cout) or
        the f32 partial products (Cin >= Cout, so x is cast to bf16 once).
        """
        cin = x_f32.shape[0]
        cout = w_ref.shape[1]
        roll_input = cin < cout
        xb = None if roll_input else x_f32.astype(mm_dtype)
        acc = None
        for t in range(9):
            dy, dx = divmod(t, 3)
            delta = (dy - 1) * Wp + (dx - 1)
            if roll_input:
                part = jnp.dot(w_ref[t], tap(x_f32, delta).astype(mm_dtype),
                               preferred_element_type=jnp.float32)
            else:
                part = tap(jnp.dot(w_ref[t], xb,
                                   preferred_element_type=jnp.float32), delta)
            acc = part if acc is None else acc + part
        return acc                             # (Cout, S_pad) f32 pre-BN

    def bn_gelu_mask(acc, s_ref, b_ref):
        y = acc * s_ref[...] + b_ref[...]      # folded eval-mode BN
        return _gelu_exact(y) * mask           # restore the zero halo

    # Preprocessing on the interior only (halo must stay exactly 0).
    img_p = (imgs_ref[0] * 2.0 - 1.0) * mask   # (3, S_pad)

    # conv_bns stack.
    x = img_p
    for i in range(num_blocks):
        w_ref, s_ref, b_ref = conv_layers[i]
        x = bn_gelu_mask(conv3x3_acc(x, w_ref), s_ref, b_ref)

    # after_concat: conv over [encoded(C), img(3)] channels on the MXU; the
    # msg channels are spatially constant, so their contribution is a per-tap
    # rank-1 term  (W_msg_t @ msg) * rolled_mask_t  added on the VPU.
    cat = jnp.concatenate([x, img_p], axis=0)          # (C + 3, S_pad) f32
    acc = conv3x3_acc(cat, wac_ref)
    cout = acc.shape[0]
    msg_v = 2.0 * msgs_ref[0] - 1.0                    # (1, L) in {-1, +1}
    mv = jnp.sum(wmsg_ref[...] * msg_v, axis=1, keepdims=True)   # (9*Cout, 1)
    for t in range(9):
        dy, dx = divmod(t, 3)
        delta = (dy - 1) * Wp + (dx - 1)
        acc = acc + mv[t * cout:(t + 1) * cout, :] * tap(mask, delta)
    y = bn_gelu_mask(acc, sac_ref, bac_ref)            # (C, S_pad)

    # Final 1x1 conv (C -> 3) + tanh on the VPU (3*C broadcast-FMAs); the MXU
    # would pay a full stationary load per lane tile for only M=3 rows.
    wf = wf_ref[...]                                   # (3, C) f32
    o = jnp.zeros((3, S_pad), jnp.float32) + bf_ref[...]
    for c in range(y.shape[0]):
        o = o + wf[:, c:c + 1] * y[c:c + 1, :]
    out_ref[0] = jnp.tanh(o).astype(out_ref.dtype)     # lane-dense (3, S_pad)


# ----------------------------------------------------------------------------
# Wrapper: layout glue + pallas_call.
# ----------------------------------------------------------------------------
def _rep_spec(arr):
    nd = arr.ndim
    return pl.BlockSpec(arr.shape, lambda b: (0,) * nd)


def hidden_embedder_forward(imgs_nchw, msgs, params):
    """imgs_nchw: (B, 3, H, W) float in [0,1]; msgs: (B, L) {0,1}. Returns (B, 3, H, W)."""
    imgs = imgs_nchw.astype(jnp.float32)
    B, Cimg, H, W = imgs.shape
    Hp, Wp = H + 2, W + 2
    S = Hp * Wp
    S_pad = ((S + 127) // 128) * 128          # lane-dense, 128-aligned frame
    L = msgs.shape[1]
    num_blocks = len(params["conv_bns"])
    channels = params["after_concat"][1].shape[0]
    mm_dtype = params["conv_bns"][0][0].dtype

    # TODO(synk): fold this tiny 3-channel halo-embed (and the final crop)
    # into the kernel to drop the extra HBM round-trip of the image.
    imgs_flat = jnp.pad(imgs, ((0, 0), (0, 0), (1, 1), (1, 1))).reshape(B, Cimg, S)
    imgs_flat = jnp.pad(imgs_flat, ((0, 0), (0, 0), (0, S_pad - S)))
    msgs_row = msgs.astype(jnp.float32).reshape(B, 1, L)
    mask = jnp.pad(jnp.ones((H, W), jnp.float32), ((1, 1), (1, 1))).reshape(1, S)
    mask = jnp.pad(mask, ((0, 0), (0, S_pad - S)))

    inputs = [msgs_row, imgs_flat, mask]
    in_specs = [
        pl.BlockSpec((1, 1, L), lambda b: (b, 0, 0)),
        pl.BlockSpec((1, Cimg, S_pad), lambda b: (b, 0, 0)),
        pl.BlockSpec((1, S_pad), lambda b: (0, 0)),
    ]
    weight_arrays = []
    for layer in list(params["conv_bns"]) + [params["after_concat"]]:
        for arr in layer:
            inputs.append(arr)
            in_specs.append(_rep_spec(arr))
            weight_arrays.append(arr)
    for arr in (params["after_msg"], params["final"][0], params["final"][1]):
        inputs.append(arr)
        in_specs.append(_rep_spec(arr))
        weight_arrays.append(arr)

    # Explicit VMEM budget: per-step working set (activations + double-buffered
    # weights/io) with headroom, clamped to the device capacity when known.
    w_bytes = sum(int(a.size) * a.dtype.itemsize for a in weight_arrays)
    act_rows = 6 * channels + 2 * (channels + 3) + 4 * Cimg + L + 16
    vmem_est = 3 * w_bytes + act_rows * S_pad * 4 + 4 * (Cimg * S_pad * 4)
    vmem_limit_bytes = int(min(112 * 2**20, max(32 * 2**20, 2 * vmem_est)))
    try:
        cap = int(pltpu.get_tpu_info().vmem_capacity_bytes)
        vmem_limit_bytes = int(min(vmem_limit_bytes, cap - 2 * 2**20))
    except Exception:
        pass  # best effort; keep the shape-derived limit

    kern = functools.partial(_hidden_encoder_kernel, num_blocks=num_blocks,
                             Wp=Wp, mm_dtype=mm_dtype)
    out_flat = pl.pallas_call(
        kern,
        out_shape=jax.ShapeDtypeStruct((B, 3, S_pad), jnp.float32),
        grid=(B,),
        in_specs=in_specs,
        out_specs=pl.BlockSpec((1, 3, S_pad), lambda b: (b, 0, 0)),
        compiler_params=pltpu.CompilerParams(
            dimension_semantics=("parallel",),
            vmem_limit_bytes=vmem_limit_bytes),
    )(*inputs)

    # Drop the halo/lane padding: (B, 3, S_pad) -> (B, 3, H, W) (NCHW).
    return out_flat[:, :, :S].reshape(B, 3, Hp, Wp)[:, :, 1:1 + H, 1:1 + W]


# ----------------------------------------------------------------------------
# Parameter construction (deterministic, synthetic) + BN folding.
# Conv weights are stored tap-major (9, Cout, Cin) with t = ky*3 + kx,
# pre-cast to the matmul dtype; BN scale/bias are (Cout, 1) f32.  For
# after_concat the input-channel order is [msg(L), encoded(C), img(3)]
# (torch.cat order in videoseal's HiddenEncoder); the msg columns are split
# out into a separate (9*Cout, L) f32 matrix used by the rank-1 path.
# ----------------------------------------------------------------------------
def _bn_fold(key, cout):
    kb, kg, kbe, km, kv = jax.random.split(key, 5)
    cb = jax.random.normal(kb, (cout,), jnp.float32) * 0.05
    gamma = 1.0 + 0.1 * jax.random.normal(kg, (cout,), jnp.float32)
    beta = 0.05 * jax.random.normal(kbe, (cout,), jnp.float32)
    rmean = 0.05 * jax.random.normal(km, (cout,), jnp.float32)
    rvar = 1.0 + 0.1 * jax.random.uniform(kv, (cout,), jnp.float32)
    s = gamma / jnp.sqrt(rvar + BN_EPS)        # eval-mode BN folded after conv
    scale = s.reshape(cout, 1)
    bias = ((cb - rmean) * s + beta).reshape(cout, 1)
    return scale, bias


def _make_conv_bn_params(key, cin, cout, w_dtype):
    kw, kbn = jax.random.split(key)
    w = jax.random.normal(kw, (3, 3, cin, cout), jnp.float32) * 0.1      # HWIO
    w9 = jnp.transpose(w, (0, 1, 3, 2)).reshape(9, cout, cin).astype(w_dtype)
    scale, bias = _bn_fold(kbn, cout)
    return w9, scale, bias


def _make_after_concat_params(key, nbits, channels, cout, w_dtype):
    cin = nbits + channels + 3
    kw, kbn = jax.random.split(key)
    w = jax.random.normal(kw, (3, 3, cin, cout), jnp.float32) * 0.1      # HWIO
    # msg part: (9*Cout, L), row order t*Cout + co
    w_msg = jnp.transpose(w[:, :, :nbits, :], (0, 1, 3, 2)).reshape(9 * cout, nbits)
    # encoded+img part: tap-major (9, Cout, C+3)
    w_xi = jnp.transpose(w[:, :, nbits:, :], (0, 1, 3, 2)).reshape(
        9, cout, channels + 3).astype(w_dtype)
    scale, bias = _bn_fold(kbn, cout)
    return w_xi, scale, bias, w_msg


def make_hidden_encoder_params(key, num_blocks, num_bits, channels,
                               w_dtype=MM_DTYPE):
    keys = jax.random.split(key, num_blocks + 2)
    conv_bns = [_make_conv_bn_params(keys[0], 3, channels, w_dtype)]
    for i in range(num_blocks - 1):
        conv_bns.append(_make_conv_bn_params(keys[1 + i], channels, channels, w_dtype))
    w_xi, s_ac, b_ac, w_msg = _make_after_concat_params(
        keys[num_blocks], num_bits, channels, channels, w_dtype)
    kf1, kf2 = jax.random.split(keys[num_blocks + 1])
    final_w = jnp.transpose(jax.random.normal(kf1, (channels, 3), jnp.float32) * 0.1)  # (3, C)
    final_b = (jax.random.normal(kf2, (3,), jnp.float32) * 0.05).reshape(3, 1)
    return {"conv_bns": conv_bns, "after_concat": (w_xi, s_ac, b_ac),
            "after_msg": w_msg, "final": (final_w, final_b)}


# ----------------------------------------------------------------------------
if __name__ == "__main__":
    B, C_IMG, H, W = 2, 3, 16, 16
    NUM_BLOCKS, NUM_BITS, CHANNELS = 2, 8, 32

    key = jax.random.PRNGKey(0)
    k_img, k_msg, k_par = jax.random.split(key, 3)

    imgs = jax.random.uniform(k_img, (B, C_IMG, H, W), jnp.float32)      # in [0, 1]
    msgs = jax.random.randint(k_msg, (B, NUM_BITS), 0, 2).astype(jnp.int32)
    params = make_hidden_encoder_params(k_par, NUM_BLOCKS, NUM_BITS, CHANNELS)

    fwd = jax.jit(hidden_embedder_forward)
    out = jax.block_until_ready(fwd(imgs, msgs, params))
    assert out.shape == (B, 3, H, W), out.shape
    assert bool(jnp.all(jnp.isfinite(out)))
    print("KERNEL_OK")
</pallas_src>

<mosaic_0001>
module attributes {stable_mosaic.version = 11 : i64} {
  func.func @_hidden_encoder_kernel(%arg0: i32, %arg1: memref<1x1x8xf32, #tpu.memory_space<vmem>>, %arg2: memref<1x3x384xf32, #tpu.memory_space<vmem>>, %arg3: memref<1x384xf32, #tpu.memory_space<vmem>>, %arg4: memref<9x32x3xbf16, #tpu.memory_space<vmem>>, %arg5: memref<32x1xf32, #tpu.memory_space<vmem>>, %arg6: memref<32x1xf32, #tpu.memory_space<vmem>>, %arg7: memref<9x32x32xbf16, #tpu.memory_space<vmem>>, %arg8: memref<32x1xf32, #tpu.memory_space<vmem>>, %arg9: memref<32x1xf32, #tpu.memory_space<vmem>>, %arg10: memref<9x32x35xbf16, #tpu.memory_space<vmem>>, %arg11: memref<32x1xf32, #tpu.memory_space<vmem>>, %arg12: memref<32x1xf32, #tpu.memory_space<vmem>>, %arg13: memref<288x8xf32, #tpu.memory_space<vmem>>, %arg14: memref<3x32xf32, #tpu.memory_space<vmem>>, %arg15: memref<3x1xf32, #tpu.memory_space<vmem>>, %arg16: memref<1x3x384xf32, #tpu.memory_space<vmem>>) attributes {dimension_semantics = [#tpu.dimension_semantics<parallel>], iteration_bounds = array<i64: 2>, scalar_prefetch = 0 : i64, scratch_operands = 0 : i64, tpu.core_type = #tpu.core_type<tc>, window_params = [{transform_indices = @transform_0, window_bounds = array<i64: 1, 1, 8>}, {transform_indices = @transform_1, window_bounds = array<i64: 1, 3, 384>}, {pipeline_mode = #tpu.pipeline_mode<synchronous>, transform_indices = @transform_2, window_bounds = array<i64: 1, 384>}, {pipeline_mode = #tpu.pipeline_mode<synchronous>, transform_indices = @transform_3, window_bounds = array<i64: 9, 32, 3>}, {pipeline_mode = #tpu.pipeline_mode<synchronous>, transform_indices = @transform_4, window_bounds = array<i64: 32, 1>}, {pipeline_mode = #tpu.pipeline_mode<synchronous>, transform_indices = @transform_5, window_bounds = array<i64: 32, 1>}, {pipeline_mode = #tpu.pipeline_mode<synchronous>, transform_indices = @transform_6, window_bounds = array<i64: 9, 32, 32>}, {pipeline_mode = #tpu.pipeline_mode<synchronous>, transform_indices = @transform_7, window_bounds = array<i64: 32, 1>}, {pipeline_mode = #tpu.pipeline_mode<synchronous>, transform_indices = @transform_8, window_bounds = array<i64: 32, 1>}, {pipeline_mode = #tpu.pipeline_mode<synchronous>, transform_indices = @transform_9, window_bounds = array<i64: 9, 32, 35>}, {pipeline_mode = #tpu.pipeline_mode<synchronous>, transform_indices = @transform_10, window_bounds = array<i64: 32, 1>}, {pipeline_mode = #tpu.pipeline_mode<synchronous>, transform_indices = @transform_11, window_bounds = array<i64: 32, 1>}, {pipeline_mode = #tpu.pipeline_mode<synchronous>, transform_indices = @transform_12, window_bounds = array<i64: 288, 8>}, {pipeline_mode = #tpu.pipeline_mode<synchronous>, transform_indices = @transform_13, window_bounds = array<i64: 3, 32>}, {pipeline_mode = #tpu.pipeline_mode<synchronous>, transform_indices = @transform_14, window_bounds = array<i64: 3, 1>}, {transform_indices = @transform_15, window_bounds = array<i64: 1, 3, 384>}]} {
    %c0 = arith.constant 0 : index
    %c0_0 = arith.constant 0 : index
    %0 = vector.load %arg3[%c0, %c0_0] : memref<1x384xf32, #tpu.memory_space<vmem>>, vector<1x384xf32>
    %c0_1 = arith.constant 0 : index
    %c0_2 = arith.constant 0 : index
    %c0_3 = arith.constant 0 : index
    %1 = vector.load %arg2[%c0_1, %c0_2, %c0_3] : memref<1x3x384xf32, #tpu.memory_space<vmem>>, vector<1x3x384xf32>
    %2 = vector.shape_cast %1 : vector<1x3x384xf32> to vector<3x384xf32>
    %cst = arith.constant 2.000000e+00 : f32
    %3 = vector.broadcast %cst : f32 to vector<3x384xf32>
    %4 = arith.mulf %2, %3 : vector<3x384xf32>
    %cst_4 = arith.constant 1.000000e+00 : f32
    %5 = vector.broadcast %cst_4 : f32 to vector<3x384xf32>
    %6 = arith.subf %4, %5 : vector<3x384xf32>
    %7 = vector.broadcast %0 : vector<1x384xf32> to vector<3x384xf32>
    %8 = arith.mulf %6, %7 : vector<3x384xf32>
    %c0_5 = arith.constant 0 : index
    %c0_6 = arith.constant 0 : index
    %c0_7 = arith.constant 0 : index
    %9 = vector.load %arg4[%c0_5, %c0_6, %c0_7] : memref<9x32x3xbf16, #tpu.memory_space<vmem>>, vector<1x32x3xbf16>
    %10 = vector.shape_cast %9 : vector<1x32x3xbf16> to vector<32x3xbf16>
    %c19_i32 = arith.constant 19 : i32
    %11 = tpu.dynamic_rotate %8 by %c19_i32 dim 1 : vector<3x384xf32>, i32 -> vector<3x384xf32>
    %12 = arith.truncf %11 : vector<3x384xf32> to vector<3x384xbf16>
    %cst_8 = arith.constant dense<0.000000e+00> : vector<32x384xf32>
    %13 = tpu.matmul %10, %12, %cst_8 {dimension_numbers = #tpu.dot_dimension_numbers<[1], [0], [0], [1], [0, 0, 1, 1], [], []>} : vector<32x3xbf16>, vector<3x384xbf16>, vector<32x384xf32> -> vector<32x384xf32>
    %c1 = arith.constant 1 : index
    %c0_9 = arith.constant 0 : index
    %c0_10 = arith.constant 0 : index
    %14 = vector.load %arg4[%c1, %c0_9, %c0_10] : memref<9x32x3xbf16, #tpu.memory_space<vmem>>, vector<1x32x3xbf16>
    %15 = vector.shape_cast %14 : vector<1x32x3xbf16> to vector<32x3xbf16>
    %c18_i32 = arith.constant 18 : i32
    %16 = tpu.dynamic_rotate %8 by %c18_i32 dim 1 : vector<3x384xf32>, i32 -> vector<3x384xf32>
    %17 = arith.truncf %16 : vector<3x384xf32> to vector<3x384xbf16>
    %cst_11 = arith.constant dense<0.000000e+00> : vector<32x384xf32>
    %18 = tpu.matmul %15, %17, %cst_11 {dimension_numbers = #tpu.dot_dimension_numbers<[1], [0], [0], [1], [0, 0, 1, 1], [], []>} : vector<32x3xbf16>, vector<3x384xbf16>, vector<32x384xf32> -> vector<32x384xf32>
    %19 = arith.addf %13, %18 : vector<32x384xf32>
    %c2 = arith.constant 2 : index
    %c0_12 = arith.constant 0 : index
    %c0_13 = arith.constant 0 : index
    %20 = vector.load %arg4[%c2, %c0_12, %c0_13] : memref<9x32x3xbf16, #tpu.memory_space<vmem>>, vector<1x32x3xbf16>
    %21 = vector.shape_cast %20 : vector<1x32x3xbf16> to vector<32x3xbf16>
    %c17_i32 = arith.constant 17 : i32
    %22 = tpu.dynamic_rotate %8 by %c17_i32 dim 1 : vector<3x384xf32>, i32 -> vector<3x384xf32>
    %23 = arith.truncf %22 : vector<3x384xf32> to vector<3x384xbf16>
    %cst_14 = arith.constant dense<0.000000e+00> : vector<32x384xf32>
    %24 = tpu.matmul %21, %23, %cst_14 {dimension_numbers = #tpu.dot_dimension_numbers<[1], [0], [0], [1], [0, 0, 1, 1], [], []>} : vector<32x3xbf16>, vector<3x384xbf16>, vector<32x384xf32> -> vector<32x384xf32>
    %25 = arith.addf %19, %24 : vector<32x384xf32>
    %c3 = arith.constant 3 : index
    %c0_15 = arith.constant 0 : index
    %c0_16 = arith.constant 0 : index
    %26 = vector.load %arg4[%c3, %c0_15, %c0_16] : memref<9x32x3xbf16, #tpu.memory_space<vmem>>, vector<1x32x3xbf16>
    %27 = vector.shape_cast %26 : vector<1x32x3xbf16> to vector<32x3xbf16>
    %c1_i32 = arith.constant 1 : i32
    %28 = tpu.dynamic_rotate %8 by %c1_i32 dim 1 : vector<3x384xf32>, i32 -> vector<3x384xf32>
    %29 = arith.truncf %28 : vector<3x384xf32> to vector<3x384xbf16>
    %cst_17 = arith.constant dense<0.000000e+00> : vector<32x384xf32>
    %30 = tpu.matmul %27, %29, %cst_17 {dimension_numbers = #tpu.dot_dimension_numbers<[1], [0], [0], [1], [0, 0, 1, 1], [], []>} : vector<32x3xbf16>, vector<3x384xbf16>, vector<32x384xf32> -> vector<32x384xf32>
    %31 = arith.addf %25, %30 : vector<32x384xf32>
    %c4 = arith.constant 4 : index
    %c0_18 = arith.constant 0 : index
    %c0_19 = arith.constant 0 : index
    %32 = vector.load %arg4[%c4, %c0_18, %c0_19] : memref<9x32x3xbf16, #tpu.memory_space<vmem>>, vector<1x32x3xbf16>
    %33 = vector.shape_cast %32 : vector<1x32x3xbf16> to vector<32x3xbf16>
    %34 = arith.truncf %8 : vector<3x384xf32> to vector<3x384xbf16>
    %cst_20 = arith.constant dense<0.000000e+00> : vector<32x384xf32>
    %35 = tpu.matmul %33, %34, %cst_20 {dimension_numbers = #tpu.dot_dimension_numbers<[1], [0], [0], [1], [0, 0, 1, 1], [], []>} : vector<32x3xbf16>, vector<3x384xbf16>, vector<32x384xf32> -> vector<32x384xf32>
    %36 = arith.addf %31, %35 : vector<32x384xf32>
    %c5 = arith.constant 5 : index
    %c0_21 = arith.constant 0 : index
    %c0_22 = arith.constant 0 : index
    %37 = vector.load %arg4[%c5, %c0_21, %c0_22] : memref<9x32x3xbf16, #tpu.memory_space<vmem>>, vector<1x32x3xbf16>
    %38 = vector.shape_cast %37 : vector<1x32x3xbf16> to vector<32x3xbf16>
    %c383_i32 = arith.constant 383 : i32
    %39 = tpu.dynamic_rotate %8 by %c383_i32 dim 1 : vector<3x384xf32>, i32 -> vector<3x384xf32>
    %40 = arith.truncf %39 : vector<3x384xf32> to vector<3x384xbf16>
    %cst_23 = arith.constant dense<0.000000e+00> : vector<32x384xf32>
    %41 = tpu.matmul %38, %40, %cst_23 {dimension_numbers = #tpu.dot_dimension_numbers<[1], [0], [0], [1], [0, 0, 1, 1], [], []>} : vector<32x3xbf16>, vector<3x384xbf16>, vector<32x384xf32> -> vector<32x384xf32>
    %42 = arith.addf %36, %41 : vector<32x384xf32>
    %c6 = arith.constant 6 : index
    %c0_24 = arith.constant 0 : index
    %c0_25 = arith.constant 0 : index
    %43 = vector.load %arg4[%c6, %c0_24, %c0_25] : memref<9x32x3xbf16, #tpu.memory_space<vmem>>, vector<1x32x3xbf16>
    %44 = vector.shape_cast %43 : vector<1x32x3xbf16> to vector<32x3xbf16>
    %c367_i32 = arith.constant 367 : i32
    %45 = tpu.dynamic_rotate %8 by %c367_i32 dim 1 : vector<3x384xf32>, i32 -> vector<3x384xf32>
    %46 = arith.truncf %45 : vector<3x384xf32> to vector<3x384xbf16>
    %cst_26 = arith.constant dense<0.000000e+00> : vector<32x384xf32>
    %47 = tpu.matmul %44, %46, %cst_26 {dimension_numbers = #tpu.dot_dimension_numbers<[1], [0], [0], [1], [0, 0, 1, 1], [], []>} : vector<32x3xbf16>, vector<3x384xbf16>, vector<32x384xf32> -> vector<32x384xf32>
    %48 = arith.addf %42, %47 : vector<32x384xf32>
    %c7 = arith.constant 7 : index
    %c0_27 = arith.constant 0 : index
    %c0_28 = arith.constant 0 : index
    %49 = vector.load %arg4[%c7, %c0_27, %c0_28] : memref<9x32x3xbf16, #tpu.memory_space<vmem>>, vector<1x32x3xbf16>
    %50 = vector.shape_cast %49 : vector<1x32x3xbf16> to vector<32x3xbf16>
    %c366_i32 = arith.constant 366 : i32
    %51 = tpu.dynamic_rotate %8 by %c366_i32 dim 1 : vector<3x384xf32>, i32 -> vector<3x384xf32>
    %52 = arith.truncf %51 : vector<3x384xf32> to vector<3x384xbf16>
    %cst_29 = arith.constant dense<0.000000e+00> : vector<32x384xf32>
    %53 = tpu.matmul %50, %52, %cst_29 {dimension_numbers = #tpu.dot_dimension_numbers<[1], [0], [0], [1], [0, 0, 1, 1], [], []>} : vector<32x3xbf16>, vector<3x384xbf16>, vector<32x384xf32> -> vector<32x384xf32>
    %54 = arith.addf %48, %53 : vector<32x384xf32>
    %c8 = arith.constant 8 : index
    %c0_30 = arith.constant 0 : index
    %c0_31 = arith.constant 0 : index
    %55 = vector.load %arg4[%c8, %c0_30, %c0_31] : memref<9x32x3xbf16, #tpu.memory_space<vmem>>, vector<1x32x3xbf16>
    %56 = vector.shape_cast %55 : vector<1x32x3xbf16> to vector<32x3xbf16>
    %c365_i32 = arith.constant 365 : i32
    %57 = tpu.dynamic_rotate %8 by %c365_i32 dim 1 : vector<3x384xf32>, i32 -> vector<3x384xf32>
    %58 = arith.truncf %57 : vector<3x384xf32> to vector<3x384xbf16>
    %cst_32 = arith.constant dense<0.000000e+00> : vector<32x384xf32>
    %59 = tpu.matmul %56, %58, %cst_32 {dimension_numbers = #tpu.dot_dimension_numbers<[1], [0], [0], [1], [0, 0, 1, 1], [], []>} : vector<32x3xbf16>, vector<3x384xbf16>, vector<32x384xf32> -> vector<32x384xf32>
    %60 = arith.addf %54, %59 : vector<32x384xf32>
    %c0_33 = arith.constant 0 : index
    %c0_34 = arith.constant 0 : index
    %61 = vector.load %arg5[%c0_33, %c0_34] : memref<32x1xf32, #tpu.memory_space<vmem>>, vector<32x1xf32>
    %62 = vector.broadcast %61 : vector<32x1xf32> to vector<32x384xf32>
    %63 = arith.mulf %60, %62 : vector<32x384xf32>
    %c0_35 = arith.constant 0 : index
    %c0_36 = arith.constant 0 : index
    %64 = vector.load %arg6[%c0_35, %c0_36] : memref<32x1xf32, #tpu.memory_space<vmem>>, vector<32x1xf32>
    %65 = vector.broadcast %64 : vector<32x1xf32> to vector<32x384xf32>
    %66 = arith.addf %63, %65 : vector<32x384xf32>
    %cst_37 = arith.constant 5.000000e-01 : f32
    %67 = vector.broadcast %cst_37 : f32 to vector<32x384xf32>
    %68 = arith.mulf %67, %66 : vector<32x384xf32>
    %cst_38 = arith.constant 0.707106769 : f32
    %69 = vector.broadcast %cst_38 : f32 to vector<32x384xf32>
    %70 = arith.mulf %66, %69 : vector<32x384xf32>
    %71 = math.absf %70 : vector<32x384xf32>
    %cst_39 = arith.constant 0.327591091 : f32
    %72 = vector.broadcast %cst_39 : f32 to vector<32x384xf32>
    %73 = arith.mulf %72, %71 : vector<32x384xf32>
    %cst_40 = arith.constant 1.000000e+00 : f32
    %74 = vector.broadcast %cst_40 : f32 to vector<32x384xf32>
    %75 = arith.addf %74, %73 : vector<32x384xf32>
    %cst_41 = arith.constant 1.000000e+00 : f32
    %76 = vector.broadcast %cst_41 : f32 to vector<32x384xf32>
    %77 = arith.divf %76, %75 : vector<32x384xf32>
    %cst_42 = arith.constant 1.06140542 : f32
    %78 = vector.broadcast %cst_42 : f32 to vector<32x384xf32>
    %79 = arith.mulf %78, %77 : vector<32x384xf32>
    %cst_43 = arith.constant -1.45315206 : f32
    %80 = vector.broadcast %cst_43 : f32 to vector<32x384xf32>
    %81 = arith.addf %79, %80 : vector<32x384xf32>
    %82 = arith.mulf %81, %77 : vector<32x384xf32>
    %cst_44 = arith.constant 1.42141378 : f32
    %83 = vector.broadcast %cst_44 : f32 to vector<32x384xf32>
    %84 = arith.addf %82, %83 : vector<32x384xf32>
    %85 = arith.mulf %84, %77 : vector<32x384xf32>
    %cst_45 = arith.constant -0.284496725 : f32
    %86 = vector.broadcast %cst_45 : f32 to vector<32x384xf32>
    %87 = arith.addf %85, %86 : vector<32x384xf32>
    %88 = arith.mulf %87, %77 : vector<32x384xf32>
    %cst_46 = arith.constant 0.254829586 : f32
    %89 = vector.broadcast %cst_46 : f32 to vector<32x384xf32>
    %90 = arith.addf %88, %89 : vector<32x384xf32>
    %91 = arith.mulf %90, %77 : vector<32x384xf32>
    %cst_47 = arith.constant 0.000000e+00 : f32
    %92 = vector.broadcast %cst_47 : f32 to vector<32x384xf32>
    %93 = arith.subf %92, %71 : vector<32x384xf32>
    %94 = arith.mulf %93, %71 : vector<32x384xf32>
    %95 = math.exp %94 : vector<32x384xf32>
    %96 = arith.mulf %91, %95 : vector<32x384xf32>
    %cst_48 = arith.constant 1.000000e+00 : f32
    %97 = vector.broadcast %cst_48 : f32 to vector<32x384xf32>
    %98 = arith.subf %97, %96 : vector<32x384xf32>
    %cst_49 = arith.constant 0.000000e+00 : f32
    %99 = vector.broadcast %cst_49 : f32 to vector<32x384xf32>
    %100 = arith.cmpf olt, %70, %99 : vector<32x384xf32>
    %cst_50 = arith.constant 0.000000e+00 : f32
    %101 = vector.broadcast %cst_50 : f32 to vector<32x384xf32>
    %102 = arith.subf %101, %98 : vector<32x384xf32>
    %103 = arith.select %100, %102, %98 : vector<32x384xi1>, vector<32x384xf32>
    %cst_51 = arith.constant 1.000000e+00 : f32
    %104 = vector.broadcast %cst_51 : f32 to vector<32x384xf32>
    %105 = arith.addf %104, %103 : vector<32x384xf32>
    %106 = arith.mulf %68, %105 : vector<32x384xf32>
    %107 = vector.broadcast %0 : vector<1x384xf32> to vector<32x384xf32>
    %108 = arith.mulf %106, %107 : vector<32x384xf32>
    %109 = arith.truncf %108 : vector<32x384xf32> to vector<32x384xbf16>
    %c0_52 = arith.constant 0 : index
    %c0_53 = arith.constant 0 : index
    %c0_54 = arith.constant 0 : index
    %110 = vector.load %arg7[%c0_52, %c0_53, %c0_54] : memref<9x32x32xbf16, #tpu.memory_space<vmem>>, vector<1x32x32xbf16>
    %111 = vector.shape_cast %110 : vector<1x32x32xbf16> to vector<32x32xbf16>
    %cst_55 = arith.constant dense<0.000000e+00> : vector<32x384xf32>
    %112 = tpu.matmul %111, %109, %cst_55 {dimension_numbers = #tpu.dot_dimension_numbers<[1], [0], [0], [1], [0, 0, 1, 1], [], []>} : vector<32x32xbf16>, vector<32x384xbf16>, vector<32x384xf32> -> vector<32x384xf32>
    %c19_i32_56 = arith.constant 19 : i32
    %113 = tpu.dynamic_rotate %112 by %c19_i32_56 dim 1 : vector<32x384xf32>, i32 -> vector<32x384xf32>
    %c1_57 = arith.constant 1 : index
    %c0_58 = arith.constant 0 : index
    %c0_59 = arith.constant 0 : index
    %114 = vector.load %arg7[%c1_57, %c0_58, %c0_59] : memref<9x32x32xbf16, #tpu.memory_space<vmem>>, vector<1x32x32xbf16>
    %115 = vector.shape_cast %114 : vector<1x32x32xbf16> to vector<32x32xbf16>
    %cst_60 = arith.constant dense<0.000000e+00> : vector<32x384xf32>
    %116 = tpu.matmul %115, %109, %cst_60 {dimension_numbers = #tpu.dot_dimension_numbers<[1], [0], [0], [1], [0, 0, 1, 1], [], []>} : vector<32x32xbf16>, vector<32x384xbf16>, vector<32x384xf32> -> vector<32x384xf32>
    %c18_i32_61 = arith.constant 18 : i32
    %117 = tpu.dynamic_rotate %116 by %c18_i32_61 dim 1 : vector<32x384xf32>, i32 -> vector<32x384xf32>
    %118 = arith.addf %113, %117 : vector<32x384xf32>
    %c2_62 = arith.constant 2 : index
    %c0_63 = arith.constant 0 : index
    %c0_64 = arith.constant 0 : index
    %119 = vector.load %arg7[%c2_62, %c0_63, %c0_64] : memref<9x32x32xbf16, #tpu.memory_space<vmem>>, vector<1x32x32xbf16>
    %120 = vector.shape_cast %119 : vector<1x32x32xbf16> to vector<32x32xbf16>
    %cst_65 = arith.constant dense<0.000000e+00> : vector<32x384xf32>
    %121 = tpu.matmul %120, %109, %cst_65 {dimension_numbers = #tpu.dot_dimension_numbers<[1], [0], [0], [1], [0, 0, 1, 1], [], []>} : vector<32x32xbf16>, vector<32x384xbf16>, vector<32x384xf32> -> vector<32x384xf32>
    %c17_i32_66 = arith.constant 17 : i32
    %122 = tpu.dynamic_rotate %121 by %c17_i32_66 dim 1 : vector<32x384xf32>, i32 -> vector<32x384xf32>
    %123 = arith.addf %118, %122 : vector<32x384xf32>
    %c3_67 = arith.constant 3 : index
    %c0_68 = arith.constant 0 : index
    %c0_69 = arith.constant 0 : index
    %124 = vector.load %arg7[%c3_67, %c0_68, %c0_69] : memref<9x32x32xbf16, #tpu.memory_space<vmem>>, vector<1x32x32xbf16>
    %125 = vector.shape_cast %124 : vector<1x32x32xbf16> to vector<32x32xbf16>
    %cst_70 = arith.constant dense<0.000000e+00> : vector<32x384xf32>
    %126 = tpu.matmul %125, %109, %cst_70 {dimension_numbers = #tpu.dot_dimension_numbers<[1], [0], [0], [1], [0, 0, 1, 1], [], []>} : vector<32x32xbf16>, vector<32x384xbf16>, vector<32x384xf32> -> vector<32x384xf32>
    %c1_i32_71 = arith.constant 1 : i32
    %127 = tpu.dynamic_rotate %126 by %c1_i32_71 dim 1 : vector<32x384xf32>, i32 -> vector<32x384xf32>
    %128 = arith.addf %123, %127 : vector<32x384xf32>
    %c4_72 = arith.constant 4 : index
    %c0_73 = arith.constant 0 : index
    %c0_74 = arith.constant 0 : index
    %129 = vector.load %arg7[%c4_72, %c0_73, %c0_74] : memref<9x32x32xbf16, #tpu.memory_space<vmem>>, vector<1x32x32xbf16>
    %130 = vector.shape_cast %129 : vector<1x32x32xbf16> to vector<32x32xbf16>
    %cst_75 = arith.constant dense<0.000000e+00> : vector<32x384xf32>
    %131 = tpu.matmul %130, %109, %cst_75 {dimension_numbers = #tpu.dot_dimension_numbers<[1], [0], [0], [1], [0, 0, 1, 1], [], []>} : vector<32x32xbf16>, vector<32x384xbf16>, vector<32x384xf32> -> vector<32x384xf32>
    %132 = arith.addf %128, %131 : vector<32x384xf32>
    %c5_76 = arith.constant 5 : index
    %c0_77 = arith.constant 0 : index
    %c0_78 = arith.constant 0 : index
    %133 = vector.load %arg7[%c5_76, %c0_77, %c0_78] : memref<9x32x32xbf16, #tpu.memory_space<vmem>>, vector<1x32x32xbf16>
    %134 = vector.shape_cast %133 : vector<1x32x32xbf16> to vector<32x32xbf16>
    %cst_79 = arith.constant dense<0.000000e+00> : vector<32x384xf32>
    %135 = tpu.matmul %134, %109, %cst_79 {dimension_numbers = #tpu.dot_dimension_numbers<[1], [0], [0], [1], [0, 0, 1, 1], [], []>} : vector<32x32xbf16>, vector<32x384xbf16>, vector<32x384xf32> -> vector<32x384xf32>
    %c383_i32_80 = arith.constant 383 : i32
    %136 = tpu.dynamic_rotate %135 by %c383_i32_80 dim 1 : vector<32x384xf32>, i32 -> vector<32x384xf32>
    %137 = arith.addf %132, %136 : vector<32x384xf32>
    %c6_81 = arith.constant 6 : index
    %c0_82 = arith.constant 0 : index
    %c0_83 = arith.constant 0 : index
    %138 = vector.load %arg7[%c6_81, %c0_82, %c0_83] : memref<9x32x32xbf16, #tpu.memory_space<vmem>>, vector<1x32x32xbf16>
    %139 = vector.shape_cast %138 : vector<1x32x32xbf16> to vector<32x32xbf16>
    %cst_84 = arith.constant dense<0.000000e+00> : vector<32x384xf32>
    %140 = tpu.matmul %139, %109, %cst_84 {dimension_numbers = #tpu.dot_dimension_numbers<[1], [0], [0], [1], [0, 0, 1, 1], [], []>} : vector<32x32xbf16>, vector<32x384xbf16>, vector<32x384xf32> -> vector<32x384xf32>
    %c367_i32_85 = arith.constant 367 : i32
    %141 = tpu.dynamic_rotate %140 by %c367_i32_85 dim 1 : vector<32x384xf32>, i32 -> vector<32x384xf32>
    %142 = arith.addf %137, %141 : vector<32x384xf32>
    %c7_86 = arith.constant 7 : index
    %c0_87 = arith.constant 0 : index
    %c0_88 = arith.constant 0 : index
    %143 = vector.load %arg7[%c7_86, %c0_87, %c0_88] : memref<9x32x32xbf16, #tpu.memory_space<vmem>>, vector<1x32x32xbf16>
    %144 = vector.shape_cast %143 : vector<1x32x32xbf16> to vector<32x32xbf16>
    %cst_89 = arith.constant dense<0.000000e+00> : vector<32x384xf32>
    %145 = tpu.matmul %144, %109, %cst_89 {dimension_numbers = #tpu.dot_dimension_numbers<[1], [0], [0], [1], [0, 0, 1, 1], [], []>} : vector<32x32xbf16>, vector<32x384xbf16>, vector<32x384xf32> -> vector<32x384xf32>
    %c366_i32_90 = arith.constant 366 : i32
    %146 = tpu.dynamic_rotate %145 by %c366_i32_90 dim 1 : vector<32x384xf32>, i32 -> vector<32x384xf32>
    %147 = arith.addf %142, %146 : vector<32x384xf32>
    %c8_91 = arith.constant 8 : index
    %c0_92 = arith.constant 0 : index
    %c0_93 = arith.constant 0 : index
    %148 = vector.load %arg7[%c8_91, %c0_92, %c0_93] : memref<9x32x32xbf16, #tpu.memory_space<vmem>>, vector<1x32x32xbf16>
    %149 = vector.shape_cast %148 : vector<1x32x32xbf16> to vector<32x32xbf16>
    %cst_94 = arith.constant dense<0.000000e+00> : vector<32x384xf32>
    %150 = tpu.matmul %149, %109, %cst_94 {dimension_numbers = #tpu.dot_dimension_numbers<[1], [0], [0], [1], [0, 0, 1, 1], [], []>} : vector<32x32xbf16>, vector<32x384xbf16>, vector<32x384xf32> -> vector<32x384xf32>
    %c365_i32_95 = arith.constant 365 : i32
    %151 = tpu.dynamic_rotate %150 by %c365_i32_95 dim 1 : vector<32x384xf32>, i32 -> vector<32x384xf32>
    %152 = arith.addf %147, %151 : vector<32x384xf32>
    %c0_96 = arith.constant 0 : index
    %c0_97 = arith.constant 0 : index
    %153 = vector.load %arg8[%c0_96, %c0_97] : memref<32x1xf32, #tpu.memory_space<vmem>>, vector<32x1xf32>
    %154 = vector.broadcast %153 : vector<32x1xf32> to vector<32x384xf32>
    %155 = arith.mulf %152, %154 : vector<32x384xf32>
    %c0_98 = arith.constant 0 : index
    %c0_99 = arith.constant 0 : index
    %156 = vector.load %arg9[%c0_98, %c0_99] : memref<32x1xf32, #tpu.memory_space<vmem>>, vector<32x1xf32>
    %157 = vector.broadcast %156 : vector<32x1xf32> to vector<32x384xf32>
    %158 = arith.addf %155, %157 : vector<32x384xf32>
    %cst_100 = arith.constant 5.000000e-01 : f32
    %159 = vector.broadcast %cst_100 : f32 to vector<32x384xf32>
    %160 = arith.mulf %159, %158 : vector<32x384xf32>
    %cst_101 = arith.constant 0.707106769 : f32
    %161 = vector.broadcast %cst_101 : f32 to vector<32x384xf32>
    %162 = arith.mulf %158, %161 : vector<32x384xf32>
    %163 = math.absf %162 : vector<32x384xf32>
    %cst_102 = arith.constant 0.327591091 : f32
    %164 = vector.broadcast %cst_102 : f32 to vector<32x384xf32>
    %165 = arith.mulf %164, %163 : vector<32x384xf32>
    %cst_103 = arith.constant 1.000000e+00 : f32
    %166 = vector.broadcast %cst_103 : f32 to vector<32x384xf32>
    %167 = arith.addf %166, %165 : vector<32x384xf32>
    %cst_104 = arith.constant 1.000000e+00 : f32
    %168 = vector.broadcast %cst_104 : f32 to vector<32x384xf32>
    %169 = arith.divf %168, %167 : vector<32x384xf32>
    %cst_105 = arith.constant 1.06140542 : f32
    %170 = vector.broadcast %cst_105 : f32 to vector<32x384xf32>
    %171 = arith.mulf %170, %169 : vector<32x384xf32>
    %cst_106 = arith.constant -1.45315206 : f32
    %172 = vector.broadcast %cst_106 : f32 to vector<32x384xf32>
    %173 = arith.addf %171, %172 : vector<32x384xf32>
    %174 = arith.mulf %173, %169 : vector<32x384xf32>
    %cst_107 = arith.constant 1.42141378 : f32
    %175 = vector.broadcast %cst_107 : f32 to vector<32x384xf32>
    %176 = arith.addf %174, %175 : vector<32x384xf32>
    %177 = arith.mulf %176, %169 : vector<32x384xf32>
    %cst_108 = arith.constant -0.284496725 : f32
    %178 = vector.broadcast %cst_108 : f32 to vector<32x384xf32>
    %179 = arith.addf %177, %178 : vector<32x384xf32>
    %180 = arith.mulf %179, %169 : vector<32x384xf32>
    %cst_109 = arith.constant 0.254829586 : f32
    %181 = vector.broadcast %cst_109 : f32 to vector<32x384xf32>
    %182 = arith.addf %180, %181 : vector<32x384xf32>
    %183 = arith.mulf %182, %169 : vector<32x384xf32>
    %cst_110 = arith.constant 0.000000e+00 : f32
    %184 = vector.broadcast %cst_110 : f32 to vector<32x384xf32>
    %185 = arith.subf %184, %163 : vector<32x384xf32>
    %186 = arith.mulf %185, %163 : vector<32x384xf32>
    %187 = math.exp %186 : vector<32x384xf32>
    %188 = arith.mulf %183, %187 : vector<32x384xf32>
    %cst_111 = arith.constant 1.000000e+00 : f32
    %189 = vector.broadcast %cst_111 : f32 to vector<32x384xf32>
    %190 = arith.subf %189, %188 : vector<32x384xf32>
    %cst_112 = arith.constant 0.000000e+00 : f32
    %191 = vector.broadcast %cst_112 : f32 to vector<32x384xf32>
    %192 = arith.cmpf olt, %162, %191 : vector<32x384xf32>
    %cst_113 = arith.constant 0.000000e+00 : f32
    %193 = vector.broadcast %cst_113 : f32 to vector<32x384xf32>
    %194 = arith.subf %193, %190 : vector<32x384xf32>
    %195 = arith.select %192, %194, %190 : vector<32x384xi1>, vector<32x384xf32>
    %cst_114 = arith.constant 1.000000e+00 : f32
    %196 = vector.broadcast %cst_114 : f32 to vector<32x384xf32>
    %197 = arith.addf %196, %195 : vector<32x384xf32>
    %198 = arith.mulf %160, %197 : vector<32x384xf32>
    %199 = vector.broadcast %0 : vector<1x384xf32> to vector<32x384xf32>
    %200 = arith.mulf %198, %199 : vector<32x384xf32>
    %201 = tpu.concatenate %200, %8 in 0 : vector<32x384xf32>, vector<3x384xf32> -> vector<35x384xf32>
    %202 = arith.truncf %201 : vector<35x384xf32> to vector<35x384xbf16>
    %c0_115 = arith.constant 0 : index
    %c0_116 = arith.constant 0 : index
    %c0_117 = arith.constant 0 : index
    %203 = vector.load %arg10[%c0_115, %c0_116, %c0_117] : memref<9x32x35xbf16, #tpu.memory_space<vmem>>, vector<1x32x35xbf16>
    %204 = vector.shape_cast %203 : vector<1x32x35xbf16> to vector<32x35xbf16>
    %cst_118 = arith.constant dense<0.000000e+00> : vector<32x384xf32>
    %205 = tpu.matmul %204, %202, %cst_118 {dimension_numbers = #tpu.dot_dimension_numbers<[1], [0], [0], [1], [0, 0, 1, 1], [], []>} : vector<32x35xbf16>, vector<35x384xbf16>, vector<32x384xf32> -> vector<32x384xf32>
    %c19_i32_119 = arith.constant 19 : i32
    %206 = tpu.dynamic_rotate %205 by %c19_i32_119 dim 1 : vector<32x384xf32>, i32 -> vector<32x384xf32>
    %c1_120 = arith.constant 1 : index
    %c0_121 = arith.constant 0 : index
    %c0_122 = arith.constant 0 : index
    %207 = vector.load %arg10[%c1_120, %c0_121, %c0_122] : memref<9x32x35xbf16, #tpu.memory_space<vmem>>, vector<1x32x35xbf16>
    %208 = vector.shape_cast %207 : vector<1x32x35xbf16> to vector<32x35xbf16>
    %cst_123 = arith.constant dense<0.000000e+00> : vector<32x384xf32>
    %209 = tpu.matmul %208, %202, %cst_123 {dimension_numbers = #tpu.dot_dimension_numbers<[1], [0], [0], [1], [0, 0, 1, 1], [], []>} : vector<32x35xbf16>, vector<35x384xbf16>, vector<32x384xf32> -> vector<32x384xf32>
    %c18_i32_124 = arith.constant 18 : i32
    %210 = tpu.dynamic_rotate %209 by %c18_i32_124 dim 1 : vector<32x384xf32>, i32 -> vector<32x384xf32>
    %211 = arith.addf %206, %210 : vector<32x384xf32>
    %c2_125 = arith.constant 2 : index
    %c0_126 = arith.constant 0 : index
    %c0_127 = arith.constant 0 : index
    %212 = vector.load %arg10[%c2_125, %c0_126, %c0_127] : memref<9x32x35xbf16, #tpu.memory_space<vmem>>, vector<1x32x35xbf16>
    %213 = vector.shape_cast %212 : vector<1x32x35xbf16> to vector<32x35xbf16>
    %cst_128 = arith.constant dense<0.000000e+00> : vector<32x384xf32>
    %214 = tpu.matmul %213, %202, %cst_128 {dimension_numbers = #tpu.dot_dimension_numbers<[1], [0], [0], [1], [0, 0, 1, 1], [], []>} : vector<32x35xbf16>, vector<35x384xbf16>, vector<32x384xf32> -> vector<32x384xf32>
    %c17_i32_129 = arith.constant 17 : i32
    %215 = tpu.dynamic_rotate %214 by %c17_i32_129 dim 1 : vector<32x384xf32>, i32 -> vector<32x384xf32>
    %216 = arith.addf %211, %215 : vector<32x384xf32>
    %c3_130 = arith.constant 3 : index
    %c0_131 = arith.constant 0 : index
    %c0_132 = arith.constant 0 : index
    %217 = vector.load %arg10[%c3_130, %c0_131, %c0_132] : memref<9x32x35xbf16, #tpu.memory_space<vmem>>, vector<1x32x35xbf16>
    %218 = vector.shape_cast %217 : vector<1x32x35xbf16> to vector<32x35xbf16>
    %cst_133 = arith.constant dense<0.000000e+00> : vector<32x384xf32>
    %219 = tpu.matmul %218, %202, %cst_133 {dimension_numbers = #tpu.dot_dimension_numbers<[1], [0], [0], [1], [0, 0, 1, 1], [], []>} : vector<32x35xbf16>, vector<35x384xbf16>, vector<32x384xf32> -> vector<32x384xf32>
    %c1_i32_134 = arith.constant 1 : i32
    %220 = tpu.dynamic_rotate %219 by %c1_i32_134 dim 1 : vector<32x384xf32>, i32 -> vector<32x384xf32>
    %221 = arith.addf %216, %220 : vector<32x384xf32>
    %c4_135 = arith.constant 4 : index
    %c0_136 = arith.constant 0 : index
    %c0_137 = arith.constant 0 : index
    %222 = vector.load %arg10[%c4_135, %c0_136, %c0_137] : memref<9x32x35xbf16, #tpu.memory_space<vmem>>, vector<1x32x35xbf16>
    %223 = vector.shape_cast %222 : vector<1x32x35xbf16> to vector<32x35xbf16>
    %cst_138 = arith.constant dense<0.000000e+00> : vector<32x384xf32>
    %224 = tpu.matmul %223, %202, %cst_138 {dimension_numbers = #tpu.dot_dimension_numbers<[1], [0], [0], [1], [0, 0, 1, 1], [], []>} : vector<32x35xbf16>, vector<35x384xbf16>, vector<32x384xf32> -> vector<32x384xf32>
    %225 = arith.addf %221, %224 : vector<32x384xf32>
    %c5_139 = arith.constant 5 : index
    %c0_140 = arith.constant 0 : index
    %c0_141 = arith.constant 0 : index
    %226 = vector.load %arg10[%c5_139, %c0_140, %c0_141] : memref<9x32x35xbf16, #tpu.memory_space<vmem>>, vector<1x32x35xbf16>
    %227 = vector.shape_cast %226 : vector<1x32x35xbf16> to vector<32x35xbf16>
    %cst_142 = arith.constant dense<0.000000e+00> : vector<32x384xf32>
    %228 = tpu.matmul %227, %202, %cst_142 {dimension_numbers = #tpu.dot_dimension_numbers<[1], [0], [0], [1], [0, 0, 1, 1], [], []>} : vector<32x35xbf16>, vector<35x384xbf16>, vector<32x384xf32> -> vector<32x384xf32>
    %c383_i32_143 = arith.constant 383 : i32
    %229 = tpu.dynamic_rotate %228 by %c383_i32_143 dim 1 : vector<32x384xf32>, i32 -> vector<32x384xf32>
    %230 = arith.addf %225, %229 : vector<32x384xf32>
    %c6_144 = arith.constant 6 : index
    %c0_145 = arith.constant 0 : index
    %c0_146 = arith.constant 0 : index
    %231 = vector.load %arg10[%c6_144, %c0_145, %c0_146] : memref<9x32x35xbf16, #tpu.memory_space<vmem>>, vector<1x32x35xbf16>
    %232 = vector.shape_cast %231 : vector<1x32x35xbf16> to vector<32x35xbf16>
    %cst_147 = arith.constant dense<0.000000e+00> : vector<32x384xf32>
    %233 = tpu.matmul %232, %202, %cst_147 {dimension_numbers = #tpu.dot_dimension_numbers<[1], [0], [0], [1], [0, 0, 1, 1], [], []>} : vector<32x35xbf16>, vector<35x384xbf16>, vector<32x384xf32> -> vector<32x384xf32>
    %c367_i32_148 = arith.constant 367 : i32
    %234 = tpu.dynamic_rotate %233 by %c367_i32_148 dim 1 : vector<32x384xf32>, i32 -> vector<32x384xf32>
    %235 = arith.addf %230, %234 : vector<32x384xf32>
    %c7_149 = arith.constant 7 : index
    %c0_150 = arith.constant 0 : index
    %c0_151 = arith.constant 0 : index
    %236 = vector.load %arg10[%c7_149, %c0_150, %c0_151] : memref<9x32x35xbf16, #tpu.memory_space<vmem>>, vector<1x32x35xbf16>
    %237 = vector.shape_cast %236 : vector<1x32x35xbf16> to vector<32x35xbf16>
    %cst_152 = arith.constant dense<0.000000e+00> : vector<32x384xf32>
    %238 = tpu.matmul %237, %202, %cst_152 {dimension_numbers = #tpu.dot_dimension_numbers<[1], [0], [0], [1], [0, 0, 1, 1], [], []>} : vector<32x35xbf16>, vector<35x384xbf16>, vector<32x384xf32> -> vector<32x384xf32>
    %c366_i32_153 = arith.constant 366 : i32
    %239 = tpu.dynamic_rotate %238 by %c366_i32_153 dim 1 : vector<32x384xf32>, i32 -> vector<32x384xf32>
    %240 = arith.addf %235, %239 : vector<32x384xf32>
    %c8_154 = arith.constant 8 : index
    %c0_155 = arith.constant 0 : index
    %c0_156 = arith.constant 0 : index
    %241 = vector.load %arg10[%c8_154, %c0_155, %c0_156] : memref<9x32x35xbf16, #tpu.memory_space<vmem>>, vector<1x32x35xbf16>
    %242 = vector.shape_cast %241 : vector<1x32x35xbf16> to vector<32x35xbf16>
    %cst_157 = arith.constant dense<0.000000e+00> : vector<32x384xf32>
    %243 = tpu.matmul %242, %202, %cst_157 {dimension_numbers = #tpu.dot_dimension_numbers<[1], [0], [0], [1], [0, 0, 1, 1], [], []>} : vector<32x35xbf16>, vector<35x384xbf16>, vector<32x384xf32> -> vector<32x384xf32>
    %c365_i32_158 = arith.constant 365 : i32
    %244 = tpu.dynamic_rotate %243 by %c365_i32_158 dim 1 : vector<32x384xf32>, i32 -> vector<32x384xf32>
    %245 = arith.addf %240, %244 : vector<32x384xf32>
    %c0_159 = arith.constant 0 : index
    %c0_160 = arith.constant 0 : index
    %c0_161 = arith.constant 0 : index
    %246 = vector.load %arg1[%c0_159, %c0_160, %c0_161] : memref<1x1x8xf32, #tpu.memory_space<vmem>>, vector<1x1x8xf32>
    %247 = vector.shape_cast %246 : vector<1x1x8xf32> to vector<1x8xf32>
    %cst_162 = arith.constant 2.000000e+00 : f32
    %248 = vector.broadcast %cst_162 : f32 to vector<1x8xf32>
    %249 = arith.mulf %248, %247 : vector<1x8xf32>
    %cst_163 = arith.constant 1.000000e+00 : f32
    %250 = vector.broadcast %cst_163 : f32 to vector<1x8xf32>
    %251 = arith.subf %249, %250 : vector<1x8xf32>
    %c0_164 = arith.constant 0 : index
    %c0_165 = arith.constant 0 : index
    %252 = vector.load %arg13[%c0_164, %c0_165] : memref<288x8xf32, #tpu.memory_space<vmem>>, vector<288x8xf32>
    %253 = vector.broadcast %251 : vector<1x8xf32> to vector<288x8xf32>
    %254 = arith.mulf %252, %253 : vector<288x8xf32>
    %cst_166 = arith.constant dense<0.000000e+00> : vector<288xf32>
    %255 = vector.multi_reduction <add>, %254, %cst_166 [1] : vector<288x8xf32> to vector<288xf32>
    %256 = vector.shape_cast %255 : vector<288xf32> to vector<288x1xf32>
    %257 = vector.extract_strided_slice %256 {offsets = [0, 0], sizes = [32, 1], strides = [1, 1]} : vector<288x1xf32> to vector<32x1xf32>
    %c19_i32_167 = arith.constant 19 : i32
    %258 = tpu.dynamic_rotate %0 by %c19_i32_167 dim 1 : vector<1x384xf32>, i32 -> vector<1x384xf32>
    %259 = vector.broadcast %257 : vector<32x1xf32> to vector<32x384xf32>
    %260 = vector.broadcast %258 : vector<1x384xf32> to vector<32x384xf32>
    %261 = arith.mulf %259, %260 : vector<32x384xf32>
    %262 = arith.addf %245, %261 : vector<32x384xf32>
    %263 = vector.extract_strided_slice %256 {offsets = [32, 0], sizes = [32, 1], strides = [1, 1]} : vector<288x1xf32> to vector<32x1xf32>
    %c18_i32_168 = arith.constant 18 : i32
    %264 = tpu.dynamic_rotate %0 by %c18_i32_168 dim 1 : vector<1x384xf32>, i32 -> vector<1x384xf32>
    %265 = vector.broadcast %263 : vector<32x1xf32> to vector<32x384xf32>
    %266 = vector.broadcast %264 : vector<1x384xf32> to vector<32x384xf32>
    %267 = arith.mulf %265, %266 : vector<32x384xf32>
    %268 = arith.addf %262, %267 : vector<32x384xf32>
    %269 = vector.extract_strided_slice %256 {offsets = [64, 0], sizes = [32, 1], strides = [1, 1]} : vector<288x1xf32> to vector<32x1xf32>
    %c17_i32_169 = arith.constant 17 : i32
    %270 = tpu.dynamic_rotate %0 by %c17_i32_169 dim 1 : vector<1x384xf32>, i32 -> vector<1x384xf32>
    %271 = vector.broadcast %269 : vector<32x1xf32> to vector<32x384xf32>
    %272 = vector.broadcast %270 : vector<1x384xf32> to vector<32x384xf32>
    %273 = arith.mulf %271, %272 : vector<32x384xf32>
    %274 = arith.addf %268, %273 : vector<32x384xf32>
    %275 = vector.extract_strided_slice %256 {offsets = [96, 0], sizes = [32, 1], strides = [1, 1]} : vector<288x1xf32> to vector<32x1xf32>
    %c1_i32_170 = arith.constant 1 : i32
    %276 = tpu.dynamic_rotate %0 by %c1_i32_170 dim 1 : vector<1x384xf32>, i32 -> vector<1x384xf32>
    %277 = vector.broadcast %275 : vector<32x1xf32> to vector<32x384xf32>
    %278 = vector.broadcast %276 : vector<1x384xf32> to vector<32x384xf32>
    %279 = arith.mulf %277, %278 : vector<32x384xf32>
    %280 = arith.addf %274, %279 : vector<32x384xf32>
    %281 = vector.extract_strided_slice %256 {offsets = [128, 0], sizes = [32, 1], strides = [1, 1]} : vector<288x1xf32> to vector<32x1xf32>
    %282 = vector.broadcast %281 : vector<32x1xf32> to vector<32x384xf32>
    %283 = vector.broadcast %0 : vector<1x384xf32> to vector<32x384xf32>
    %284 = arith.mulf %282, %283 : vector<32x384xf32>
    %285 = arith.addf %280, %284 : vector<32x384xf32>
    %286 = vector.extract_strided_slice %256 {offsets = [160, 0], sizes = [32, 1], strides = [1, 1]} : vector<288x1xf32> to vector<32x1xf32>
    %c383_i32_171 = arith.constant 383 : i32
    %287 = tpu.dynamic_rotate %0 by %c383_i32_171 dim 1 : vector<1x384xf32>, i32 -> vector<1x384xf32>
    %288 = vector.broadcast %286 : vector<32x1xf32> to vector<32x384xf32>
    %289 = vector.broadcast %287 : vector<1x384xf32> to vector<32x384xf32>
    %290 = arith.mulf %288, %289 : vector<32x384xf32>
    %291 = arith.addf %285, %290 : vector<32x384xf32>
    %292 = vector.extract_strided_slice %256 {offsets = [192, 0], sizes = [32, 1], strides = [1, 1]} : vector<288x1xf32> to vector<32x1xf32>
    %c367_i32_172 = arith.constant 367 : i32
    %293 = tpu.dynamic_rotate %0 by %c367_i32_172 dim 1 : vector<1x384xf32>, i32 -> vector<1x384xf32>
    %294 = vector.broadcast %292 : vector<32x1xf32> to vector<32x384xf32>
    %295 = vector.broadcast %293 : vector<1x384xf32> to vector<32x384xf32>
    %296 = arith.mulf %294, %295 : vector<32x384xf32>
    %297 = arith.addf %291, %296 : vector<32x384xf32>
    %298 = vector.extract_strided_slice %256 {offsets = [224, 0], sizes = [32, 1], strides = [1, 1]} : vector<288x1xf32> to vector<32x1xf32>
    %c366_i32_173 = arith.constant 366 : i32
    %299 = tpu.dynamic_rotate %0 by %c366_i32_173 dim 1 : vector<1x384xf32>, i32 -> vector<1x384xf32>
    %300 = vector.broadcast %298 : vector<32x1xf32> to vector<32x384xf32>
    %301 = vector.broadcast %299 : vector<1x384xf32> to vector<32x384xf32>
    %302 = arith.mulf %300, %301 : vector<32x384xf32>
    %303 = arith.addf %297, %302 : vector<32x384xf32>
    %304 = vector.extract_strided_slice %256 {offsets = [256, 0], sizes = [32, 1], strides = [1, 1]} : vector<288x1xf32> to vector<32x1xf32>
    %c365_i32_174 = arith.constant 365 : i32
    %305 = tpu.dynamic_rotate %0 by %c365_i32_174 dim 1 : vector<1x384xf32>, i32 -> vector<1x384xf32>
    %306 = vector.broadcast %304 : vector<32x1xf32> to vector<32x384xf32>
    %307 = vector.broadcast %305 : vector<1x384xf32> to vector<32x384xf32>
    %308 = arith.mulf %306, %307 : vector<32x384xf32>
    %309 = arith.addf %303, %308 : vector<32x384xf32>
    %c0_175 = arith.constant 0 : index
    %c0_176 = arith.constant 0 : index
    %310 = vector.load %arg11[%c0_175, %c0_176] : memref<32x1xf32, #tpu.memory_space<vmem>>, vector<32x1xf32>
    %311 = vector.broadcast %310 : vector<32x1xf32> to vector<32x384xf32>
    %312 = arith.mulf %309, %311 : vector<32x384xf32>
    %c0_177 = arith.constant 0 : index
    %c0_178 = arith.constant 0 : index
    %313 = vector.load %arg12[%c0_177, %c0_178] : memref<32x1xf32, #tpu.memory_space<vmem>>, vector<32x1xf32>
    %314 = vector.broadcast %313 : vector<32x1xf32> to vector<32x384xf32>
    %315 = arith.addf %312, %314 : vector<32x384xf32>
    %cst_179 = arith.constant 5.000000e-01 : f32
    %316 = vector.broadcast %cst_179 : f32 to vector<32x384xf32>
    %317 = arith.mulf %316, %315 : vector<32x384xf32>
    %cst_180 = arith.constant 0.707106769 : f32
    %318 = vector.broadcast %cst_180 : f32 to vector<32x384xf32>
    %319 = arith.mulf %315, %318 : vector<32x384xf32>
    %320 = math.absf %319 : vector<32x384xf32>
    %cst_181 = arith.constant 0.327591091 : f32
    %321 = vector.broadcast %cst_181 : f32 to vector<32x384xf32>
    %322 = arith.mulf %321, %320 : vector<32x384xf32>
    %cst_182 = arith.constant 1.000000e+00 : f32
    %323 = vector.broadcast %cst_182 : f32 to vector<32x384xf32>
    %324 = arith.addf %323, %322 : vector<32x384xf32>
    %cst_183 = arith.constant 1.000000e+00 : f32
    %325 = vector.broadcast %cst_183 : f32 to vector<32x384xf32>
    %326 = arith.divf %325, %324 : vector<32x384xf32>
    %cst_184 = arith.constant 1.06140542 : f32
    %327 = vector.broadcast %cst_184 : f32 to vector<32x384xf32>
    %328 = arith.mulf %327, %326 : vector<32x384xf32>
    %cst_185 = arith.constant -1.45315206 : f32
    %329 = vector.broadcast %cst_185 : f32 to vector<32x384xf32>
    %330 = arith.addf %328, %329 : vector<32x384xf32>
    %331 = arith.mulf %330, %326 : vector<32x384xf32>
    %cst_186 = arith.constant 1.42141378 : f32
    %332 = vector.broadcast %cst_186 : f32 to vector<32x384xf32>
    %333 = arith.addf %331, %332 : vector<32x384xf32>
    %334 = arith.mulf %333, %326 : vector<32x384xf32>
    %cst_187 = arith.constant -0.284496725 : f32
    %335 = vector.broadcast %cst_187 : f32 to vector<32x384xf32>
    %336 = arith.addf %334, %335 : vector<32x384xf32>
    %337 = arith.mulf %336, %326 : vector<32x384xf32>
    %cst_188 = arith.constant 0.254829586 : f32
    %338 = vector.broadcast %cst_188 : f32 to vector<32x384xf32>
    %339 = arith.addf %337, %338 : vector<32x384xf32>
    %340 = arith.mulf %339, %326 : vector<32x384xf32>
    %cst_189 = arith.constant 0.000000e+00 : f32
    %341 = vector.broadcast %cst_189 : f32 to vector<32x384xf32>
    %342 = arith.subf %341, %320 : vector<32x384xf32>
    %343 = arith.mulf %342, %320 : vector<32x384xf32>
    %344 = math.exp %343 : vector<32x384xf32>
    %345 = arith.mulf %340, %344 : vector<32x384xf32>
    %cst_190 = arith.constant 1.000000e+00 : f32
    %346 = vector.broadcast %cst_190 : f32 to vector<32x384xf32>
    %347 = arith.subf %346, %345 : vector<32x384xf32>
    %cst_191 = arith.constant 0.000000e+00 : f32
    %348 = vector.broadcast %cst_191 : f32 to vector<32x384xf32>
    %349 = arith.cmpf olt, %319, %348 : vector<32x384xf32>
    %cst_192 = arith.constant 0.000000e+00 : f32
    %350 = vector.broadcast %cst_192 : f32 to vector<32x384xf32>
    %351 = arith.subf %350, %347 : vector<32x384xf32>
    %352 = arith.select %349, %351, %347 : vector<32x384xi1>, vector<32x384xf32>
    %cst_193 = arith.constant 1.000000e+00 : f32
    %353 = vector.broadcast %cst_193 : f32 to vector<32x384xf32>
    %354 = arith.addf %353, %352 : vector<32x384xf32>
    %355 = arith.mulf %317, %354 : vector<32x384xf32>
    %356 = vector.broadcast %0 : vector<1x384xf32> to vector<32x384xf32>
    %357 = arith.mulf %355, %356 : vector<32x384xf32>
    %c0_194 = arith.constant 0 : index
    %c0_195 = arith.constant 0 : index
    %358 = vector.load %arg14[%c0_194, %c0_195] : memref<3x32xf32, #tpu.memory_space<vmem>>, vector<3x32xf32>
    %cst_196 = arith.constant 0.000000e+00 : f32
    %359 = vector.broadcast %cst_196 : f32 to vector<3x384xf32>
    %c0_197 = arith.constant 0 : index
    %c0_198 = arith.constant 0 : index
    %360 = vector.load %arg15[%c0_197, %c0_198] : memref<3x1xf32, #tpu.memory_space<vmem>>, vector<3x1xf32>
    %361 = vector.broadcast %360 : vector<3x1xf32> to vector<3x384xf32>
    %362 = arith.addf %359, %361 : vector<3x384xf32>
    %363 = vector.extract_strided_slice %358 {offsets = [0, 0], sizes = [3, 1], strides = [1, 1]} : vector<3x32xf32> to vector<3x1xf32>
    %364 = vector.extract_strided_slice %357 {offsets = [0, 0], sizes = [1, 384], strides = [1, 1]} : vector<32x384xf32> to vector<1x384xf32>
    %365 = vector.broadcast %363 : vector<3x1xf32> to vector<3x384xf32>
    %366 = vector.broadcast %364 : vector<1x384xf32> to vector<3x384xf32>
    %367 = arith.mulf %365, %366 : vector<3x384xf32>
    %368 = arith.addf %362, %367 : vector<3x384xf32>
    %369 = vector.extract_strided_slice %358 {offsets = [0, 1], sizes = [3, 1], strides = [1, 1]} : vector<3x32xf32> to vector<3x1xf32>
    %370 = vector.extract_strided_slice %357 {offsets = [1, 0], sizes = [1, 384], strides = [1, 1]} : vector<32x384xf32> to vector<1x384xf32>
    %371 = vector.broadcast %369 : vector<3x1xf32> to vector<3x384xf32>
    %372 = vector.broadcast %370 : vector<1x384xf32> to vector<3x384xf32>
    %373 = arith.mulf %371, %372 : vector<3x384xf32>
    %374 = arith.addf %368, %373 : vector<3x384xf32>
    %375 = vector.extract_strided_slice %358 {offsets = [0, 2], sizes = [3, 1], strides = [1, 1]} : vector<3x32xf32> to vector<3x1xf32>
    %376 = vector.extract_strided_slice %357 {offsets = [2, 0], sizes = [1, 384], strides = [1, 1]} : vector<32x384xf32> to vector<1x384xf32>
    %377 = vector.broadcast %375 : vector<3x1xf32> to vector<3x384xf32>
    %378 = vector.broadcast %376 : vector<1x384xf32> to vector<3x384xf32>
    %379 = arith.mulf %377, %378 : vector<3x384xf32>
    %380 = arith.addf %374, %379 : vector<3x384xf32>
    %381 = vector.extract_strided_slice %358 {offsets = [0, 3], sizes = [3, 1], strides = [1, 1]} : vector<3x32xf32> to vector<3x1xf32>
    %382 = vector.extract_strided_slice %357 {offsets = [3, 0], sizes = [1, 384], strides = [1, 1]} : vector<32x384xf32> to vector<1x384xf32>
    %383 = vector.broadcast %381 : vector<3x1xf32> to vector<3x384xf32>
    %384 = vector.broadcast %382 : vector<1x384xf32> to vector<3x384xf32>
    %385 = arith.mulf %383, %384 : vector<3x384xf32>
    %386 = arith.addf %380, %385 : vector<3x384xf32>
    %387 = vector.extract_strided_slice %358 {offsets = [0, 4], sizes = [3, 1], strides = [1, 1]} : vector<3x32xf32> to vector<3x1xf32>
    %388 = vector.extract_strided_slice %357 {offsets = [4, 0], sizes = [1, 384], strides = [1, 1]} : vector<32x384xf32> to vector<1x384xf32>
    %389 = vector.broadcast %387 : vector<3x1xf32> to vector<3x384xf32>
    %390 = vector.broadcast %388 : vector<1x384xf32> to vector<3x384xf32>
    %391 = arith.mulf %389, %390 : vector<3x384xf32>
    %392 = arith.addf %386, %391 : vector<3x384xf32>
    %393 = vector.extract_strided_slice %358 {offsets = [0, 5], sizes = [3, 1], strides = [1, 1]} : vector<3x32xf32> to vector<3x1xf32>
    %394 = vector.extract_strided_slice %357 {offsets = [5, 0], sizes = [1, 384], strides = [1, 1]} : vector<32x384xf32> to vector<1x384xf32>
    %395 = vector.broadcast %393 : vector<3x1xf32> to vector<3x384xf32>
    %396 = vector.broadcast %394 : vector<1x384xf32> to vector<3x384xf32>
    %397 = arith.mulf %395, %396 : vector<3x384xf32>
    %398 = arith.addf %392, %397 : vector<3x384xf32>
    %399 = vector.extract_strided_slice %358 {offsets = [0, 6], sizes = [3, 1], strides = [1, 1]} : vector<3x32xf32> to vector<3x1xf32>
    %400 = vector.extract_strided_slice %357 {offsets = [6, 0], sizes = [1, 384], strides = [1, 1]} : vector<32x384xf32> to vector<1x384xf32>
    %401 = vector.broadcast %399 : vector<3x1xf32> to vector<3x384xf32>
    %402 = vector.broadcast %400 : vector<1x384xf32> to vector<3x384xf32>
    %403 = arith.mulf %401, %402 : vector<3x384xf32>
    %404 = arith.addf %398, %403 : vector<3x384xf32>
    %405 = vector.extract_strided_slice %358 {offsets = [0, 7], sizes = [3, 1], strides = [1, 1]} : vector<3x32xf32> to vector<3x1xf32>
    %406 = vector.extract_strided_slice %357 {offsets = [7, 0], sizes = [1, 384], strides = [1, 1]} : vector<32x384xf32> to vector<1x384xf32>
    %407 = vector.broadcast %405 : vector<3x1xf32> to vector<3x384xf32>
    %408 = vector.broadcast %406 : vector<1x384xf32> to vector<3x384xf32>
    %409 = arith.mulf %407, %408 : vector<3x384xf32>
    %410 = arith.addf %404, %409 : vector<3x384xf32>
    %411 = vector.extract_strided_slice %358 {offsets = [0, 8], sizes = [3, 1], strides = [1, 1]} : vector<3x32xf32> to vector<3x1xf32>
    %412 = vector.extract_strided_slice %357 {offsets = [8, 0], sizes = [1, 384], strides = [1, 1]} : vector<32x384xf32> to vector<1x384xf32>
    %413 = vector.broadcast %411 : vector<3x1xf32> to vector<3x384xf32>
    %414 = vector.broadcast %412 : vector<1x384xf32> to vector<3x384xf32>
    %415 = arith.mulf %413, %414 : vector<3x384xf32>
    %416 = arith.addf %410, %415 : vector<3x384xf32>
    %417 = vector.extract_strided_slice %358 {offsets = [0, 9], sizes = [3, 1], strides = [1, 1]} : vector<3x32xf32> to vector<3x1xf32>
    %418 = vector.extract_strided_slice %357 {offsets = [9, 0], sizes = [1, 384], strides = [1, 1]} : vector<32x384xf32> to vector<1x384xf32>
    %419 = vector.broadcast %417 : vector<3x1xf32> to vector<3x384xf32>
    %420 = vector.broadcast %418 : vector<1x384xf32> to vector<3x384xf32>
    %421 = arith.mulf %419, %420 : vector<3x384xf32>
    %422 = arith.addf %416, %421 : vector<3x384xf32>
    %423 = vector.extract_strided_slice %358 {offsets = [0, 10], sizes = [3, 1], strides = [1, 1]} : vector<3x32xf32> to vector<3x1xf32>
    %424 = vector.extract_strided_slice %357 {offsets = [10, 0], sizes = [1, 384], strides = [1, 1]} : vector<32x384xf32> to vector<1x384xf32>
    %425 = vector.broadcast %423 : vector<3x1xf32> to vector<3x384xf32>
    %426 = vector.broadcast %424 : vector<1x384xf32> to vector<3x384xf32>
    %427 = arith.mulf %425, %426 : vector<3x384xf32>
    %428 = arith.addf %422, %427 : vector<3x384xf32>
    %429 = vector.extract_strided_slice %358 {offsets = [0, 11], sizes = [3, 1], strides = [1, 1]} : vector<3x32xf32> to vector<3x1xf32>
    %430 = vector.extract_strided_slice %357 {offsets = [11, 0], sizes = [1, 384], strides = [1, 1]} : vector<32x384xf32> to vector<1x384xf32>
    %431 = vector.broadcast %429 : vector<3x1xf32> to vector<3x384xf32>
    %432 = vector.broadcast %430 : vector<1x384xf32> to vector<3x384xf32>
    %433 = arith.mulf %431, %432 : vector<3x384xf32>
    %434 = arith.addf %428, %433 : vector<3x384xf32>
    %435 = vector.extract_strided_slice %358 {offsets = [0, 12], sizes = [3, 1], strides = [1, 1]} : vector<3x32xf32> to vector<3x1xf32>
    %436 = vector.extract_strided_slice %357 {offsets = [12, 0], sizes = [1, 384], strides = [1, 1]} : vector<32x384xf32> to vector<1x384xf32>
    %437 = vector.broadcast %435 : vector<3x1xf32> to vector<3x384xf32>
    %438 = vector.broadcast %436 : vector<1x384xf32> to vector<3x384xf32>
    %439 = arith.mulf %437, %438 : vector<3x384xf32>
    %440 = arith.addf %434, %439 : vector<3x384xf32>
    %441 = vector.extract_strided_slice %358 {offsets = [0, 13], sizes = [3, 1], strides = [1, 1]} : vector<3x32xf32> to vector<3x1xf32>
    %442 = vector.extract_strided_slice %357 {offsets = [13, 0], sizes = [1, 384], strides = [1, 1]} : vector<32x384xf32> to vector<1x384xf32>
    %443 = vector.broadcast %441 : vector<3x1xf32> to vector<3x384xf32>
    %444 = vector.broadcast %442 : vector<1x384xf32> to vector<3x384xf32>
    %445 = arith.mulf %443, %444 : vector<3x384xf32>
    %446 = arith.addf %440, %445 : vector<3x384xf32>
    %447 = vector.extract_strided_slice %358 {offsets = [0, 14], sizes = [3, 1], strides = [1, 1]} : vector<3x32xf32> to vector<3x1xf32>
    %448 = vector.extract_strided_slice %357 {offsets = [14, 0], sizes = [1, 384], strides = [1, 1]} : vector<32x384xf32> to vector<1x384xf32>
    %449 = vector.broadcast %447 : vector<3x1xf32> to vector<3x384xf32>
    %450 = vector.broadcast %448 : vector<1x384xf32> to vector<3x384xf32>
    %451 = arith.mulf %449, %450 : vector<3x384xf32>
    %452 = arith.addf %446, %451 : vector<3x384xf32>
    %453 = vector.extract_strided_slice %358 {offsets = [0, 15], sizes = [3, 1], strides = [1, 1]} : vector<3x32xf32> to vector<3x1xf32>
    %454 = vector.extract_strided_slice %357 {offsets = [15, 0], sizes = [1, 384], strides = [1, 1]} : vector<32x384xf32> to vector<1x384xf32>
    %455 = vector.broadcast %453 : vector<3x1xf32> to vector<3x384xf32>
    %456 = vector.broadcast %454 : vector<1x384xf32> to vector<3x384xf32>
    %457 = arith.mulf %455, %456 : vector<3x384xf32>
    %458 = arith.addf %452, %457 : vector<3x384xf32>
    %459 = vector.extract_strided_slice %358 {offsets = [0, 16], sizes = [3, 1], strides = [1, 1]} : vector<3x32xf32> to vector<3x1xf32>
    %460 = vector.extract_strided_slice %357 {offsets = [16, 0], sizes = [1, 384], strides = [1, 1]} : vector<32x384xf32> to vector<1x384xf32>
    %461 = vector.broadcast %459 : vector<3x1xf32> to vector<3x384xf32>
    %462 = vector.broadcast %460 : vector<1x384xf32> to vector<3x384xf32>
    %463 = arith.mulf %461, %462 : vector<3x384xf32>
    %464 = arith.addf %458, %463 : vector<3x384xf32>
    %465 = vector.extract_strided_slice %358 {offsets = [0, 17], sizes = [3, 1], strides = [1, 1]} : vector<3x32xf32> to vector<3x1xf32>
    %466 = vector.extract_strided_slice %357 {offsets = [17, 0], sizes = [1, 384], strides = [1, 1]} : vector<32x384xf32> to vector<1x384xf32>
    %467 = vector.broadcast %465 : vector<3x1xf32> to vector<3x384xf32>
    %468 = vector.broadcast %466 : vector<1x384xf32> to vector<3x384xf32>
    %469 = arith.mulf %467, %468 : vector<3x384xf32>
    %470 = arith.addf %464, %469 : vector<3x384xf32>
    %471 = vector.extract_strided_slice %358 {offsets = [0, 18], sizes = [3, 1], strides = [1, 1]} : vector<3x32xf32> to vector<3x1xf32>
    %472 = vector.extract_strided_slice %357 {offsets = [18, 0], sizes = [1, 384], strides = [1, 1]} : vector<32x384xf32> to vector<1x384xf32>
    %473 = vector.broadcast %471 : vector<3x1xf32> to vector<3x384xf32>
    %474 = vector.broadcast %472 : vector<1x384xf32> to vector<3x384xf32>
    %475 = arith.mulf %473, %474 : vector<3x384xf32>
    %476 = arith.addf %470, %475 : vector<3x384xf32>
    %477 = vector.extract_strided_slice %358 {offsets = [0, 19], sizes = [3, 1], strides = [1, 1]} : vector<3x32xf32> to vector<3x1xf32>
    %478 = vector.extract_strided_slice %357 {offsets = [19, 0], sizes = [1, 384], strides = [1, 1]} : vector<32x384xf32> to vector<1x384xf32>
    %479 = vector.broadcast %477 : vector<3x1xf32> to vector<3x384xf32>
    %480 = vector.broadcast %478 : vector<1x384xf32> to vector<3x384xf32>
    %481 = arith.mulf %479, %480 : vector<3x384xf32>
    %482 = arith.addf %476, %481 : vector<3x384xf32>
    %483 = vector.extract_strided_slice %358 {offsets = [0, 20], sizes = [3, 1], strides = [1, 1]} : vector<3x32xf32> to vector<3x1xf32>
    %484 = vector.extract_strided_slice %357 {offsets = [20, 0], sizes = [1, 384], strides = [1, 1]} : vector<32x384xf32> to vector<1x384xf32>
    %485 = vector.broadcast %483 : vector<3x1xf32> to vector<3x384xf32>
    %486 = vector.broadcast %484 : vector<1x384xf32> to vector<3x384xf32>
    %487 = arith.mulf %485, %486 : vector<3x384xf32>
    %488 = arith.addf %482, %487 : vector<3x384xf32>
    %489 = vector.extract_strided_slice %358 {offsets = [0, 21], sizes = [3, 1], strides = [1, 1]} : vector<3x32xf32> to vector<3x1xf32>
    %490 = vector.extract_strided_slice %357 {offsets = [21, 0], sizes = [1, 384], strides = [1, 1]} : vector<32x384xf32> to vector<1x384xf32>
    %491 = vector.broadcast %489 : vector<3x1xf32> to vector<3x384xf32>
    %492 = vector.broadcast %490 : vector<1x384xf32> to vector<3x384xf32>
    %493 = arith.mulf %491, %492 : vector<3x384xf32>
    %494 = arith.addf %488, %493 : vector<3x384xf32>
    %495 = vector.extract_strided_slice %358 {offsets = [0, 22], sizes = [3, 1], strides = [1, 1]} : vector<3x32xf32> to vector<3x1xf32>
    %496 = vector.extract_strided_slice %357 {offsets = [22, 0], sizes = [1, 384], strides = [1, 1]} : vector<32x384xf32> to vector<1x384xf32>
    %497 = vector.broadcast %495 : vector<3x1xf32> to vector<3x384xf32>
    %498 = vector.broadcast %496 : vector<1x384xf32> to vector<3x384xf32>
    %499 = arith.mulf %497, %498 : vector<3x384xf32>
    %500 = arith.addf %494, %499 : vector<3x384xf32>
    %501 = vector.extract_strided_slice %358 {offsets = [0, 23], sizes = [3, 1], strides = [1, 1]} : vector<3x32xf32> to vector<3x1xf32>
    %502 = vector.extract_strided_slice %357 {offsets = [23, 0], sizes = [1, 384], strides = [1, 1]} : vector<32x384xf32> to vector<1x384xf32>
    %503 = vector.broadcast %501 : vector<3x1xf32> to vector<3x384xf32>
    %504 = vector.broadcast %502 : vector<1x384xf32> to vector<3x384xf32>
    %505 = arith.mulf %503, %504 : vector<3x384xf32>
    %506 = arith.addf %500, %505 : vector<3x384xf32>
    %507 = vector.extract_strided_slice %358 {offsets = [0, 24], sizes = [3, 1], strides = [1, 1]} : vector<3x32xf32> to vector<3x1xf32>
    %508 = vector.extract_strided_slice %357 {offsets = [24, 0], sizes = [1, 384], strides = [1, 1]} : vector<32x384xf32> to vector<1x384xf32>
    %509 = vector.broadcast %507 : vector<3x1xf32> to vector<3x384xf32>
    %510 = vector.broadcast %508 : vector<1x384xf32> to vector<3x384xf32>
    %511 = arith.mulf %509, %510 : vector<3x384xf32>
    %512 = arith.addf %506, %511 : vector<3x384xf32>
    %513 = vector.extract_strided_slice %358 {offsets = [0, 25], sizes = [3, 1], strides = [1, 1]} : vector<3x32xf32> to vector<3x1xf32>
    %514 = vector.extract_strided_slice %357 {offsets = [25, 0], sizes = [1, 384], strides = [1, 1]} : vector<32x384xf32> to vector<1x384xf32>
    %515 = vector.broadcast %513 : vector<3x1xf32> to vector<3x384xf32>
    %516 = vector.broadcast %514 : vector<1x384xf32> to vector<3x384xf32>
    %517 = arith.mulf %515, %516 : vector<3x384xf32>
    %518 = arith.addf %512, %517 : vector<3x384xf32>
    %519 = vector.extract_strided_slice %358 {offsets = [0, 26], sizes = [3, 1], strides = [1, 1]} : vector<3x32xf32> to vector<3x1xf32>
    %520 = vector.extract_strided_slice %357 {offsets = [26, 0], sizes = [1, 384], strides = [1, 1]} : vector<32x384xf32> to vector<1x384xf32>
    %521 = vector.broadcast %519 : vector<3x1xf32> to vector<3x384xf32>
    %522 = vector.broadcast %520 : vector<1x384xf32> to vector<3x384xf32>
    %523 = arith.mulf %521, %522 : vector<3x384xf32>
    %524 = arith.addf %518, %523 : vector<3x384xf32>
    %525 = vector.extract_strided_slice %358 {offsets = [0, 27], sizes = [3, 1], strides = [1, 1]} : vector<3x32xf32> to vector<3x1xf32>
    %526 = vector.extract_strided_slice %357 {offsets = [27, 0], sizes = [1, 384], strides = [1, 1]} : vector<32x384xf32> to vector<1x384xf32>
    %527 = vector.broadcast %525 : vector<3x1xf32> to vector<3x384xf32>
    %528 = vector.broadcast %526 : vector<1x384xf32> to vector<3x384xf32>
    %529 = arith.mulf %527, %528 : vector<3x384xf32>
    %530 = arith.addf %524, %529 : vector<3x384xf32>
    %531 = vector.extract_strided_slice %358 {offsets = [0, 28], sizes = [3, 1], strides = [1, 1]} : vector<3x32xf32> to vector<3x1xf32>
    %532 = vector.extract_strided_slice %357 {offsets = [28, 0], sizes = [1, 384], strides = [1, 1]} : vector<32x384xf32> to vector<1x384xf32>
    %533 = vector.broadcast %531 : vector<3x1xf32> to vector<3x384xf32>
    %534 = vector.broadcast %532 : vector<1x384xf32> to vector<3x384xf32>
    %535 = arith.mulf %533, %534 : vector<3x384xf32>
    %536 = arith.addf %530, %535 : vector<3x384xf32>
    %537 = vector.extract_strided_slice %358 {offsets = [0, 29], sizes = [3, 1], strides = [1, 1]} : vector<3x32xf32> to vector<3x1xf32>
    %538 = vector.extract_strided_slice %357 {offsets = [29, 0], sizes = [1, 384], strides = [1, 1]} : vector<32x384xf32> to vector<1x384xf32>
    %539 = vector.broadcast %537 : vector<3x1xf32> to vector<3x384xf32>
    %540 = vector.broadcast %538 : vector<1x384xf32> to vector<3x384xf32>
    %541 = arith.mulf %539, %540 : vector<3x384xf32>
    %542 = arith.addf %536, %541 : vector<3x384xf32>
    %543 = vector.extract_strided_slice %358 {offsets = [0, 30], sizes = [3, 1], strides = [1, 1]} : vector<3x32xf32> to vector<3x1xf32>
    %544 = vector.extract_strided_slice %357 {offsets = [30, 0], sizes = [1, 384], strides = [1, 1]} : vector<32x384xf32> to vector<1x384xf32>
    %545 = vector.broadcast %543 : vector<3x1xf32> to vector<3x384xf32>
    %546 = vector.broadcast %544 : vector<1x384xf32> to vector<3x384xf32>
    %547 = arith.mulf %545, %546 : vector<3x384xf32>
    %548 = arith.addf %542, %547 : vector<3x384xf32>
    %549 = vector.extract_strided_slice %358 {offsets = [0, 31], sizes = [3, 1], strides = [1, 1]} : vector<3x32xf32> to vector<3x1xf32>
    %550 = vector.extract_strided_slice %357 {offsets = [31, 0], sizes = [1, 384], strides = [1, 1]} : vector<32x384xf32> to vector<1x384xf32>
    %551 = vector.broadcast %549 : vector<3x1xf32> to vector<3x384xf32>
    %552 = vector.broadcast %550 : vector<1x384xf32> to vector<3x384xf32>
    %553 = arith.mulf %551, %552 : vector<3x384xf32>
    %554 = arith.addf %548, %553 : vector<3x384xf32>
    %555 = math.tanh %554 : vector<3x384xf32>
    %c0_199 = arith.constant 0 : index
    %c0_200 = arith.constant 0 : index
    %c0_201 = arith.constant 0 : index
    %556 = vector.load %arg16[%c0_199, %c0_200, %c0_201] : memref<1x3x384xf32, #tpu.memory_space<vmem>>, vector<1x3x384xf32>
    %557 = vector.shape_cast %556 : vector<1x3x384xf32> to vector<3x384xf32>
    %558 = vector.shape_cast %555 : vector<3x384xf32> to vector<1x3x384xf32>
    tpu.vector_store %arg16[%c0_199, %c0_200, %c0_201], %558 {strides = array<i32>} : memref<1x3x384xf32, #tpu.memory_space<vmem>>, vector<1x3x384xf32>,
    return
  }
  func.func @transform_0(%arg0: i32) -> (i32, i32, i32) {
    %c0_i32 = arith.constant 0 : i32
    %c0_i32_0 = arith.constant 0 : i32
    %c0_i32_1 = arith.constant 0 : i32
    return %arg0, %c0_i32, %c0_i32_0 : i32, i32, i32
  }
  func.func @transform_1(%arg0: i32) -> (i32, i32, i32) {
    %c0_i32 = arith.constant 0 : i32
    %c0_i32_0 = arith.constant 0 : i32
    %c0_i32_1 = arith.constant 0 : i32
    return %arg0, %c0_i32, %c0_i32_0 : i32, i32, i32
  }
  func.func @transform_2(%arg0: i32) -> (i32, i32) {
    %c0_i32 = arith.constant 0 : i32
    %c0_i32_0 = arith.constant 0 : i32
    %c0_i32_1 = arith.constant 0 : i32
    return %c0_i32, %c0_i32_0 : i32, i32
  }
  func.func @transform_3(%arg0: i32) -> (i32, i32, i32) {
    %c0_i32 = arith.constant 0 : i32
    %c0_i32_0 = arith.constant 0 : i32
    %c0_i32_1 = arith.constant 0 : i32
    %c0_i32_2 = arith.constant 0 : i32
    return %c0_i32, %c0_i32_0, %c0_i32_1 : i32, i32, i32
  }
  func.func @transform_4(%arg0: i32) -> (i32, i32) {
    %c0_i32 = arith.constant 0 : i32
    %c0_i32_0 = arith.constant 0 : i32
    %c0_i32_1 = arith.constant 0 : i32
    return %c0_i32, %c0_i32_0 : i32, i32
  }
  func.func @transform_5(%arg0: i32) -> (i32, i32) {
    %c0_i32 = arith.constant 0 : i32
    %c0_i32_0 = arith.constant 0 : i32
    %c0_i32_1 = arith.constant 0 : i32
    return %c0_i32, %c0_i32_0 : i32, i32
  }
  func.func @transform_6(%arg0: i32) -> (i32, i32, i32) {
    %c0_i32 = arith.constant 0 : i32
    %c0_i32_0 = arith.constant 0 : i32
    %c0_i32_1 = arith.constant 0 : i32
    %c0_i32_2 = arith.constant 0 : i32
    return %c0_i32, %c0_i32_0, %c0_i32_1 : i32, i32, i32
  }
  func.func @transform_7(%arg0: i32) -> (i32, i32) {
    %c0_i32 = arith.constant 0 : i32
    %c0_i32_0 = arith.constant 0 : i32
    %c0_i32_1 = arith.constant 0 : i32
    return %c0_i32, %c0_i32_0 : i32, i32
  }
  func.func @transform_8(%arg0: i32) -> (i32, i32) {
    %c0_i32 = arith.constant 0 : i32
    %c0_i32_0 = arith.constant 0 : i32
    %c0_i32_1 = arith.constant 0 : i32
    return %c0_i32, %c0_i32_0 : i32, i32
  }
  func.func @transform_9(%arg0: i32) -> (i32, i32, i32) {
    %c0_i32 = arith.constant 0 : i32
    %c0_i32_0 = arith.constant 0 : i32
    %c0_i32_1 = arith.constant 0 : i32
    %c0_i32_2 = arith.constant 0 : i32
    return %c0_i32, %c0_i32_0, %c0_i32_1 : i32, i32, i32
  }
  func.func @transform_10(%arg0: i32) -> (i32, i32) {
    %c0_i32 = arith.constant 0 : i32
    %c0_i32_0 = arith.constant 0 : i32
    %c0_i32_1 = arith.constant 0 : i32
    return %c0_i32, %c0_i32_0 : i32, i32
  }
  func.func @transform_11(%arg0: i32) -> (i32, i32) {
    %c0_i32 = arith.constant 0 : i32
    %c0_i32_0 = arith.constant 0 : i32
    %c0_i32_1 = arith.constant 0 : i32
    return %c0_i32, %c0_i32_0 : i32, i32
  }
  func.func @transform_12(%arg0: i32) -> (i32, i32) {
    %c0_i32 = arith.constant 0 : i32
    %c0_i32_0 = arith.constant 0 : i32
    %c0_i32_1 = arith.constant 0 : i32
    return %c0_i32, %c0_i32_0 : i32, i32
  }
  func.func @transform_13(%arg0: i32) -> (i32, i32) {
    %c0_i32 = arith.constant 0 : i32
    %c0_i32_0 = arith.constant 0 : i32
    %c0_i32_1 = arith.constant 0 : i32
    return %c0_i32, %c0_i32_0 : i32, i32
  }
  func.func @transform_14(%arg0: i32) -> (i32, i32) {
    %c0_i32 = arith.constant 0 : i32
    %c0_i32_0 = arith.constant 0 : i32
    %c0_i32_1 = arith.constant 0 : i32
    return %c0_i32, %c0_i32_0 : i32, i32
  }
  func.func @transform_15(%arg0: i32) -> (i32, i32, i32) {
    %c0_i32 = arith.constant 0 : i32
    %c0_i32_0 = arith.constant 0 : i32
    %c0_i32_1 = arith.constant 0 : i32
    return %arg0, %c0_i32, %c0_i32_0 : i32, i32, i32
  }
}

</mosaic_0001>

<bundles_post_ra>
// kernel: hidden_embedder_forward.1
= control target key start
LH: loop header
LB: loop body
LE: loop exit
PB: predicated region body
PF: predicated region fallthrough
CT: control target
= control target key end

     0   :  { %s8651_s18 = smov 0   ;;  %s13113_s0 = inlined_call_operand.vmem [shape: f32[2,1,8], index: 0, kind: input, shape index: {}]   ;;  %s13114_s1 = inlined_call_operand.vmem [shape: f32[2,3,384], index: 1, kind: input, shape index: {}]   ;;  %s13115_s2 = inlined_call_operand.vmem [shape: f32[1,384], index: 2, kind: input, shape index: {}]   ;;  %s13116_s3 = inlined_call_operand.vmem [shape: bf16[9,32,3], index: 3, kind: input, shape index: {}]   ;;  %s13117_s4 = inlined_call_operand.vmem [shape: f32[32,1], index: 4, kind: input, shape index: {}]   ;;  %s13118_s5 = inlined_call_operand.vmem [shape: f32[32,1], index: 5, kind: input, shape index: {}]   ;;  %s13119_s6 = inlined_call_operand.vmem [shape: bf16[9,32,32], index: 6, kind: input, shape index: {}]   ;;  %s13120_s7 = inlined_call_operand.vmem [shape: f32[32,1], index: 7, kind: input, shape index: {}]   ;;  %s13121_s8 = inlined_call_operand.vmem [shape: f32[32,1], index: 8, kind: input, shape index: {}]   ;;  %s13122_s9 = inlined_call_operand.vmem [shape: bf16[9,32,35], index: 9, kind: input, shape index: {}]   ;;  %s13123_s10 = inlined_call_operand.vmem [shape: f32[32,1], index: 10, kind: input, shape index: {}]   ;;  %s13124_s11 = inlined_call_operand.vmem [shape: f32[32,1], index: 11, kind: input, shape index: {}]   ;;  %s13125_s12 = inlined_call_operand.vmem [shape: f32[288,8], index: 12, kind: input, shape index: {}]   ;;  %s13126_s13 = inlined_call_operand.vmem [shape: f32[3,32], index: 13, kind: input, shape index: {}]   ;;  %s13127_s14 = inlined_call_operand.vmem [shape: f32[3,1], index: 14, kind: input, shape index: {}]   ;;  %s13128_s15 = inlined_call_operand.vmem [shape: f32[2,3,384], index: 15, kind: output, shape index: {}]  }
   0x1 LB: > { %s7503_s19 = sadd.s32 4294967295, %s8528_s18   ;;  %p7507_p0 = scmp.ge.s32.totalorder %s8528_s18, 1  ;;  %s8528_s18 = sphi %s8651_s18, %s25_s18  }
   0x2   : > { %p445_p1 = scmp.lt.s32.totalorder %s8528_s18, 3 }
   0x4   : > { %p446_p2 = pnand %p7507_p0, %p445_p1 }
   0x6   : > { %449 = sbr.rel (%p446_p2) target bundleno = 1965 (0x7ad), region = 80 }
   0xd   : > { %p496_p3 = scmp.lt.s32.totalorder %s7503_s19, 1  ;;  %v518_v0 = vlaneseq  ;;  %v510_v2 = vld [vmem:[%s13115_s2] sm:$0x7]  ;;  %v8703_v19 = vld [vmem:[%s13116_s3 + $0x10] sm:$0xff]   ;;  %s8530_s28 = smov 18   ;;  %vm585_vm0 = vcmask 23552  }
   0xe   : > { %s8531_s29 = smov 19   ;;  %v13136_v21 = vmov 0   ;;  %7883 = vmatprep.mubr.msk.bf16.mxu1 %vm585_vm0, %v8703_v19  ;;  %s13132_s30 = smov 17   ;;  %vm592_vm1 = vcmask 1040384   ;;  %vm593_vm2 = vcmask 1041408   ;;  %v8539_v24 = vmov 65535  }
   0xf   : > { %s13681_s19 = smov (!%p496_p3, %s7503_s19), 1  ;;  %v8661_v1 = vshrl.u32 %v518_v0, 7  ;;  %637 = vmatprep.mubr.bf16.mxu0 %v13136_v21  ;;  %8284 = vset.pattern.permute.xlu1 %v13136_v21  ;;  %s13204_s16 = smov 1   ;;  %v8739_v23 = vand.u32 127, %v518_v0  ;;  %v594_v25 = vsel %vm592_vm1, 4294967295, %v8539_v24  ;;  %v8318_v57 = vld [vmem:[%s13116_s3 + $0x18] sm:$0xff]  }
  0x10   : > { %s13129_s22 = smul.u32 12, %s13681_s19  ;;  %8283 = vset.pattern.permute.xlu0 %v13136_v21  ;;  %s13202_s17 = smov 127   ;;  %v8743_v32 = vsel %vm593_vm2, %v594_v25, 0  ;;  %v8319_v61 = vld [vmem:[%s13116_s3] sm:$0xff]   ;;  %v8320_v24 = vld [vmem:[%s13116_s3 + $0x8] sm:$0xff]  }
  0x11   : > { %13279 = vst [vmem:[#allocation2_spill] sm:$0xff] %v8661_v1  ;;  %v8668_v3 = vsub.s32 0, %v8661_v1  ;;  %v8671_v4 = vsub.s32 1, %v8661_v1  ;;  %v8687_v12 = vsub.s32 2, %v8661_v1  ;;  %s13200_s20 = smov 111   ;;  %s13134_s21 = smov 110  }
  0x12   : > { %s503_s25 = scalar_lea.vmem %s13114_s1, %s13129_s22  ;;  %s13130_s23 = smov 109   ;;  %vm568_vm3 = vcmp.lt.s32.totalorder %v8739_v23, 18  ;;  %vm550_vm4 = vcmp.lt.s32.totalorder %v8739_v23, 19  ;;  %vm845_vm5 = vcmp.lt.s32.totalorder %v8739_v23, 17  ;;  %vm1002_vm6 = vcmp.lt.s32.totalorder %v8739_v23, 1 }
  0x13   : > { %13280 = vst [vmem:[#allocation3_spill] sm:$0xff] %v8668_v3  ;;  %13281 = vst [vmem:[#allocation4_spill] sm:$0xff] %v8671_v4  ;;  %v8679_v5 = vrot.slane %v510_v2, %v8668_v3  ;;  %v8682_v6 = vrot.slane %v510_v2, %v8671_v4  ;;  %v511_v7 = vld [vmem:[%s503_s25] sm:$0x77]  ;;  %v512_v8 = vld [vmem:[%s503_s25 + $0x8] sm:$0x7]  ;;  %v8696_v17 = vrot.slane %v510_v2, %v8687_v12 }
  0x14   : > { %v513_v9 = vmul.f32 2.0, %v511_v7  ;;  %v514_v11 = vmul.f32 2.0, %v512_v8  ;;  %13284 = vst [vmem:[#allocation7_spill] sm:$0xff] %v8687_v12  ;;  %vm1306_vm7 = vcmp.lt.s32.totalorder %v8739_v23, 127  ;;  %vm1463_vm8 = vcmp.lt.s32.totalorder %v8739_v23, 111  ;;  %s13298_s26 = smov 110  }
  0x15   : > { %13282 = vst [vmem:[#allocation5_spill] sm:$0xff] %v8679_v5  ;;  %13283 = vst [vmem:[#allocation6_spill] sm:$0xff] %v8682_v6  ;;  %v531_v10 = vcombine.low %v8679_v5, %v8682_v6  ;;  %vm1620_vm9 = vcmp.lt.s32.totalorder %v8739_v23, 110  ;;  %vm1777_vm10 = vcmp.lt.s32.totalorder %v8739_v23, 109  ;;  %s13301_s27 = smov 17   ;;  %s13313_s22 = smov 109  }
  0x16   : > { %v7510_v13 = vadd.f32 -1.0, %v513_v9  ;;  %v7511_v14 = vadd.f32 -1.0, %v514_v11  ;;  %13285 = vst [vmem:[#allocation8_spill] sm:$0xff] %v8696_v17  ;;  %s13412_s24 = smov 127  }
  0x18   : > { %v8689_v15 = vmul.f32 %v7510_v13, %v531_v10  ;;  %v8708_v20 = vmul.f32 %v7511_v14, %v8696_v17 }
  0x1a   : > { %v8693_v16 = vcombine.high %v8689_v15, %v8689_v15 }
  0x1c   : > { %v8243_v18 = vpack.i.bf16 %v8693_v16, %v8689_v15  ;;  %v8263_v22 = vpack.i.bf16 %v8708_v20, %v8693_v16 }
  0x1e   : > { %8244 = vrot.lane.b32.xlu0 %v8243_v18, %s8530_s28  ;;  %8249 = vrot.lane.b32.xlu1 %v8243_v18, %s8531_s29 }
  0x22   : > { %566 = vrot.lane.b32.xlu0 %v8708_v20, %s8530_s28  ;;  %546 = vrot.lane.b32.xlu1 %v8708_v20, %s8531_s29 }
  0x26   : > { %8254 = vrot.lane.b32.xlu0 %v8243_v18, %s13132_s30  ;;  %843 = vrot.lane.b32.xlu1 %v8708_v20, %s13132_s30  ;;  %s13411_s30 = smov 1  }
  0x2a   : > { %8259 = vrot.lane.b32.xlu0 %v8243_v18, %s13204_s16  ;;  %1000 = vrot.lane.b32.xlu1 %v8708_v20, %s13204_s16  ;;  %v1924_v18 = vld [vmem:[%s13117_s4 + $0x8] sm:$0xff] }
  0x2e   : > { %8264 = vrot.lane.b32.xlu0 %v8263_v22, %s13202_s17  ;;  %1300 = vrot.lane.b32.xlu1 %v8689_v15, %s13202_s17 }
  0x32   : > { %8269 = vrot.lane.b32.xlu0 %v8263_v22, %s13200_s20  ;;  %1457 = vrot.lane.b32.xlu1 %v8689_v15, %s13200_s20 }
  0x36   : > { %8274 = vrot.lane.b32.xlu0 %v8263_v22, %s13134_s21  ;;  %1614 = vrot.lane.b32.xlu1 %v8689_v15, %s13134_s21  ;;  %s13413_s21 = smov 111  }
  0x3a   : > { %8279 = vrot.lane.b32.xlu0 %v8263_v22, %s13130_s23  ;;  %1771 = vrot.lane.b32.xlu1 %v8689_v15, %s13130_s23  ;;  %s498_s23 = scalar_lea.vmem %s13113_s0, %s13681_s19 }
  0x3e   : > { %1934 = vperm.xlu1 %8284, %v1924_v18  }
  0x90   : > { %v8245_v26 = vpop.permute.xlu0 %8244  ;;  %v8250_v27 = vpop.permute.xlu1 %8249 }
  0x91   : > { %v8247_v28 = vunpack.i.h.bf16 %v8245_v26  ;;  %v8246_v29 = vunpack.i.l.bf16 %v8245_v26  ;;  %v8252_v30 = vunpack.i.h.bf16 %v8250_v27  ;;  %v8251_v31 = vunpack.i.l.bf16 %v8250_v27  ;;  %v1959_v26 = vld [vmem:[%s13118_s5] sm:$0xff] }
  0x92   : > { %v8321_v27 = vld [vmem:[%s13116_s3 + $0x20] sm:$0xff]   ;;  %1965 = vperm.xlu1 %8284, %v1959_v26  }
  0x93   : > { %v570_v33 = vsel %vm568_vm3, %v8246_v29, %v8247_v28  ;;  %v552_v34 = vsel %vm550_vm4, %v8251_v31, %v8252_v30 }
  0x94   : > { %v567_v35 = vpop.permute.xlu0 %566  ;;  %v547_v36 = vpop.permute.xlu1 %546  ;;  %v573_v37 = vpack.c.bf16 %v570_v33, %v570_v33  ;;  %v555_v38 = vpack.c.bf16 %v552_v34, %v552_v34  ;;  %v1925_v33 = vld [vmem:[%s13117_s4 + $0x10] sm:$0xff]  ;;  %v1926_v34 = vld [vmem:[%s13117_s4 + $0x18] sm:$0xff] }
  0x95   : > { %v569_v39 = vsel %vm568_vm3, %v8247_v28, %v567_v35  ;;  %v571_v40 = vsel %vm568_vm3, %v567_v35, %v8246_v29  ;;  %v551_v41 = vsel %vm550_vm4, %v8252_v30, %v547_v36  ;;  %v553_v42 = vsel %vm550_vm4, %v547_v36, %v8251_v31  ;;  %v1960_v28 = vld [vmem:[%s13118_s5 + $0x8] sm:$0xff]  ;;  %v1961_v35 = vld [vmem:[%s13118_s5 + $0x10] sm:$0xff] }
  0x96   : > { %v554_v43 = vpack.c.bf16 %v553_v42, %v553_v42  ;;  %v556_v44 = vpack.c.bf16 %v551_v41, %v551_v41  ;;  %v600_v45 = vand.u32 %v8743_v32, %v573_v37  ;;  %v572_v46 = vpack.c.bf16 %v571_v40, %v571_v40  ;;  %1939 = vperm.xlu1 %8284, %v1925_v33   ;;  %v1962_v37 = vld [vmem:[%s13118_s5 + $0x18] sm:$0xff]  ;;  %v8323_v41 = vld [vmem:[%s13116_s3 + $0x30] sm:$0xff]  }
  0x97   : > { %v574_v47 = vpack.c.bf16 %v569_v39, %v569_v39  ;;  %v727_v48 = vand.u32 %v8743_v32, %v555_v38  ;;  %v1155_v36 = vpack.c.bf16 %v8708_v20, %v8708_v20  ;;  %v8322_v38 = vld [vmem:[%s13116_s3 + $0x28] sm:$0xff]   ;;  %v3830_v20 = vld [vmem:[%s13120_s7] sm:$0xff] }
  0x98   : > { %605 = vmatprep.subr.bf16.mxu0 %v600_v45  ;;  %v597_v49 = vand.u32 %v8743_v32, %v572_v46  ;;  %v8255_v50 = vpop.permute.xlu0 %8254  ;;  %v844_v51 = vpop.permute.xlu1 %843  ;;  %v730_v53 = vand.u32 %v8743_v32, %v556_v44  ;;  %v724_v56 = vand.u32 %v8743_v32, %v554_v43  ;;  %v3831_v45 = vld [vmem:[%s13120_s7 + $0x8] sm:$0xff]  ;;  %v1154_v46 = vpack.c.bf16 %v8693_v16, %v8693_v16 }
  0x99   : > { %v603_v52 = vand.u32 %v8743_v32, %v574_v47  ;;  %v8257_v54 = vunpack.i.h.bf16 %v8255_v50  ;;  %v8256_v55 = vunpack.i.l.bf16 %v8255_v50  ;;  %v8843_v42 = vand.u32 %v1155_v36, %v8743_v32  ;;  %v3867_v50 = vld [vmem:[%s13121_s8 + $0x8] sm:$0xff] }
  0x9a   : > { %606 = vmatpush1.bf16.msra.mxu0 %v597_v49  ;;  %1975 = vperm.xlu1 %8284, %v1961_v35  }
  0x9b   : > { %7881 = vmatprep.subr.bf16.mxu1 %v603_v52  ;;  %732 = vmatprep.subr.bf16.mxu0 %v727_v48  ;;  %v846_v58 = vsel %vm845_vm5, %v8257_v54, %v844_v51  ;;  %v847_v59 = vsel %vm845_vm5, %v8256_v55, %v8257_v54  ;;  %v848_v11 = vsel %vm845_vm5, %v844_v51, %v8256_v55  ;;  %v3866_v48 = vld [vmem:[%s13121_s8] sm:$0xff]  ;;  %v3833_v54 = vld [vmem:[%s13120_s7 + $0x18] sm:$0xff] }
  0x9c   : > { %7882 = vmatpush3.bf16.msra.mxu1 %v603_v52  ;;  %v851_v60 = vpack.c.bf16 %v846_v58, %v846_v58  ;;  %v850_v62 = vpack.c.bf16 %v847_v59, %v847_v59  ;;  %v8260_v63 = vpop.permute.xlu0 %8259  ;;  %v1001_v8 = vpop.permute.xlu1 %1000  ;;  %v849_v22 = vpack.c.bf16 %v848_v11, %v848_v11  ;;  %13286 = vst [vmem:[#allocation9_spill] sm:$0xff] %v8843_v42  ;;  %v3832_v52 = vld [vmem:[%s13120_s7 + $0x10] sm:$0xff]  ;;  %v8324_v55 = vld [vmem:[%s13116_s3 + $0x38] sm:$0xff]   ;;  %v8326_v11 = vld [vmem:[%s13116_s3 + $0x48] sm:$0xff]  }
  0x9d   : > { %7518 = vmatmul.mubr.msk.bf16.vlgmr.msra.gmra.mrb[0].mxu0 %vm585_vm0, %v8703_v19  ;;  %7887 = vmatprep.subr.bf16.mxu1 %v730_v53  ;;  %v8262_v7 = vunpack.i.h.bf16 %v8260_v63  ;;  %v8261_v9 = vunpack.i.l.bf16 %v8260_v63  ;;  %v1923_v19 = vld [vmem:[%s13117_s4] sm:$0xff]  ;;  %v8870_v51 = vand.u32 %v1154_v46, %v8743_v32  ;;  %v3868_v59 = vld [vmem:[%s13121_s8 + $0x10] sm:$0xff]  ;;  %v3869_v63 = vld [vmem:[%s13121_s8 + $0x18] sm:$0xff] }
  0x9e   : > { %733 = vmatpush1.bf16.msra.mxu0 %v724_v56  ;;  %647 = vmatprep.mubr.bf16.mxu0 %v13136_v21  ;;  %v872_v0 = vand.u32 %v850_v62, %v8743_v32  ;;  %v875_v2 = vand.u32 %v851_v60, %v8743_v32  ;;  %v869_v30 = vand.u32 %v849_v22, %v8743_v32 }
  0x9f   : > { %7884 = vmatmul.mubr.msk.bf16.vlgmr.msra.gmra.mrb[0].mxu1 %vm585_vm0, %v8318_v57  ;;  %v1003_v10 = vsel %vm1002_vm6, %v8262_v7, %v1001_v8  ;;  %v1004_v13 = vsel %vm1002_vm6, %v8261_v9, %v8262_v7  ;;  %1929 = vperm.xlu0 %8283, %v1923_v19   ;;  %v1005_v39 = vsel %vm1002_vm6, %v1001_v8, %v8261_v9 }
  0xa0   : > { %7888 = vmatpush3.bf16.msra.mxu1 %v730_v53  ;;  %7889 = vmatprep.mubr.msk.bf16.mxu1 %vm585_vm0, %v8319_v61  ;;  %v1008_v14 = vpack.c.bf16 %v1003_v10, %v1003_v10  ;;  %v1007_v25 = vpack.c.bf16 %v1004_v13, %v1004_v13  ;;  %v8834_v40 = vpop.permute.xlu0 %8264  ;;  %v1006_v43 = vpack.c.bf16 %v1005_v39, %v1005_v39  ;;  %v8855_v47 = vpop.permute.xlu1 %1300 }
  0xa1   : > { %877 = vmatprep.subr.bf16.mxu0 %v872_v0  ;;  %7893 = vmatprep.subr.bf16.mxu1 %v875_v2  ;;  %v8267_v44 = vunpack.i.h.bf16 %v8834_v40  ;;  %13287 = vst [vmem:[#allocation10_spill] sm:$0xff] %v8870_v51  ;;  %v8266_v58 = vunpack.i.l.bf16 %v8834_v40 }
  0xa2   : > { %v1032_v29 = vand.u32 %v1008_v14, %v8743_v32  ;;  %v1029_v31 = vand.u32 %v1007_v25, %v8743_v32  ;;  %3836 = vperm.xlu1 %8284, %v3830_v20   ;;  %v1026_v49 = vand.u32 %v1006_v43, %v8743_v32 }
  0xa3   : > { %1970 = vperm.xlu0 %8283, %v1960_v28   ;;  %v1309_v16 = vsel %vm1306_vm7, %v8267_v44, %v8855_v47  ;;  %v1307_v0 = vsel %vm1306_vm7, %v8266_v58, %v8267_v44  ;;  %v1308_v26 = vsel %vm1306_vm7, %v8855_v47, %v8266_v58  ;;  %v8330_v44 = vld [vmem:[%s13116_s3 + $0x68] sm:$0xff]  }
  0xa4   : > { %v1312_v53 = vpack.c.bf16 %v1309_v16, %v1309_v16  ;;  %v8884_v56 = vpop.permute.xlu0 %8269  ;;  %v1458_v62 = vpop.permute.xlu1 %1457  ;;  %v1311_v8 = vpack.c.bf16 %v1307_v0, %v1307_v0 }
  0xa5   : > { %7519 = vmatmul.mubr.msk.bf16.gmra.mrb[4].mxu0 %vm585_vm0, %v8318_v57  ;;  %v8325_v57 = vld [vmem:[%s13116_s3 + $0x40] sm:$0xff]  }
  0xa6   : > { %764 = vmatprep.mubr.bf16.mxu0 %v13136_v21  ;;  %3872 = vperm.xlu1 %8284, %v3866_v48   ;;  %v1336_v60 = vand.u32 %v1312_v53, %v8743_v32  ;;  %v1333_v13 = vand.u32 %v1311_v8, %v8743_v32 }
  0xa7   : > { %1944 = vperm.xlu0 %8283, %v1926_v34   ;;  %v8329_v34 = vld [vmem:[%s13116_s3 + $0x60] sm:$0xff]  }
  0xa8   : > { %v8917_v14 = vpop.permute.xlu0 %8274  ;;  %v1615_v22 = vpop.permute.xlu1 %1614 }
  0xa9   : > { %v8277_v19 = vunpack.i.h.bf16 %v8917_v14 }
  0xaa   : > { %3846 = vperm.xlu1 %8284, %v3832_v52   ;;  %v8332_v52 = vld [vmem:[%s13116_s3 + $0x78] sm:$0xff]  }
  0xab   : > { %7890 = vmatmul.mubr.msk.bf16.vlgmr.msra.gmra.mrb[0].mxu1 %vm585_vm0, %v8320_v24  ;;  %1980 = vperm.xlu0 %8283, %v1962_v37   ;;  %v1623_v25 = vsel %vm1620_vm9, %v8277_v19, %v1615_v22 }
  0xac   : > { %7894 = vmatpush3.bf16.msra.mxu1 %v875_v2  ;;  %7895 = vmatprep.mubr.msk.bf16.mxu1 %vm585_vm0, %v8321_v27  ;;  %v1153_v2 = vpack.c.bf16 %v8689_v15, %v8689_v15  ;;  %v8327_v15 = vld [vmem:[%s13116_s3 + $0x50] sm:$0xff]   ;;  %v1626_v28 = vpack.c.bf16 %v1623_v25, %v1623_v25  ;;  %v8280_v33 = vpop.permute.xlu0 %8279  ;;  %v1772_v39 = vpop.permute.xlu1 %1771 }
  0xad   : > { %7524 = vmatmul.mubr.msk.bf16.vlgmr.msra.gmra.mrb[0].mxu0 %vm585_vm0, %v8319_v61  ;;  %7899 = vmatprep.subr.bf16.mxu1 %v1032_v29  ;;  %v8272_v61 = vunpack.i.h.bf16 %v8884_v56  ;;  %v8282_v37 = vunpack.i.h.bf16 %v8280_v33  ;;  %v8281_v53 = vunpack.i.l.bf16 %v8280_v33 }
  0xae   : > { %878 = vmatpush1.bf16.msra.mxu0 %v869_v30  ;;  %774 = vmatprep.mubr.bf16.mxu0 %v13136_v21  ;;  %v8911_v10 = vand.u32 %v1153_v2, %v8743_v32  ;;  %v8328_v30 = vld [vmem:[%s13116_s3 + $0x58] sm:$0xff]   ;;  %v1650_v35 = vand.u32 %v1626_v28, %v8743_v32 }
  0xaf   : > { %1034 = vmatprep.subr.bf16.mxu0 %v1029_v31  ;;  %3841 = vperm.xlu0 %8283, %v3831_v45   ;;  %v1466_v7 = vsel %vm1463_vm8, %v8272_v61, %v1458_v62  ;;  %v1780_v40 = vsel %vm1777_vm10, %v8282_v37, %v1772_v39  ;;  %v8331_v45 = vld [vmem:[%s13116_s3 + $0x70] sm:$0xff]  }
  0xb0   : > { %3882 = vperm.xlu1 %8284, %v3868_v59   ;;  %v1469_v9 = vpack.c.bf16 %v1466_v7, %v1466_v7  ;;  %13288 = vst [vmem:[#allocation11_spill] sm:$0xff] %v8911_v10  ;;  %v1783_v20 = vpack.c.bf16 %v1780_v40, %v1780_v40 }
  0xb2   : > { %v1493_v18 = vand.u32 %v1469_v9, %v8743_v32  ;;  %v1807_v47 = vand.u32 %v1783_v20, %v8743_v32 }
  0xb3   : > { %3877 = vperm.xlu0 %8283, %v3867_v50  }
  0xb5   : > { %7525 = vmatmul.mubr.msk.bf16.gmra.mrb[4].mxu0 %vm585_vm0, %v8320_v24  ;;  %v8271_v24 = vunpack.i.l.bf16 %v8884_v56  ;;  %v1778_v56 = vsel %vm1777_vm10, %v8281_v53, %v8282_v37 }
  0xb6   : > { %909 = vmatprep.mubr.bf16.mxu0 %v13136_v21  ;;  %v1782_v58 = vpack.c.bf16 %v1778_v56, %v1778_v56 }
  0xb7   : > { %7896 = vmatmul.mubr.msk.bf16.vlgmr.msra.gmra.mrb[0].mxu1 %vm585_vm0, %v8322_v38  ;;  %3851 = vperm.xlu0 %8283, %v3833_v54   ;;  %v1465_v43 = vsel %vm1463_vm8, %v1458_v62, %v8271_v24  ;;  %v8333_v54 = vld [vmem:[%s13116_s3 + $0x80] sm:$0xff]   ;;  %v1779_v62 = vsel %vm1777_vm10, %v1772_v39, %v8281_v53 }
  0xb8   : > { %7900 = vmatpush3.bf16.msra.mxu1 %v1032_v29  ;;  %7901 = vmatprep.mubr.msk.bf16.mxu1 %vm585_vm0, %v8323_v41  ;;  %v1310_v29 = vpack.c.bf16 %v1308_v26, %v1308_v26  ;;  %v1467_v48 = vpack.c.bf16 %v1465_v43, %v1465_v43 }
  0xb9   : > { %7905 = vmatprep.subr.bf16.mxu1 %v8843_v42 }
  0xba   : > { %v1330_v36 = vand.u32 %v1310_v29, %v8743_v32  ;;  %v1487_v16 = vand.u32 %v1467_v48, %v8743_v32 }
  0xbb   : > { %3887 = vperm.xlu0 %8283, %v3869_v63   ;;  %v1781_v63 = vpack.c.bf16 %v1779_v62, %v1779_v62 }
  0xbd   : > { %7534 = vmatmul.mubr.msk.bf16.vlgmr.msra.gmra.mrb[0].mxu0 %vm585_vm0, %v8321_v27  ;;  %v1464_v27 = vsel %vm1463_vm8, %v8271_v24, %v8272_v61  ;;  %v1804_v61 = vand.u32 %v1782_v58, %v8743_v32  ;;  %v1801_v0 = vand.u32 %v1781_v63, %v8743_v32  ;;  %v9012_v2 = vpop.permute.xlu1 %1934 }
  0xbe   : > { %1035 = vmatpush1.bf16.msra.mxu0 %v1026_v49  ;;  %919 = vmatprep.mubr.bf16.mxu0 %v13136_v21  ;;  %v1468_v31 = vpack.c.bf16 %v1464_v27, %v1464_v27 }
  0xbf   : > { %1181 = vmatprep.subr.bf16.mxu0 %v8870_v51 }
  0xc3   : > { %7902 = vmatmul.mubr.msk.bf16.vlgmr.msra.gmra.mrb[0].mxu1 %vm585_vm0, %v8324_v55 }
  0xc4   : > { %7906 = vmatpush3.bf16.msra.mxu1 %v8843_v42  ;;  %7907 = vmatprep.mubr.msk.bf16.mxu1 %vm585_vm0, %v8325_v57 }
  0xc5   : > { %7535 = vmatmul.mubr.msk.bf16.gmra.mrb[4].mxu0 %vm585_vm0, %v8322_v38  ;;  %7911 = vmatprep.subr.bf16.mxu1 %v1336_v60  ;;  %v1490_v38 = vand.u32 %v1468_v31, %v8743_v32 }
  0xc6   : > { %1066 = vmatprep.mubr.bf16.mxu0 %v13136_v21 }
  0xcd   : > { %7544 = vmatmul.mubr.msk.bf16.vlgmr.msra.gmra.mrb[0].mxu0 %vm585_vm0, %v8323_v41  ;;  %v8276_v41 = vunpack.i.l.bf16 %v8917_v14 }
  0xce   : > { %1182 = vmatpush1.bf16.msra.mxu0 %v8911_v10  ;;  %1076 = vmatprep.mubr.bf16.mxu0 %v13136_v21 }
  0xcf   : > { %7908 = vmatmul.mubr.msk.bf16.vlgmr.msra.gmra.mrb[0].mxu1 %vm585_vm0, %v8326_v11  ;;  %1338 = vmatprep.subr.bf16.mxu0 %v1333_v13  ;;  %v1621_v46 = vsel %vm1620_vm9, %v8276_v41, %v8277_v19 }
  0xd0   : > { %7912 = vmatpush3.bf16.msra.mxu1 %v1336_v60  ;;  %7913 = vmatprep.mubr.msk.bf16.mxu1 %vm585_vm0, %v8327_v15  ;;  %v1625_v49 = vpack.c.bf16 %v1621_v46, %v1621_v46  ;;  %v8334_v60 = vld [vmem:[%s13116_s3 + $0x88] sm:$0xff]  }
  0xd1   : > { %7917 = vmatprep.subr.bf16.mxu1 %v1493_v18 }
  0xd2   : > { %v1647_v50 = vand.u32 %v1625_v49, %v8743_v32 }
  0xd5   : > { %7545 = vmatmul.mubr.msk.bf16.gmra.mrb[4].mxu0 %vm585_vm0, %v8324_v55  ;;  %v1622_v55 = vsel %vm1620_vm9, %v1615_v22, %v8276_v41 }
  0xd6   : > { %1213 = vmatprep.mubr.bf16.mxu0 %v13136_v21 }
  0xdb   : > { %7914 = vmatmul.mubr.msk.bf16.vlgmr.msra.gmra.mrb[0].mxu1 %vm585_vm0, %v8328_v30 }
  0xdc   : > { %7918 = vmatpush3.bf16.msra.mxu1 %v1493_v18  ;;  %7919 = vmatprep.mubr.msk.bf16.mxu1 %vm585_vm0, %v8329_v34 }
  0xdd   : > { %7554 = vmatmul.mubr.msk.bf16.vlgmr.msra.gmra.mrb[0].mxu0 %vm585_vm0, %v8325_v57  ;;  %7923 = vmatprep.subr.bf16.mxu1 %v1650_v35  ;;  %v1624_v57 = vpack.c.bf16 %v1622_v55, %v1622_v55 }
  0xde   : > { %1339 = vmatpush1.bf16.msra.mxu0 %v1330_v36  ;;  %1223 = vmatprep.mubr.bf16.mxu0 %v13136_v21 }
  0xdf   : > { %1495 = vmatprep.subr.bf16.mxu0 %v1490_v38  ;;  %v1644_v59 = vand.u32 %v1624_v57, %v8743_v32 }
  0xe5   : > { %7555 = vmatmul.mubr.msk.bf16.gmra.mrb[4].mxu0 %vm585_vm0, %v8326_v11 }
  0xe6   : > { %1370 = vmatprep.mubr.bf16.mxu0 %v13136_v21 }
  0xe7   : > { %7920 = vmatmul.mubr.msk.bf16.vlgmr.msra.gmra.mrb[0].mxu1 %vm585_vm0, %v8330_v44 }
  0xe8   : > { %7924 = vmatpush3.bf16.msra.mxu1 %v1650_v35  ;;  %7925 = vmatprep.mubr.msk.bf16.mxu1 %vm585_vm0, %v8331_v45 }
  0xe9   : > { %7929 = vmatprep.subr.bf16.mxu1 %v1807_v47 }
  0xed   : > { %7564 = vmatmul.mubr.msk.bf16.vlgmr.msra.gmra.mrb[0].mxu0 %vm585_vm0, %v8327_v15 }
  0xee   : > { %1496 = vmatpush1.bf16.msra.mxu0 %v1487_v16  ;;  %1380 = vmatprep.mubr.bf16.mxu0 %v13136_v21 }
  0xef   : > { %1652 = vmatprep.subr.bf16.mxu0 %v1647_v50 }
  0xf3   : > { %7926 = vmatmul.mubr.msk.bf16.vlgmr.msra.gmra.mrb[0].mxu1 %vm585_vm0, %v8332_v52 }
  0xf4   : > { %7930 = vmatpush3.bf16.msra.mxu1 %v1807_v47  ;;  %7931 = vmatprep.mubr.msk.bf16.mxu1 %vm585_vm0, %v8333_v54 }
  0xf5   : > { %7565 = vmatmul.mubr.msk.bf16.gmra.mrb[4].mxu0 %vm585_vm0, %v8328_v30 }
  0xf6   : > { %1527 = vmatprep.mubr.bf16.mxu0 %v13136_v21 }
  0xfd   : > { %7574 = vmatmul.mubr.msk.bf16.vlgmr.msra.gmra.mrb[0].mxu0 %vm585_vm0, %v8329_v34 }
  0xfe   : > { %1653 = vmatpush1.bf16.msra.mxu0 %v1644_v59  ;;  %1537 = vmatprep.mubr.bf16.mxu0 %v13136_v21 }
  0xff   : > { %7932 = vmatmul.mubr.msk.bf16.vlgmr.msra.gmra.mrb[0].mxu1 %vm585_vm0, %v8334_v60  ;;  %1809 = vmatprep.subr.bf16.mxu0 %v1804_v61 }
 0x100   : > { %2392 = vmatprep.mubr.bf16.mxu1 %v13136_v21 }
 0x105   : > { %7575 = vmatmul.mubr.msk.bf16.gmra.mrb[4].mxu0 %vm585_vm0, %v8330_v44 }
 0x106   : > { %1684 = vmatprep.mubr.bf16.mxu0 %v13136_v21 }
 0x10d   : > { %7584 = vmatmul.mubr.msk.bf16.vlgmr.msra.gmra.mrb[0].mxu0 %vm585_vm0, %v8331_v45 }
 0x10e   : > { %1810 = vmatpush1.bf16.msra.mxu0 %v1801_v0  ;;  %1694 = vmatprep.mubr.bf16.mxu0 %v13136_v21 }
 0x111   : > { %v9016_v7 = vpop.permute.xlu1 %1965 }
 0x115   : > { %7585 = vmatmul.mubr.msk.bf16.gmra.mrb[4].mxu0 %vm585_vm0, %v8332_v52  ;;  %v9020_v9 = vpop.permute.xlu1 %1939 }
 0x116   : > { %1841 = vmatprep.mubr.bf16.mxu0 %v13136_v21 }
 0x119   : > { %v9024_v14 = vpop.permute.xlu1 %1975 }
 0x11d   : > { %7594 = vmatmul.mubr.msk.bf16.vlgmr.msra.gmra.mrb[0].mxu0 %vm585_vm0, %v8333_v54 }
 0x11e   : > { %1851 = vmatprep.mubr.bf16.mxu0 %v13136_v21  ;;  %v9014_v32 = vpop.permute.xlu0 %1929 }
 0x122   : > { %v9018_v8 = vpop.permute.xlu0 %1970 }
 0x125   : > { %7595 = vmatmul.mubr.msk.bf16.gmra.mrb[4].mxu0 %vm585_vm0, %v8334_v60 }
 0x126   : > { %2893 = vmatprep.mubr.bf16.mxu0 %v13136_v21  ;;  %v9022_v11 = vpop.permute.xlu0 %1944 }
 0x12a   : > { %v9028_v24 = vpop.permute.xlu0 %1980 }
 0x1d2   : > { %v7933_v13 = vpop.f32.mrb[0].mxu1 }
 0x1d3   : > { %v1955_v15 = vmul.f32 %v7933_v13, %v9020_v9  ;;  %v1896_v18 = vpop.f32.mrb[1].mxu1 }
 0x1d4   : > { %v1949_v19 = vmul.f32 %v9014_v32, %v1896_v18  ;;  %v7934_v22 = vpop.f32.mrb[2].mxu1 }
 0x1d5   : > { %v9031_v25 = vadd.f32 %v9024_v14, %v1955_v15  ;;  %v1958_v26 = vmul.f32 %v7934_v22, %v9022_v11  ;;  %v1899_v27 = vpop.f32.mrb[3].mxu1 }
 0x1d6   : > { %v9035_v28 = vadd.f32 %v9016_v7, %v1949_v19  ;;  %v1952_v29 = vmul.f32 %v9012_v2, %v1899_v27 }
 0x1d7   : > { %v9039_v30 = vmul.f32 0.70710677, %v9031_v25  ;;  %v9042_v31 = vadd.f32 %v9028_v24, %v1958_v26 }
 0x1d8   : > { %v9045_v33 = vmul.f32 0.70710677, %v9035_v28  ;;  %v9048_v34 = vadd.f32 %v9018_v8, %v1952_v29 }
 0x1d9   : > { %v2027_v35 = vand.u32 2147483647, %v9039_v30  ;;  %v9052_v36 = vmul.f32 0.70710677, %v9042_v31  ;;  %vm2267_vm11 = vcmp.lt.f32.partialorder %v9039_v30, 0.0  ;;  %v1997_v30 = vmul.f32 0.5, %v9035_v28 }
 0x1da   : > { %v2021_v37 = vand.u32 2147483647, %v9045_v33  ;;  %v9056_v38 = vmul.f32 0.70710677, %v9048_v34  ;;  %vm2261_vm12 = vcmp.lt.f32.partialorder %v9045_v33, 0.0 }
 0x1db   : > { %v2039_v39 = vmul.f32 0.3275911, %v2027_v35  ;;  %v2030_v40 = vand.u32 2147483647, %v9052_v36  ;;  %v2195_v49 = vsub.f32 0.0, %v2027_v35  ;;  %vm2270_vm14 = vcmp.lt.f32.partialorder %v9052_v36, 0.0 }
 0x1dc   : > { %v2033_v41 = vmul.f32 0.3275911, %v2021_v37  ;;  %v2024_v20 = vand.u32 2147483647, %v9056_v38  ;;  %v2189_v16 = vsub.f32 0.0, %v2021_v37  ;;  %vm2264_vm13 = vcmp.lt.f32.partialorder %v9056_v38, 0.0 }
 0x1dd   : > { %v2051_v43 = vadd.f32 1.0, %v2039_v39  ;;  %v2042_v44 = vmul.f32 0.3275911, %v2030_v40  ;;  %v2207_v50 = vmul.f32 %v2195_v49, %v2027_v35  ;;  %v2198_v58 = vsub.f32 0.0, %v2030_v40 }
 0x1de   : > { %v2045_v45 = vadd.f32 1.0, %v2033_v41  ;;  %v2036_v46 = vmul.f32 0.3275911, %v2024_v20  ;;  %v2201_v53 = vmul.f32 %v2189_v16, %v2021_v37  ;;  %v2192_v54 = vsub.f32 0.0, %v2024_v20 }
 0x1df   : > { %8371 = vrcp.f32 %v2051_v43  ;;  %v2054_v48 = vadd.f32 1.0, %v2042_v44  ;;  %v2227_v60 = vmul.f32 1.442695, %v2207_v50  ;;  %v2210_v22 = vmul.f32 %v2198_v58, %v2030_v40 }
 0x1e0   : > { %8373 = vrcp.f32 %v2045_v45  ;;  %v2048_v47 = vadd.f32 1.0, %v2036_v46  ;;  %v2215_v63 = vmul.f32 1.442695, %v2201_v53  ;;  %v2204_v0 = vmul.f32 %v2192_v54, %v2024_v20 }
 0x1e2   : > { %8375 = vrcp.f32 %v2048_v47  ;;  %v2221_v37 = vmul.f32 1.442695, %v2204_v0  ;;  %v2233_v47 = vmul.f32 1.442695, %v2210_v22 }
 0x1e3   : > { %8377 = vrcp.f32 %v2054_v48 }
 0x1e4   : > { %8379 = vpow2.f32 %v2227_v60 }
 0x1e5   : > { %8381 = vpow2.f32 %v2215_v63 }
 0x1e6   : > { %8383 = vpow2.f32 %v2221_v37 }
 0x1e7   : > { %8385 = vpow2.f32 %v2233_v47 }
 0x1e9   : > { %v8372_v52 = vpop.eup %8371 }
 0x1ea   : > { %v8374_v55 = vpop.eup %8373  ;;  %v2087_v56 = vmul.f32 1.0614054, %v8372_v52 }
 0x1eb   : > { %v2081_v57 = vmul.f32 1.0614054, %v8374_v55 }
 0x1ec   : > { %v2099_v59 = vadd.f32 -1.4531521, %v2087_v56  ;;  %v9060_v61 = vpop.eup %8375 }
 0x1ed   : > { %v2093_v62 = vadd.f32 -1.4531521, %v2081_v57  ;;  %v2084_v15 = vmul.f32 1.0614054, %v9060_v61  ;;  %v9063_v18 = vpop.eup %8377 }
 0x1ee   : > { %v2111_v13 = vmul.f32 %v8372_v52, %v2099_v59  ;;  %v2090_v29 = vmul.f32 1.0614054, %v9063_v18 }
 0x1ef   : > { %v2105_v19 = vmul.f32 %v8374_v55, %v2093_v62  ;;  %v2096_v27 = vadd.f32 -1.4531521, %v2084_v15 }
 0x1f0   : > { %v2123_v26 = vadd.f32 1.4214138, %v2111_v13  ;;  %v1843_v39 = vpop.f32.mrb[0].mxu0  ;;  %v2102_v20 = vadd.f32 -1.4531521, %v2090_v29 }
 0x1f1   : > { %v2117_v35 = vadd.f32 1.4214138, %v2105_v19  ;;  %v2108_v43 = vmul.f32 %v9060_v61, %v2096_v27  ;;  %v1947_v44 = vmul.f32 %v9014_v32, %v1843_v39  ;;  %v1845_v45 = vpop.f32.mrb[1].mxu0  ;;  %v8380_v27 = vpop.eup %8379 }
 0x1f2   : > { %v2135_v41 = vmul.f32 %v8372_v52, %v2123_v26  ;;  %v1948_v40 = vmul.f32 %v9014_v32, %v1845_v45  ;;  %v1847_v48 = vpop.f32.mrb[2].mxu0  ;;  %v2114_v50 = vmul.f32 %v9063_v18, %v2102_v20 }
 0x1f3   : > { %v2129_v46 = vmul.f32 %v8374_v55, %v2117_v35  ;;  %v2120_v16 = vadd.f32 1.4214138, %v2108_v43  ;;  %v9071_v53 = vadd.f32 %v9016_v7, %v1947_v44  ;;  %v1849_v54 = vpop.f32.mrb[3].mxu0  ;;  %v1950_v26 = vmul.f32 %v9012_v2, %v1847_v48  ;;  %v8382_v43 = vpop.eup %8381 }
 0x1f4   : > { %v2147_v49 = vadd.f32 -0.28449672, %v2135_v41  ;;  %v9074_v57 = vadd.f32 %v9016_v7, %v1948_v40  ;;  %v2126_v60 = vadd.f32 1.4214138, %v2114_v50 }
 0x1f5   : > { %v2141_v56 = vadd.f32 -0.28449672, %v2129_v46  ;;  %v2132_v59 = vmul.f32 %v9060_v61, %v2120_v16  ;;  %v9078_v32 = vmul.f32 0.70710677, %v9071_v53  ;;  %v9101_v50 = vadd.f32 %v9018_v8, %v1950_v26 }
 0x1f6   : > { %v2159_v58 = vmul.f32 %v8372_v52, %v2147_v49  ;;  %v9081_v63 = vmul.f32 0.70710677, %v9074_v57  ;;  %v2138_v15 = vmul.f32 %v9063_v18, %v2126_v60 }
 0x1f7   : > { %v2153_v62 = vmul.f32 %v8374_v55, %v2141_v56  ;;  %v2144_v13 = vadd.f32 -0.28449672, %v2132_v59  ;;  %v2019_v22 = vand.u32 2147483647, %v9078_v32  ;;  %v1951_v56 = vmul.f32 %v9012_v2, %v1849_v54 }
 0x1f8   : > { %v2171_v0 = vadd.f32 0.2548296, %v2159_v58  ;;  %v9084_v19 = vpop.f32.mrb[4].mxu0  ;;  %v2150_v37 = vadd.f32 -0.28449672, %v2138_v15  ;;  %vm2259_vm15 = vcmp.lt.f32.partialorder %v9078_v32, 0.0 }
 0x1f9   : > { %v2165_v7 = vadd.f32 0.2548296, %v2153_v62  ;;  %v2156_v35 = vmul.f32 %v9060_v61, %v2144_v13  ;;  %v9090_v39 = vand.u32 2147483647, %v9081_v63  ;;  %v9092_v41 = vpop.f32.mrb[5].mxu0  ;;  %v8384_v62 = vpop.eup %8383  ;;  %v2187_v2 = vsub.f32 0.0, %v2019_v22 }
 0x1fa   : > { %v2183_v29 = vmul.f32 %v8372_v52, %v2171_v0  ;;  %v2031_v44 = vmul.f32 0.3275911, %v2019_v22  ;;  %v9094_v45 = vpop.f32.mrb[6].mxu0  ;;  %v2162_v40 = vmul.f32 %v9063_v18, %v2150_v37  ;;  %v9109_v54 = vmul.f32 0.70710677, %v9101_v50 }
 0x1fb   : > { %v2177_v20 = vmul.f32 %v8374_v55, %v2165_v7  ;;  %v2168_v47 = vadd.f32 0.2548296, %v2156_v35  ;;  %v2032_v48 = vmul.f32 0.3275911, %v9090_v39  ;;  %v9098_v52 = vpop.f32.mrb[7].mxu0  ;;  %v9112_v37 = vadd.f32 %v9018_v8, %v1951_v56 }
 0x1fc   : > { %v2243_v46 = vmul.f32 %v8380_v27, %v2183_v29  ;;  %v2043_v16 = vadd.f32 1.0, %v2031_v44  ;;  %v2174_v59 = vadd.f32 0.2548296, %v2162_v40  ;;  %v8386_v27 = vpop.eup %8385  ;;  %v2000_v40 = vmul.f32 0.5, %v9048_v34 }
 0x1fd   : > { %v2237_v49 = vmul.f32 %v8382_v43, %v2177_v20  ;;  %v2180_v55 = vmul.f32 %v9060_v61, %v2168_v47  ;;  %v2044_v60 = vadd.f32 1.0, %v2032_v48  ;;  %v2022_v20 = vand.u32 2147483647, %v9109_v54 }
 0x1fe   : > { %v2255_v58 = vsub.f32 1.0, %v2243_v46  ;;  %8387 = vrcp.f32 %v2043_v16  ;;  %v2186_v7 = vmul.f32 %v9063_v18, %v2174_v59  ;;  %v2003_v18 = vmul.f32 0.5, %v9031_v25 }
 0x1ff   : > { %v2249_v0 = vsub.f32 1.0, %v2237_v49  ;;  %v2240_v15 = vmul.f32 %v8384_v62, %v2180_v55  ;;  %8389 = vrcp.f32 %v2044_v60  ;;  %v2199_v48 = vmul.f32 %v2187_v2, %v2019_v22 }
 0x200   : > { %v2279_v13 = vsub.f32 0.0, %v2255_v58  ;;  %v2246_v35 = vmul.f32 %v8386_v27, %v2186_v7  ;;  %v2034_v49 = vmul.f32 0.3275911, %v2022_v20  ;;  %v2188_v56 = vsub.f32 0.0, %v9090_v39 }
 0x201   : > { %v2273_v26 = vsub.f32 0.0, %v2249_v0  ;;  %v2252_v29 = vsub.f32 1.0, %v2240_v15  ;;  %v9121_v28 = vmul.f32 0.70710677, %v9112_v37  ;;  %v2006_v60 = vmul.f32 0.5, %v9042_v31 }
 0x202   : > { %v2291_v61 = vsel %vm2267_vm11, %v2279_v13, %v2255_v58  ;;  %v2258_v47 = vsub.f32 1.0, %v2246_v35  ;;  %v2046_v55 = vadd.f32 1.0, %v2034_v49  ;;  %v2211_v13 = vmul.f32 1.442695, %v2199_v48 }
 0x203   : > { %v2285_v43 = vsel %vm2261_vm12, %v2273_v26, %v2249_v0  ;;  %v2303_v33 = vadd.f32 1.0, %v2291_v61  ;;  %v2276_v46 = vsub.f32 0.0, %v2252_v29  ;;  %v2023_v38 = vand.u32 2147483647, %v9121_v28 }
 0x204   : > { %v2297_v44 = vadd.f32 1.0, %v2285_v43  ;;  %v2282_v8 = vsub.f32 0.0, %v2258_v47  ;;  %8391 = vrcp.f32 %v2046_v55  ;;  %v2200_v27 = vmul.f32 %v2188_v56, %v9090_v39 }
 0x205   : > { %v2288_v16 = vsel %vm2264_vm13, %v2276_v46, %v2252_v29  ;;  %v2315_v59 = vmul.f32 %v2303_v33, %v2003_v18  ;;  %v2035_v36 = vmul.f32 0.3275911, %v2023_v38  ;;  %v1953_v26 = vmul.f32 %v9020_v9, %v9084_v19 }
 0x206   : > { %v2309_v25 = vmul.f32 %v2297_v44, %v1997_v30  ;;  %v2300_v58 = vadd.f32 1.0, %v2288_v16  ;;  %v2294_v34 = vsel %vm2270_vm14, %v2282_v8, %v2258_v47  ;;  %v1954_v19 = vmul.f32 %v9020_v9, %v9092_v41 }
 0x207   : > { %v2306_v0 = vadd.f32 1.0, %v2294_v34  ;;  %v2329_v35 = vmul.f32 %v2315_v59, %v8696_v17  ;;  %v2047_v43 = vadd.f32 1.0, %v2035_v36  ;;  %v9139_v18 = vadd.f32 %v9024_v14, %v1953_v26 }
 0x208   : > { %v9126_v22 = vpop.eup %8387  ;;  %v2312_v62 = vmul.f32 %v2300_v58, %v2000_v40  ;;  %v2323_v31 = vmul.f32 %v2309_v25, %v8696_v17  ;;  %v2190_v47 = vsub.f32 0.0, %v2022_v20  ;;  %v9154_v16 = vadd.f32 %v9024_v14, %v1954_v19 }
 0x209   : > { %v9128_v15 = vpop.eup %8389  ;;  %v2079_v7 = vmul.f32 1.0614054, %v9126_v22  ;;  %v2318_v61 = vmul.f32 %v2306_v0, %v2006_v60  ;;  %8393 = vrcp.f32 %v2047_v43  ;;  %v9151_v49 = vmul.f32 0.70710677, %v9139_v18 }
 0x20a   : > { %v2326_v2 = vmul.f32 %v2312_v62, %v8696_v17  ;;  %v2080_v29 = vmul.f32 1.0614054, %v9128_v15  ;;  %v2213_v56 = vmul.f32 1.442695, %v2200_v27  ;;  %8395 = vpow2.f32 %v2211_v13 }
 0x20b   : > { %v2091_v30 = vadd.f32 -1.4531521, %v2079_v7  ;;  %v2332_v39 = vmul.f32 %v2318_v61, %v8696_v17  ;;  %v2025_v9 = vand.u32 2147483647, %v9151_v49  ;;  %v1956_v41 = vmul.f32 %v9022_v11, %v9094_v45 }
 0x20c   : > { %v9141_v44 = vpack.c.bf16 %v2326_v2, %v2323_v31  ;;  %v2092_v33 = vadd.f32 -1.4531521, %v2080_v29  ;;  %v9161_v55 = vmul.f32 0.70710677, %v9154_v16  ;;  %v2202_v14 = vmul.f32 %v2190_v47, %v2022_v20 }
 0x20d   : > { %v2103_v46 = vmul.f32 %v9126_v22, %v2091_v30  ;;  %v9147_v40 = vpack.c.bf16 %v2332_v39, %v2329_v35  ;;  %v2191_v34 = vsub.f32 0.0, %v2023_v38  ;;  %v2037_v62 = vmul.f32 0.3275911, %v2025_v9 }
 0x20e   : > { %v2104_v48 = vmul.f32 %v9128_v15, %v2092_v33  ;;  %v9163_v59 = vpop.eup %8391  ;;  %8397 = vpow2.f32 %v2213_v56  ;;  %v2026_v7 = vand.u32 2147483647, %v9161_v55  ;;  %v9169_v36 = vadd.f32 %v9028_v24, %v1956_v41 }
 0x20f   : > { %v2115_v8 = vadd.f32 1.4214138, %v2103_v46  ;;  %v2082_v13 = vmul.f32 1.0614054, %v9163_v59  ;;  %v2049_v45 = vadd.f32 1.0, %v2037_v62  ;;  %v1957_v20 = vmul.f32 %v9022_v11, %v9098_v52 }
 0x210   : > { %v2116_v25 = vadd.f32 1.4214138, %v2104_v48  ;;  %v2038_v2 = vmul.f32 0.3275911, %v2026_v7  ;;  %v2217_v29 = vmul.f32 1.442695, %v2202_v14  ;;  %v2203_v39 = vmul.f32 %v2191_v34, %v2023_v38 }
 0x211   : > { %v2127_v58 = vmul.f32 %v9126_v22, %v2115_v8  ;;  %v2094_v31 = vadd.f32 -1.4531521, %v2082_v13  ;;  %8399 = vrcp.f32 %v2049_v45  ;;  %v9180_v47 = vmul.f32 0.70710677, %v9169_v36 }
 0x212   : > { %v2128_v60 = vmul.f32 %v9128_v15, %v2116_v25  ;;  %v2050_v33 = vadd.f32 1.0, %v2038_v2  ;;  %v9184_v52 = vadd.f32 %v9028_v24, %v1957_v20  ;;  %v2193_v34 = vsub.f32 0.0, %v2025_v9 }
 0x213   : > { %v2139_v0 = vadd.f32 -0.28449672, %v2127_v58  ;;  %v9175_v35 = vpop.eup %8393  ;;  %v2106_v43 = vmul.f32 %v9163_v59, %v2094_v31  ;;  %v2028_v38 = vand.u32 2147483647, %v9180_v47  ;;  %vm2260_vm0 = vcmp.lt.f32.partialorder %v9081_v63, 0.0 }
 0x214   : > { %v2140_v27 = vadd.f32 -0.28449672, %v2128_v60  ;;  %v2083_v46 = vmul.f32 1.0614054, %v9175_v35  ;;  %8401 = vrcp.f32 %v2050_v33  ;;  %v8396_v8 = vpop.eup %8395  ;;  %v2219_v60 = vmul.f32 1.442695, %v2203_v39 }
 0x215   : > { %v2151_v26 = vmul.f32 %v9126_v22, %v2139_v0  ;;  %v2118_v11 = vadd.f32 1.4214138, %v2106_v43  ;;  %8403 = vpow2.f32 %v2217_v29  ;;  %v2040_v62 = vmul.f32 0.3275911, %v2028_v38 }
 0x216   : > { %v2152_v61 = vmul.f32 %v9128_v15, %v2140_v27  ;;  %v2095_v25 = vadd.f32 -1.4531521, %v2083_v46  ;;  %v9191_v27 = vmul.f32 0.70710677, %v9184_v52  ;;  %8405 = vpow2.f32 %v2219_v60 }
 0x217   : > { %v2163_v30 = vadd.f32 0.2548296, %v2151_v26  ;;  %v2130_v58 = vmul.f32 %v9163_v59, %v2118_v11  ;;  %v2052_v31 = vadd.f32 1.0, %v2040_v62  ;;  %v2205_v43 = vmul.f32 %v2193_v34, %v2025_v9 }
 0x218   : > { %v2164_v19 = vadd.f32 0.2548296, %v2152_v61  ;;  %v2107_v14 = vmul.f32 %v9175_v35, %v2095_v25  ;;  %v8398_v0 = vpop.eup %8397  ;;  %v9196_v61 = vand.u32 2147483647, %v9191_v27  ;;  %v9205_v46 = vmul.f32 0.5, %v9074_v57 }
 0x219   : > { %v2175_v48 = vmul.f32 %v9126_v22, %v2163_v30  ;;  %v2194_v22 = vsub.f32 0.0, %v2026_v7  ;;  %v2142_v24 = vadd.f32 -0.28449672, %v2130_v58  ;;  %8407 = vrcp.f32 %v2052_v31 }
 0x21a   : > { %v2176_v56 = vmul.f32 %v9128_v15, %v2164_v19  ;;  %v1995_v15 = vmul.f32 0.5, %v9071_v53  ;;  %v2119_v26 = vadd.f32 1.4214138, %v2107_v14  ;;  %v2041_v19 = vmul.f32 0.3275911, %v9196_v61 }
 0x21b   : > { %v2235_v41 = vmul.f32 %v8396_v8, %v2175_v48  ;;  %v2154_v20 = vmul.f32 %v9163_v59, %v2142_v24  ;;  %v9198_v29 = vpop.eup %8399  ;;  %v2206_v39 = vmul.f32 %v2194_v22, %v2026_v7  ;;  %v2223_v60 = vmul.f32 1.442695, %v2205_v43 }
 0x21c   : > { %v2236_v45 = vmul.f32 %v8398_v0, %v2176_v56  ;;  %v2131_v30 = vmul.f32 %v9175_v35, %v2119_v26  ;;  %v2085_v53 = vmul.f32 1.0614054, %v9198_v29  ;;  %v2053_v7 = vadd.f32 1.0, %v2041_v19 }
 0x21d   : > { %v2247_v13 = vsub.f32 1.0, %v2235_v41  ;;  %v2166_v33 = vadd.f32 0.2548296, %v2154_v20  ;;  %v2225_v34 = vmul.f32 1.442695, %v2206_v39  ;;  %v2196_v22 = vsub.f32 0.0, %v2028_v38 }
 0x21e   : > { %v2248_v48 = vsub.f32 1.0, %v2236_v45  ;;  %v2143_v11 = vadd.f32 -0.28449672, %v2131_v30  ;;  %v9207_v8 = vpop.eup %8401  ;;  %v2097_v9 = vadd.f32 -1.4531521, %v2085_v53  ;;  %8409 = vrcp.f32 %v2053_v7 }
 0x21f   : > { %v2271_v2 = vsub.f32 0.0, %v2247_v13  ;;  %v2178_v25 = vmul.f32 %v9163_v59, %v2166_v33  ;;  %v8404_v41 = vpop.eup %8403  ;;  %v2086_v14 = vmul.f32 1.0614054, %v9207_v8  ;;  %v1998_v59 = vmul.f32 0.5, %v9101_v50 }
 0x220   : > { %v2155_v58 = vmul.f32 %v9175_v35, %v2143_v11  ;;  %v2109_v57 = vmul.f32 %v9198_v29, %v2097_v9  ;;  %v2272_v0 = vsub.f32 0.0, %v2248_v48  ;;  %vm2262_vm1 = vcmp.lt.f32.partialorder %v9109_v54, 0.0  ;;  %v8406_v20 = vpop.eup %8405 }
 0x221   : > { %v2283_v56 = vsel %vm2259_vm15, %v2271_v2, %v2247_v13  ;;  %v2238_v32 = vmul.f32 %v8404_v41, %v2178_v25  ;;  %v2098_v13 = vadd.f32 -1.4531521, %v2086_v14  ;;  %8411 = vpow2.f32 %v2223_v60 }
 0x222   : > { %v2295_v62 = vadd.f32 1.0, %v2283_v56  ;;  %v2167_v24 = vadd.f32 0.2548296, %v2155_v58  ;;  %v2121_v26 = vadd.f32 1.4214138, %v2109_v57  ;;  %8413 = vpow2.f32 %v2225_v34 }
 0x223   : > { %v2250_v45 = vsub.f32 1.0, %v2238_v32  ;;  %v2110_v2 = vmul.f32 %v9207_v8, %v2098_v13  ;;  %v2208_v39 = vmul.f32 %v2196_v22, %v2028_v38  ;;  %v9219_v33 = vpop.eup %8407  ;;  %v2284_v53 = vsel %vm2260_vm0, %v2272_v0, %v2248_v48 }
 0x224   : > { %v2179_v31 = vmul.f32 %v9175_v35, %v2167_v24  ;;  %v2133_v43 = vmul.f32 %v9198_v29, %v2121_v26  ;;  %v2307_v63 = vmul.f32 %v2295_v62, %v1995_v15  ;;  %v2088_v54 = vmul.f32 1.0614054, %v9219_v33 }
 0x225   : > { %v2274_v30 = vsub.f32 0.0, %v2250_v45  ;;  %v2122_v19 = vadd.f32 1.4214138, %v2110_v2  ;;  %v2197_v35 = vsub.f32 0.0, %v9196_v61  ;;  %v1999_v9 = vmul.f32 0.5, %v9112_v37 }
 0x226   : > { %v2239_v50 = vmul.f32 %v8406_v20, %v2179_v31  ;;  %v2145_v56 = vadd.f32 -0.28449672, %v2133_v43  ;;  %v2296_v58 = vadd.f32 1.0, %v2284_v53  ;;  %vm2263_vm2 = vcmp.lt.f32.partialorder %v9121_v28, 0.0 }
 0x227   : > { %v2286_v11 = vsel %vm2262_vm1, %v2274_v30, %v2250_v45  ;;  %v2134_v41 = vmul.f32 %v9207_v8, %v2122_v19  ;;  %v2100_v15 = vadd.f32 -1.4531521, %v2088_v54  ;;  %v2229_v34 = vmul.f32 1.442695, %v2208_v39 }
 0x228   : > { %v2298_v25 = vadd.f32 1.0, %v2286_v11  ;;  %v2251_v7 = vsub.f32 1.0, %v2239_v50  ;;  %v2157_v38 = vmul.f32 %v9198_v29, %v2145_v56  ;;  %v8410_v32 = vpop.eup %8409  ;;  %v2321_v57 = vmul.f32 %v2307_v63, %v8679_v5 }
 0x229   : > { %v2146_v14 = vadd.f32 -0.28449672, %v2134_v41  ;;  %v2112_v62 = vmul.f32 %v9219_v33, %v2100_v15  ;;  %v2209_v37 = vmul.f32 %v2197_v35, %v9196_v61  ;;  %v2089_v13 = vmul.f32 1.0614054, %v8410_v32 }
 0x22a   : > { %v2310_v48 = vmul.f32 %v2298_v25, %v1998_v59  ;;  %v2275_v60 = vsub.f32 0.0, %v2251_v7  ;;  %v2169_v22 = vadd.f32 0.2548296, %v2157_v38  ;;  %v2308_v45 = vmul.f32 %v2296_v58, %v9205_v46 }
 0x22b   : > { %v2158_v28 = vmul.f32 %v9207_v8, %v2146_v14  ;;  %v2124_v31 = vadd.f32 1.4214138, %v2112_v62  ;;  %v8412_v2 = vpop.eup %8411  ;;  %8415 = vpow2.f32 %v2229_v34  ;;  %v2101_v43 = vadd.f32 -1.4531521, %v2089_v13 }
 0x22c   : > { %v2324_v0 = vmul.f32 %v2310_v48, %v8679_v5  ;;  %v2287_v24 = vsel %vm2263_vm2, %v2275_v60, %v2251_v7  ;;  %v2181_v26 = vmul.f32 %v9198_v29, %v2169_v22  ;;  %v8414_v39 = vpop.eup %8413  ;;  %v2231_v50 = vmul.f32 1.442695, %v2209_v37 }
 0x22d   : > { %v2299_v59 = vadd.f32 1.0, %v2287_v24  ;;  %v2170_v30 = vadd.f32 0.2548296, %v2158_v28  ;;  %v2136_v53 = vmul.f32 %v9219_v33, %v2124_v31  ;;  %v2113_v11 = vmul.f32 %v8410_v32, %v2101_v43 }
 0x22e   : > { %v9234_v20 = vpack.c.bf16 %v2324_v0, %v2321_v57  ;;  %v2241_v63 = vmul.f32 %v8412_v2, %v2181_v26  ;;  %v2322_v46 = vmul.f32 %v2308_v45, %v8682_v6  ;;  %8417 = vpow2.f32 %v2231_v50 }
 0x22f   : > { %v2311_v61 = vmul.f32 %v2299_v59, %v1999_v9  ;;  %v2182_v19 = vmul.f32 %v9207_v8, %v2170_v30  ;;  %v2148_v54 = vadd.f32 -0.28449672, %v2136_v53  ;;  %v2125_v25 = vadd.f32 1.4214138, %v2113_v11 }
 0x230   : > { %v2253_v56 = vsub.f32 1.0, %v2241_v63  ;;  %vm2265_vm11 = vcmp.lt.f32.partialorder %v9151_v49, 0.0  ;;  %vm2266_vm12 = vcmp.lt.f32.partialorder %v9161_v55, 0.0  ;;  %v2001_v45 = vmul.f32 0.5, %v9139_v18 }
 0x231   : > { %v2325_v29 = vmul.f32 %v2311_v61, %v8682_v6  ;;  %v2242_v35 = vmul.f32 %v8414_v39, %v2182_v19  ;;  %v2160_v41 = vmul.f32 %v9219_v33, %v2148_v54  ;;  %v2137_v9 = vmul.f32 %v8410_v32, %v2125_v25  ;;  %v9300_v54 = vld [vmem:[%s13119_s6 + $0x40] sm:$0xff]   ;;  %v8341_v25 = vld [vmem:[%s13119_s6 + $0x10] sm:$0xff]  }
 0x232   : > { %v2277_v58 = vsub.f32 0.0, %v2253_v56  ;;  %vm2268_vm13 = vcmp.lt.f32.partialorder %v9180_v47, 0.0  ;;  %v2004_v31 = vmul.f32 0.5, %v9169_v36  ;;  %vm2269_vm14 = vcmp.lt.f32.partialorder %v9191_v27, 0.0  ;;  %v8337_v27 = vld [vmem:[%s13119_s6 + $0x8] sm:$0xff]  }
 0x233   : > { %v9240_v7 = vpack.c.bf16 %v2325_v29, %v2322_v46  ;;  %v2172_v38 = vadd.f32 0.2548296, %v2160_v41  ;;  %v2254_v8 = vsub.f32 1.0, %v2242_v35  ;;  %v2149_v15 = vadd.f32 -0.28449672, %v2137_v9  ;;  %v9313_v35 = vld [vmem:[%s13119_s6 + $0x48] sm:$0xff]  }
 0x234   : > { %v2289_v34 = vsel %vm2265_vm11, %v2277_v58, %v2253_v56  ;;  %v2005_v53 = vmul.f32 0.5, %v9184_v52  ;;  %v9272_v52 = vld [vmem:[%s13119_s6 + $0x30] sm:$0xff]   ;;  %vm2353_vm15 = vcmask 261120   ;;  %v9293_v56 = vld [vmem:[%s13119_s6 + $0x38] sm:$0xff]   ;;  %vm4258_vm0 = vcmask 285696  }
 0x235   : > { %2360 = vmatprep.subr.bf16.mxu1 %v9240_v7  ;;  %2861 = vmatprep.subr.bf16.mxu0 %v9240_v7  ;;  %v2184_v48 = vmul.f32 %v9219_v33, %v2172_v38  ;;  %v8416_v60 = vpop.eup %8415  ;;  %v2161_v14 = vmul.f32 %v8410_v32, %v2149_v15  ;;  %v2278_v22 = vsub.f32 0.0, %v2254_v8  ;;  %v2301_v0 = vadd.f32 1.0, %v2289_v34  ;;  %v9330_v41 = vld [vmem:[%s13119_s6 + $0x50] sm:$0xff]   ;;  %v8343_v9 = vld [vmem:[%s13119_s6 + $0x18] sm:$0xff]   ;;  %v9358_v38 = vld [vmem:[%s13119_s6 + $0x60] sm:$0xff]  }
 0x236   : > { %2361 = vmatpush1.bf16.msra.mxu1 %v9234_v20  ;;  %2862 = vmatpush1.bf16.msra.mxu0 %v9234_v20  ;;  %v9351_v58 = vld [vmem:[%s13119_s6 + $0x58] sm:$0xff]   ;;  %v8347_v15 = vld [vmem:[%s13119_s6 + $0x20] sm:$0xff]  }
 0x237   : > { %v2244_v57 = vmul.f32 %v8416_v60, %v2184_v48  ;;  %v2173_v62 = vadd.f32 0.2548296, %v2161_v14  ;;  %v2290_v59 = vsel %vm2266_vm12, %v2278_v22, %v2254_v8  ;;  %v2313_v49 = vmul.f32 %v2301_v0, %v2001_v45  ;;  %v9371_v8 = vld [vmem:[%s13119_s6 + $0x68] sm:$0xff]   ;;  %v8348_v48 = vld [vmem:[%s13119_s6 + $0x70] sm:$0xff]   ;;  %v8350_v14 = vld [vmem:[%s13119_s6 + $0x78] sm:$0xff]  }
 0x238   : > { %v8418_v28 = vpop.eup %8417  ;;  %v2302_v43 = vadd.f32 1.0, %v2290_v59  ;;  %v8349_v60 = vld [vmem:[%s13119_s6 + $0x28] sm:$0xff]   ;;  %v8351_v34 = vld [vmem:[%s13119_s6 + $0x80] sm:$0xff]  }
 0x239   : > { %v2256_v37 = vsub.f32 1.0, %v2244_v57  ;;  %v2185_v24 = vmul.f32 %v8410_v32, %v2173_v62  ;;  %v2002_v32 = vmul.f32 0.5, %v9154_v16  ;;  %v2327_v55 = vmul.f32 %v2313_v49, %v8679_v5  ;;  %v8335_v16 = vld [vmem:[%s13119_s6] sm:$0xff]   ;;  %v8352_v57 = vld [vmem:[%s13119_s6 + $0x88] sm:$0xff]  }
 0x23b   : > { %v2280_v13 = vsub.f32 0.0, %v2256_v37  ;;  %v2245_v33 = vmul.f32 %v8418_v28, %v2185_v24  ;;  %v2314_v47 = vmul.f32 %v2302_v43, %v2002_v32 }
 0x23d   : > { %v2292_v26 = vsel %vm2268_vm13, %v2280_v13, %v2256_v37  ;;  %v2257_v30 = vsub.f32 1.0, %v2245_v33  ;;  %v2328_v11 = vmul.f32 %v2314_v47, %v8682_v6 }
 0x23e   : > { %v2304_v2 = vadd.f32 1.0, %v2292_v26 }
 0x23f   : > { %v2281_v61 = vsub.f32 0.0, %v2257_v30 }
 0x240   : > { %v2316_v39 = vmul.f32 %v2304_v2, %v2004_v31 }
 0x241   : > { %v2293_v63 = vsel %vm2269_vm14, %v2281_v61, %v2257_v30 }
 0x242   : > { %v2330_v18 = vmul.f32 %v2316_v39, %v8679_v5  ;;  %v2305_v50 = vadd.f32 1.0, %v2293_v63 }
 0x244   : > { %v9258_v19 = vpack.c.bf16 %v2330_v18, %v2327_v55  ;;  %v2317_v36 = vmul.f32 %v2305_v50, %v2005_v53 }
 0x246   : > { %v2331_v46 = vmul.f32 %v2317_v36, %v8682_v6 }
 0x248   : > { %v9262_v29 = vpack.c.bf16 %v2331_v46, %v2328_v11 }
 0x24a   : > { %2362 = vmatprep.subr.bf16.mxu1 %v9262_v29  ;;  %2863 = vmatprep.subr.bf16.mxu0 %v9262_v29 }
 0x24b   : > { %2363 = vmatpush1.bf16.msra.mxu1 %v9258_v19  ;;  %2864 = vmatpush1.bf16.msra.mxu0 %v9258_v19 }
 0x24c   : > { %7935 = vmatprep.subr.bf16.mxu1 %v9141_v44  ;;  %7967 = vmatprep.subr.bf16.mxu0 %v9141_v44 }
 0x24e   : > { %7600 = vmatmul.mubr.msk.bf16.vlgmr.msra.gmra.mrb[4].mxu1 %vm2353_vm15, %v8335_v16  ;;  %7630 = vmatmul.mubr.msk.bf16.vlgmr.msra.gmra.mrb[8].mxu0 %vm2353_vm15, %v9272_v52 }
 0x24f   : > { %7936 = vmatpush3.bf16.msra.mxu1 %v9141_v44  ;;  %7968 = vmatpush3.bf16.msra.mxu0 %v9141_v44 }
 0x250   : > { %7937 = vmatprep.subr.bf16.mxu1 %v9147_v40  ;;  %7969 = vmatprep.subr.bf16.mxu0 %v9147_v40 }
 0x251   : > { %2402 = vmatprep.mubr.bf16.mxu1 %v13136_v21  ;;  %2903 = vmatprep.mubr.bf16.mxu0 %v13136_v21 }
 0x253   : > { %7938 = vmatpush3.bf16.msra.mxu1 %v9147_v40  ;;  %7970 = vmatpush3.bf16.msra.mxu0 %v9147_v40 }
 0x254   : > { %2519 = vmatprep.subr.bf16.mxu1 %v9240_v7  ;;  %3167 = vmatprep.subr.bf16.mxu0 %v9240_v7 }
 0x256   : > { %7601 = vmatmul.mubr.msk.bf16.gmra.mrb[8].mxu1 %vm2353_vm15, %v8337_v27  ;;  %7631 = vmatmul.mubr.msk.bf16.gmra.mrb[12].mxu0 %vm2353_vm15, %v9293_v56 }
 0x257   : > { %7939 = vmatprep.mubr.msk.bf16.mxu1 %vm2353_vm15, %v8335_v16  ;;  %7971 = vmatprep.mubr.msk.bf16.mxu0 %vm2353_vm15, %v9300_v54 }
 0x25e   : > { %7940 = vmatmul.mubr.msk.bf16.vlgmr.msra.gmra.mrb[12].mxu1 %vm2353_vm15, %v8337_v27  ;;  %7972 = vmatmul.mubr.msk.bf16.vlgmr.msra.gmra.mrb[16].mxu0 %vm2353_vm15, %v9313_v35 }
 0x25f   : > { %2520 = vmatpush1.bf16.msra.mxu1 %v9234_v20  ;;  %3168 = vmatpush1.bf16.msra.mxu0 %v9234_v20 }
 0x260   : > { %2521 = vmatprep.subr.bf16.mxu1 %v9262_v29  ;;  %3169 = vmatprep.subr.bf16.mxu0 %v9262_v29 }
 0x261   : > { %2551 = vmatprep.mubr.bf16.mxu1 %v13136_v21  ;;  %3199 = vmatprep.mubr.bf16.mxu0 %v13136_v21 }
 0x263   : > { %2522 = vmatpush1.bf16.msra.mxu1 %v9258_v19  ;;  %3170 = vmatpush1.bf16.msra.mxu0 %v9258_v19 }
 0x264   : > { %7943 = vmatprep.subr.bf16.mxu1 %v9141_v44  ;;  %7983 = vmatprep.subr.bf16.mxu0 %v9141_v44 }
 0x266   : > { %7610 = vmatmul.mubr.msk.bf16.vlgmr.msra.gmra.mrb[16].mxu1 %vm2353_vm15, %v8341_v25  ;;  %7650 = vmatmul.mubr.msk.bf16.vlgmr.msra.gmra.mrb[20].mxu0 %vm2353_vm15, %v9330_v41 }
 0x267   : > { %7944 = vmatpush3.bf16.msra.mxu1 %v9141_v44  ;;  %7984 = vmatpush3.bf16.msra.mxu0 %v9141_v44 }
 0x268   : > { %7945 = vmatprep.subr.bf16.mxu1 %v9147_v40  ;;  %7985 = vmatprep.subr.bf16.mxu0 %v9147_v40 }
 0x269   : > { %2561 = vmatprep.mubr.bf16.mxu1 %v13136_v21  ;;  %3209 = vmatprep.mubr.bf16.mxu0 %v13136_v21 }
 0x26b   : > { %7946 = vmatpush3.bf16.msra.mxu1 %v9147_v40  ;;  %7986 = vmatpush3.bf16.msra.mxu0 %v9147_v40 }
 0x26c   : > { %2690 = vmatprep.subr.bf16.mxu1 %v9240_v7  ;;  %3509 = vmatprep.subr.bf16.mxu0 %v9240_v7 }
 0x26e   : > { %7611 = vmatmul.mubr.msk.bf16.gmra.mrb[20].mxu1 %vm2353_vm15, %v8343_v9  ;;  %7651 = vmatmul.mubr.msk.bf16.gmra.mrb[24].mxu0 %vm2353_vm15, %v9351_v58 }
 0x26f   : > { %7947 = vmatprep.mubr.msk.bf16.mxu1 %vm2353_vm15, %v8341_v25  ;;  %7987 = vmatprep.mubr.msk.bf16.mxu0 %vm2353_vm15, %v9358_v38 }
 0x276   : > { %7948 = vmatmul.mubr.msk.bf16.vlgmr.msra.gmra.mrb[24].mxu1 %vm2353_vm15, %v8343_v9  ;;  %7988 = vmatmul.mubr.msk.bf16.vlgmr.msra.gmra.mrb[28].mxu0 %vm2353_vm15, %v9371_v8 }
 0x277   : > { %2691 = vmatpush1.bf16.msra.mxu1 %v9234_v20  ;;  %3510 = vmatpush1.bf16.msra.mxu0 %v9234_v20 }
 0x278   : > { %2692 = vmatprep.subr.bf16.mxu1 %v9262_v29  ;;  %3511 = vmatprep.subr.bf16.mxu0 %v9262_v29 }
 0x279   : > { %2722 = vmatprep.mubr.bf16.mxu1 %v13136_v21  ;;  %3541 = vmatprep.mubr.bf16.mxu0 %v13136_v21 }
 0x27b   : > { %2693 = vmatpush1.bf16.msra.mxu1 %v9258_v19  ;;  %3512 = vmatpush1.bf16.msra.mxu0 %v9258_v19 }
 0x27c   : > { %7951 = vmatprep.subr.bf16.mxu1 %v9141_v44  ;;  %7999 = vmatprep.subr.bf16.mxu0 %v9141_v44 }
 0x27e   : > { %7620 = vmatmul.mubr.msk.bf16.vlgmr.msra.gmra.mrb[28].mxu1 %vm2353_vm15, %v8347_v15  ;;  %7670 = vmatmul.mubr.msk.bf16.vlgmr.msra.gmra.mrb[32].mxu0 %vm2353_vm15, %v8348_v48 }
 0x27f   : > { %7952 = vmatpush3.bf16.msra.mxu1 %v9141_v44  ;;  %8000 = vmatpush3.bf16.msra.mxu0 %v9141_v44 }
 0x280   : > { %7953 = vmatprep.subr.bf16.mxu1 %v9147_v40  ;;  %8001 = vmatprep.subr.bf16.mxu0 %v9147_v40 }
 0x281   : > { %2732 = vmatprep.mubr.bf16.mxu1 %v13136_v21  ;;  %3551 = vmatprep.mubr.bf16.mxu0 %v13136_v21 }
 0x283   : > { %7954 = vmatpush3.bf16.msra.mxu1 %v9147_v40  ;;  %8002 = vmatpush3.bf16.msra.mxu0 %v9147_v40 }
 0x284   : > { %7959 = vmatprep.subr.bf16.mxu1 %v9141_v44 }
 0x286   : > { %7621 = vmatmul.mubr.msk.bf16.gmra.mrb[32].mxu1 %vm2353_vm15, %v8349_v60  ;;  %7671 = vmatmul.mubr.msk.bf16.gmra.mrb[36].mxu0 %vm2353_vm15, %v8350_v14 }
 0x287   : > { %7955 = vmatprep.mubr.msk.bf16.mxu1 %vm2353_vm15, %v8347_v15  ;;  %8003 = vmatprep.mubr.msk.bf16.mxu0 %vm2353_vm15, %v8351_v34 }
 0x28e   : > { %7956 = vmatmul.mubr.msk.bf16.vlgmr.msra.gmra.mrb[36].mxu1 %vm2353_vm15, %v8349_v60  ;;  %8004 = vmatmul.mubr.msk.bf16.vlgmr.msra.gmra.mrb[40].mxu0 %vm2353_vm15, %v8352_v57 }
 0x28f   : > { %7960 = vmatpush3.bf16.msra.mxu1 %v9141_v44  ;;  %7963 = vmatprep.mubr.msk.bf16.mxu1 %vm2353_vm15, %v9272_v52 }
 0x290   : > { %7961 = vmatprep.subr.bf16.mxu1 %v9147_v40 }
 0x293   : > { %7962 = vmatpush3.bf16.msra.mxu1 %v9147_v40 }
 0x294   : > { %3032 = vmatprep.subr.bf16.mxu1 %v9240_v7 }
 0x296   : > { %7964 = vmatmul.mubr.msk.bf16.vlgmr.msra.gmra.mrb[40].mxu1 %vm2353_vm15, %v9293_v56 }
 0x297   : > { %3033 = vmatpush1.bf16.msra.mxu1 %v9234_v20  ;;  %3064 = vmatprep.mubr.bf16.mxu1 %v13136_v21 }
 0x298   : > { %3034 = vmatprep.subr.bf16.mxu1 %v9262_v29 }
 0x29b   : > { %3035 = vmatpush1.bf16.msra.mxu1 %v9258_v19 }
 0x29c   : > { %7975 = vmatprep.subr.bf16.mxu1 %v9141_v44 }
 0x29e   : > { %7640 = vmatmul.mubr.msk.bf16.vlgmr.msra.gmra.mrb[44].mxu1 %vm2353_vm15, %v9300_v54 }
 0x29f   : > { %7976 = vmatpush3.bf16.msra.mxu1 %v9141_v44  ;;  %3074 = vmatprep.mubr.bf16.mxu1 %v13136_v21 }
 0x2a0   : > { %7977 = vmatprep.subr.bf16.mxu1 %v9147_v40 }
 0x2a3   : > { %7978 = vmatpush3.bf16.msra.mxu1 %v9147_v40 }
 0x2a4   : > { %3338 = vmatprep.subr.bf16.mxu1 %v9240_v7 }
 0x2a6   : > { %7641 = vmatmul.mubr.msk.bf16.gmra.mrb[48].mxu1 %vm2353_vm15, %v9313_v35 }
 0x2a7   : > { %7979 = vmatprep.mubr.msk.bf16.mxu1 %vm2353_vm15, %v9330_v41 }
 0x2ae   : > { %7980 = vmatmul.mubr.msk.bf16.vlgmr.msra.gmra.mrb[52].mxu1 %vm2353_vm15, %v9351_v58 }
 0x2af   : > { %3339 = vmatpush1.bf16.msra.mxu1 %v9234_v20  ;;  %3370 = vmatprep.mubr.bf16.mxu1 %v13136_v21 }
 0x2b0   : > { %3340 = vmatprep.subr.bf16.mxu1 %v9262_v29 }
 0x2b3   : > { %3341 = vmatpush1.bf16.msra.mxu1 %v9258_v19 }
 0x2b4   : > { %7991 = vmatprep.subr.bf16.mxu1 %v9141_v44 }
 0x2b6   : > { %7660 = vmatmul.mubr.msk.bf16.vlgmr.msra.gmra.mrb[56].mxu1 %vm2353_vm15, %v9358_v38 }
 0x2b7   : > { %7992 = vmatpush3.bf16.msra.mxu1 %v9141_v44  ;;  %3380 = vmatprep.mubr.bf16.mxu1 %v13136_v21 }
 0x2b8   : > { %7993 = vmatprep.subr.bf16.mxu1 %v9147_v40 }
 0x2bb   : > { %7994 = vmatpush3.bf16.msra.mxu1 %v9147_v40 }
 0x2bc   : > { %3680 = vmatprep.subr.bf16.mxu1 %v9240_v7 }
 0x2be   : > { %7661 = vmatmul.mubr.msk.bf16.gmra.mrb[60].mxu1 %vm2353_vm15, %v9371_v8 }
 0x2bf   : > { %7995 = vmatprep.mubr.msk.bf16.mxu1 %vm2353_vm15, %v8348_v48 }
 0x2c6   : > { %7996 = vmatmul.mubr.msk.bf16.vlgmr.msra.gmra.mrb[64].mxu1 %vm2353_vm15, %v8350_v14 }
 0x2c7   : > { %3681 = vmatpush1.bf16.msra.mxu1 %v9234_v20  ;;  %3712 = vmatprep.mubr.bf16.mxu1 %v13136_v21 }
 0x2c8   : > { %3682 = vmatprep.subr.bf16.mxu1 %v9262_v29 }
 0x2cb   : > { %3683 = vmatpush1.bf16.msra.mxu1 %v9258_v19 }
 0x2ce   : > { %7680 = vmatmul.mubr.msk.bf16.vlgmr.msra.gmra.mrb[68].mxu1 %vm2353_vm15, %v8351_v34 }
 0x2cf   : > { %3722 = vmatprep.mubr.bf16.mxu1 %v13136_v21 }
 0x2d6   : > { %7681 = vmatmul.mubr.msk.bf16.gmra.mrb[72].mxu1 %vm2353_vm15, %v8352_v57 }
 0x2d7   : > { %4297 = vmatprep.mubr.bf16.mxu1 %v13136_v21 }
 0x321   : > { %v2394_v44 = vpop.f32.mrb[4].mxu1  ;;  %v2895_v40 = vpop.f32.mrb[8].mxu0 }
 0x322   : > { %2462 = vrot.lane.b32.xlu1 %v2394_v44, %s8531_s29  ;;  %v2396_v7 = vpop.f32.mrb[5].mxu1  ;;  %v2897_v20 = vpop.f32.mrb[9].mxu0 }
 0x323   : > { %v2398_v22 = vpop.f32.mrb[6].mxu1  ;;  %v2899_v62 = vpop.f32.mrb[10].mxu0 }
 0x324   : > { %2464 = vrot.lane.b32.xlu0 %v2398_v22, %s8531_s29  ;;  %v2400_v37 = vpop.f32.mrb[7].mxu1  ;;  %v2901_v0 = vpop.f32.mrb[11].mxu0 }
 0x326   : > { %2963 = vrot.lane.b32.xlu1 %v2895_v40, %s13204_s16 }
 0x328   : > { %2965 = vrot.lane.b32.xlu0 %v2899_v62, %s13204_s16 }
 0x329   : > { %v2404_v24 = vpop.f32.mrb[8].mxu1  ;;  %v2905_v28 = vpop.f32.mrb[12].mxu0 }
 0x32a   : > { %2470 = vrot.lane.b32.xlu1 %v2396_v7, %s8531_s29  ;;  %v2406_v13 = vpop.f32.mrb[9].mxu1  ;;  %v2907_v45 = vpop.f32.mrb[13].mxu0 }
 0x32b   : > { %v2408_v59 = vpop.f32.mrb[10].mxu1  ;;  %v2909_v33 = vpop.f32.mrb[14].mxu0 }
 0x32c   : > { %2472 = vrot.lane.b32.xlu0 %v2400_v37, %s8531_s29  ;;  %v2410_v26 = vpop.f32.mrb[11].mxu1  ;;  %v2911_v49 = vpop.f32.mrb[15].mxu0 }
 0x32e   : > { %2971 = vrot.lane.b32.xlu1 %v2897_v20, %s13204_s16 }
 0x330   : > { %2973 = vrot.lane.b32.xlu0 %v2901_v0, %s13204_s16 }
 0x331   : > { %v7941_v31 = vpop.f32.mrb[12].mxu1  ;;  %v9479_v2 = vpop.f32.mrb[16].mxu0 }
 0x332   : > { %13289 = vst [vmem:[#allocation12_spill] sm:$0xff] %v9479_v2  ;;  %2466 = vrot.lane.b32.xlu1 %v2404_v24, %s8531_s29  ;;  %v2447_v30 = vpop.f32.mrb[13].mxu1  ;;  %v9482_v43 = vpop.f32.mrb[17].mxu0 }
 0x333   : > { %13290 = vst [vmem:[#allocation13_spill] sm:$0xff] %v9482_v43  ;;  %v7942_v39 = vpop.f32.mrb[14].mxu1  ;;  %v9484_v61 = vpop.f32.mrb[18].mxu0 }
 0x334   : > { %13291 = vst [vmem:[#allocation14_spill] sm:$0xff] %v9484_v61  ;;  %2468 = vrot.lane.b32.xlu0 %v2408_v59, %s8531_s29  ;;  %v2450_v32 = vpop.f32.mrb[15].mxu1  ;;  %v9487_v55 = vpop.f32.mrb[19].mxu0 }
 0x335   : > { %13292 = vst [vmem:[#allocation15_spill] sm:$0xff] %v9487_v55 }
 0x336   : > { %2967 = vrot.lane.b32.xlu1 %v2905_v28, %s13204_s16 }
 0x338   : > { %2969 = vrot.lane.b32.xlu0 %v2909_v33, %s13204_s16 }
 0x339   : > { %v2553_v18 = vpop.f32.mrb[16].mxu1  ;;  %v3201_v63 = vpop.f32.mrb[20].mxu0 }
 0x33a   : > { %2474 = vrot.lane.b32.xlu1 %v2406_v13, %s8531_s29  ;;  %v2555_v47 = vpop.f32.mrb[17].mxu1  ;;  %v3203_v53 = vpop.f32.mrb[21].mxu0 }
 0x33b   : > { %v2557_v50 = vpop.f32.mrb[18].mxu1  ;;  %v3205_v19 = vpop.f32.mrb[22].mxu0 }
 0x33c   : > { %2476 = vrot.lane.b32.xlu0 %v2410_v26, %s8531_s29  ;;  %v2559_v36 = vpop.f32.mrb[19].mxu1  ;;  %v3207_v11 = vpop.f32.mrb[23].mxu0 }
 0x33e   : > { %2975 = vrot.lane.b32.xlu1 %v2907_v45, %s13204_s16 }
 0x340   : > { %2977 = vrot.lane.b32.xlu0 %v2911_v49, %s13204_s16 }
 0x341   : > { %v2563_v46 = vpop.f32.mrb[20].mxu1  ;;  %v3211_v29 = vpop.f32.mrb[24].mxu0 }
 0x342   : > { %2482 = vrot.lane.b32.xlu1 %v7941_v31, %s8531_s29  ;;  %v2565_v16 = vpop.f32.mrb[21].mxu1  ;;  %v3213_v52 = vpop.f32.mrb[25].mxu0 }
 0x343   : > { %v2567_v27 = vpop.f32.mrb[22].mxu1  ;;  %v3215_v56 = vpop.f32.mrb[26].mxu0 }
 0x344   : > { %2484 = vrot.lane.b32.xlu0 %v7942_v39, %s8531_s29  ;;  %v2569_v54 = vpop.f32.mrb[23].mxu1  ;;  %v3217_v35 = vpop.f32.mrb[27].mxu0 }
 0x346   : > { %2478 = vrot.lane.b32.xlu1 %v2447_v30, %s8531_s29 }
 0x348   : > { %2480 = vrot.lane.b32.xlu0 %v2450_v32, %s8531_s29 }
 0x349   : > { %v7949_v25 = vpop.f32.mrb[24].mxu1  ;;  %v7989_v41 = vpop.f32.mrb[28].mxu0 }
 0x34a   : > { %2621 = vrot.lane.b32.xlu1 %v2553_v18, %s8530_s28  ;;  %v2606_v9 = vpop.f32.mrb[25].mxu1  ;;  %v3425_v58 = vpop.f32.mrb[29].mxu0 }
 0x34b   : > { %v7950_v38 = vpop.f32.mrb[26].mxu1  ;;  %v7990_v8 = vpop.f32.mrb[30].mxu0 }
 0x34c   : > { %2623 = vrot.lane.b32.xlu0 %v2557_v50, %s8530_s28  ;;  %v2609_v15 = vpop.f32.mrb[27].mxu1  ;;  %v3428_v48 = vpop.f32.mrb[31].mxu0 }
 0x34e   : > { %3269 = vrot.lane.b32.xlu1 %v3201_v63, %s13202_s17 }
 0x350   : > { %3271 = vrot.lane.b32.xlu0 %v3205_v19, %s13202_s17 }
 0x351   : > { %v3543_v60 = vpop.f32.mrb[32].mxu0  ;;  %v2724_v14 = vpop.f32.mrb[28].mxu1 }
 0x352   : > { %2629 = vrot.lane.b32.xlu1 %v2555_v47, %s8530_s28  ;;  %v2726_v34 = vpop.f32.mrb[29].mxu1  ;;  %v3545_v57 = vpop.f32.mrb[33].mxu0 }
 0x353   : > { %v3547_v44 = vpop.f32.mrb[34].mxu0  ;;  %v2728_v40 = vpop.f32.mrb[30].mxu1 }
 0x354   : > { %2631 = vrot.lane.b32.xlu0 %v2559_v36, %s8530_s28  ;;  %v2730_v7 = vpop.f32.mrb[31].mxu1  ;;  %v3549_v20 = vpop.f32.mrb[35].mxu0 }
 0x356   : > { %3277 = vrot.lane.b32.xlu1 %v3203_v53, %s13202_s17 }
 0x358   : > { %3279 = vrot.lane.b32.xlu0 %v3207_v11, %s13202_s17 }
 0x359   : > { %v2734_v22 = vpop.f32.mrb[32].mxu1  ;;  %v9507_v62 = vpop.f32.mrb[36].mxu0 }
 0x35a   : > { %2625 = vrot.lane.b32.xlu1 %v2563_v46, %s8530_s28  ;;  %v9510_v37 = vpop.f32.mrb[33].mxu1  ;;  %v9512_v0 = vpop.f32.mrb[37].mxu0 }
 0x35b   : > { %v2738_v24 = vpop.f32.mrb[34].mxu1  ;;  %v9514_v28 = vpop.f32.mrb[38].mxu0 }
 0x35c   : > { %2627 = vrot.lane.b32.xlu0 %v2567_v27, %s8530_s28  ;;  %v9517_v13 = vpop.f32.mrb[35].mxu1  ;;  %v9519_v45 = vpop.f32.mrb[39].mxu0 }
 0x35d   : > { %v9577_v27 = vpop.permute.xlu1 %3836 }
 0x35e   : > { %3273 = vrot.lane.b32.xlu1 %v3211_v29, %s13202_s17  ;;  %13303 = vst [vmem:[#allocation24_spill] sm:$0xff] %v9577_v27 }
 0x360   : > { %3275 = vrot.lane.b32.xlu0 %v3215_v56, %s13202_s17  ;;  %v9580_v56 = vpop.permute.xlu0 %3841 }
 0x361   : > { %v9523_v59 = vpop.f32.mrb[36].mxu1  ;;  %v9525_v33 = vpop.f32.mrb[40].mxu0  ;;  %13304 = vst [vmem:[#allocation25_spill] sm:$0xff] %v9580_v56 }
 0x362   : > { %2633 = vrot.lane.b32.xlu1 %v2565_v16, %s8530_s28  ;;  %v9528_v26 = vpop.f32.mrb[37].mxu1  ;;  %v9530_v49 = vpop.f32.mrb[41].mxu0 }
 0x363   : > { %v9532_v31 = vpop.f32.mrb[38].mxu1  ;;  %v9534_v30 = vpop.f32.mrb[42].mxu0 }
 0x364   : > { %2635 = vrot.lane.b32.xlu0 %v2569_v54, %s8530_s28  ;;  %v9537_v39 = vpop.f32.mrb[39].mxu1  ;;  %v9539_v32 = vpop.f32.mrb[43].mxu0 }
 0x366   : > { %3281 = vrot.lane.b32.xlu1 %v3213_v52, %s13202_s17 }
 0x368   : > { %3283 = vrot.lane.b32.xlu0 %v3217_v35, %s13202_s17 }
 0x369   : > { %v9543_v18 = vpop.f32.mrb[40].mxu1 }
 0x36a   : > { %2641 = vrot.lane.b32.xlu1 %v7949_v25, %s8530_s28  ;;  %v9546_v63 = vpop.f32.mrb[41].mxu1 }
 0x36b   : > { %v9548_v47 = vpop.f32.mrb[42].mxu1 }
 0x36c   : > { %2643 = vrot.lane.b32.xlu0 %v7950_v38, %s8530_s28  ;;  %v9551_v53 = vpop.f32.mrb[43].mxu1 }
 0x36e   : > { %3460 = vrot.lane.b32.xlu1 %v7989_v41, %s13200_s20  ;;  %v9590_v41 = vpop.permute.xlu1 %3872 }
 0x36f   : > { %13305 = vst [vmem:[#allocation26_spill] sm:$0xff] %v9590_v41 }
 0x370   : > { %3462 = vrot.lane.b32.xlu0 %v7990_v8, %s13200_s20 }
 0x371   : > { %v9555_v50 = vpop.f32.mrb[44].mxu1 }
 0x372   : > { %13293 = vst [vmem:[#allocation16_spill] sm:$0xff] %v9555_v50  ;;  %2637 = vrot.lane.b32.xlu1 %v2606_v9, %s8530_s28  ;;  %v9558_v19 = vpop.f32.mrb[45].mxu1  ;;  %v9601_v8 = vpop.permute.xlu1 %3846 }
 0x373   : > { %13294 = vst [vmem:[#allocation17_spill] sm:$0xff] %v9558_v19  ;;  %v9560_v36 = vpop.f32.mrb[46].mxu1  ;;  %13307 = vst [vmem:[#allocation28_spill] sm:$0xff] %v9601_v8 }
 0x374   : > { %13295 = vst [vmem:[#allocation18_spill] sm:$0xff] %v9560_v36  ;;  %2639 = vrot.lane.b32.xlu0 %v2609_v15, %s8530_s28  ;;  %v9563_v11 = vpop.f32.mrb[47].mxu1 }
 0x375   : > { %13296 = vst [vmem:[#allocation19_spill] sm:$0xff] %v9563_v11 }
 0x376   : > { %3456 = vrot.lane.b32.xlu1 %v3425_v58, %s13200_s20  ;;  %v9595_v58 = vpop.permute.xlu0 %3877 }
 0x377   : > { %13306 = vst [vmem:[#allocation27_spill] sm:$0xff] %v9595_v58 }
 0x378   : > { %3458 = vrot.lane.b32.xlu0 %v3428_v48, %s13200_s20 }
 0x379   : > { %v9567_v46 = vpop.f32.mrb[48].mxu1 }
 0x37a   : > { %13297 = vst [vmem:[#allocation20_spill] sm:$0xff] %v9567_v46  ;;  %3611 = vrot.lane.b32.xlu1 %v3543_v60, %s13298_s26  ;;  %v9570_v29 = vpop.f32.mrb[49].mxu1  ;;  %v9608_v60 = vpop.permute.xlu0 %3851 }
 0x37b   : > { %13299 = vst [vmem:[#allocation21_spill] sm:$0xff] %v9570_v29  ;;  %v9572_v16 = vpop.f32.mrb[50].mxu1  ;;  %13308 = vst [vmem:[#allocation29_spill] sm:$0xff] %v9608_v60 }
 0x37c   : > { %13300 = vst [vmem:[#allocation22_spill] sm:$0xff] %v9572_v16  ;;  %2792 = vrot.lane.b32.xlu0 %v2724_v14, %s13301_s27  ;;  %v9575_v52 = vpop.f32.mrb[51].mxu1 }
 0x37d   : > { %13302 = vst [vmem:[#allocation23_spill] sm:$0xff] %v9575_v52 }
 0x37e   : > { %3619 = vrot.lane.b32.xlu1 %v3545_v57, %s13298_s26 }
 0x380   : > { %2800 = vrot.lane.b32.xlu0 %v2726_v34, %s13301_s27  ;;  %v9615_v34 = vpop.permute.xlu1 %3882 }
 0x381   : > { %v9583_v54 = vpop.f32.mrb[52].mxu1  ;;  %13309 = vst [vmem:[#allocation30_spill] sm:$0xff] %v9615_v34 }
 0x382   : > { %2794 = vrot.lane.b32.xlu1 %v2728_v40, %s13301_s27  ;;  %v9586_v35 = vpop.f32.mrb[53].mxu1 }
 0x383   : > { %v9588_v25 = vpop.f32.mrb[54].mxu1 }
 0x384   : > { %3613 = vrot.lane.b32.xlu0 %v3547_v44, %s13298_s26  ;;  %v9593_v9 = vpop.f32.mrb[55].mxu1  ;;  %v9621_v44 = vpop.permute.xlu0 %3887 }
 0x385   : > { %13310 = vst [vmem:[#allocation31_spill] sm:$0xff] %v9621_v44 }
 0x386   : > { %2802 = vrot.lane.b32.xlu1 %v2730_v7, %s13301_s27 }
 0x388   : > { %3621 = vrot.lane.b32.xlu0 %v3549_v20, %s13298_s26 }
 0x389   : > { %v9599_v38 = vpop.f32.mrb[56].mxu1 }
 0x38a   : > { %2796 = vrot.lane.b32.xlu1 %v2734_v22, %s13301_s27  ;;  %v9604_v15 = vpop.f32.mrb[57].mxu1 }
 0x38b   : > { %v9606_v48 = vpop.f32.mrb[58].mxu1 }
 0x38c   : > { %2798 = vrot.lane.b32.xlu0 %v2738_v24, %s13301_s27  ;;  %v9611_v14 = vpop.f32.mrb[59].mxu1 }
 0x38e   : > { %3615 = vrot.lane.b32.xlu1 %v9507_v62, %s13298_s26 }
 0x390   : > { %3617 = vrot.lane.b32.xlu0 %v9514_v28, %s13298_s26 }
 0x391   : > { %v9619_v57 = vpop.f32.mrb[60].mxu1 }
 0x392   : > { %2804 = vrot.lane.b32.xlu1 %v9510_v37, %s13301_s27  ;;  %v9625_v40 = vpop.f32.mrb[61].mxu1 }
 0x393   : > { %v3386_v7 = vpop.f32.mrb[62].mxu1 }
 0x394   : > { %v9627_v20 = vpop.permute.xlu1 %2462  ;;  %2806 = vrot.lane.b32.xlu0 %v9517_v13, %s13301_s27  ;;  %v9631_v22 = vpop.f32.mrb[63].mxu1 }
 0x396   : > { %v9633_v62 = vpop.permute.xlu0 %2464  ;;  %3623 = vrot.lane.b32.xlu1 %v9512_v0, %s13298_s26 }
 0x398   : > { %v9637_v24 = vpop.permute.xlu1 %2963  ;;  %3625 = vrot.lane.b32.xlu0 %v9519_v45, %s13298_s26 }
 0x399   : > { %13311 = vst [vmem:[#allocation32_spill] sm:$0xff] %v9637_v24  ;;  %v7997_v37 = vpop.f32.mrb[64].mxu1 }
 0x39a   : > { %v9641_v28 = vpop.permute.xlu0 %2965  ;;  %2812 = vrot.lane.b32.xlu1 %v9523_v59, %s13301_s27  ;;  %v3596_v21 = vpop.f32.mrb[65].mxu1 }
 0x39b   : > { %13312 = vst [vmem:[#allocation33_spill] sm:$0xff] %v9641_v28  ;;  %v7998_v13 = vpop.f32.mrb[66].mxu1 }
 0x39c   : > { %v9645_v12 = vpop.permute.xlu1 %2470  ;;  %2808 = vrot.lane.b32.xlu0 %v9528_v26, %s13301_s27  ;;  %v3599_v4 = vpop.f32.mrb[67].mxu1 }
 0x39e   : > { %v9649_v0 = vpop.permute.xlu0 %2472  ;;  %3802 = vrot.lane.b32.xlu1 %v9525_v33, %s13313_s22 }
 0x3a0   : > { %v9653_v45 = vpop.permute.xlu1 %2971  ;;  %2814 = vrot.lane.b32.xlu0 %v9532_v31, %s13301_s27 }
 0x3a1   : > { %13314 = vst [vmem:[#allocation34_spill] sm:$0xff] %v9653_v45  ;;  %v3714_v1 = vpop.f32.mrb[68].mxu1 }
 0x3a2   : > { %v9657_v59 = vpop.permute.xlu0 %2973  ;;  %3798 = vrot.lane.b32.xlu1 %v9530_v49, %s13313_s22  ;;  %v3716_v10 = vpop.f32.mrb[69].mxu1 }
 0x3a3   : > { %13315 = vst [vmem:[#allocation35_spill] sm:$0xff] %v9657_v59  ;;  %v3718_v51 = vpop.f32.mrb[70].mxu1 }
 0x3a4   : > { %v9661_v26 = vpop.permute.xlu1 %2466  ;;  %3804 = vrot.lane.b32.xlu0 %v9534_v30, %s13313_s22  ;;  %v3720_v42 = vpop.f32.mrb[71].mxu1 }
 0x3a6   : > { %v9665_v33 = vpop.permute.xlu0 %2468  ;;  %2810 = vrot.lane.b32.xlu1 %v9537_v39, %s13301_s27 }
 0x3a8   : > { %v9669_v31 = vpop.permute.xlu1 %2967  ;;  %3800 = vrot.lane.b32.xlu0 %v9539_v32, %s13313_s22 }
 0x3a9   : > { %v3724_v6 = vpop.f32.mrb[72].mxu1 }
 0x3aa   : > { %v9673_v49 = vpop.permute.xlu0 %2969  ;;  %2983 = vrot.lane.b32.xlu1 %v9543_v18, %s13204_s16  ;;  %v3726_v5 = vpop.f32.mrb[73].mxu1 }
 0x3ab   : > { %v3728_v17 = vpop.f32.mrb[74].mxu1 }
 0x3ac   : > { %v9677_v30 = vpop.permute.xlu1 %2474  ;;  %2985 = vrot.lane.b32.xlu0 %v9548_v47, %s13204_s16  ;;  %v3730_v44 = vpop.f32.mrb[75].mxu1 }
 0x3ae   : > { %v9681_v39 = vpop.permute.xlu0 %2476  ;;  %2979 = vrot.lane.b32.xlu1 %v9546_v63, %s13204_s16 }
 0x3b0   : > { %v9685_v32 = vpop.permute.xlu1 %2975  ;;  %2981 = vrot.lane.b32.xlu0 %v9551_v53, %s13204_s16 }
 0x3b1   : > { %13316 = vst [vmem:[#allocation36_spill] sm:$0xff] %v9685_v32 }
 0x3b2   : > { %v9689_v60 = vpop.permute.xlu0 %2977  ;;  %3289 = vrot.lane.b32.xlu1 %v9583_v54, %s13202_s17 }
 0x3b3   : > { %13317 = vst [vmem:[#allocation37_spill] sm:$0xff] %v9689_v60 }
 0x3b4   : > { %v9693_v18 = vpop.permute.xlu1 %2482  ;;  %3291 = vrot.lane.b32.xlu0 %v9588_v25, %s13202_s17 }
 0x3b6   : > { %v9697_v47 = vpop.permute.xlu0 %2484  ;;  %3285 = vrot.lane.b32.xlu1 %v9586_v35, %s13202_s17 }
 0x3b8   : > { %v9701_v63 = vpop.permute.xlu1 %2478  ;;  %3287 = vrot.lane.b32.xlu0 %v9593_v9, %s13202_s17 }
 0x3ba   : > { %v9705_v53 = vpop.permute.xlu0 %2480  ;;  %3440 = vrot.lane.b32.xlu1 %v9599_v38, %s13200_s20 }
 0x3bc   : > { %v9709_v54 = vpop.permute.xlu1 %2621  ;;  %3442 = vrot.lane.b32.xlu0 %v9606_v48, %s13200_s20 }
 0x3be   : > { %v9713_v25 = vpop.permute.xlu0 %2623  ;;  %3448 = vrot.lane.b32.xlu1 %v9604_v15, %s13200_s20 }
 0x3c0   : > { %v9717_v35 = vpop.permute.xlu1 %3269  ;;  %3450 = vrot.lane.b32.xlu0 %v9611_v14, %s13200_s20 }
 0x3c2   : > { %v9721_v9 = vpop.permute.xlu0 %3271  ;;  %3444 = vrot.lane.b32.xlu1 %v9619_v57, %s13200_s20 }
 0x3c3   : > { %13318 = vst [vmem:[#allocation38_spill] sm:$0xff] %v9721_v9 }
 0x3c4   : > { %v9725_v38 = vpop.permute.xlu1 %2629  ;;  %3446 = vrot.lane.b32.xlu0 %v3386_v7, %s13200_s20 }
 0x3c6   : > { %v9728_v48 = vpop.permute.xlu0 %2631  ;;  %3452 = vrot.lane.b32.xlu1 %v9625_v40, %s13200_s20 }
 0x3c8   : > { %v9732_v15 = vpop.permute.xlu1 %3277  ;;  %3454 = vrot.lane.b32.xlu0 %v9631_v22, %s13200_s20 }
 0x3c9   : > { %13319 = vst [vmem:[#allocation39_spill] sm:$0xff] %v9732_v15 }
 0x3ca   : > { %v9736_v14 = vpop.permute.xlu0 %3279  ;;  %3631 = vrot.lane.b32.xlu1 %v7997_v37, %s13298_s26 }
 0x3cb   : > { %13320 = vst [vmem:[#allocation40_spill] sm:$0xff] %v9736_v14 }
 0x3cc   : > { %v9739_v34 = vpop.permute.xlu1 %2625  ;;  %3633 = vrot.lane.b32.xlu0 %v7998_v13, %s13298_s26 }
 0x3ce   : > { %v9742_v57 = vpop.permute.xlu0 %2627  ;;  %3627 = vrot.lane.b32.xlu1 %v3596_v21, %s13298_s26 }
 0x3d0   : > { %v9745_v7 = vpop.permute.xlu1 %3273  ;;  %3629 = vrot.lane.b32.xlu0 %v3599_v4, %s13298_s26 }
 0x3d2   : > { %v9748_v40 = vpop.permute.xlu0 %3275  ;;  %3782 = vrot.lane.b32.xlu1 %v3714_v1, %s13313_s22 }
 0x3d3   : > { %13321 = vst [vmem:[#allocation41_spill] sm:$0xff] %v9748_v40 }
 0x3d4   : > { %v9751_v22 = vpop.permute.xlu1 %2633  ;;  %3784 = vrot.lane.b32.xlu0 %v3718_v51, %s13313_s22 }
 0x3d6   : > { %v9754_v37 = vpop.permute.xlu0 %2635  ;;  %3790 = vrot.lane.b32.xlu1 %v3716_v10, %s13313_s22 }
 0x3d8   : > { %v9757_v13 = vpop.permute.xlu1 %3281  ;;  %3792 = vrot.lane.b32.xlu0 %v3720_v42, %s13313_s22 }
 0x3da   : > { %v9760_v21 = vpop.permute.xlu0 %3283  ;;  %3786 = vrot.lane.b32.xlu1 %v3724_v6, %s13313_s22 }
 0x3dc   : > { %v9763_v4 = vpop.permute.xlu1 %2641  ;;  %3788 = vrot.lane.b32.xlu0 %v3728_v17, %s13313_s22 }
 0x3de   : > { %v9766_v1 = vpop.permute.xlu0 %2643  ;;  %3794 = vrot.lane.b32.xlu1 %v3726_v5, %s13313_s22 }
 0x3e0   : > { %v9769_v51 = vpop.permute.xlu1 %3460  ;;  %3796 = vrot.lane.b32.xlu0 %v3730_v44, %s13313_s22 }
 0x3e1   : > { %13322 = vst [vmem:[#allocation42_spill] sm:$0xff] %v9769_v51 }
 0x3e2   : > { %v9772_v10 = vpop.permute.xlu0 %3462 }
 0x3e3   : > { %13323 = vst [vmem:[#allocation43_spill] sm:$0xff] %v9772_v10 }
 0x3e4   : > { %v9774_v8 = vpop.permute.xlu1 %2637 }
 0x3e6   : > { %v9776_v42 = vpop.permute.xlu0 %2639 }
 0x3e8   : > { %v9778_v58 = vpop.permute.xlu1 %3456 }
 0x3e9   : > { %13324 = vst [vmem:[#allocation44_spill] sm:$0xff] %v9778_v58 }
 0x3ea   : > { %v9780_v6 = vpop.permute.xlu0 %3458 }
 0x3eb   : > { %13325 = vst [vmem:[#allocation45_spill] sm:$0xff] %v9780_v6 }
 0x3ec   : > { %v9782_v56 = vpop.permute.xlu1 %3611 }
 0x3ed   : > { %13326 = vst [vmem:[#allocation46_spill] sm:$0xff] %v9782_v56 }
 0x3ee   : > { %v9784_v17 = vpop.permute.xlu0 %2792 }
 0x3f0   : > { %v9786_v41 = vpop.permute.xlu1 %3619 }
 0x3f1   : > { %13327 = vst [vmem:[#allocation47_spill] sm:$0xff] %v9786_v41 }
 0x3f2   : > { %v9788_v5 = vpop.permute.xlu0 %2800 }
 0x3f4   : > { %v9790_v27 = vpop.permute.xlu1 %2794 }
 0x3f6   : > { %v9792_v44 = vpop.permute.xlu0 %3613 }
 0x3f7   : > { %13328 = vst [vmem:[#allocation48_spill] sm:$0xff] %v9792_v44  ;;  %v5735_v44 = vld [vmem:[%s498_s23] sm:$0x1] }
 0x3f8   : > { %v9794_v10 = vpop.permute.xlu1 %2802 }
 0x3fa   : > { %v9796_v51 = vpop.permute.xlu0 %3621 }
 0x3fb   : > { %13329 = vst [vmem:[#allocation49_spill] sm:$0xff] %v9796_v51 }
 0x3fc   : > { %v9798_v58 = vpop.permute.xlu1 %2796 }
 0x3fe   : > { %v9800_v6 = vpop.permute.xlu0 %2798 }
 0x400   : > { %v9802_v55 = vpop.permute.xlu1 %3615 }
 0x401   : > { %13330 = vst [vmem:[#allocation50_spill] sm:$0xff] %v9802_v55 }
 0x402   : > { %v9804_v43 = vpop.permute.xlu0 %3617 }
 0x403   : > { %13331 = vst [vmem:[#allocation51_spill] sm:$0xff] %v9804_v43 }
 0x404   : > { %v9806_v36 = vpop.permute.xlu1 %2804 }
 0x406   : > { %v9808_v61 = vpop.permute.xlu0 %2806 }
 0x408   : > { %v9810_v2 = vpop.permute.xlu1 %3623 }
 0x409   : > { %13332 = vst [vmem:[#allocation52_spill] sm:$0xff] %v9810_v2 }
 0x40a   : > { %v9812_v50 = vpop.permute.xlu0 %3625 }
 0x40b   : > { %13333 = vst [vmem:[#allocation53_spill] sm:$0xff] %v9812_v50  ;;  %v5736_v50 = vmul.f32 2.0, %v5735_v44  ;;  %v2491_v44 = vsel %vm550_vm4, %v9633_v62, %v9649_v0 }
 0x40c   : > { %v9814_v52 = vpop.permute.xlu1 %2812 }
 0x40e   : > { %v9816_v11 = vpop.permute.xlu0 %2808 }
 0x40f   : > { %13334 = vst [vmem:[#allocation54_spill] sm:$0xff] %v9816_v11  ;;  %v7770_v11 = vadd.f32 -1.0, %v5736_v50  ;;  %v2991_v50 = vsel %vm1002_vm6, %v9637_v24, %v9653_v45  ;;  %v2496_v45 = vsel %vm550_vm4, %v9693_v18, %v9661_v26 }
 0x410   : > { %v9818_v29 = vpop.permute.xlu1 %3802 }
 0x411   : > { %13335 = vst [vmem:[#allocation55_spill] sm:$0xff] %v9818_v29  ;;  %v9841_v56 = vrot.slane %v7770_v11, %v8668_v3  ;;  %v2992_v11 = vsel %vm1002_vm6, %v9641_v28, %v9657_v59  ;;  %v2492_v3 = vsel %vm550_vm4, %v9661_v26, %v9677_v30  ;;  %v2488_v28 = vsel %vm550_vm4, %v9677_v30, %v9693_v18 }
 0x412   : > { %v9820_v16 = vpop.permute.xlu0 %2814  ;;  %v2497_v30 = vsel %vm550_vm4, %v9697_v47, %v9665_v33  ;;  %v2651_v26 = vsel %vm568_vm3, %v9739_v34, %v9751_v22  ;;  %v2820_v18 = vsel %vm845_vm5, %v9784_v17, %v9788_v5 }
 0x413   : > { %13340 = vst [vmem:[#allocation60_spill] sm:$0xff] %v9841_v56  ;;  %v2493_v56 = vsel %vm550_vm4, %v9665_v33, %v9681_v39  ;;  %v2494_v33 = vsel %vm550_vm4, %v9701_v63, %v9627_v20 }
 0x414   : > { %v9826_v43 = vpop.permute.xlu1 %3798 }
 0x415   : > { %13336 = vst [vmem:[#allocation56_spill] sm:$0xff] %v9826_v43  ;;  %v2649_v43 = vsel %vm568_vm3, %v9709_v54, %v9725_v38 }
 0x416   : > { %v9828_v55 = vpop.permute.xlu0 %3804 }
 0x417   : > { %13337 = vst [vmem:[#allocation57_spill] sm:$0xff] %v9828_v55  ;;  %v2490_v55 = vsel %vm550_vm4, %v9627_v20, %v9645_v12  ;;  %v9945_v20 = vsel %vm1306_vm7, %v9721_v9, %v9736_v14 }
 0x418   : > { %v9830_v2 = vpop.permute.xlu1 %2810  ;;  %13345 = vst [vmem:[#allocation65_spill] sm:$0xff] %v9945_v20 }
 0x41a   : > { %v9832_v51 = vpop.permute.xlu0 %3800 }
 0x41b   : > { %13338 = vst [vmem:[#allocation58_spill] sm:$0xff] %v9832_v51  ;;  %v2993_v51 = vsel %vm1002_vm6, %v9669_v31, %v9685_v32 }
 0x41c   : > { %v9834_v46 = vpop.permute.xlu1 %2983 }
 0x41e   : > { %v9836_v29 = vpop.permute.xlu0 %2985 }
 0x420   : > { %v9838_v19 = vpop.permute.xlu1 %2979 }
 0x421   : > { %13339 = vst [vmem:[#allocation59_spill] sm:$0xff] %v9838_v19  ;;  %v2489_v19 = vsel %vm550_vm4, %v9681_v39, %v9697_v47  ;;  %v2486_v39 = vsel %vm550_vm4, %v9645_v12, %v9701_v63  ;;  %v2658_v47 = vadd.f32 %v2649_v43, %v2490_v55  ;;  %v2495_v12 = vsel %vm550_vm4, %v9705_v53, %v9633_v62 }
 0x422   : > { %v9843_v41 = vpop.permute.xlu0 %2981  ;;  %v9937_v43 = vsel %vm1306_vm7, %v9717_v35, %v9732_v15  ;;  %v2655_v62 = vsel %vm568_vm3, %v9763_v4, %v9739_v34 }
 0x423   : > { %13341 = vst [vmem:[#allocation61_spill] sm:$0xff] %v9843_v41  ;;  %v2994_v41 = vsel %vm1002_vm6, %v9673_v49, %v9689_v60  ;;  %v2652_v60 = vsel %vm568_vm3, %v9742_v57, %v9754_v37  ;;  %13344 = vst [vmem:[#allocation64_spill] sm:$0xff] %v9937_v43 }
 0x424   : > { %v9877_v59 = vpop.permute.xlu1 %3289  ;;  %v2667_v63 = vadd.f32 %v2652_v60, %v2493_v56  ;;  %v2647_v56 = vsel %vm568_vm3, %v9751_v22, %v9763_v4  ;;  %v2656_v60 = vsel %vm568_vm3, %v9766_v1, %v9742_v57  ;;  %v2648_v22 = vsel %vm568_vm3, %v9754_v37, %v9766_v1 }
 0x425   : > { %13342 = vst [vmem:[#allocation62_spill] sm:$0xff] %v9877_v59  ;;  %v2650_v59 = vsel %vm568_vm3, %v9713_v25, %v9728_v48  ;;  %v2645_v57 = vsel %vm568_vm3, %v9725_v38, %v9774_v8  ;;  %v2653_v4 = vsel %vm568_vm3, %v9774_v8, %v9709_v54  ;;  %v2654_v37 = vsel %vm568_vm3, %v9776_v42, %v9713_v25  ;;  %v13348_v25 = vld [vmem:[#allocation47_spill] sm:$0xff] }
 0x426   : > { %v9911_v24 = vpop.permute.xlu0 %3291  ;;  %v2661_v32 = vadd.f32 %v2650_v59, %v2491_v44  ;;  %v2829_v59 = vadd.f32 %v2820_v18, %v2658_v47  ;;  %v9961_v44 = vsel %vm1306_vm7, %v9748_v40, %v9760_v21  ;;  %v2823_v18 = vsel %vm845_vm5, %v9800_v6, %v9808_v61 }
 0x427   : > { %13343 = vst [vmem:[#allocation63_spill] sm:$0xff] %v9911_v24  ;;  %v2487_v24 = vsel %vm550_vm4, %v9649_v0, %v9705_v53  ;;  %v2664_v0 = vadd.f32 %v2651_v26, %v2492_v3  ;;  %v9955_v53 = vsel %vm1306_vm7, %v9745_v7, %v9757_v13  ;;  %v2821_v3 = vsel %vm845_vm5, %v9790_v27, %v9794_v10 }
 0x428   : > { %v9939_v55 = vpop.permute.xlu1 %3285  ;;  %v2822_v26 = vsel %vm845_vm5, %v9798_v58, %v9806_v36  ;;  %v2663_v47 = vadd.f32 %v2655_v62, %v2496_v45  ;;  %v2646_v45 = vsel %vm568_vm3, %v9728_v48, %v9776_v42  ;;  %v3000_v1 = vadd.f32 %v2991_v50, %v2829_v59  ;;  %v13349_v42 = vld [vmem:[#allocation46_spill] sm:$0xff] }
 0x429   : > { %v2832_v62 = vadd.f32 %v2821_v3, %v2661_v32  ;;  %v2665_v38 = vadd.f32 %v2647_v56, %v2488_v28  ;;  %v2666_v14 = vadd.f32 %v2656_v60, %v2497_v30  ;;  %v2835_v43 = vadd.f32 %v2822_v26, %v2664_v0  ;;  %v13356_v60 = vld [vmem:[#allocation34_spill] sm:$0xff] }
 0x42a   : > { %v9967_v34 = vpop.permute.xlu0 %3287  ;;  %v2668_v8 = vadd.f32 %v2648_v22, %v2489_v19  ;;  %v2657_v54 = vadd.f32 %v2653_v4, %v2494_v33  ;;  %v2826_v48 = vsel %vm845_vm5, %v9814_v52, %v9798_v58  ;;  %v2660_v15 = vadd.f32 %v2654_v37, %v2495_v12 }
 0x42b   : > { %13346 = vst [vmem:[#allocation66_spill] sm:$0xff] %v9967_v34  ;;  %v2838_v34 = vadd.f32 %v2823_v18, %v2667_v63  ;;  %v2662_v40 = vadd.f32 %v2646_v45, %v2487_v24  ;;  %v2818_v28 = vsel %vm845_vm5, %v9806_v36, %v9814_v52  ;;  %v2827_v32 = vsel %vm845_vm5, %v9820_v16, %v9800_v6  ;;  %v13350_v36 = vld [vmem:[#allocation17_spill] sm:$0xff]  ;;  %v13359_v45 = vld [vmem:[#allocation35_spill] sm:$0xff] }
 0x42c   : > { %v9997_v20 = vpop.permute.xlu1 %3440  ;;  %v10027_v50 = vsel %vm1620_vm9, %v13349_v42, %v13348_v25  ;;  %v3003_v58 = vadd.f32 %v2992_v11, %v2832_v62  ;;  %v2997_v24 = vsel %vm1002_vm6, %v9834_v46, %v9669_v31  ;;  %v10034_v52 = vadd.f32 %v13350_v36, %v3000_v1  ;;  %v13351_v11 = vld [vmem:[#allocation54_spill] sm:$0xff]  ;;  %v13357_v18 = vld [vmem:[#allocation33_spill] sm:$0xff]  ;;  %v13360_v62 = vld [vmem:[#allocation20_spill] sm:$0xff] }
 0x42d   : > { %13347 = vst [vmem:[#allocation67_spill] sm:$0xff] %v9997_v20  ;;  %v2659_v20 = vadd.f32 %v2645_v57, %v2486_v39  ;;  %v3006_v30 = vadd.f32 %v2993_v51, %v2835_v43  ;;  %v3009_v39 = vadd.f32 %v2994_v41, %v2838_v34  ;;  %v2834_v6 = vadd.f32 %v2826_v48, %v2663_v47  ;;  %v13355_v34 = vld [vmem:[#allocation59_spill] sm:$0xff] }
 0x42e   : > { %v10007_v9 = vpop.permute.xlu0 %3442  ;;  %v2998_v33 = vsel %vm1002_vm6, %v9836_v29, %v9673_v49  ;;  %v2836_v0 = vadd.f32 %v2818_v28, %v2665_v38  ;;  %v2824_v59 = vsel %vm845_vm5, %v13351_v11, %v9784_v17  ;;  %v2819_v31 = vsel %vm845_vm5, %v9808_v61, %v9820_v16  ;;  %v13352_v61 = vld [vmem:[#allocation36_spill] sm:$0xff]  ;;  %v13361_v28 = vld [vmem:[#allocation49_spill] sm:$0xff] }
 0x42f   : > { %v2837_v41 = vadd.f32 %v2827_v32, %v2666_v14  ;;  %v2816_v51 = vsel %vm845_vm5, %v9788_v5, %v13351_v11  ;;  %v2817_v49 = vsel %vm845_vm5, %v9794_v10, %v9830_v2  ;;  %v2825_v17 = vsel %vm845_vm5, %v9830_v2, %v9790_v27  ;;  %v13353_v14 = vld [vmem:[#allocation37_spill] sm:$0xff]  ;;  %v13354_v10 = vld [vmem:[#allocation32_spill] sm:$0xff] }
 0x430   : > { %v10021_v19 = vpop.permute.xlu1 %3448  ;;  %v3005_v43 = vadd.f32 %v2997_v24, %v2834_v6  ;;  %v2989_v16 = vsel %vm1002_vm6, %v13352_v61, %v9834_v46  ;;  %v2990_v5 = vsel %vm1002_vm6, %v13353_v14, %v9836_v29  ;;  %v2995_v56 = vsel %vm1002_vm6, %v13355_v34, %v13354_v10  ;;  %v13358_v46 = vld [vmem:[#allocation61_spill] sm:$0xff]  ;;  %v13362_v32 = vld [vmem:[#allocation48_spill] sm:$0xff] }
 0x431   : > { %v3008_v3 = vadd.f32 %v2998_v33, %v2837_v41  ;;  %v2828_v2 = vadd.f32 %v2824_v59, %v2657_v54  ;;  %v2839_v27 = vadd.f32 %v2819_v31, %v2668_v8  ;;  %v2987_v26 = vsel %vm1002_vm6, %v13356_v60, %v13355_v34  ;;  %v13364_v6 = vld [vmem:[#allocation52_spill] sm:$0xff]  ;;  %v13365_v33 = vld [vmem:[#allocation50_spill] sm:$0xff]  ;;  %v13366_v59 = vld [vmem:[#allocation21_spill] sm:$0xff] }
 0x432   : > { %v10040_v12 = vpop.permute.xlu0 %3450  ;;  %v2996_v47 = vsel %vm1002_vm6, %v13358_v46, %v13357_v18  ;;  %v2830_v29 = vadd.f32 %v2816_v51, %v2659_v20  ;;  %v2831_v57 = vadd.f32 %v2825_v17, %v2660_v15  ;;  %v2833_v4 = vadd.f32 %v2817_v49, %v2662_v40  ;;  %v13363_v15 = vld [vmem:[#allocation22_spill] sm:$0xff]  ;;  %v13367_v41 = vld [vmem:[#allocation19_spill] sm:$0xff]  ;;  %v13368_v17 = vld [vmem:[#allocation53_spill] sm:$0xff] }
 0x433   : > { %v2988_v37 = vsel %vm1002_vm6, %v13359_v45, %v13358_v46  ;;  %v3007_v1 = vadd.f32 %v2989_v16, %v2836_v0  ;;  %v3140_v38 = vadd.f32 %v13360_v62, %v3005_v43  ;;  %v3010_v8 = vadd.f32 %v2990_v5, %v2839_v27  ;;  %v13369_v43 = vld [vmem:[#allocation51_spill] sm:$0xff]  ;;  %v13370_v16 = vld [vmem:[#allocation62_spill] sm:$0xff]  ;;  %v13373_v34 = vld [vmem:[#allocation12_spill] sm:$0xff] }
 0x434   : > { %v10062_v63 = vpop.permute.xlu1 %3444  ;;  %v2999_v54 = vadd.f32 %v2995_v56, %v2828_v2  ;;  %v10097_v24 = vsel %vm1620_vm9, %v13362_v32, %v13361_v28  ;;  %v3143_v40 = vadd.f32 %v13363_v15, %v3008_v3  ;;  %v3001_v20 = vadd.f32 %v2987_v26, %v2830_v29  ;;  %v13371_v5 = vld [vmem:[#allocation23_spill] sm:$0xff]  ;;  %v13372_v3 = vld [vmem:[#allocation16_spill] sm:$0xff]  ;;  %v13374_v2 = vld [vmem:[#allocation14_spill] sm:$0xff] }
 0x435   : > { %v3002_v36 = vadd.f32 %v2996_v47, %v2831_v57  ;;  %v10104_v0 = vsel %vm1620_vm9, %v13365_v33, %v13364_v6  ;;  %v3004_v11 = vadd.f32 %v2988_v37, %v2833_v4  ;;  %v3141_v31 = vadd.f32 %v13366_v59, %v3006_v30  ;;  %v13375_v18 = vld [vmem:[#allocation18_spill] sm:$0xff]  ;;  %v13376_v46 = vld [vmem:[#allocation13_spill] sm:$0xff]  ;;  %v13377_v4 = vld [vmem:[#allocation63_spill] sm:$0xff] }
 0x436   : > { %v10084_v22 = vpop.permute.xlu0 %3446  ;;  %v3138_v51 = vadd.f32 %v13367_v41, %v3003_v58  ;;  %v10114_v61 = vsel %vm1620_vm9, %v13369_v43, %v13368_v17  ;;  %v3295_v14 = vsel %vm1306_vm7, %v9757_v13, %v13370_v16  ;;  %v3303_v30 = vsel %vm1306_vm7, %v13370_v16, %v9745_v7  ;;  %v13378_v45 = vld [vmem:[#allocation15_spill] sm:$0xff]  ;;  %v13379_v62 = vld [vmem:[#allocation41_spill] sm:$0xff]  ;;  %v13386_v16 = vld [vmem:[#allocation40_spill] sm:$0xff] }
 0x437   : > { %v3144_v58 = vadd.f32 %v13371_v5, %v3009_v39  ;;  %v3134_v10 = vadd.f32 %v13372_v3, %v2999_v54  ;;  %v3142_v56 = vadd.f32 %v13373_v34, %v3007_v1  ;;  %v3145_v27 = vadd.f32 %v13374_v2, %v3010_v8  ;;  %v13381_v8 = vld [vmem:[#allocation38_spill] sm:$0xff]  ;;  %v13388_v3 = vld [vmem:[#allocation65_spill] sm:$0xff] }
 0x438   : > { %v10091_v48 = vpop.permute.xlu1 %3452  ;;  %v10129_v60 = vadd.f32 %v9955_v53, %v3140_v38  ;;  %v3137_v13 = vadd.f32 %v13375_v18, %v3002_v36  ;;  %v3136_v47 = vadd.f32 %v13376_v46, %v3001_v20  ;;  %v3301_v7 = vsel %vm1306_vm7, %v9939_v55, %v9717_v35  ;;  %v13382_v54 = vld [vmem:[#allocation66_spill] sm:$0xff] }
 0x439   : > { %v10140_v39 = vadd.f32 %v9961_v44, %v3143_v40  ;;  %v10142_v29 = vadd.f32 %v3295_v14, %v3141_v31  ;;  %v3313_v57 = vadd.f32 %v3303_v30, %v3142_v56  ;;  %v3296_v53 = vsel %vm1306_vm7, %v9760_v21, %v13377_v4  ;;  %v13380_v44 = vld [vmem:[#allocation39_spill] sm:$0xff]  ;;  %v13384_v40 = vld [vmem:[#allocation44_spill] sm:$0xff]  ;;  %v13387_v30 = vld [vmem:[#allocation45_spill] sm:$0xff] }
 0x43a   : > { %v10108_v49 = vpop.permute.xlu0 %3454  ;;  %v3139_v37 = vadd.f32 %v13378_v45, %v3004_v11  ;;  %v3304_v35 = vsel %vm1306_vm7, %v13377_v4, %v13379_v62  ;;  %v3293_v38 = vsel %vm1306_vm7, %v13380_v44, %v9939_v55  ;;  %v3302_v15 = vsel %vm1306_vm7, %v13382_v54, %v13381_v8  ;;  %v13383_v21 = vld [vmem:[#allocation67_spill] sm:$0xff]  ;;  %v13385_v11 = vld [vmem:[#allocation64_spill] sm:$0xff]  ;;  %v13389_v45 = vld [vmem:[#allocation42_spill] sm:$0xff] }
 0x43b   : > { %v3472_v20 = vsel %vm1463_vm8, %v13384_v40, %v13383_v21  ;;  %v3307_v36 = vadd.f32 %v3301_v7, %v3136_v47  ;;  %v3305_v59 = vadd.f32 %v13385_v11, %v3134_v10  ;;  %v3468_v31 = vsel %vm1463_vm8, %v13383_v21, %v10021_v19  ;;  %v13390_v8 = vld [vmem:[#allocation56_spill] sm:$0xff] }
 0x43c   : > { %v10131_v26 = vpop.permute.xlu1 %3631  ;;  %v3469_v55 = vsel %vm1463_vm8, %v10007_v9, %v10040_v12  ;;  %v3294_v14 = vsel %vm1306_vm7, %v13386_v16, %v13382_v54  ;;  %v3473_v5 = vsel %vm1463_vm8, %v13387_v30, %v10007_v9  ;;  %v3308_v10 = vadd.f32 %v13388_v3, %v3137_v13 }
 0x43d   : > { %v3306_v56 = vadd.f32 %v3293_v38, %v10034_v52  ;;  %v3310_v2 = vadd.f32 %v3302_v15, %v3139_v37  ;;  %v3478_v18 = vadd.f32 %v3472_v20, %v3307_v36  ;;  %v3464_v46 = vsel %vm1463_vm8, %v10021_v19, %v13384_v40  ;;  %v13391_v36 = vld [vmem:[#allocation58_spill] sm:$0xff] }
 0x43e   : > { %v10149_v1 = vpop.permute.xlu0 %3633  ;;  %v3476_v7 = vadd.f32 %v3468_v31, %v3305_v59  ;;  %v3465_v9 = vsel %vm1463_vm8, %v10040_v12, %v13387_v30  ;;  %v3479_v13 = vadd.f32 %v3469_v55, %v3308_v10  ;;  %v3309_v52 = vadd.f32 %v3294_v14, %v3138_v51  ;;  %v13393_v59 = vld [vmem:[#allocation24_spill] sm:$0xff]  ;;  %v13394_v14 = vld [vmem:[#allocation26_spill] sm:$0xff] }
 0x43f   : > { %v3481_v4 = vadd.f32 %v3473_v5, %v3310_v2  ;;  %v3474_v37 = vsel %vm1463_vm8, %v13389_v45, %v10062_v63  ;;  %v3315_v44 = vadd.f32 %v3296_v53, %v3144_v58  ;;  %v3316_v38 = vadd.f32 %v3304_v35, %v3145_v27  ;;  %v13395_v5 = vld [vmem:[#allocation25_spill] sm:$0xff]  ;;  %v8353_v2 = vld [vmem:[%s13122_s9] sm:$0xff]  }
 0x440   : > { %v3628_v41 = vpop.permute.xlu1 %3627  ;;  %v3480_v51 = vadd.f32 %v3465_v9, %v3309_v52  ;;  %v10210_v20 = vadd.f32 %v3474_v37, %v3313_v57  ;;  %v3647_v27 = vadd.f32 %v10027_v50, %v3476_v7  ;;  %v3650_v53 = vadd.f32 %v10097_v24, %v3479_v13  ;;  %v13396_v9 = vld [vmem:[#allocation27_spill] sm:$0xff]  ;;  %8013 = vmatprep.mubr.msk.bf16.mxu0 %vm4258_vm0, %v8353_v2 }
 0x441   : > { %v3643_v34 = vsel %vm1620_vm9, %v3628_v41, %v13349_v42  ;;  %v3635_v12 = vsel %vm1620_vm9, %v13348_v25, %v3628_v41  ;;  %v13392_v25 = vld [vmem:[#allocation43_spill] sm:$0xff]  ;;  %v3466_v57 = vsel %vm1463_vm8, %v10091_v48, %v13389_v45 }
 0x442   : > { %v3630_v47 = vpop.permute.xlu0 %3629  ;;  %v3649_v19 = vadd.f32 %v3643_v34, %v3478_v18  ;;  %v3475_v35 = vsel %vm1463_vm8, %v13392_v25, %v10084_v22 }
 0x443   : > { %v3644_v42 = vsel %vm1620_vm9, %v3630_v47, %v13362_v32  ;;  %v3477_v32 = vadd.f32 %v3464_v46, %v3306_v56  ;;  %v3636_v50 = vsel %vm1620_vm9, %v13361_v28, %v3630_v47  ;;  %v3470_v28 = vsel %vm1463_vm8, %v10062_v63, %v10091_v48 }
 0x444   : > { %v3783_v62 = vpop.permute.xlu1 %3782  ;;  %v3652_v15 = vadd.f32 %v3644_v42, %v3481_v4  ;;  %v3651_v47 = vadd.f32 %v3636_v50, %v3480_v51  ;;  %v3487_v52 = vadd.f32 %v3475_v35, %v3316_v38  ;;  %v3467_v63 = vsel %vm1463_vm8, %v10108_v49, %v13392_v25 }
 0x445   : > { %v3814_v54 = vsel %vm1777_vm10, %v13390_v8, %v3783_v62  ;;  %v3648_v11 = vadd.f32 %v3635_v12, %v3477_v32  ;;  %v3471_v48 = vsel %vm1463_vm8, %v10084_v22, %v10108_v49  ;;  %v3482_v38 = vadd.f32 %v3470_v28, %v10129_v60 }
 0x446   : > { %v3820_v21 = vadd.f32 %v3814_v54, %v3649_v19  ;;  %v3785_v40 = vpop.permute.xlu0 %3784  ;;  %v3483_v12 = vadd.f32 %v3466_v57, %v10142_v29  ;;  %v10275_v32 = vadd.f32 %v3471_v48, %v10140_v39  ;;  %v10277_v22 = vadd.f32 %v3467_v63, %v3315_v44 }
 0x447   : > { %v3815_v58 = vsel %vm1777_vm10, %v13391_v36, %v3785_v40  ;;  %v3637_v60 = vsel %vm1620_vm9, %v13364_v6, %v10131_v26 }
 0x448   : > { %v3856_v31 = vmul.f32 %v13393_v59, %v3820_v21  ;;  %v3823_v55 = vadd.f32 %v3815_v58, %v3652_v15  ;;  %v3791_v41 = vpop.permute.xlu1 %3790  ;;  %v3645_v58 = vsel %vm1620_vm9, %v10131_v26, %v13365_v33  ;;  %v10300_v25 = vadd.f32 %v3637_v60, %v3483_v12 }
 0x449   : > { %v3806_v24 = vsel %vm1777_vm10, %v3791_v41, %v13390_v8  ;;  %v3810_v16 = vsel %vm1777_vm10, %v3783_v62, %v3791_v41  ;;  %v3655_v41 = vadd.f32 %v3645_v58, %v10210_v20 }
 0x44a   : > { %v10235_v30 = vadd.f32 %v13394_v14, %v3856_v31  ;;  %v3859_v3 = vmul.f32 %v13395_v5, %v3823_v55  ;;  %v3818_v10 = vadd.f32 %v3810_v16, %v3647_v27  ;;  %v3819_v34 = vadd.f32 %v3806_v24, %v3648_v11  ;;  %v3793_v56 = vpop.permute.xlu0 %3792 }
 0x44b   : > { %v3807_v18 = vsel %vm1777_vm10, %v3793_v56, %v13391_v36  ;;  %v3811_v46 = vsel %vm1777_vm10, %v3785_v40, %v3793_v56  ;;  %v3646_v31 = vsel %vm1620_vm9, %v10149_v1, %v13369_v43  ;;  %v10321_v43 = vsel %vm1620_vm9, %v13368_v17, %v10149_v1 }
 0x44c   : > { %v10251_v7 = vmul.f32 0.70710677, %v10235_v30  ;;  %v3895_v13 = vadd.f32 %v13396_v9, %v3859_v3  ;;  %v3854_v42 = vmul.f32 %v13393_v59, %v3818_v10  ;;  %v3855_v4 = vmul.f32 %v13393_v59, %v3819_v34  ;;  %v10302_v59 = vpop.permute.xlu1 %3786 }
 0x44d   : > { %v3821_v19 = vadd.f32 %v3811_v46, %v3650_v53  ;;  %v3822_v62 = vadd.f32 %v3807_v18, %v3651_v47  ;;  %v10298_v53 = vadd.f32 %v10104_v0, %v3482_v38  ;;  %v3658_v20 = vadd.f32 %v3646_v31, %v3487_v52  ;;  %v13398_v47 = vld [vmem:[#allocation57_spill] sm:$0xff] }
 0x44e   : > { %v3928_v45 = vand.u32 2147483647, %v10251_v7  ;;  %v10266_v37 = vmul.f32 0.70710677, %v3895_v13  ;;  %v3890_v8 = vadd.f32 %v13394_v14, %v3854_v42  ;;  %v10272_v54 = vadd.f32 %v13394_v14, %v3855_v4  ;;  %v13397_v14 = vld [vmem:[#allocation55_spill] sm:$0xff]  ;;  %v10315_v3 = vpop.permute.xlu0 %3788  ;;  %v13399_v4 = vld [vmem:[#allocation28_spill] sm:$0xff] }
 0x44f   : > { %v3857_v39 = vmul.f32 %v13395_v5, %v3821_v19  ;;  %v3858_v44 = vmul.f32 %v13395_v5, %v3822_v62  ;;  %v3816_v5 = vsel %vm1777_vm10, %v13397_v14, %v10302_v59  ;;  %v10332_v17 = vmul.f32 0.5, %v10235_v30 }
 0x450   : > { %v3940_v49 = vmul.f32 0.3275911, %v3928_v45  ;;  %v3931_v51 = vand.u32 2147483647, %v10266_v37  ;;  %v4096_v15 = vsub.f32 0.0, %v3928_v45  ;;  %v3826_v46 = vadd.f32 %v3816_v5, %v3655_v41  ;;  %v13402_v41 = vld [vmem:[#allocation31_spill] sm:$0xff] }
 0x451   : > { %v10284_v29 = vmul.f32 0.70710677, %v3890_v8  ;;  %v10287_v21 = vmul.f32 0.70710677, %v10272_v54  ;;  %v3893_v0 = vadd.f32 %v13396_v9, %v3857_v39  ;;  %v3894_v50 = vadd.f32 %v13396_v9, %v3858_v44 }
 0x452   : > { %v3952_v40 = vadd.f32 1.0, %v3940_v49  ;;  %v3943_v36 = vmul.f32 0.3275911, %v3931_v51  ;;  %v4099_v11 = vsub.f32 0.0, %v3931_v51  ;;  %v4108_v33 = vmul.f32 %v4096_v15, %v3928_v45  ;;  %v13401_v15 = vld [vmem:[#allocation29_spill] sm:$0xff] }
 0x453   : > { %v3926_v27 = vand.u32 2147483647, %v10284_v29  ;;  %v3927_v6 = vand.u32 2147483647, %v10287_v21  ;;  %v10323_v2 = vmul.f32 0.70710677, %v3893_v0  ;;  %v3817_v9 = vsel %vm1777_vm10, %v13398_v47, %v10315_v3 }
 0x454   : > { %8419 = vrcp.f32 %v3952_v40  ;;  %v3955_v35 = vadd.f32 1.0, %v3943_v36  ;;  %v4111_v10 = vmul.f32 %v4099_v11, %v3931_v51  ;;  %v4122_v56 = vmul.f32 1.442695, %v4108_v33 }
 0x455   : > { %v3938_v26 = vmul.f32 0.3275911, %v3926_v27  ;;  %v3939_v55 = vmul.f32 0.3275911, %v3927_v6  ;;  %v4094_v57 = vsub.f32 0.0, %v3926_v27  ;;  %v4095_v34 = vsub.f32 0.0, %v3927_v6 }
 0x456   : > { %8421 = vrcp.f32 %v3955_v35  ;;  %v10325_v28 = vmul.f32 0.70710677, %v3894_v50  ;;  %v10334_v1 = vmul.f32 0.5, %v3895_v13  ;;  %v3929_v42 = vand.u32 2147483647, %v10323_v2  ;;  %v13400_v13 = vld [vmem:[#allocation30_spill] sm:$0xff] }
 0x457   : > { %v3950_v24 = vadd.f32 1.0, %v3938_v26  ;;  %v3951_v16 = vadd.f32 1.0, %v3939_v55  ;;  %v4106_v18 = vmul.f32 %v4094_v57, %v3926_v27  ;;  %v4128_v63 = vmul.f32 1.442695, %v4111_v10 }
 0x458   : > { %v3930_v52 = vand.u32 2147483647, %v10325_v28  ;;  %v4107_v48 = vmul.f32 %v4095_v34, %v3927_v6  ;;  %v3862_v45 = vmul.f32 %v13399_v4, %v3826_v46  ;;  %v3829_v19 = vadd.f32 %v3817_v9, %v3658_v20 }
 0x459   : > { %8423 = vrcp.f32 %v3950_v24  ;;  %v10339_v62 = vmul.f32 0.5, %v3890_v8  ;;  %v3941_v38 = vmul.f32 0.3275911, %v3929_v42  ;;  %v4097_v49 = vsub.f32 0.0, %v3929_v42 }
 0x45a   : > { %8425 = vrcp.f32 %v3951_v16  ;;  %v3942_v12 = vmul.f32 0.3275911, %v3930_v52  ;;  %v4118_v30 = vmul.f32 1.442695, %v4106_v18  ;;  %v10344_v60 = vadd.f32 %v13400_v13, %v3862_v45 }
 0x45b   : > { %8427 = vpow2.f32 %v4122_v56  ;;  %v3865_v40 = vmul.f32 %v13401_v15, %v3829_v19  ;;  %v3953_v39 = vadd.f32 1.0, %v3941_v38  ;;  %v4098_v58 = vsub.f32 0.0, %v3930_v52 }
 0x45c   : > { %v3954_v44 = vadd.f32 1.0, %v3942_v12  ;;  %8429 = vpow2.f32 %v4128_v63  ;;  %v10349_v8 = vmul.f32 0.5, %v10272_v54  ;;  %v4120_v27 = vmul.f32 1.442695, %v4107_v48  ;;  %v3795_v54 = vpop.permute.xlu1 %3794 }
 0x45d   : > { %v10352_v6 = vmul.f32 0.70710677, %v10344_v60  ;;  %v10356_v31 = vmul.f32 0.5, %v3893_v0  ;;  %8431 = vrcp.f32 %v3953_v39  ;;  %v4109_v33 = vmul.f32 %v4097_v49, %v3929_v42 }
 0x45e   : > { %v10341_v51 = vpop.eup %8419  ;;  %8433 = vrcp.f32 %v3954_v44  ;;  %v10361_v57 = vadd.f32 %v13402_v41, %v3865_v40  ;;  %v10366_v5 = vmul.f32 0.5, %v3894_v50  ;;  %v4110_v0 = vmul.f32 %v4098_v58, %v3930_v52 }
 0x45f   : > { %v3988_v36 = vmul.f32 1.0614054, %v10341_v51  ;;  %v3934_v55 = vand.u32 2147483647, %v10352_v6  ;;  %8435 = vpow2.f32 %v4118_v30  ;;  %v4124_v9 = vmul.f32 1.442695, %v4109_v33 }
 0x460   : > { %v10354_v35 = vpop.eup %8421  ;;  %8437 = vpow2.f32 %v4120_v27  ;;  %v3812_v42 = vsel %vm1777_vm10, %v10302_v59, %v3795_v54  ;;  %v10377_v52 = vmul.f32 0.70710677, %v10361_v57  ;;  %v4126_v38 = vmul.f32 1.442695, %v4110_v0 }
 0x461   : > { %v4000_v11 = vadd.f32 -1.4531521, %v3988_v36  ;;  %v3991_v26 = vmul.f32 1.0614054, %v10354_v35  ;;  %v3946_v56 = vmul.f32 0.3275911, %v3934_v55  ;;  %v3808_v12 = vsel %vm1777_vm10, %v3795_v54, %v13397_v14 }
 0x462   : > { %v3937_v59 = vand.u32 2147483647, %v10377_v52  ;;  %v4102_v44 = vsub.f32 0.0, %v3934_v55  ;;  %v3824_v58 = vadd.f32 %v3812_v42, %v10298_v53  ;;  %v3825_v0 = vadd.f32 %v3808_v12, %v10300_v25 }
 0x463   : > { %v10363_v24 = vpop.eup %8423  ;;  %v4012_v16 = vmul.f32 %v10341_v51, %v4000_v11  ;;  %v4003_v10 = vadd.f32 -1.4531521, %v3991_v26  ;;  %v3958_v48 = vadd.f32 1.0, %v3946_v56  ;;  %vm4168_vm1 = vcmp.lt.f32.partialorder %v10251_v7, 0.0 }
 0x464   : > { %v10368_v20 = vpop.eup %8425  ;;  %v3986_v34 = vmul.f32 1.0614054, %v10363_v24  ;;  %v3949_v26 = vmul.f32 0.3275911, %v3937_v59  ;;  %vm4171_vm2 = vcmp.lt.f32.partialorder %v10266_v37, 0.0  ;;  %vm4166_vm11 = vcmp.lt.f32.partialorder %v10284_v29, 0.0 }
 0x465   : > { %v4024_v18 = vadd.f32 1.4214138, %v4012_v16  ;;  %v3987_v46 = vmul.f32 1.0614054, %v10368_v20  ;;  %v4015_v63 = vmul.f32 %v10354_v35, %v4003_v10  ;;  %v8428_v49 = vpop.eup %8427  ;;  %8439 = vrcp.f32 %v3958_v48 }
 0x466   : > { %v3998_v50 = vadd.f32 -1.4531521, %v3986_v34  ;;  %v8430_v27 = vpop.eup %8429  ;;  %8441 = vpow2.f32 %v4124_v9  ;;  %vm4167_vm12 = vcmp.lt.f32.partialorder %v10287_v21, 0.0  ;;  %vm4169_vm13 = vcmp.lt.f32.partialorder %v10323_v2, 0.0 }
 0x467   : > { %v4036_v45 = vmul.f32 %v10341_v51, %v4024_v18  ;;  %v3999_v19 = vadd.f32 -1.4531521, %v3987_v46  ;;  %v4027_v30 = vadd.f32 1.4214138, %v4015_v63  ;;  %v10388_v14 = vpop.eup %8431  ;;  %8443 = vpow2.f32 %v4126_v38 }
 0x468   : > { %v4010_v40 = vmul.f32 %v10363_v24, %v3998_v50  ;;  %v10392_v10 = vpop.eup %8433  ;;  %v3989_v53 = vmul.f32 1.0614054, %v10388_v14  ;;  %v3961_v18 = vadd.f32 1.0, %v3949_v26  ;;  %v4114_v50 = vmul.f32 %v4102_v44, %v3934_v55 }
 0x469   : > { %v4048_v36 = vadd.f32 -0.28449672, %v4036_v45  ;;  %v4011_v39 = vmul.f32 %v10368_v20, %v3999_v19  ;;  %v4039_v11 = vmul.f32 %v10354_v35, %v4027_v30  ;;  %v8436_v46 = vpop.eup %8435  ;;  %v3990_v63 = vmul.f32 1.0614054, %v10392_v10 }
 0x46a   : > { %v4022_v33 = vadd.f32 1.4214138, %v4010_v40  ;;  %v8438_v48 = vpop.eup %8437  ;;  %v4001_v19 = vadd.f32 -1.4531521, %v3989_v53  ;;  %8445 = vrcp.f32 %v3961_v18  ;;  %v4105_v40 = vsub.f32 0.0, %v3937_v59 }
 0x46b   : > { %v4060_v54 = vmul.f32 %v10341_v51, %v4048_v36  ;;  %v4023_v16 = vadd.f32 1.4214138, %v4011_v39  ;;  %v4051_v34 = vadd.f32 -0.28449672, %v4039_v11  ;;  %v4002_v30 = vadd.f32 -1.4531521, %v3990_v63 }
 0x46c   : > { %v4034_v56 = vmul.f32 %v10363_v24, %v4022_v33  ;;  %v4013_v11 = vmul.f32 %v10388_v14, %v4001_v19  ;;  %v3860_v55 = vmul.f32 %v13399_v4, %v3824_v58  ;;  %v3861_v53 = vmul.f32 %v13399_v4, %v3825_v0 }
 0x46d   : > { %v4072_v42 = vadd.f32 0.2548296, %v4060_v54  ;;  %v4035_v9 = vmul.f32 %v10368_v20, %v4023_v16  ;;  %v4063_v25 = vmul.f32 %v10354_v35, %v4051_v34  ;;  %v4014_v26 = vmul.f32 %v10392_v10, %v4002_v30 }
 0x46e   : > { %v4046_v45 = vadd.f32 -0.28449672, %v4034_v56  ;;  %v4134_v54 = vmul.f32 1.442695, %v4114_v50  ;;  %v4025_v56 = vadd.f32 1.4214138, %v4013_v11  ;;  %v4117_v58 = vmul.f32 %v4105_v40, %v3937_v59 }
 0x46f   : > { %v4084_v38 = vmul.f32 %v10341_v51, %v4072_v42  ;;  %v4047_v12 = vadd.f32 -0.28449672, %v4035_v9  ;;  %v4075_v36 = vadd.f32 0.2548296, %v4063_v25  ;;  %v10407_v16 = vpop.eup %8439  ;;  %v4026_v9 = vadd.f32 1.4214138, %v4014_v26 }
 0x470   : > { %v4058_v39 = vmul.f32 %v10363_v24, %v4046_v45  ;;  %v4037_v50 = vmul.f32 %v10388_v14, %v4025_v56  ;;  %v3994_v45 = vmul.f32 1.0614054, %v10407_v16  ;;  %v10418_v0 = vadd.f32 %v13400_v13, %v3860_v55 }
 0x471   : > { %v4144_v44 = vmul.f32 %v8428_v49, %v4084_v38  ;;  %v4059_v33 = vmul.f32 %v10368_v20, %v4047_v12  ;;  %v4087_v51 = vmul.f32 %v10354_v35, %v4075_v36  ;;  %v8442_v49 = vpop.eup %8441  ;;  %v4038_v4 = vmul.f32 %v10392_v10, %v4026_v9 }
 0x472   : > { %v4070_v34 = vadd.f32 0.2548296, %v4058_v39  ;;  %v8444_v19 = vpop.eup %8443  ;;  %v10424_v39 = vadd.f32 %v13400_v13, %v3861_v53  ;;  %8447 = vpow2.f32 %v4134_v54  ;;  %vm4170_vm14 = vcmp.lt.f32.partialorder %v10325_v28, 0.0 }
 0x473   : > { %v4156_v18 = vsub.f32 1.0, %v4144_v44  ;;  %v4071_v42 = vadd.f32 0.2548296, %v4059_v33  ;;  %v4147_v63 = vmul.f32 %v8430_v27, %v4087_v51  ;;  %v4006_v27 = vadd.f32 -1.4531521, %v3994_v45 }
 0x474   : > { %v4082_v25 = vmul.f32 %v10363_v24, %v4070_v34  ;;  %v4049_v24 = vadd.f32 -0.28449672, %v4037_v50  ;;  %v4050_v36 = vadd.f32 -0.28449672, %v4038_v4  ;;  %v4140_v50 = vmul.f32 1.442695, %v4117_v58 }
 0x475   : > { %v4180_v35 = vsub.f32 0.0, %v4156_v18  ;;  %v4083_v38 = vmul.f32 %v10368_v20, %v4071_v42  ;;  %v4159_v59 = vsub.f32 1.0, %v4147_v63  ;;  %v10426_v20 = vpop.eup %8445  ;;  %v4018_v51 = vmul.f32 %v10407_v16, %v4006_v27 }
 0x476   : > { %v4142_v12 = vmul.f32 %v8436_v46, %v4082_v25  ;;  %v4061_v33 = vmul.f32 %v10388_v14, %v4049_v24  ;;  %v4062_v26 = vmul.f32 %v10392_v10, %v4050_v36  ;;  %v3997_v7 = vmul.f32 1.0614054, %v10426_v20 }
 0x477   : > { %v4192_v30 = vsel %vm4168_vm1, %v4180_v35, %v4156_v18  ;;  %v4143_v40 = vmul.f32 %v8438_v48, %v4083_v38  ;;  %v4183_v44 = vsub.f32 0.0, %v4159_v59  ;;  %v4030_v9 = vadd.f32 1.4214138, %v4018_v51  ;;  %v13403_v38 = vld [vmem:[#allocation8_spill] sm:$0xff] }
 0x478   : > { %v4204_v11 = vadd.f32 1.0, %v4192_v30  ;;  %v4154_v55 = vsub.f32 1.0, %v4142_v12  ;;  %v4073_v56 = vadd.f32 0.2548296, %v4061_v33  ;;  %v4074_v42 = vadd.f32 0.2548296, %v4062_v26 }
 0x479   : > { %v4155_v46 = vsub.f32 1.0, %v4143_v40  ;;  %v4195_v13 = vsel %vm4171_vm2, %v4183_v44, %v4159_v59  ;;  %v4009_v25 = vadd.f32 -1.4531521, %v3997_v7  ;;  %v10442_v35 = vmul.f32 0.70710677, %v10418_v0 }
 0x47a   : > { %v4216_v48 = vmul.f32 %v4204_v11, %v10332_v17  ;;  %v4178_v34 = vsub.f32 0.0, %v4154_v55  ;;  %v4207_v53 = vadd.f32 1.0, %v4195_v13  ;;  %v4085_v63 = vmul.f32 %v10388_v14, %v4073_v56 }
 0x47b   : > { %v4179_v18 = vsub.f32 0.0, %v4155_v46  ;;  %v4086_v37 = vmul.f32 %v10392_v10, %v4074_v42  ;;  %v4042_v12 = vmul.f32 %v10407_v16, %v4030_v9  ;;  %v4021_v14 = vmul.f32 %v10426_v20, %v4009_v25 }
 0x47c   : > { %v4219_v45 = vmul.f32 %v4207_v53, %v10334_v1  ;;  %v4190_v17 = vsel %vm4166_vm11, %v4178_v34, %v4154_v55  ;;  %v4228_v4 = vmul.f32 %v4216_v48, %v13403_v38  ;;  %v4145_v59 = vmul.f32 %v8442_v49, %v4085_v63  ;;  %v8448_v53 = vpop.eup %8447 }
 0x47d   : > { %v4191_v1 = vsel %vm4167_vm12, %v4179_v18, %v4155_v46  ;;  %v4146_v58 = vmul.f32 %v8444_v19, %v4086_v37  ;;  %v10451_v29 = vmul.f32 0.70710677, %v10424_v39  ;;  %v4202_v10 = vadd.f32 1.0, %v4190_v17 }
 0x47e   : > { %v4231_v54 = vmul.f32 %v4219_v45, %v13403_v38  ;;  %v4157_v24 = vsub.f32 1.0, %v4145_v59  ;;  %v4054_v27 = vadd.f32 -0.28449672, %v4042_v12  ;;  %v4033_v30 = vadd.f32 1.4214138, %v4021_v14 }
 0x47f   : > { %v4158_v49 = vsub.f32 1.0, %v4146_v58  ;;  %8449 = vpow2.f32 %v4140_v50  ;;  %v10456_v36 = vand.u32 2147483647, %v10442_v35  ;;  %v4203_v11 = vadd.f32 1.0, %v4191_v1  ;;  %v5741_v58 = vld [vmem:[%s13125_s12 + $0x18] sm:$0xff] }
 0x480   : > { %v10453_v40 = vpack.c.bf16 %v4231_v54, %v4228_v4  ;;  %v4181_v44 = vsub.f32 0.0, %v4157_v24  ;;  %v4066_v21 = vmul.f32 %v10407_v16, %v4054_v27  ;;  %v4045_v19 = vmul.f32 %v10426_v20, %v4033_v30  ;;  %v13404_v4 = vld [vmem:[#allocation5_spill] sm:$0xff] }
 0x481   : > { %v4182_v55 = vsub.f32 0.0, %v4158_v49  ;;  %v10462_v33 = vand.u32 2147483647, %v10451_v29  ;;  %v3944_v46 = vmul.f32 0.3275911, %v10456_v36  ;;  %v4214_v26 = vmul.f32 %v4202_v10, %v10339_v62 }
 0x482   : > { %8007 = vmatprep.subr.bf16.mxu0 %v10453_v40  ;;  %v4193_v51 = vsel %vm4169_vm13, %v4181_v44, %v4157_v24  ;;  %v4078_v7 = vadd.f32 0.2548296, %v4066_v21  ;;  %v4057_v48 = vadd.f32 -0.28449672, %v4045_v19  ;;  %v4215_v18 = vmul.f32 %v4203_v11, %v10349_v8  ;;  %v3797_v8 = vpop.permute.xlu0 %3796 }
 0x483   : > { %8008 = vmatpush3.bf16.msra.mxu0 %v10453_v40  ;;  %v4194_v13 = vsel %vm4170_vm14, %v4182_v55, %v4158_v49  ;;  %v4205_v34 = vadd.f32 1.0, %v4193_v51  ;;  %v3945_v28 = vmul.f32 0.3275911, %v10462_v33  ;;  %v3956_v56 = vadd.f32 1.0, %v3944_v46  ;;  %v13406_v49 = vld [vmem:[#allocation60_spill] sm:$0xff] }
 0x484   : > { %v4206_v42 = vadd.f32 1.0, %v4194_v13  ;;  %v4090_v9 = vmul.f32 %v10407_v16, %v4078_v7  ;;  %v4069_v62 = vmul.f32 %v10426_v20, %v4057_v48  ;;  %v3656_v25 = vadd.f32 %v10114_v61, %v10275_v32  ;;  %v5742_v48 = vld [vmem:[%s13125_s12 + $0x20] sm:$0xff] }
 0x485   : > { %v4217_v2 = vmul.f32 %v4205_v34, %v10356_v31  ;;  %v3957_v63 = vadd.f32 1.0, %v3945_v28  ;;  %8451 = vrcp.f32 %v3956_v56  ;;  %v3657_v50 = vadd.f32 %v10321_v43, %v10277_v22  ;;  %v13405_v31 = vld [vmem:[#allocation6_spill] sm:$0xff] }
 0x486   : > { %v4218_v45 = vmul.f32 %v4206_v42, %v10366_v5  ;;  %v4150_v17 = vmul.f32 %v8448_v53, %v4090_v9  ;;  %v4081_v37 = vadd.f32 0.2548296, %v4069_v62  ;;  %v4226_v59 = vmul.f32 %v4214_v26, %v13404_v4  ;;  %v5738_v22 = vld [vmem:[%s13125_s12] sm:$0xff] }
 0x487   : > { %v4229_v16 = vmul.f32 %v4217_v2, %v13404_v4  ;;  %v3910_v12 = vmul.f32 0.5, %v10344_v60  ;;  %8453 = vrcp.f32 %v3957_v63  ;;  %v4227_v14 = vmul.f32 %v4215_v18, %v13405_v31  ;;  %v5745_v63 = vld [vmem:[%s13125_s12 + $0x38] sm:$0xff] }
 0x488   : > { %v4230_v54 = vmul.f32 %v4218_v45, %v13405_v31  ;;  %v4162_v61 = vsub.f32 1.0, %v4150_v17  ;;  %v4093_v32 = vmul.f32 %v10426_v20, %v4081_v37  ;;  %vm4174_vm15 = vcmp.lt.f32.partialorder %v10352_v6, 0.0  ;;  %v5739_v20 = vld [vmem:[%s13125_s12 + $0x8] sm:$0xff] }
 0x489   : > { %v8450_v43 = vpop.eup %8449  ;;  %v10489_v5 = vpack.c.bf16 %v4229_v16, %v4226_v59  ;;  %v3809_v60 = vsel %vm1777_vm10, %v3797_v8, %v13398_v47  ;;  %v3813_v1 = vsel %vm1777_vm10, %v10315_v3, %v3797_v8  ;;  %v3913_v6 = vmul.f32 0.5, %v10361_v57  ;;  %v5740_v3 = vld [vmem:[%s13125_s12 + $0x10] sm:$0xff]  ;;  %v5743_v57 = vld [vmem:[%s13125_s12 + $0x28] sm:$0xff] }
 0x48a   : > { %v10504_v10 = vpack.c.bf16 %v4230_v54, %v4227_v14  ;;  %v4186_v24 = vsub.f32 0.0, %v4162_v61  ;;  %v4153_v27 = vmul.f32 %v8450_v43, %v4093_v32  ;;  %v3827_v30 = vadd.f32 %v3813_v1, %v3656_v25 }
 0x48b   : > { %v3828_v47 = vadd.f32 %v3809_v60, %v3657_v50  ;;  %v5780_v11 = vmul.f32 %v13406_v49, %v5738_v22  ;;  %vm5816_vm1 = vcmask 64512   ;;  %v5781_v19 = vmul.f32 %v13406_v49, %v5739_v20  ;;  %v5744_v60 = vld [vmem:[%s13125_s12 + $0x30] sm:$0xff] }
 0x48c   : > { %v4198_v44 = vsel %vm4174_vm15, %v4186_v24, %v4162_v61  ;;  %v4165_v21 = vsub.f32 1.0, %v4153_v27  ;;  %4265 = vmatprep.subr.bf16.mxu1 %v10504_v10  ;;  %v5783_v55 = vmul.f32 %v13406_v49, %v5741_v58  ;;  %v3863_v26 = vmul.f32 %v13401_v15, %v3827_v30 }
 0x48d   : > { %v4210_v46 = vadd.f32 1.0, %v4198_v44  ;;  %v3864_v51 = vmul.f32 %v13401_v15, %v3828_v47  ;;  %4266 = vmatpush1.bf16.msra.mxu1 %v10489_v5  ;;  %v5817_v7 = vsel %vm5816_vm1, %v5780_v11, 0.0  ;;  %vm4177_vm2 = vcmp.lt.f32.partialorder %v10377_v52, 0.0  ;;  %v5747_v11 = vld [vmem:[%s13125_s12 + $0x48] sm:$0xff] }
 0x48e   : > { %v4189_v13 = vsub.f32 0.0, %v4165_v21  ;;  %5818 = vadd.xlane.f32.xlu1 %v5817_v7  ;;  %v5820_v34 = vsel %vm5816_vm1, %v5781_v19, 0.0  ;;  %v5782_v28 = vmul.f32 %v13406_v49, %v5740_v3  ;;  %v10530_v15 = vadd.f32 %v13402_v41, %v3863_v26  ;;  %v5749_v7 = vld [vmem:[%s13125_s12 + $0x58] sm:$0xff] }
 0x48f   : > { %v10527_v56 = vpop.eup %8451  ;;  %v10533_v53 = vadd.f32 %v13402_v41, %v3864_v51  ;;  %5821 = vadd.xlane.f32.xlu0 %v5820_v34  ;;  %v5826_v18 = vsel %vm5816_vm1, %v5783_v55, 0.0  ;;  %v5785_v42 = vmul.f32 %v13406_v49, %v5743_v57  ;;  %v5784_v2 = vmul.f32 %v13406_v49, %v5742_v48 }
 0x490   : > { %v4201_v52 = vsel %vm4177_vm2, %v4189_v13, %v4165_v21  ;;  %v3992_v9 = vmul.f32 1.0614054, %v10527_v56  ;;  %v5823_v62 = vsel %vm5816_vm1, %v5782_v28, 0.0  ;;  %v4222_v41 = vmul.f32 %v4210_v46, %v3910_v12  ;;  %v5748_v28 = vld [vmem:[%s13125_s12 + $0x50] sm:$0xff] }
 0x491   : > { %v10543_v25 = vpop.eup %8453  ;;  %v4213_v50 = vadd.f32 1.0, %v4201_v52  ;;  %v4100_v45 = vsub.f32 0.0, %v10456_v36  ;;  %v4101_v17 = vsub.f32 0.0, %v10462_v33  ;;  %v10549_v59 = vmul.f32 0.70710677, %v10530_v15 }
 0x492   : > { %v3993_v37 = vmul.f32 1.0614054, %v10543_v25  ;;  %v4004_v8 = vadd.f32 -1.4531521, %v3992_v9  ;;  %5827 = vadd.xlane.f32.xlu1 %v5826_v18  ;;  %v10552_v14 = vmul.f32 0.70710677, %v10533_v53  ;;  %v5787_v12 = vmul.f32 %v13406_v49, %v5745_v63 }
 0x493   : > { %v4225_v16 = vmul.f32 %v4213_v50, %v3913_v6  ;;  %5824 = vadd.xlane.f32.xlu0 %v5823_v62  ;;  %v5832_v54 = vsel %vm5816_vm1, %v5785_v42, 0.0  ;;  %v10558_v22 = vand.u32 2147483647, %v10549_v59  ;;  %v5829_v43 = vsel %vm5816_vm1, %v5784_v2, 0.0  ;;  %v13407_v42 = vld [vmem:[#allocation9_spill] sm:$0xff] }
 0x494   : > { %v4005_v61 = vadd.f32 -1.4531521, %v3993_v37  ;;  %v4016_v32 = vmul.f32 %v10527_v56, %v4004_v8  ;;  %v4234_v1 = vmul.f32 %v4222_v41, %v13403_v38  ;;  %v4112_v58 = vmul.f32 %v4100_v45, %v10456_v36  ;;  %v10601_v41 = vld [vmem:[%s13122_s9 + $0x8] sm:$0xff]   ;;  %v5750_v37 = vld [vmem:[%s13125_s12 + $0x60] sm:$0xff] }
 0x495   : > { %v4237_v20 = vmul.f32 %v4225_v16, %v13403_v38  ;;  %v3936_v24 = vand.u32 2147483647, %v10552_v14  ;;  %v4113_v30 = vmul.f32 %v4101_v17, %v10462_v33  ;;  %v3947_v47 = vmul.f32 0.3275911, %v10558_v22  ;;  %v5746_v33 = vld [vmem:[%s13125_s12 + $0x40] sm:$0xff]  ;;  %v5751_v17 = vld [vmem:[%s13125_s12 + $0x68] sm:$0xff] }
 0x496   : > { %v4017_v6 = vmul.f32 %v10543_v25, %v4005_v61  ;;  %v4028_v27 = vadd.f32 1.4214138, %v4016_v32  ;;  %5833 = vadd.xlane.f32.xlu1 %v5832_v54  ;;  %v5838_v36 = vsel %vm5816_vm1, %v5787_v12, 0.0  ;;  %v5786_v21 = vmul.f32 %v13406_v49, %v5744_v60  ;;  %v5753_v60 = vld [vmem:[%s13125_s12 + $0x78] sm:$0xff] }
 0x497   : > { %v10574_v3 = vpack.c.bf16 %v4237_v20, %v4234_v1  ;;  %v3948_v44 = vmul.f32 0.3275911, %v3936_v24  ;;  %5830 = vadd.xlane.f32.xlu0 %v5829_v43  ;;  %v3959_v57 = vadd.f32 1.0, %v3947_v47  ;;  %v5789_v51 = vmul.f32 %v13406_v49, %v5747_v11  ;;  %v5752_v20 = vld [vmem:[%s13125_s12 + $0x70] sm:$0xff] }
 0x498   : > { %v4029_v19 = vadd.f32 1.4214138, %v4017_v6  ;;  %v4040_v55 = vmul.f32 %v10527_v56, %v4028_v27  ;;  %v5835_v26 = vsel %vm5816_vm1, %v5786_v21, 0.0  ;;  %v4130_v34 = vmul.f32 1.442695, %v4112_v58 }
 0x499   : > { %v3960_v46 = vadd.f32 1.0, %v3948_v44  ;;  %8009 = vmatprep.subr.bf16.mxu0 %v10574_v3  ;;  %8455 = vrcp.f32 %v3959_v57  ;;  %v4132_v18 = vmul.f32 1.442695, %v4113_v30  ;;  %v5844_v52 = vsel %vm5816_vm1, %v5789_v51, 0.0  ;;  %v5754_v57 = vld [vmem:[%s13125_s12 + $0x80] sm:$0xff] }
 0x49a   : > { %v4041_v48 = vmul.f32 %v10543_v25, %v4029_v19  ;;  %v4052_v13 = vadd.f32 -0.28449672, %v4040_v55  ;;  %8010 = vmatpush3.bf16.msra.mxu0 %v10574_v3  ;;  %5839 = vadd.xlane.f32.xlu1 %v5838_v36  ;;  %v5788_v9 = vmul.f32 %v13406_v49, %v5746_v33  ;;  %v5791_v2 = vmul.f32 %v13406_v49, %v5749_v7  ;;  %v5757_v33 = vld [vmem:[%s13125_s12 + $0x98] sm:$0xff] }
 0x49b   : > { %8457 = vrcp.f32 %v3960_v46  ;;  %8011 = vmatprep.subr.bf16.mxu0 %v13407_v42  ;;  %5836 = vadd.xlane.f32.xlu0 %v5835_v26  ;;  %v5790_v45 = vmul.f32 %v13406_v49, %v5748_v28  ;;  %v4103_v8 = vsub.f32 0.0, %v10558_v22  ;;  %v4104_v16 = vsub.f32 0.0, %v3936_v24 }
 0x49c   : > { %v4053_v62 = vadd.f32 -0.28449672, %v4041_v48  ;;  %v4064_v63 = vmul.f32 %v10527_v56, %v4052_v13  ;;  %v5841_v50 = vsel %vm5816_vm1, %v5788_v9, 0.0  ;;  %8459 = vpow2.f32 %v4130_v34  ;;  %v5756_v34 = vld [vmem:[%s13125_s12 + $0x90] sm:$0xff] }
 0x49d   : > { %8461 = vpow2.f32 %v4132_v18  ;;  %v5850_v12 = vsel %vm5816_vm1, %v5791_v2, 0.0  ;;  %v5847_v61 = vsel %vm5816_vm1, %v5790_v45, 0.0  ;;  %v5793_v32 = vmul.f32 %v13406_v49, %v5751_v17 }
 0x49e   : > { %8012 = vmatpush3.bf16.msra.mxu0 %v13407_v42  ;;  %5845 = vadd.xlane.f32.xlu1 %v5844_v52  ;;  %v4065_v54 = vmul.f32 %v10543_v25, %v4053_v62  ;;  %v5792_v43 = vmul.f32 %v13406_v49, %v5750_v37  ;;  %v4076_v1 = vadd.f32 0.2548296, %v4064_v63  ;;  %v4115_v58 = vmul.f32 %v4103_v8, %v10558_v22  ;;  %v5755_v22 = vld [vmem:[%s13125_s12 + $0x88] sm:$0xff]  ;;  %v5758_v8 = vld [vmem:[%s13125_s12 + $0xa0] sm:$0xff] }
 0x49f   : > { %4424 = vmatprep.subr.bf16.mxu0 %v10504_v10  ;;  %5842 = vadd.xlane.f32.xlu0 %v5841_v50  ;;  %v4116_v6 = vmul.f32 %v4104_v16, %v3936_v24  ;;  %v13408_v27 = vmov 0   ;;  %v5795_v47 = vmul.f32 %v13406_v49, %v5753_v60  ;;  %v5856_v44 = vsel %vm5816_vm1, %v5793_v32, 0.0  ;;  %v5769_v50 = vld [vmem:[%s13125_s12 + $0xf8] sm:$0xff]  ;;  %v5759_v37 = vld [vmem:[%s13125_s12 + $0xa8] sm:$0xff] }
 0x4a0   : > { %v4077_v30 = vadd.f32 0.2548296, %v4065_v54  ;;  %v5853_v36 = vsel %vm5816_vm1, %v5792_v43, 0.0  ;;  %v5794_v21 = vmul.f32 %v13406_v49, %v5752_v20  ;;  %v4088_v19 = vmul.f32 %v10527_v56, %v4076_v1  ;;  %v5771_v20 = vld [vmem:[%s13125_s12 + $0x108] sm:$0xff] }
 0x4a1   : > { %8014 = vmatmul.mubr.msk.bf16.vlgmr.msra.gmra.mrb[44].mxu0 %vm4258_vm0, %v10601_v41  ;;  %v4136_v26 = vmul.f32 1.442695, %v4115_v58  ;;  %v4138_v51 = vmul.f32 1.442695, %v4116_v6  ;;  %v5862_v56 = vsel %vm5816_vm1, %v5795_v47, 0.0  ;;  %v5797_v13 = vmul.f32 %v13406_v49, %v5755_v22  ;;  %v5770_v58 = vld [vmem:[%s13125_s12 + $0x100] sm:$0xff] }
 0x4a2   : > { %4425 = vmatpush1.bf16.msra.mxu0 %v10489_v5  ;;  %4456 = vmatprep.mubr.bf16.mxu0 %v13408_v27  ;;  %v4089_v7 = vmul.f32 %v10543_v25, %v4077_v30  ;;  %v5859_v52 = vsel %vm5816_vm1, %v5794_v21, 0.0  ;;  %v5796_v9 = vmul.f32 %v13406_v49, %v5754_v57  ;;  %v5799_v62 = vmul.f32 %v13406_v49, %v5757_v33  ;;  %v5772_v21 = vld [vmem:[%s13125_s12 + $0x110] sm:$0xff] }
 0x4a3   : > { %5851 = vadd.xlane.f32.xlu1 %v5850_v12  ;;  %5848 = vadd.xlane.f32.xlu0 %v5847_v61  ;;  %v10631_v11 = vpop.eup %8455  ;;  %8463 = vpow2.f32 %v4136_v26  ;;  %v5798_v17 = vmul.f32 %v13406_v49, %v5756_v34  ;;  %v5868_v12 = vsel %vm5816_vm1, %v5797_v13, 0.0  ;;  %v5768_v61 = vld [vmem:[%s13125_s12 + $0xf0] sm:$0xff]  ;;  %v5811_v1 = vmul.f32 %v13406_v49, %v5769_v50 }
 0x4a4   : > { %v3995_v55 = vmul.f32 1.0614054, %v10631_v11  ;;  %8465 = vpow2.f32 %v4138_v51  ;;  %v5865_v43 = vsel %vm5816_vm1, %v5796_v9, 0.0  ;;  %v5874_v60 = vsel %vm5816_vm1, %v5799_v62, 0.0 }
 0x4a5   : > { %v10639_v24 = vpop.eup %8457  ;;  %v5801_v47 = vmul.f32 %v13406_v49, %v5759_v37  ;;  %v5810_v57 = vmul.f32 %v13406_v49, %v5768_v61  ;;  %v5813_v26 = vmul.f32 %v13406_v49, %v5771_v20  ;;  %v5812_v51 = vmul.f32 %v13406_v49, %v5770_v58 }
 0x4a6   : > { %v3996_v46 = vmul.f32 1.0614054, %v10639_v24  ;;  %v4007_v48 = vadd.f32 -1.4531521, %v3995_v55  ;;  %v8460_v28 = vpop.eup %8459  ;;  %v10701_v55 = vsel %vm5816_vm1, %v5811_v1, 0.0  ;;  %vm4172_vm11 = vcmp.lt.f32.partialorder %v10442_v35, 0.0 }
 0x4a7   : > { %5857 = vadd.xlane.f32.xlu1 %v5856_v44  ;;  %5854 = vadd.xlane.f32.xlu0 %v5853_v36  ;;  %v8462_v25 = vpop.eup %8461  ;;  %v10659_v2 = vmul.f32 %v8460_v28, %v4088_v19  ;;  %v5800_v44 = vmul.f32 %v13406_v49, %v5758_v8  ;;  %v5773_v36 = vld [vmem:[%s13125_s12 + $0x118] sm:$0xff]  ;;  %v5871_v19 = vsel %vm5816_vm1, %v5798_v17, 0.0  ;;  %v10714_v13 = vsel %vm5816_vm1, %v5810_v57, 0.0 }
 0x4a8   : > { %v4008_v18 = vadd.f32 -1.4531521, %v3996_v46  ;;  %v4019_v63 = vmul.f32 %v10631_v11, %v4007_v48  ;;  %v10673_v16 = vmul.f32 %v8462_v25, %v4089_v7  ;;  %v5761_v48 = vld [vmem:[%s13125_s12 + $0xb8] sm:$0xff]  ;;  %v5815_v34 = vmul.f32 %v13406_v49, %v5773_v36 }
 0x4a9   : > { %v4160_v6 = vsub.f32 1.0, %v10659_v2  ;;  %v5814_v28 = vmul.f32 %v13406_v49, %v5772_v21  ;;  %v10723_v9 = vsel %vm5816_vm1, %v5812_v51, 0.0  ;;  %vm4173_vm12 = vcmp.lt.f32.partialorder %v10451_v29, 0.0  ;;  %v5765_v35 = vld [vmem:[%s13125_s12 + $0xd8] sm:$0xff] }
 0x4aa   : > { %v4020_v45 = vmul.f32 %v10639_v24, %v4008_v18  ;;  %v4031_v54 = vadd.f32 1.4214138, %v4019_v63  ;;  %v4161_v33 = vsub.f32 1.0, %v10673_v16  ;;  %v10727_v25 = vsel %vm5816_vm1, %v5815_v34, 0.0 }
 0x4ab   : > { %5863 = vadd.xlane.f32.xlu1 %v5862_v56  ;;  %5860 = vadd.xlane.f32.xlu0 %v5859_v52  ;;  %v5760_v56 = vld [vmem:[%s13125_s12 + $0xb0] sm:$0xff]  ;;  %v10720_v52 = vsel %vm5816_vm1, %v5813_v26, 0.0  ;;  %v10730_v2 = vsel %vm5816_vm1, %v5814_v28, 0.0  ;;  %v4184_v63 = vsub.f32 0.0, %v4160_v6  ;;  %vm4175_vm13 = vcmp.lt.f32.partialorder %v10549_v59, 0.0 }
 0x4ac   : > { %v4032_v32 = vadd.f32 1.4214138, %v4020_v45  ;;  %v4043_v30 = vmul.f32 %v10631_v11, %v4031_v54  ;;  %v5803_v45 = vmul.f32 %v13406_v49, %v5761_v48  ;;  %v5802_v17 = vmul.f32 %v13406_v49, %v5760_v56 }
 0x4ad   : > { %v8464_v37 = vpop.eup %8463  ;;  %v4185_v8 = vsub.f32 0.0, %v4161_v33  ;;  %v5880_v54 = vsel %vm5816_vm1, %v5801_v47, 0.0  ;;  %v4196_v20 = vsel %vm4172_vm11, %v4184_v63, %v4160_v6  ;;  %v3908_v6 = vmul.f32 0.5, %v10418_v0 }
 0x4ae   : > { %v4044_v22 = vmul.f32 %v10639_v24, %v4032_v32  ;;  %v4055_v46 = vadd.f32 -0.28449672, %v4043_v30  ;;  %v8466_v61 = vpop.eup %8465  ;;  %v5883_v30 = vsel %vm5816_vm1, %v5802_v17, 0.0  ;;  %v3909_v56 = vmul.f32 0.5, %v10424_v39 }
 0x4af   : > { %5869 = vadd.xlane.f32.xlu1 %v5868_v12  ;;  %5866 = vadd.xlane.f32.xlu0 %v5865_v43  ;;  %v5877_v12 = vsel %vm5816_vm1, %v5800_v44, 0.0  ;;  %v5763_v43 = vld [vmem:[%s13125_s12 + $0xc8] sm:$0xff]  ;;  %v4197_v47 = vsel %vm4173_vm12, %v4185_v8, %v4161_v33  ;;  %vm4176_vm14 = vcmp.lt.f32.partialorder %v10552_v14, 0.0  ;;  %v3911_v59 = vmul.f32 0.5, %v10530_v15  ;;  %v5766_v15 = vld [vmem:[%s13125_s12 + $0xe0] sm:$0xff] }
 0x4b0   : > { %v4056_v7 = vadd.f32 -0.28449672, %v4044_v22  ;;  %v4067_v18 = vmul.f32 %v10631_v11, %v4055_v46  ;;  %v5805_v36 = vmul.f32 %v13406_v49, %v5763_v43  ;;  %v4208_v22 = vadd.f32 1.0, %v4196_v20  ;;  %v13409_v20 = vld [vmem:[#allocation10_spill] sm:$0xff] }
 0x4b1   : > { %v4209_v57 = vadd.f32 1.0, %v4197_v47  ;;  %v5807_v46 = vmul.f32 %v13406_v49, %v5765_v35  ;;  %v3912_v63 = vmul.f32 0.5, %v10533_v53  ;;  %v8364_v47 = vld [vmem:[%s13122_s9 + $0x58] sm:$0xff]   ;;  %v8369_v35 = vld [vmem:[%s13122_s9 + $0x80] sm:$0xff]  }
 0x4b2   : > { %v4068_v62 = vmul.f32 %v10639_v24, %v4056_v7  ;;  %v4079_v50 = vadd.f32 0.2548296, %v4067_v18  ;;  %v5892_v51 = vsel %vm5816_vm1, %v5805_v36, 0.0  ;;  %v4220_v34 = vmul.f32 %v4208_v22, %v3908_v6  ;;  %v8366_v36 = vld [vmem:[%s13122_s9 + $0x68] sm:$0xff]  }
 0x4b3   : > { %5875 = vadd.xlane.f32.xlu1 %v5874_v60  ;;  %5872 = vadd.xlane.f32.xlu0 %v5871_v19  ;;  %v5762_v60 = vld [vmem:[%s13125_s12 + $0xc0] sm:$0xff]  ;;  %v5898_v39 = vsel %vm5816_vm1, %v5807_v46, 0.0 }
 0x4b4   : > { %v4080_v16 = vadd.f32 0.2548296, %v4068_v62  ;;  %v4091_v32 = vmul.f32 %v10631_v11, %v4079_v50  ;;  %v5886_v11 = vsel %vm5816_vm1, %v5803_v45, 0.0  ;;  %v5804_v21 = vmul.f32 %v13406_v49, %v5762_v60  ;;  %v5767_v45 = vld [vmem:[%s13125_s12 + $0xe8] sm:$0xff] }
 0x4b5   : > { %v4221_v62 = vmul.f32 %v4209_v57, %v3909_v56  ;;  %v4232_v8 = vmul.f32 %v4220_v34, %v13404_v4 }
 0x4b6   : > { %v4092_v1 = vmul.f32 %v10639_v24, %v4080_v16  ;;  %v4151_v58 = vmul.f32 %v8464_v37, %v4091_v32  ;;  %v5764_v24 = vld [vmem:[%s13125_s12 + $0xd0] sm:$0xff]  ;;  %v5889_v7 = vsel %vm5816_vm1, %v5804_v21, 0.0  ;;  %v5809_v16 = vmul.f32 %v13406_v49, %v5767_v45 }
 0x4b7   : > { %5881 = vadd.xlane.f32.xlu1 %v5880_v54  ;;  %5878 = vadd.xlane.f32.xlu0 %v5877_v12  ;;  %v5806_v48 = vmul.f32 %v13406_v49, %v5764_v24  ;;  %v4233_v54 = vmul.f32 %v4221_v62, %v13405_v31  ;;  %v8367_v21 = vld [vmem:[%s13122_s9 + $0x70] sm:$0xff]  }
 0x4b8   : > { %v4152_v44 = vmul.f32 %v8466_v61, %v4092_v1  ;;  %v4163_v29 = vsub.f32 1.0, %v4151_v58  ;;  %v5808_v61 = vmul.f32 %v13406_v49, %v5766_v15  ;;  %v5904_v60 = vsel %vm5816_vm1, %v5809_v16, 0.0  ;;  %v8355_v49 = vld [vmem:[%s13122_s9 + $0x10] sm:$0xff]   ;;  %v13410_v58 = vld [vmem:[#allocation11_spill] sm:$0xff] }
 0x4b9   : > { %v5895_v14 = vsel %vm5816_vm1, %v5806_v48, 0.0 }
 0x4ba   : > { %v4164_v19 = vsub.f32 1.0, %v4152_v44  ;;  %v4187_v33 = vsub.f32 0.0, %v4163_v29  ;;  %v5901_v1 = vsel %vm5816_vm1, %v5808_v61, 0.0  ;;  %v8365_v44 = vld [vmem:[%s13122_s9 + $0x60] sm:$0xff]  }
 0x4bb   : > { %5887 = vadd.xlane.f32.xlu1 %v5886_v11  ;;  %5884 = vadd.xlane.f32.xlu0 %v5883_v30  ;;  %v8521_v11 = vld [vmem:[%s13122_s9] sm:$0xff]   ;;  %v8363_v30 = vld [vmem:[%s13122_s9 + $0x50] sm:$0xff]  }
 0x4bc   : > { %v4188_v26 = vsub.f32 0.0, %v4164_v19  ;;  %v4199_v0 = vsel %vm4175_vm13, %v4187_v33, %v4163_v29 }
 0x4bd   : > { %v4211_v18 = vadd.f32 1.0, %v4199_v0 }
 0x4be   : > { %v4200_v28 = vsel %vm4176_vm14, %v4188_v26, %v4164_v19 }
 0x4bf   : > { %v4212_v50 = vadd.f32 1.0, %v4200_v28  ;;  %5893 = vadd.xlane.f32.xlu1 %v5892_v51  ;;  %5890 = vadd.xlane.f32.xlu0 %v5889_v7  ;;  %v4223_v17 = vmul.f32 %v4211_v18, %v3911_v59 }
 0x4c1   : > { %v4224_v37 = vmul.f32 %v4212_v50, %v3912_v63  ;;  %v4235_v53 = vmul.f32 %v4223_v17, %v13404_v4 }
 0x4c3   : > { %v4236_v12 = vmul.f32 %v4224_v37, %v13405_v31  ;;  %5899 = vadd.xlane.f32.xlu1 %v5898_v39  ;;  %5896 = vadd.xlane.f32.xlu0 %v5895_v14  ;;  %v10780_v32 = vpack.c.bf16 %v4235_v53, %v4232_v8 }
 0x4c5   : > { %v10782_v43 = vpack.c.bf16 %v4236_v12, %v4233_v54 }
 0x4c7   : > { %4267 = vmatprep.subr.bf16.mxu1 %v10782_v43  ;;  %4426 = vmatprep.subr.bf16.mxu0 %v10782_v43 }
 0x4c8   : > { %4268 = vmatpush1.bf16.msra.mxu1 %v10780_v32  ;;  %4427 = vmatpush1.bf16.msra.mxu0 %v10780_v32 }
 0x4c9   : > { %4269 = vmatprep.subr.bf16.mxu1 %v13409_v20  ;;  %4428 = vmatprep.subr.bf16.mxu0 %v13409_v20 }
 0x4ca   : > { %5905 = vadd.xlane.f32.xlu1 %v5904_v60  ;;  %5902 = vadd.xlane.f32.xlu0 %v5901_v1 }
 0x4cc   : > { %4270 = vmatpush1.bf16.msra.mxu1 %v13410_v58  ;;  %4429 = vmatpush1.bf16.msra.mxu0 %v13410_v58 }
 0x4cd   : > { %8017 = vmatprep.subr.bf16.mxu1 %v10453_v40  ;;  %8027 = vmatprep.subr.bf16.mxu0 %v10453_v40 }
 0x4ce   : > { %5911 = vadd.xlane.f32.xlu1 %v10701_v55  ;;  %5908 = vadd.xlane.f32.xlu0 %v10714_v13  ;;  %v8356_v55 = vld [vmem:[%s13122_s9 + $0x18] sm:$0xff]   ;;  %v8357_v13 = vld [vmem:[%s13122_s9 + $0x20] sm:$0xff]  }
 0x4cf   : > { %7686 = vmatmul.mubr.msk.bf16.vlgmr.msra.gmra.mrb[76].mxu1 %vm4258_vm0, %v8521_v11  ;;  %7696 = vmatmul.mubr.msk.bf16.vlgmr.msra.gmra.mrb[48].mxu0 %vm4258_vm0, %v8355_v49 }
 0x4d0   : > { %8018 = vmatpush3.bf16.msra.mxu1 %v10453_v40  ;;  %4307 = vmatprep.mubr.bf16.mxu1 %v13408_v27 }
 0x4d1   : > { %8019 = vmatprep.subr.bf16.mxu1 %v10574_v3  ;;  %8028 = vmatpush3.bf16.msra.mxu0 %v10453_v40 }
 0x4d2   : > { %8029 = vmatprep.subr.bf16.mxu0 %v10574_v3  ;;  %4466 = vmatprep.mubr.bf16.mxu0 %v13408_v27 }
 0x4d3   : > { %5917 = vadd.xlane.f32.xlu1 %v10720_v52  ;;  %5914 = vadd.xlane.f32.xlu0 %v10723_v9  ;;  %v8358_v52 = vld [vmem:[%s13122_s9 + $0x28] sm:$0xff]   ;;  %v8360_v9 = vld [vmem:[%s13122_s9 + $0x38] sm:$0xff]  }
 0x4d4   : > { %8020 = vmatpush3.bf16.msra.mxu1 %v10574_v3 }
 0x4d5   : > { %8021 = vmatprep.subr.bf16.mxu1 %v13407_v42  ;;  %8030 = vmatpush3.bf16.msra.mxu0 %v10574_v3 }
 0x4d6   : > { %8031 = vmatprep.subr.bf16.mxu0 %v13407_v42 }
 0x4d7   : > { %7687 = vmatmul.mubr.msk.bf16.gmra.mrb[80].mxu1 %vm4258_vm0, %v10601_v41  ;;  %7697 = vmatmul.mubr.msk.bf16.gmra.mrb[52].mxu0 %vm4258_vm0, %v8356_v55  ;;  %v8359_v41 = vld [vmem:[%s13122_s9 + $0x30] sm:$0xff]  }
 0x4d8   : > { %8022 = vmatpush3.bf16.msra.mxu1 %v13407_v42  ;;  %8023 = vmatprep.mubr.msk.bf16.mxu1 %vm4258_vm0, %v8355_v49 }
 0x4d9   : > { %4595 = vmatprep.subr.bf16.mxu1 %v10504_v10  ;;  %8032 = vmatpush3.bf16.msra.mxu0 %v13407_v42 }
 0x4da   : > { %4766 = vmatprep.subr.bf16.mxu0 %v10504_v10  ;;  %8033 = vmatprep.mubr.msk.bf16.mxu0 %vm4258_vm0, %v8357_v13 }
 0x4db   : > { %5923 = vadd.xlane.f32.xlu1 %v10727_v25  ;;  %5920 = vadd.xlane.f32.xlu0 %v10730_v2  ;;  %v8361_v25 = vld [vmem:[%s13122_s9 + $0x40] sm:$0xff]   ;;  %v8362_v2 = vld [vmem:[%s13122_s9 + $0x48] sm:$0xff]  }
 0x4df   : > { %8024 = vmatmul.mubr.msk.bf16.vlgmr.msra.gmra.mrb[84].mxu1 %vm4258_vm0, %v8356_v55  ;;  %8034 = vmatmul.mubr.msk.bf16.vlgmr.msra.gmra.mrb[56].mxu0 %vm4258_vm0, %v8358_v52 }
 0x4e0   : > { %4596 = vmatpush1.bf16.msra.mxu1 %v10489_v5  ;;  %4767 = vmatpush1.bf16.msra.mxu0 %v10489_v5 }
 0x4e1   : > { %4597 = vmatprep.subr.bf16.mxu1 %v10782_v43  ;;  %4768 = vmatprep.subr.bf16.mxu0 %v10782_v43 }
 0x4e2   : > { %4627 = vmatprep.mubr.bf16.mxu1 %v13408_v27  ;;  %4798 = vmatprep.mubr.bf16.mxu0 %v13408_v27 }
 0x4e4   : > { %4598 = vmatpush1.bf16.msra.mxu1 %v10780_v32  ;;  %4769 = vmatpush1.bf16.msra.mxu0 %v10780_v32 }
 0x4e5   : > { %4599 = vmatprep.subr.bf16.mxu1 %v13409_v20  ;;  %4770 = vmatprep.subr.bf16.mxu0 %v13409_v20 }
 0x4e8   : > { %4600 = vmatpush1.bf16.msra.mxu1 %v13410_v58  ;;  %4771 = vmatpush1.bf16.msra.mxu0 %v13410_v58 }
 0x4e9   : > { %8037 = vmatprep.subr.bf16.mxu1 %v10453_v40  ;;  %8047 = vmatprep.subr.bf16.mxu0 %v10453_v40 }
 0x4eb   : > { %7706 = vmatmul.mubr.msk.bf16.vlgmr.msra.gmra.mrb[88].mxu1 %vm4258_vm0, %v8357_v13  ;;  %7716 = vmatmul.mubr.msk.bf16.vlgmr.msra.gmra.mrb[60].mxu0 %vm4258_vm0, %v8359_v41 }
 0x4ec   : > { %8038 = vmatpush3.bf16.msra.mxu1 %v10453_v40  ;;  %4637 = vmatprep.mubr.bf16.mxu1 %v13408_v27 }
 0x4ed   : > { %8039 = vmatprep.subr.bf16.mxu1 %v10574_v3  ;;  %8048 = vmatpush3.bf16.msra.mxu0 %v10453_v40 }
 0x4ee   : > { %8049 = vmatprep.subr.bf16.mxu0 %v10574_v3  ;;  %4808 = vmatprep.mubr.bf16.mxu0 %v13408_v27 }
 0x4ef   : > { %5927 = vrot.lane.b32.xlu1 %v13405_v31, %s8531_s29 }
 0x4f0   : > { %8040 = vmatpush3.bf16.msra.mxu1 %v10574_v3 }
 0x4f1   : > { %8041 = vmatprep.subr.bf16.mxu1 %v13407_v42  ;;  %8050 = vmatpush3.bf16.msra.mxu0 %v10574_v3 }
 0x4f2   : > { %8051 = vmatprep.subr.bf16.mxu0 %v13407_v42  ;;  %5925 = vrot.lane.b32.xlu0 %v13404_v4, %s8531_s29 }
 0x4f3   : > { %7707 = vmatmul.mubr.msk.bf16.gmra.mrb[92].mxu1 %vm4258_vm0, %v8358_v52  ;;  %7717 = vmatmul.mubr.msk.bf16.gmra.mrb[64].mxu0 %vm4258_vm0, %v8360_v9 }
 0x4f4   : > { %8042 = vmatpush3.bf16.msra.mxu1 %v13407_v42  ;;  %8043 = vmatprep.mubr.msk.bf16.mxu1 %vm4258_vm0, %v8359_v41 }
 0x4f5   : > { %4937 = vmatprep.subr.bf16.mxu1 %v10504_v10  ;;  %8052 = vmatpush3.bf16.msra.mxu0 %v13407_v42 }
 0x4f6   : > { %5072 = vmatprep.subr.bf16.mxu0 %v10504_v10  ;;  %8053 = vmatprep.mubr.msk.bf16.mxu0 %vm4258_vm0, %v8361_v25 }
 0x4f7   : > { %5929 = vrot.lane.b32.xlu1 %v13403_v38, %s8531_s29  ;;  %5970 = vrot.lane.b32.xlu0 %v13404_v4, %s8530_s28 }
 0x4fb   : > { %8044 = vmatmul.mubr.msk.bf16.vlgmr.msra.gmra.mrb[96].mxu1 %vm4258_vm0, %v8360_v9  ;;  %8054 = vmatmul.mubr.msk.bf16.vlgmr.msra.gmra.mrb[68].mxu0 %vm4258_vm0, %v8362_v2 }
 0x4fc   : > { %4938 = vmatpush1.bf16.msra.mxu1 %v10489_v5  ;;  %5073 = vmatpush1.bf16.msra.mxu0 %v10489_v5 }
 0x4fd   : > { %4939 = vmatprep.subr.bf16.mxu1 %v10782_v43  ;;  %5074 = vmatprep.subr.bf16.mxu0 %v10782_v43 }
 0x4fe   : > { %4969 = vmatprep.mubr.bf16.mxu1 %v13408_v27  ;;  %5104 = vmatprep.mubr.bf16.mxu0 %v13408_v27 }
 0x4ff   : > { %5974 = vrot.lane.b32.xlu0 %v13403_v38, %s8530_s28  ;;  %5972 = vrot.lane.b32.xlu1 %v13405_v31, %s8530_s28 }
 0x500   : > { %4940 = vmatpush1.bf16.msra.mxu1 %v10780_v32  ;;  %5075 = vmatpush1.bf16.msra.mxu0 %v10780_v32 }
 0x501   : > { %4941 = vmatprep.subr.bf16.mxu1 %v13409_v20  ;;  %5076 = vmatprep.subr.bf16.mxu0 %v13409_v20 }
 0x503   : > { %6015 = vrot.lane.b32.xlu1 %v13404_v4, %s13301_s27  ;;  %6017 = vrot.lane.b32.xlu0 %v13405_v31, %s13301_s27 }
 0x504   : > { %4942 = vmatpush1.bf16.msra.mxu1 %v13410_v58  ;;  %5077 = vmatpush1.bf16.msra.mxu0 %v13410_v58 }
 0x505   : > { %8057 = vmatprep.subr.bf16.mxu1 %v10453_v40  ;;  %8067 = vmatprep.subr.bf16.mxu0 %v10453_v40 }
 0x507   : > { %7726 = vmatmul.mubr.msk.bf16.vlgmr.msra.gmra.mrb[100].mxu1 %vm4258_vm0, %v8361_v25  ;;  %7736 = vmatmul.mubr.msk.bf16.vlgmr.msra.gmra.mrb[72].mxu0 %vm4258_vm0, %v8363_v30 }
 0x508   : > { %8058 = vmatpush3.bf16.msra.mxu1 %v10453_v40  ;;  %4979 = vmatprep.mubr.bf16.mxu1 %v13408_v27 }
 0x509   : > { %8059 = vmatprep.subr.bf16.mxu1 %v10574_v3  ;;  %8068 = vmatpush3.bf16.msra.mxu0 %v10453_v40 }
 0x50a   : > { %8069 = vmatprep.subr.bf16.mxu0 %v10574_v3  ;;  %5114 = vmatprep.mubr.bf16.mxu0 %v13408_v27 }
 0x50b   : > { %6019 = vrot.lane.b32.xlu1 %v13403_v38, %s13301_s27  ;;  %6060 = vrot.lane.b32.xlu0 %v13404_v4, %s13411_s30 }
 0x50c   : > { %8060 = vmatpush3.bf16.msra.mxu1 %v10574_v3 }
 0x50d   : > { %8061 = vmatprep.subr.bf16.mxu1 %v13407_v42  ;;  %8070 = vmatpush3.bf16.msra.mxu0 %v10574_v3 }
 0x50e   : > { %8071 = vmatprep.subr.bf16.mxu0 %v13407_v42 }
 0x50f   : > { %7727 = vmatmul.mubr.msk.bf16.gmra.mrb[104].mxu1 %vm4258_vm0, %v8362_v2  ;;  %7737 = vmatmul.mubr.msk.bf16.gmra.mrb[76].mxu0 %vm4258_vm0, %v8364_v47 }
 0x510   : > { %8062 = vmatpush3.bf16.msra.mxu1 %v13407_v42  ;;  %8063 = vmatprep.mubr.msk.bf16.mxu1 %vm4258_vm0, %v8363_v30 }
 0x511   : > { %5243 = vmatprep.subr.bf16.mxu1 %v10504_v10  ;;  %8072 = vmatpush3.bf16.msra.mxu0 %v13407_v42 }
 0x512   : > { %5414 = vmatprep.subr.bf16.mxu0 %v10504_v10  ;;  %8073 = vmatprep.mubr.msk.bf16.mxu0 %vm4258_vm0, %v8365_v44 }
 0x513   : > { %6064 = vrot.lane.b32.xlu0 %v13403_v38, %s13411_s30  ;;  %6062 = vrot.lane.b32.xlu1 %v13405_v31, %s13411_s30 }
 0x517   : > { %8064 = vmatmul.mubr.msk.bf16.vlgmr.msra.gmra.mrb[108].mxu1 %vm4258_vm0, %v8364_v47  ;;  %8074 = vmatmul.mubr.msk.bf16.vlgmr.msra.gmra.mrb[80].mxu0 %vm4258_vm0, %v8366_v36 }
 0x518   : > { %5244 = vmatpush1.bf16.msra.mxu1 %v10489_v5  ;;  %5415 = vmatpush1.bf16.msra.mxu0 %v10489_v5 }
 0x519   : > { %5245 = vmatprep.subr.bf16.mxu1 %v10782_v43  ;;  %5416 = vmatprep.subr.bf16.mxu0 %v10782_v43 }
 0x51a   : > { %5275 = vmatprep.mubr.bf16.mxu1 %v13408_v27  ;;  %5446 = vmatprep.mubr.bf16.mxu0 %v13408_v27 }
 0x51b   : > { %6129 = vrot.lane.b32.xlu1 %v13404_v4, %s13412_s24  ;;  %6131 = vrot.lane.b32.xlu0 %v13405_v31, %s13412_s24 }
 0x51c   : > { %5246 = vmatpush1.bf16.msra.mxu1 %v10780_v32  ;;  %5417 = vmatpush1.bf16.msra.mxu0 %v10780_v32 }
 0x51d   : > { %5247 = vmatprep.subr.bf16.mxu1 %v13409_v20  ;;  %5418 = vmatprep.subr.bf16.mxu0 %v13409_v20 }
 0x51f   : > { %6133 = vrot.lane.b32.xlu1 %v13403_v38, %s13412_s24  ;;  %6174 = vrot.lane.b32.xlu0 %v13404_v4, %s13413_s21 }
 0x520   : > { %5248 = vmatpush1.bf16.msra.mxu1 %v13410_v58  ;;  %5419 = vmatpush1.bf16.msra.mxu0 %v13410_v58 }
 0x521   : > { %8077 = vmatprep.subr.bf16.mxu1 %v10453_v40  ;;  %8087 = vmatprep.subr.bf16.mxu0 %v10453_v40 }
 0x523   : > { %7746 = vmatmul.mubr.msk.bf16.vlgmr.msra.gmra.mrb[112].mxu1 %vm4258_vm0, %v8365_v44  ;;  %7756 = vmatmul.mubr.msk.bf16.vlgmr.msra.gmra.mrb[84].mxu0 %vm4258_vm0, %v8367_v21 }
 0x524   : > { %8078 = vmatpush3.bf16.msra.mxu1 %v10453_v40  ;;  %5285 = vmatprep.mubr.bf16.mxu1 %v13408_v27 }
 0x525   : > { %8079 = vmatprep.subr.bf16.mxu1 %v10574_v3  ;;  %8088 = vmatpush3.bf16.msra.mxu0 %v10453_v40  ;;  %v8368_v40 = vld [vmem:[%s13122_s9 + $0x78] sm:$0xff]  }
 0x526   : > { %8089 = vmatprep.subr.bf16.mxu0 %v10574_v3  ;;  %5456 = vmatprep.mubr.bf16.mxu0 %v13408_v27 }
 0x527   : > { %6178 = vrot.lane.b32.xlu0 %v13403_v38, %s13413_s21  ;;  %6176 = vrot.lane.b32.xlu1 %v13405_v31, %s13413_s21 }
 0x528   : > { %8080 = vmatpush3.bf16.msra.mxu1 %v10574_v3 }
 0x529   : > { %8081 = vmatprep.subr.bf16.mxu1 %v13407_v42  ;;  %8090 = vmatpush3.bf16.msra.mxu0 %v10574_v3  ;;  %v8370_v3 = vld [vmem:[%s13122_s9 + $0x88] sm:$0xff]  }
 0x52a   : > { %8091 = vmatprep.subr.bf16.mxu0 %v13407_v42 }
 0x52b   : > { %7747 = vmatmul.mubr.msk.bf16.gmra.mrb[116].mxu1 %vm4258_vm0, %v8366_v36  ;;  %7757 = vmatmul.mubr.msk.bf16.gmra.mrb[88].mxu0 %vm4258_vm0, %v8368_v40 }
 0x52c   : > { %8082 = vmatpush3.bf16.msra.mxu1 %v13407_v42  ;;  %8083 = vmatprep.mubr.msk.bf16.mxu1 %vm4258_vm0, %v8367_v21 }
 0x52d   : > { %5585 = vmatprep.subr.bf16.mxu1 %v10504_v10  ;;  %8092 = vmatpush3.bf16.msra.mxu0 %v13407_v42  ;;  %v11028_v10 = vpop.xlane.xlu1 %5818  ;;  %v11030_v42 = vpop.xlane.xlu0 %5821 }
 0x52e   : > { %8093 = vmatprep.mubr.msk.bf16.mxu0 %vm4258_vm0, %v8369_v35  ;;  %13414 = vst [vmem:[#allocation47_spill] sm:$0xff] %v11028_v10  ;;  %13415 = vst [vmem:[#allocation46_spill] sm:$0xff] %v11030_v42 }
 0x531   : > { %v11034_v29 = vpop.xlane.xlu0 %5824 }
 0x532   : > { %13417 = vst [vmem:[#allocation54_spill] sm:$0xff] %v11034_v29 }
 0x533   : > { %8084 = vmatmul.mubr.msk.bf16.vlgmr.msra.gmra.mrb[120].mxu1 %vm4258_vm0, %v8368_v40  ;;  %8094 = vmatmul.mubr.msk.bf16.vlgmr.msra.gmra.mrb[92].mxu0 %vm4258_vm0, %v8370_v3 }
 0x534   : > { %5586 = vmatpush1.bf16.msra.mxu1 %v10489_v5  ;;  %5617 = vmatprep.mubr.bf16.mxu1 %v13408_v27  ;;  %v11032_v5 = vpop.xlane.xlu1 %5827 }
 0x535   : > { %5587 = vmatprep.subr.bf16.mxu1 %v10782_v43  ;;  %13416 = vst [vmem:[#allocation17_spill] sm:$0xff] %v11032_v5  ;;  %v11038_v6 = vpop.xlane.xlu0 %5830 }
 0x536   : > { %13419 = vst [vmem:[#allocation37_spill] sm:$0xff] %v11038_v6 }
 0x538   : > { %5588 = vmatpush1.bf16.msra.mxu1 %v10780_v32  ;;  %v11036_v24 = vpop.xlane.xlu1 %5833 }
 0x539   : > { %5589 = vmatprep.subr.bf16.mxu1 %v13409_v20  ;;  %13418 = vst [vmem:[#allocation36_spill] sm:$0xff] %v11036_v24  ;;  %v11042_v19 = vpop.xlane.xlu0 %5836 }
 0x53a   : > { %13421 = vst [vmem:[#allocation59_spill] sm:$0xff] %v11042_v19 }
 0x53c   : > { %5590 = vmatpush1.bf16.msra.mxu1 %v13410_v58  ;;  %v11040_v22 = vpop.xlane.xlu1 %5839 }
 0x53d   : > { %13420 = vst [vmem:[#allocation32_spill] sm:$0xff] %v11040_v22  ;;  %v11047_v26 = vpop.xlane.xlu0 %5842 }
 0x53e   : > { %13423 = vst [vmem:[#allocation33_spill] sm:$0xff] %v11047_v26 }
 0x53f   : > { %7766 = vmatmul.mubr.msk.bf16.vlgmr.msra.gmra.mrb[124].mxu1 %vm4258_vm0, %v8369_v35 }
 0x540   : > { %5627 = vmatprep.mubr.bf16.mxu1 %v13408_v27  ;;  %v11045_v33 = vpop.xlane.xlu1 %5845 }
 0x541   : > { %13422 = vst [vmem:[#allocation34_spill] sm:$0xff] %v11045_v33  ;;  %v11052_v48 = vpop.xlane.xlu0 %5848 }
 0x542   : > { %13425 = vst [vmem:[#allocation35_spill] sm:$0xff] %v11052_v48 }
 0x544   : > { %v11050_v7 = vpop.xlane.xlu1 %5851 }
 0x545   : > { %13424 = vst [vmem:[#allocation61_spill] sm:$0xff] %v11050_v7  ;;  %v11056_v0 = vpop.xlane.xlu0 %5854 }
 0x546   : > { %13427 = vst [vmem:[#allocation49_spill] sm:$0xff] %v11056_v0 }
 0x547   : > { %7767 = vmatmul.mubr.msk.bf16.gmra.mrb[128].mxu1 %vm4258_vm0, %v8370_v3 }
 0x548   : > { %v11054_v56 = vpop.xlane.xlu1 %5857 }
 0x549   : > { %13426 = vst [vmem:[#allocation20_spill] sm:$0xff] %v11054_v56  ;;  %v11060_v59 = vpop.xlane.xlu0 %5860 }
 0x54a   : > { %13429 = vst [vmem:[#allocation22_spill] sm:$0xff] %v11060_v59 }
 0x54c   : > { %v11058_v34 = vpop.xlane.xlu1 %5863 }
 0x54d   : > { %13428 = vst [vmem:[#allocation48_spill] sm:$0xff] %v11058_v34  ;;  %v11064_v18 = vpop.xlane.xlu0 %5866 }
 0x54e   : > { %13431 = vst [vmem:[#allocation50_spill] sm:$0xff] %v11064_v18 }
 0x550   : > { %v11062_v28 = vpop.xlane.xlu1 %5869 }
 0x551   : > { %13430 = vst [vmem:[#allocation52_spill] sm:$0xff] %v11062_v28  ;;  %v11068_v63 = vpop.xlane.xlu0 %5872 }
 0x552   : > { %13433 = vst [vmem:[#allocation19_spill] sm:$0xff] %v11068_v63 }
 0x554   : > { %v11066_v62 = vpop.xlane.xlu1 %5875 }
 0x555   : > { %13432 = vst [vmem:[#allocation21_spill] sm:$0xff] %v11066_v62  ;;  %v11072_v45 = vpop.xlane.xlu0 %5878 }
 0x556   : > { %13435 = vst [vmem:[#allocation51_spill] sm:$0xff] %v11072_v45 }
 0x558   : > { %v11070_v50 = vpop.xlane.xlu1 %5881 }
 0x559   : > { %13434 = vst [vmem:[#allocation53_spill] sm:$0xff] %v11070_v50  ;;  %v11076_v39 = vpop.xlane.xlu0 %5884 }
 0x55a   : > { %13437 = vst [vmem:[#allocation23_spill] sm:$0xff] %v11076_v39 }
 0x55c   : > { %v11074_v17 = vpop.xlane.xlu1 %5887 }
 0x55d   : > { %13436 = vst [vmem:[#allocation62_spill] sm:$0xff] %v11074_v17  ;;  %v11083_v32 = vpop.xlane.xlu0 %5890 }
 0x55e   : > { %13439 = vst [vmem:[#allocation12_spill] sm:$0xff] %v11083_v32 }
 0x560   : > { %v11081_v61 = vpop.xlane.xlu1 %5893 }
 0x561   : > { %13438 = vst [vmem:[#allocation16_spill] sm:$0xff] %v11081_v61  ;;  %v11091_v52 = vpop.xlane.xlu0 %5896 }
 0x562   : > { %13441 = vst [vmem:[#allocation18_spill] sm:$0xff] %v11091_v52 }
 0x564   : > { %v11089_v13 = vpop.xlane.xlu1 %5899 }
 0x565   : > { %13440 = vst [vmem:[#allocation14_spill] sm:$0xff] %v11089_v13  ;;  %v11098_v40 = vpop.xlane.xlu0 %5902 }
 0x566   : > { %13443 = vst [vmem:[#allocation63_spill] sm:$0xff] %v11098_v40 }
 0x568   : > { %v11096_v21 = vpop.xlane.xlu1 %5905 }
 0x569   : > { %13442 = vst [vmem:[#allocation13_spill] sm:$0xff] %v11096_v21  ;;  %v11105_v3 = vpop.xlane.xlu0 %5908 }
 0x56a   : > { %13445 = vst [vmem:[#allocation41_spill] sm:$0xff] %v11105_v3 }
 0x56c   : > { %v11103_v35 = vpop.xlane.xlu1 %5911 }
 0x56d   : > { %13444 = vst [vmem:[#allocation15_spill] sm:$0xff] %v11103_v35 }
 0x574   : > { %v8015_v57 = vpop.f32.mrb[44].mxu0 }
 0x575   : > { %v4352_v27 = vpop.f32.mrb[45].mxu0  ;;  %4387 = vrot.lane.b32.xlu1 %v8015_v57, %s8531_s29 }
 0x576   : > { %v8016_v46 = vpop.f32.mrb[46].mxu0 }
 0x577   : > { %v4355_v51 = vpop.f32.mrb[47].mxu0  ;;  %4389 = vrot.lane.b32.xlu0 %v8016_v46, %s8531_s29 }
 0x5a2   : > { %v4299_v14 = vpop.f32.mrb[76].mxu1  ;;  %v4458_v15 = vpop.f32.mrb[48].mxu0 }
 0x5a3   : > { %v4301_v37 = vpop.f32.mrb[77].mxu1  ;;  %4367 = vrot.lane.b32.xlu1 %v4299_v14, %s8531_s29  ;;  %v4460_v8 = vpop.f32.mrb[49].mxu0 }
 0x5a4   : > { %v4303_v53 = vpop.f32.mrb[78].mxu1  ;;  %v4462_v16 = vpop.f32.mrb[50].mxu0 }
 0x5a5   : > { %v4305_v54 = vpop.f32.mrb[79].mxu1  ;;  %4369 = vrot.lane.b32.xlu0 %v4303_v53, %s8531_s29  ;;  %v4464_v12 = vpop.f32.mrb[51].mxu0 }
 0x5a6   : > { %v11119_v53 = vpop.xlane.xlu1 %5917 }
 0x5a7   : > { %4383 = vrot.lane.b32.xlu1 %v4352_v27, %s8531_s29  ;;  %13446 = vst [vmem:[#allocation39_spill] sm:$0xff] %v11119_v53 }
 0x5a9   : > { %4385 = vrot.lane.b32.xlu0 %v4355_v51, %s8531_s29 }
 0x5aa   : > { %v4309_v43 = vpop.f32.mrb[80].mxu1  ;;  %v4468_v60 = vpop.f32.mrb[52].mxu0 }
 0x5ab   : > { %4375 = vrot.lane.b32.xlu1 %v4301_v37, %s8531_s29  ;;  %v4311_v1 = vpop.f32.mrb[81].mxu1  ;;  %v4470_v20 = vpop.f32.mrb[53].mxu0 }
 0x5ac   : > { %v4313_v49 = vpop.f32.mrb[82].mxu1  ;;  %v4472_v58 = vpop.f32.mrb[54].mxu0 }
 0x5ad   : > { %4377 = vrot.lane.b32.xlu0 %v4305_v54, %s8531_s29  ;;  %v4315_v11 = vpop.f32.mrb[83].mxu1  ;;  %v4474_v55 = vpop.f32.mrb[55].mxu0 }
 0x5af   : > { %4371 = vrot.lane.b32.xlu1 %v4309_v43, %s8531_s29 }
 0x5b1   : > { %4373 = vrot.lane.b32.xlu0 %v4313_v49, %s8531_s29 }
 0x5b2   : > { %v8025_v41 = vpop.f32.mrb[84].mxu1  ;;  %v8035_v9 = vpop.f32.mrb[56].mxu0 }
 0x5b3   : > { %4379 = vrot.lane.b32.xlu1 %v4311_v1, %s8531_s29  ;;  %v4511_v25 = vpop.f32.mrb[85].mxu1  ;;  %v4682_v2 = vpop.f32.mrb[57].mxu0 }
 0x5b4   : > { %v8026_v30 = vpop.f32.mrb[86].mxu1  ;;  %v8036_v47 = vpop.f32.mrb[58].mxu0 }
 0x5b5   : > { %4381 = vrot.lane.b32.xlu0 %v4315_v11, %s8531_s29  ;;  %v4514_v44 = vpop.f32.mrb[87].mxu1  ;;  %v4685_v36 = vpop.f32.mrb[59].mxu0 }
 0x5b7   : > { %4526 = vrot.lane.b32.xlu1 %v4458_v15, %s8530_s28 }
 0x5b9   : > { %4528 = vrot.lane.b32.xlu0 %v4462_v16, %s8530_s28  ;;  %v11121_v16 = vpop.xlane.xlu0 %5914 }
 0x5ba   : > { %13447 = vst [vmem:[#allocation38_spill] sm:$0xff] %v11121_v16 }
 0x5bb   : > { %4534 = vrot.lane.b32.xlu1 %v4460_v8, %s8530_s28 }
 0x5bd   : > { %4536 = vrot.lane.b32.xlu0 %v4464_v12, %s8530_s28 }
 0x5be   : > { %v4629_v57 = vpop.f32.mrb[88].mxu1  ;;  %v11108_v27 = vpop.f32.mrb[60].mxu0 }
 0x5bf   : > { %4546 = vrot.lane.b32.xlu1 %v8025_v41, %s8530_s28  ;;  %v4631_v46 = vpop.f32.mrb[89].mxu1  ;;  %v11111_v51 = vpop.f32.mrb[61].mxu0 }
 0x5c0   : > { %v4633_v14 = vpop.f32.mrb[90].mxu1  ;;  %v11113_v15 = vpop.f32.mrb[62].mxu0 }
 0x5c1   : > { %4548 = vrot.lane.b32.xlu0 %v8026_v30, %s8530_s28  ;;  %v4635_v37 = vpop.f32.mrb[91].mxu1  ;;  %v11116_v8 = vpop.f32.mrb[63].mxu0 }
 0x5c2   : > { %v11135_v30 = vpop.xlane.xlu1 %5923 }
 0x5c3   : > { %4542 = vrot.lane.b32.xlu1 %v4511_v25, %s8530_s28  ;;  %13448 = vst [vmem:[#allocation66_spill] sm:$0xff] %v11135_v30 }
 0x5c5   : > { %4544 = vrot.lane.b32.xlu0 %v4514_v44, %s8530_s28  ;;  %v11137_v44 = vpop.xlane.xlu0 %5920 }
 0x5c6   : > { %v4639_v54 = vpop.f32.mrb[92].mxu1  ;;  %v11124_v12 = vpop.f32.mrb[64].mxu0  ;;  %13449 = vst [vmem:[#allocation67_spill] sm:$0xff] %v11137_v44 }
 0x5c7   : > { %4530 = vrot.lane.b32.xlu1 %v4468_v60, %s8530_s28  ;;  %v4641_v43 = vpop.f32.mrb[93].mxu1  ;;  %v11127_v1 = vpop.f32.mrb[65].mxu0 }
 0x5c8   : > { %v4643_v49 = vpop.f32.mrb[94].mxu1  ;;  %v11129_v11 = vpop.f32.mrb[66].mxu0 }
 0x5c9   : > { %4532 = vrot.lane.b32.xlu0 %v4472_v58, %s8530_s28  ;;  %v4645_v41 = vpop.f32.mrb[95].mxu1  ;;  %v11132_v25 = vpop.f32.mrb[67].mxu0 }
 0x5ca   : > { %v11150_v30 = vpop.permute.xlu1 %5927  ;;  %v11152_v44 = vpop.permute.xlu0 %5925 }
 0x5cb   : > { %4538 = vrot.lane.b32.xlu1 %v4470_v20, %s8530_s28  ;;  %13451 = vst [vmem:[#allocation64_spill] sm:$0xff] %v11150_v30  ;;  %13452 = vst [vmem:[#allocation40_spill] sm:$0xff] %v11152_v44 }
 0x5cd   : > { %4540 = vrot.lane.b32.xlu0 %v4474_v55, %s8530_s28 }
 0x5ce   : > { %v8045_v60 = vpop.f32.mrb[96].mxu1  ;;  %v11140_v3 = vpop.f32.mrb[68].mxu0 }
 0x5cf   : > { %13450 = vst [vmem:[#allocation44_spill] sm:$0xff] %v11140_v3  ;;  %4697 = vrot.lane.b32.xlu1 %v4629_v57, %s13301_s27  ;;  %v4853_v35 = vpop.f32.mrb[97].mxu1  ;;  %v11143_v21 = vpop.f32.mrb[69].mxu0 }
 0x5d0   : > { %v8046_v58 = vpop.f32.mrb[98].mxu1  ;;  %v11145_v53 = vpop.f32.mrb[70].mxu0 }
 0x5d1   : > { %4699 = vrot.lane.b32.xlu0 %v4633_v14, %s13301_s27  ;;  %v4856_v20 = vpop.f32.mrb[99].mxu1  ;;  %v11148_v16 = vpop.f32.mrb[71].mxu0 }
 0x5d2   : > { %v11157_v55 = vpop.permute.xlu1 %5929  ;;  %v11159_v57 = vpop.permute.xlu0 %5970 }
 0x5d3   : > { %4717 = vrot.lane.b32.xlu1 %v8035_v9, %s13301_s27  ;;  %13453 = vst [vmem:[#allocation45_spill] sm:$0xff] %v11157_v55  ;;  %13454 = vst [vmem:[#allocation65_spill] sm:$0xff] %v11159_v57 }
 0x5d5   : > { %4719 = vrot.lane.b32.xlu0 %v8036_v47, %s13301_s27 }
 0x5d6   : > { %v11179_v13 = vpop.permute.xlu1 %5972 }
 0x5d7   : > { %4705 = vrot.lane.b32.xlu1 %v4631_v46, %s13301_s27  ;;  %13457 = vst [vmem:[#allocation58_spill] sm:$0xff] %v11179_v13 }
 0x5d9   : > { %4707 = vrot.lane.b32.xlu0 %v4635_v37, %s13301_s27  ;;  %v11177_v37 = vpop.permute.xlu0 %5974 }
 0x5da   : > { %v11162_v14 = vpop.f32.mrb[100].mxu1  ;;  %v5106_v40 = vpop.f32.mrb[72].mxu0  ;;  %13456 = vst [vmem:[#allocation56_spill] sm:$0xff] %v11177_v37 }
 0x5db   : > { %13455 = vst [vmem:[#allocation42_spill] sm:$0xff] %v11162_v14  ;;  %4713 = vrot.lane.b32.xlu1 %v4682_v2, %s13301_s27  ;;  %v11165_v52 = vpop.f32.mrb[101].mxu1  ;;  %v11167_v61 = vpop.f32.mrb[73].mxu0 }
 0x5dc   : > { %v11169_v9 = vpop.f32.mrb[102].mxu1  ;;  %v5110_v47 = vpop.f32.mrb[74].mxu0 }
 0x5dd   : > { %4715 = vrot.lane.b32.xlu0 %v4685_v36, %s13301_s27  ;;  %v11172_v46 = vpop.f32.mrb[103].mxu1  ;;  %v11174_v32 = vpop.f32.mrb[75].mxu0 }
 0x5df   : > { %4701 = vrot.lane.b32.xlu1 %v4639_v54, %s13301_s27 }
 0x5e1   : > { %4703 = vrot.lane.b32.xlu0 %v4643_v49, %s13301_s27  ;;  %v11202_v49 = vpop.permute.xlu1 %6015 }
 0x5e2   : > { %v11182_v2 = vpop.f32.mrb[104].mxu1  ;;  %v11184_v17 = vpop.f32.mrb[76].mxu0  ;;  %13460 = vst [vmem:[#allocation26_spill] sm:$0xff] %v11202_v49 }
 0x5e3   : > { %13458 = vst [vmem:[#allocation43_spill] sm:$0xff] %v11182_v2  ;;  %4709 = vrot.lane.b32.xlu1 %v4641_v43, %s13301_s27  ;;  %v11187_v39 = vpop.f32.mrb[105].mxu1  ;;  %v11189_v36 = vpop.f32.mrb[77].mxu0  ;;  %v6309_v2 = vld [vmem:[%s13123_s10] sm:$0xff] }
 0x5e4   : > { %13459 = vst [vmem:[#allocation24_spill] sm:$0xff] %v11187_v39  ;;  %v11191_v50 = vpop.f32.mrb[106].mxu1  ;;  %v11193_v45 = vpop.f32.mrb[78].mxu0 }
 0x5e5   : > { %4711 = vrot.lane.b32.xlu0 %v4645_v41, %s13301_s27  ;;  %v11196_v54 = vpop.f32.mrb[107].mxu1  ;;  %v11198_v14 = vpop.f32.mrb[79].mxu0 }
 0x5e6   : > { %v11204_v43 = vpop.permute.xlu0 %6017 }
 0x5e7   : > { %4868 = vrot.lane.b32.xlu1 %v11108_v27, %s13411_s30  ;;  %13461 = vst [vmem:[#allocation25_spill] sm:$0xff] %v11204_v43 }
 0x5e9   : > { %4870 = vrot.lane.b32.xlu0 %v11113_v15, %s13411_s30  ;;  %v11223_v15 = vpop.permute.xlu1 %6019 }
 0x5ea   : > { %v8065_v34 = vpop.f32.mrb[108].mxu1  ;;  %v11208_v59 = vpop.f32.mrb[80].mxu0  ;;  %13463 = vst [vmem:[#allocation55_spill] sm:$0xff] %v11223_v15 }
 0x5eb   : > { %4876 = vrot.lane.b32.xlu1 %v11111_v51, %s13411_s30  ;;  %v5159_v41 = vpop.f32.mrb[109].mxu1  ;;  %v11212_v56 = vpop.f32.mrb[81].mxu0 }
 0x5ec   : > { %v8066_v0 = vpop.f32.mrb[110].mxu1  ;;  %v11214_v7 = vpop.f32.mrb[82].mxu0 }
 0x5ed   : > { %4878 = vrot.lane.b32.xlu0 %v11116_v8, %s13411_s30  ;;  %v5162_v27 = vpop.f32.mrb[111].mxu1  ;;  %v11218_v48 = vpop.f32.mrb[83].mxu0 }
 0x5ee   : > { %v11220_v33 = vpop.permute.xlu0 %6060  ;;  %v11229_v26 = vpop.permute.xlu1 %6062 }
 0x5ef   : > { %13462 = vst [vmem:[#allocation27_spill] sm:$0xff] %v11220_v33  ;;  %4888 = vrot.lane.b32.xlu1 %v8045_v60, %s13411_s30  ;;  %13465 = vst [vmem:[#allocation28_spill] sm:$0xff] %v11229_v26 }
 0x5f1   : > { %4890 = vrot.lane.b32.xlu0 %v8046_v58, %s13411_s30 }
 0x5f2   : > { %v11227_v51 = vpop.permute.xlu0 %6064 }
 0x5f3   : > { %4884 = vrot.lane.b32.xlu1 %v4853_v35, %s13411_s30  ;;  %13464 = vst [vmem:[#allocation57_spill] sm:$0xff] %v11227_v51 }
 0x5f5   : > { %4886 = vrot.lane.b32.xlu0 %v4856_v20, %s13411_s30  ;;  %v11246_v20 = vpop.permute.xlu1 %6129 }
 0x5f6   : > { %v5277_v8 = vpop.f32.mrb[112].mxu1  ;;  %v11232_v22 = vpop.f32.mrb[84].mxu0  ;;  %13466 = vst [vmem:[#allocation30_spill] sm:$0xff] %v11246_v20 }
 0x5f7   : > { %4872 = vrot.lane.b32.xlu1 %v11124_v12, %s13411_s30  ;;  %v5279_v33 = vpop.f32.mrb[113].mxu1  ;;  %v11236_v60 = vpop.f32.mrb[85].mxu0 }
 0x5f8   : > { %v5281_v15 = vpop.f32.mrb[114].mxu1  ;;  %v11238_v19 = vpop.f32.mrb[86].mxu0 }
 0x5f9   : > { %4874 = vrot.lane.b32.xlu0 %v11129_v11, %s13411_s30  ;;  %v5283_v35 = vpop.f32.mrb[115].mxu1  ;;  %v11242_v58 = vpop.f32.mrb[87].mxu0 }
 0x5fa   : > { %v11248_v26 = vpop.permute.xlu0 %6131 }
 0x5fb   : > { %4880 = vrot.lane.b32.xlu1 %v11127_v1, %s13411_s30  ;;  %13467 = vst [vmem:[#allocation29_spill] sm:$0xff] %v11248_v26 }
 0x5fd   : > { %4882 = vrot.lane.b32.xlu0 %v11132_v25, %s13411_s30  ;;  %v11264_v25 = vpop.permute.xlu1 %6133 }
 0x5fe   : > { %v5287_v12 = vpop.f32.mrb[116].mxu1  ;;  %v11252_v51 = vpop.f32.mrb[88].mxu0  ;;  %13468 = vst [vmem:[#allocation31_spill] sm:$0xff] %v11264_v25 }
 0x5ff   : > { %5174 = vrot.lane.b32.xlu1 %v5106_v40, %s13412_s24  ;;  %v5289_v24 = vpop.f32.mrb[117].mxu1  ;;  %v11255_v11 = vpop.f32.mrb[89].mxu0 }
 0x600   : > { %v5291_v6 = vpop.f32.mrb[118].mxu1  ;;  %v11257_v5 = vpop.f32.mrb[90].mxu0 }
 0x601   : > { %5176 = vrot.lane.b32.xlu0 %v5110_v47, %s13412_s24  ;;  %v5293_v1 = vpop.f32.mrb[119].mxu1  ;;  %v11260_v20 = vpop.f32.mrb[91].mxu0 }
 0x602   : > { %v11266_v26 = vpop.permute.xlu0 %6174 }
 0x603   : > { %5182 = vrot.lane.b32.xlu1 %v11167_v61, %s13412_s24  ;;  %13469 = vst [vmem:[#allocation60_spill] sm:$0xff] %v11266_v26  ;;  %v11280_v26 = vpop.permute.xlu1 %6176 }
 0x604   : > { %13470 = vst [vmem:[#allocation9_spill] sm:$0xff] %v11280_v26 }
 0x605   : > { %5184 = vrot.lane.b32.xlu0 %v11174_v32, %s13412_s24 }
 0x606   : > { %v8085_v40 = vpop.f32.mrb[120].mxu1  ;;  %v11270_v49 = vpop.f32.mrb[92].mxu0 }
 0x607   : > { %5194 = vrot.lane.b32.xlu1 %v8065_v34, %s13412_s24  ;;  %v5501_v43 = vpop.f32.mrb[121].mxu1  ;;  %v11273_v47 = vpop.f32.mrb[93].mxu0 }
 0x608   : > { %v8086_v29 = vpop.f32.mrb[122].mxu1  ;;  %v11275_v42 = vpop.f32.mrb[94].mxu0 }
 0x609   : > { %5196 = vrot.lane.b32.xlu0 %v8066_v0, %s13412_s24  ;;  %v5504_v61 = vpop.f32.mrb[123].mxu1  ;;  %v11278_v25 = vpop.f32.mrb[95].mxu0 }
 0x60a   : > { %v11283_v32 = vpop.permute.xlu0 %6178  ;;  %v11288_v34 = vpop.permute.xlu1 %4387 }
 0x60b   : > { %5190 = vrot.lane.b32.xlu1 %v5159_v41, %s13412_s24  ;;  %13471 = vst [vmem:[#allocation10_spill] sm:$0xff] %v11283_v32 }
 0x60d   : > { %5192 = vrot.lane.b32.xlu0 %v5162_v27, %s13412_s24 }
 0x60e   : > { %v11292_v0 = vpop.permute.xlu0 %4389 }
 0x60f   : > { %5178 = vrot.lane.b32.xlu1 %v11184_v17, %s13412_s24 }
 0x611   : > { %5180 = vrot.lane.b32.xlu0 %v11193_v45, %s13412_s24 }
 0x612   : > { %v5619_v10 = vpop.f32.mrb[124].mxu1 }
 0x613   : > { %5186 = vrot.lane.b32.xlu1 %v11189_v36, %s13412_s24  ;;  %v11296_v26 = vpop.f32.mrb[125].mxu1 }
 0x614   : > { %v11298_v41 = vpop.f32.mrb[126].mxu1 }
 0x615   : > { %5188 = vrot.lane.b32.xlu0 %v11198_v14, %s13412_s24  ;;  %v11302_v27 = vpop.permute.xlu1 %4367  ;;  %v11304_v17 = vpop.f32.mrb[127].mxu1 }
 0x617   : > { %v11306_v32 = vpop.permute.xlu0 %4369  ;;  %5345 = vrot.lane.b32.xlu1 %v5277_v8, %s13413_s21 }
 0x619   : > { %5347 = vrot.lane.b32.xlu0 %v5281_v15, %s13413_s21  ;;  %v11310_v45 = vpop.permute.xlu1 %4383 }
 0x61a   : > { %v11312_v36 = vpop.f32.mrb[128].mxu1 }
 0x61b   : > { %v11314_v13 = vpop.permute.xlu0 %4385  ;;  %5365 = vrot.lane.b32.xlu1 %v11208_v59, %s13413_s21  ;;  %v11318_v14 = vpop.f32.mrb[129].mxu1 }
 0x61c   : > { %v11320_v63 = vpop.f32.mrb[130].mxu1 }
 0x61d   : > { %5367 = vrot.lane.b32.xlu0 %v11214_v7, %s13413_s21  ;;  %v11324_v37 = vpop.permute.xlu1 %4375  ;;  %v11326_v8 = vpop.f32.mrb[131].mxu1 }
 0x61f   : > { %v11328_v15 = vpop.permute.xlu0 %4377  ;;  %5353 = vrot.lane.b32.xlu1 %v5279_v33, %s13413_s21 }
 0x621   : > { %5355 = vrot.lane.b32.xlu0 %v5283_v35, %s13413_s21  ;;  %v11332_v57 = vpop.permute.xlu1 %4371 }
 0x623   : > { %v11334_v59 = vpop.permute.xlu0 %4373  ;;  %5361 = vrot.lane.b32.xlu1 %v11212_v56, %s13413_s21 }
 0x625   : > { %5363 = vrot.lane.b32.xlu0 %v11218_v48, %s13413_s21  ;;  %v11340_v7 = vpop.permute.xlu1 %4379 }
 0x627   : > { %v11342_v62 = vpop.permute.xlu0 %4381  ;;  %5349 = vrot.lane.b32.xlu1 %v5287_v12, %s13413_s21 }
 0x629   : > { %5351 = vrot.lane.b32.xlu0 %v5291_v6, %s13413_s21  ;;  %v11346_v33 = vpop.permute.xlu1 %4526 }
 0x62b   : > { %v11348_v35 = vpop.permute.xlu0 %4528  ;;  %5357 = vrot.lane.b32.xlu1 %v5289_v24, %s13413_s21 }
 0x62d   : > { %5359 = vrot.lane.b32.xlu0 %v5293_v1, %s13413_s21  ;;  %v11352_v56 = vpop.permute.xlu1 %4534 }
 0x62f   : > { %v4537_v18 = vpop.permute.xlu0 %4536  ;;  %5516 = vrot.lane.b32.xlu1 %v11232_v22, %s13298_s26 }
 0x630   : > { %v4555_v28 = vsel %vm568_vm3, %v11348_v35, %v4537_v18 }
 0x631   : > { %5518 = vrot.lane.b32.xlu0 %v11238_v19, %s13298_s26  ;;  %v11358_v48 = vpop.permute.xlu1 %4546 }
 0x633   : > { %v11360_v6 = vpop.permute.xlu0 %4548  ;;  %5524 = vrot.lane.b32.xlu1 %v11236_v60, %s13298_s26 }
 0x635   : > { %5526 = vrot.lane.b32.xlu0 %v11242_v58, %s13298_s26  ;;  %v11366_v24 = vpop.permute.xlu1 %4542 }
 0x637   : > { %v4545_v12 = vpop.permute.xlu0 %4544  ;;  %5536 = vrot.lane.b32.xlu1 %v8085_v40, %s13298_s26 }
 0x639   : > { %5538 = vrot.lane.b32.xlu0 %v8086_v29, %s13298_s26  ;;  %v11370_v22 = vpop.permute.xlu1 %4530 }
 0x63b   : > { %v11372_v19 = vpop.permute.xlu0 %4532  ;;  %5532 = vrot.lane.b32.xlu1 %v5501_v43, %s13298_s26 }
 0x63d   : > { %5534 = vrot.lane.b32.xlu0 %v5504_v61, %s13298_s26  ;;  %v11376_v1 = vpop.permute.xlu1 %4538 }
 0x63f   : > { %v11378_v60 = vpop.permute.xlu0 %4540  ;;  %5520 = vrot.lane.b32.xlu1 %v11252_v51, %s13298_s26 }
 0x641   : > { %5522 = vrot.lane.b32.xlu0 %v11257_v5, %s13298_s26  ;;  %v11384_v58 = vpop.permute.xlu1 %4697 }
 0x643   : > { %v4700_v29 = vpop.permute.xlu0 %4699  ;;  %5528 = vrot.lane.b32.xlu1 %v11255_v11, %s13298_s26 }
 0x645   : > { %5530 = vrot.lane.b32.xlu0 %v11260_v20, %s13298_s26  ;;  %v11390_v43 = vpop.permute.xlu1 %4717 }
 0x647   : > { %v11392_v40 = vpop.permute.xlu0 %4719  ;;  %5687 = vrot.lane.b32.xlu1 %v5619_v10, %s13313_s22 }
 0x649   : > { %6221 = vrot.lane.b32.xlu0 %v13405_v31, %s13298_s26  ;;  %v11397_v51 = vpop.permute.xlu1 %4705 }
 0x64b   : > { %v4708_v5 = vpop.permute.xlu0 %4707  ;;  %5707 = vrot.lane.b32.xlu1 %v11270_v49, %s13313_s22 }
 0x64d   : > { %6264 = vrot.lane.b32.xlu0 %v13404_v4, %s13313_s22  ;;  %v11403_v11 = vpop.permute.xlu1 %4713 }
 0x64f   : > { %v4716_v20 = vpop.permute.xlu0 %4715  ;;  %5695 = vrot.lane.b32.xlu1 %v11296_v26, %s13313_s22 }
 0x651   : > { %6268 = vrot.lane.b32.xlu0 %v13403_v38, %s13313_s22  ;;  %v11409_v10 = vpop.permute.xlu1 %4701 }
 0x653   : > { %v11411_v61 = vpop.permute.xlu0 %4703  ;;  %5703 = vrot.lane.b32.xlu1 %v11273_v47, %s13313_s22  ;;  %v4396_v47 = vsel %vm550_vm4, %v11306_v32, %v11328_v15 }
 0x655   : > { %5689 = vrot.lane.b32.xlu0 %v11298_v41, %s13313_s22  ;;  %v11417_v49 = vpop.permute.xlu1 %4709  ;;  %v4726_v41 = vsel %vm845_vm5, %v4700_v29, %v4708_v5 }
 0x657   : > { %v4712_v55 = vpop.permute.xlu0 %4711  ;;  %6219 = vrot.lane.b32.xlu1 %v13404_v4, %s13298_s26  ;;  %v4566_v4 = vadd.f32 %v4555_v28, %v4396_v47  ;;  %v6345_v47 = vld [vmem:[%s13124_s11] sm:$0xff] }
 0x659   : > { %5709 = vrot.lane.b32.xlu0 %v11275_v42, %s13313_s22  ;;  %v11423_v26 = vpop.permute.xlu1 %4868  ;;  %v4737_v30 = vadd.f32 %v4726_v41, %v4566_v4  ;;  %v4551_v4 = vsel %vm568_vm3, %v4537_v18, %v4545_v12  ;;  %v4392_v18 = vsel %vm550_vm4, %v11328_v15, %v11314_v13 }
 0x65b   : > { %v4871_v44 = vpop.permute.xlu0 %4870  ;;  %6223 = vrot.lane.b32.xlu1 %v13403_v38, %s13298_s26 }
 0x65d   : > { %5697 = vrot.lane.b32.xlu0 %v11304_v17, %s13313_s22  ;;  %v11438_v42 = vpop.permute.xlu1 %4876  ;;  %v4559_v17 = vsel %vm568_vm3, %v4545_v12, %v11348_v35  ;;  %v4730_v35 = vsel %vm845_vm5, %v4716_v20, %v4700_v29  ;;  %v4567_v12 = vadd.f32 %v4551_v4, %v4392_v18  ;;  %v4402_v29 = vsel %vm550_vm4, %v11292_v0, %v11334_v59 }
 0x65f   : > { %v4879_v39 = vpop.permute.xlu0 %4878  ;;  %6266 = vrot.lane.b32.xlu1 %v13405_v31, %s13313_s22 }
 0x660   : > { %v4897_v38 = vsel %vm1002_vm6, %v4871_v44, %v4879_v39 }
 0x661   : > { %v4908_v3 = vadd.f32 %v4897_v38, %v4737_v30  ;;  %5705 = vrot.lane.b32.xlu0 %v11278_v25, %s13313_s22  ;;  %v11449_v28 = vpop.permute.xlu1 %4888  ;;  %v4400_v30 = vsel %vm550_vm4, %v11314_v13, %v11306_v32  ;;  %v4722_v25 = vsel %vm845_vm5, %v4708_v5, %v4716_v20  ;;  %v6346_v13 = vld [vmem:[%s13124_s11 + $0x8] sm:$0xff]  ;;  %v4732_v20 = vsel %vm845_vm5, %v11392_v40, %v11411_v61 }
 0x662   : > { %v4738_v15 = vadd.f32 %v4722_v25, %v4567_v12  ;;  %v4553_v25 = vsel %vm568_vm3, %v11378_v60, %v11360_v6 }
 0x663   : > { %v4891_v41 = vpop.permute.xlu0 %4890  ;;  %6315 = vperm.xlu1 %8284, %v6309_v2   ;;  %v11460_v38 = vadd.f32 %v11172_v46, %v4908_v3  ;;  %v4565_v2 = vadd.f32 %v4559_v17, %v4400_v30  ;;  %v4561_v46 = vsel %vm568_vm3, %v11360_v6, %v11372_v19 }
 0x665   : > { %6351 = vperm.xlu0 %8283, %v6345_v47   ;;  %v11474_v3 = vpop.permute.xlu1 %4884  ;;  %v4736_v32 = vadd.f32 %v4730_v35, %v4565_v2  ;;  %v4571_v47 = vadd.f32 %v4561_v46, %v4402_v29  ;;  %v4557_v35 = vsel %vm568_vm3, %v11372_v19, %v11378_v60  ;;  %v4398_v19 = vsel %vm550_vm4, %v11334_v59, %v11342_v62  ;;  %v6348_v59 = vld [vmem:[%s13124_s11 + $0x18] sm:$0xff] }
 0x666   : > { %v4724_v60 = vsel %vm845_vm5, %v4712_v55, %v11392_v40 }
 0x667   : > { %v4887_v5 = vpop.permute.xlu0 %4886  ;;  %5691 = vrot.lane.b32.xlu1 %v11312_v36, %s13313_s22  ;;  %v4742_v2 = vadd.f32 %v4732_v20, %v4571_v47  ;;  %v6311_v20 = vld [vmem:[%s13123_s10 + $0x10] sm:$0xff] }
 0x668   : > { %v4893_v4 = vsel %vm1002_vm6, %v4879_v39, %v4887_v5  ;;  %v4901_v17 = vsel %vm1002_vm6, %v4887_v5, %v4871_v44  ;;  %v6347_v39 = vld [vmem:[%s13124_s11 + $0x10] sm:$0xff]  ;;  %v4394_v44 = vsel %vm550_vm4, %v11342_v62, %v11292_v0  ;;  %v4728_v0 = vsel %vm845_vm5, %v11411_v61, %v4712_v55 }
 0x669   : > { %v4907_v30 = vadd.f32 %v4901_v17, %v4736_v32  ;;  %v4909_v18 = vadd.f32 %v4893_v4, %v4738_v15  ;;  %6356 = vperm.xlu0 %8283, %v6346_v13   ;;  %v11497_v36 = vpop.permute.xlu1 %4872  ;;  %v4573_v13 = vadd.f32 %v4553_v25, %v4394_v44 }
 0x66b   : > { %v4875_v12 = vpop.permute.xlu0 %4874  ;;  %5699 = vrot.lane.b32.xlu1 %v11318_v14, %s13313_s22  ;;  %v5042_v6 = vadd.f32 %v11169_v9, %v4907_v30  ;;  %v11518_v46 = vadd.f32 %v11148_v16, %v4909_v18  ;;  %v6310_v16 = vld [vmem:[%s13123_s10 + $0x8] sm:$0xff]  ;;  %v4572_v9 = vadd.f32 %v4557_v35, %v4398_v19  ;;  %v4744_v15 = vadd.f32 %v4724_v60, %v4573_v13 }
 0x66c   : > { %v4903_v14 = vsel %vm1002_vm6, %v4891_v41, %v4875_v12  ;;  %v4391_v35 = vsel %vm550_vm4, %v11324_v37, %v11310_v45  ;;  %v4892_v19 = vsel %vm1002_vm6, %v11438_v42, %v11474_v3 }
 0x66d   : > { %v4913_v32 = vadd.f32 %v4903_v14, %v4742_v2  ;;  %6361 = vperm.xlu0 %8283, %v6347_v39   ;;  %v11535_v62 = vpop.permute.xlu1 %4880  ;;  %v4743_v40 = vadd.f32 %v4728_v0, %v4572_v9  ;;  %v4395_v39 = vsel %vm550_vm4, %v11302_v27, %v11324_v37  ;;  %v4556_v9 = vsel %vm568_vm3, %v11370_v22, %v11376_v1 }
 0x66f   : > { %v4883_v55 = vpop.permute.xlu0 %4882  ;;  %6320 = vperm.xlu1 %8284, %v6310_v16   ;;  %v11541_v61 = vadd.f32 %v11191_v50, %v4913_v32  ;;  %v4554_v50 = vsel %vm568_vm3, %v11346_v33, %v11352_v56  ;;  %v4560_v16 = vsel %vm568_vm3, %v11358_v48, %v11370_v22  ;;  %v11622_v32 = vld [vmem:[%s13126_s13] sm:$0x7] }
 0x670   : > { %v4895_v5 = vsel %vm1002_vm6, %v4883_v55, %v4891_v41  ;;  %v4899_v29 = vsel %vm1002_vm6, %v4875_v12, %v4883_v55  ;;  %v4550_v41 = vsel %vm568_vm3, %v11352_v56, %v11366_v24  ;;  %v4725_v56 = vsel %vm845_vm5, %v11384_v58, %v11397_v51  ;;  %v6718_v55 = vld [vmem:[%s13127_s14] sm:$0x7] }
 0x671   : > { %v4914_v4 = vadd.f32 %v4899_v29, %v4743_v40  ;;  %v4915_v17 = vadd.f32 %v4895_v5, %v4744_v15  ;;  %6366 = vperm.xlu0 %8283, %v6348_v59   ;;  %v11550_v47 = vpop.permute.xlu1 %5174  ;;  %v4563_v44 = vadd.f32 %v4554_v50, %v4395_v39  ;;  %v4564_v2 = vadd.f32 %v4550_v41, %v4391_v35 }
 0x672   : > { %v4552_v12 = vsel %vm568_vm3, %v11376_v1, %v11358_v48  ;;  %v4894_v1 = vsel %vm1002_vm6, %v11535_v62, %v11449_v28  ;;  %v4401_v5 = vsel %vm550_vm4, %v11288_v34, %v11332_v57  ;;  %v4898_v39 = vsel %vm1002_vm6, %v11497_v36, %v11535_v62 }
 0x673   : > { %v5177_v30 = vpop.permute.xlu0 %5176  ;;  %6325 = vperm.xlu1 %8284, %v6311_v20   ;;  %v11561_v18 = vadd.f32 %v11145_v53, %v4915_v17  ;;  %v11564_v25 = vadd.f32 %v11196_v54, %v4914_v4  ;;  %v4721_v53 = vsel %vm845_vm5, %v11397_v51, %v11403_v11  ;;  %v6312_v54 = vld [vmem:[%s13123_s10 + $0x18] sm:$0xff]  ;;  %v4896_v51 = vsel %vm1002_vm6, %v11423_v26, %v11438_v42 }
 0x674   : > { %v4734_v60 = vadd.f32 %v4725_v56, %v4563_v44  ;;  %v4735_v0 = vadd.f32 %v4721_v53, %v4564_v2  ;;  %v4723_v42 = vsel %vm845_vm5, %v11417_v49, %v11390_v43  ;;  %v4568_v4 = vadd.f32 %v4560_v16, %v4401_v5 }
 0x675   : > { %5693 = vrot.lane.b32.xlu0 %v11320_v63, %s13313_s22  ;;  %v11587_v37 = vpop.permute.xlu1 %5182  ;;  %v4393_v63 = vsel %vm550_vm4, %v11340_v7, %v11288_v34  ;;  %v4727_v34 = vsel %vm845_vm5, %v11409_v10, %v11417_v49  ;;  %v8540_v53 = vmov 1  }
 0x676   : > { %v4570_v59 = vadd.f32 %v4552_v12, %v4393_v63  ;;  %v4905_v48 = vadd.f32 %v4896_v51, %v4734_v60  ;;  %v4906_v40 = vadd.f32 %v4892_v19, %v4735_v0  ;;  %v13472_v51 = vld [vmem:[#allocation44_spill] sm:$0xff]  ;;  %v8541_v60 = vmov 2  }
 0x677   : > { %v5185_v14 = vpop.permute.xlu0 %5184  ;;  %6330 = vperm.xlu1 %8284, %v6312_v54  }
 0x678   : > { %v5203_v13 = vsel %vm1306_vm7, %v5177_v30, %v5185_v14  ;;  %v4741_v29 = vadd.f32 %v4723_v42, %v4570_v59  ;;  %v5041_v50 = vadd.f32 %v11143_v21, %v4906_v40 }
 0x679   : > { %v11624_v15 = vadd.f32 %v5203_v13, %v5042_v6  ;;  %5701 = vrot.lane.b32.xlu0 %v11326_v8, %s13313_s22  ;;  %v5195_v22 = vpop.permute.xlu1 %5194  ;;  %v4397_v8 = vsel %vm550_vm4, %v11332_v57, %v11340_v7  ;;  %v4731_v6 = vsel %vm845_vm5, %v11390_v43, %v11409_v10  ;;  %v4902_v57 = vsel %vm1002_vm6, %v11449_v28, %v11497_v36  ;;  %v13474_v13 = vld [vmem:[#allocation24_spill] sm:$0xff]  ;;  %s13679_s22 = smul.u32 12, %s13681_s19 }
 0x67a   : > { %v4569_v17 = vadd.f32 %v4556_v9, %v4397_v8  ;;  %v4912_v7 = vadd.f32 %v4894_v1, %v4741_v29  ;;  %v5040_v43 = vadd.f32 %v11165_v52, %v4905_v48  ;;  %v4739_v35 = vadd.f32 %v4731_v6, %v4568_v4 }
 0x67b   : > { %v5197_v20 = vpop.permute.xlu0 %5196  ;;  %6727 = vperm.xlu1 %8284, %v11622_v32   ;;  %v8542_v9 = vmov 3   ;;  %s508_s25 = scalar_lea.vmem %s13128_s15, %s13679_s22 }
 0x67c   : > { %v4740_v28 = vadd.f32 %v4727_v34, %v4569_v17  ;;  %v4910_v54 = vadd.f32 %v4902_v57, %v4739_v35  ;;  %v5047_v19 = vadd.f32 %v13472_v51, %v4912_v7  ;;  %v8544_v17 = vmov 4  }
 0x67d   : > { %6721 = vperm.xlu0 %8283, %v6718_v55   ;;  %v5191_v41 = vpop.permute.xlu1 %5190  ;;  %v8543_v55 = vmov 5   ;;  %v8545_v7 = vmov 8   ;;  %v8548_v35 = vmov 7  }
 0x67e   : > { %v5198_v10 = vsel %vm1306_vm7, %v11587_v37, %v5191_v41  ;;  %v5206_v49 = vsel %vm1306_vm7, %v5191_v41, %v11550_v47  ;;  %v4911_v44 = vadd.f32 %v4898_v39, %v4740_v28  ;;  %v8549_v28 = vmov 14  }
 0x67f   : > { %v11668_v56 = vadd.f32 %v5198_v10, %v5040_v43  ;;  %v11670_v52 = vadd.f32 %v5206_v49, %v5041_v50  ;;  %v5193_v21 = vpop.permute.xlu0 %5192  ;;  %8285 = vset.pattern.permute.xlu1 %v8540_v53 }
 0x680   : > { %v5199_v36 = vsel %vm1306_vm7, %v5185_v14, %v5193_v21  ;;  %v5207_v62 = vsel %vm1306_vm7, %v5193_v21, %v5177_v30  ;;  %6749 = vperm.xlu1 %8285, %v11622_v32   ;;  %v5046_v59 = vadd.f32 %v13474_v13, %v4911_v44  ;;  %v8551_v44 = vmov 17  }
 0x681   : > { %v11678_v2 = vadd.f32 %v5199_v36, %v11460_v38  ;;  %v5215_v12 = vadd.f32 %v5207_v62, %v11518_v46  ;;  %v5179_v63 = vpop.permute.xlu1 %5178  ;;  %8286 = vset.pattern.permute.xlu0 %v8541_v60  ;;  %v13473_v46 = vld [vmem:[#allocation43_spill] sm:$0xff] }
 0x682   : > { %v5208_v0 = vsel %vm1306_vm7, %v5195_v22, %v5179_v63  ;;  %6771 = vperm.xlu0 %8286, %v11622_v32   ;;  %v5045_v42 = vadd.f32 %v13473_v46, %v4910_v54  ;;  %v8550_v54 = vmov 9  }
 0x683   : > { %v5218_v14 = vadd.f32 %v5208_v0, %v5047_v19  ;;  %v5181_v30 = vpop.permute.xlu0 %5180 }
 0x684   : > { %v5209_v16 = vsel %vm1306_vm7, %v5197_v20, %v5181_v30  ;;  %8287 = vset.pattern.permute.xlu1 %v8542_v9 }
 0x685   : > { %v5221_v38 = vadd.f32 %v5209_v16, %v11561_v18  ;;  %6793 = vperm.xlu1 %8287, %v11622_v32   ;;  %v5187_v48 = vpop.permute.xlu1 %5186 }
 0x686   : > { %v5200_v40 = vsel %vm1306_vm7, %v5187_v48, %v5195_v22  ;;  %v5204_v1 = vsel %vm1306_vm7, %v5179_v63, %v5187_v48  ;;  %8289 = vset.pattern.permute.xlu0 %v8543_v55  ;;  %v13479_v48 = vld [vmem:[#allocation40_spill] sm:$0xff] }
 0x687   : > { %v5216_v5 = vadd.f32 %v5204_v1, %v5045_v42  ;;  %v5217_v8 = vadd.f32 %v5200_v40, %v5046_v59  ;;  %v5189_v6 = vpop.permute.xlu0 %5188  ;;  %6837 = vperm.xlu0 %8289, %v11622_v32   ;;  %v8553_v42 = vmov 20   ;;  %v13478_v59 = vld [vmem:[#allocation64_spill] sm:$0xff] }
 0x688   : > { %v5201_v18 = vsel %vm1306_vm7, %v5189_v6, %v5197_v20  ;;  %v5205_v29 = vsel %vm1306_vm7, %v5181_v30, %v5189_v6  ;;  %v8546_v20 = vmov 6   ;;  %v5932_v40 = vsel %vm550_vm4, %v13479_v48, %v13478_v59  ;;  %v13481_v6 = vld [vmem:[#allocation5_spill] sm:$0xff] }
 0x689   : > { %v5219_v4 = vadd.f32 %v5205_v29, %v11541_v61  ;;  %v5220_v22 = vadd.f32 %v5201_v18, %v11564_v25  ;;  %8288 = vset.pattern.permute.xlu1 %v8544_v17  ;;  %v11702_v34 = vpop.permute.xlu1 %5345  ;;  %v8547_v61 = vmov 11   ;;  %v13482_v18 = vld [vmem:[#allocation52_spill] sm:$0xff]  ;;  %v13484_v17 = vld [vmem:[#allocation45_spill] sm:$0xff] }
 0x68a   : > { %6815 = vperm.xlu1 %8288, %v11622_v32   ;;  %v11765_v29 = vmul.f32 %v13482_v18, %v13481_v6 }
 0x68b   : > { %v5348_v57 = vpop.permute.xlu0 %5347  ;;  %8292 = vset.pattern.permute.xlu0 %v8545_v7  ;;  %v11780_v7 = vmul.f32 %v13482_v18, %v13405_v31 }
 0x68c   : > { %6903 = vperm.xlu0 %8292, %v11622_v32   ;;  %13483 = vst [vmem:[#allocation64_spill] sm:$0xff] %v11765_v29 }
 0x68d   : > { %v5366_v43 = vpop.permute.xlu1 %5365  ;;  %13485 = vst [vmem:[#allocation40_spill] sm:$0xff] %v11780_v7  ;;  %v13521_v7 = vld [vmem:[#allocation55_spill] sm:$0xff] }
 0x68e   : > { %8290 = vset.pattern.permute.xlu1 %v8546_v20 }
 0x68f   : > { %v5368_v50 = vpop.permute.xlu0 %5367  ;;  %6859 = vperm.xlu1 %8290, %v11622_v32  }
 0x690   : > { %8295 = vset.pattern.permute.xlu0 %v8547_v61 }
 0x691   : > { %v11707_v25 = vpop.permute.xlu1 %5353  ;;  %6969 = vperm.xlu0 %8295, %v11622_v32  }
 0x693   : > { %v11710_v41 = vpop.permute.xlu0 %5355  ;;  %8291 = vset.pattern.permute.xlu1 %v8548_v35  ;;  %v8555_v35 = vmov 23  }
 0x694   : > { %v5374_v39 = vsel %vm1463_vm8, %v5348_v57, %v11710_v41  ;;  %6881 = vperm.xlu1 %8291, %v11622_v32  }
 0x695   : > { %v11717_v10 = vadd.f32 %v5374_v39, %v11624_v15  ;;  %v11719_v49 = vpop.permute.xlu1 %5361  ;;  %8298 = vset.pattern.permute.xlu0 %v8549_v28  ;;  %v13489_v39 = vld [vmem:[#allocation50_spill] sm:$0xff] }
 0x696   : > { %7035 = vperm.xlu0 %8298, %v11622_v32   ;;  %v11789_v28 = vmul.f32 %v13489_v39, %v13481_v6 }
 0x697   : > { %v11722_v21 = vpop.permute.xlu0 %5363 }
 0x698   : > { %v5378_v53 = vsel %vm1463_vm8, %v11722_v21, %v5348_v57  ;;  %8293 = vset.pattern.permute.xlu1 %v8550_v54  ;;  %v5931_v57 = vsel %vm550_vm4, %v13478_v59, %v13484_v17 }
 0x699   : > { %v11727_v36 = vadd.f32 %v5378_v53, %v5215_v12  ;;  %6925 = vperm.xlu1 %8293, %v11622_v32   ;;  %v5350_v15 = vpop.permute.xlu1 %5349  ;;  %v8552_v12 = vmov 10   ;;  %v11793_v53 = vmul.f32 %v13489_v39, %v13405_v31 }
 0x69a   : > { %v5379_v62 = vsel %vm1463_vm8, %v5366_v43, %v5350_v15  ;;  %8301 = vset.pattern.permute.xlu0 %v8551_v44 }
 0x69b   : > { %v11732_v51 = vadd.f32 %v5379_v62, %v5218_v14  ;;  %v5352_v19 = vpop.permute.xlu0 %5351  ;;  %7101 = vperm.xlu0 %8301, %v11622_v32  }
 0x69c   : > { %v5380_v63 = vsel %vm1463_vm8, %v5368_v50, %v5352_v19 }
 0x69d   : > { %13475 = vst [vmem:[#allocation11_spill] sm:$0xff] %v11732_v51  ;;  %v11737_v60 = vadd.f32 %v5380_v63, %v5221_v38  ;;  %8294 = vset.pattern.permute.xlu1 %v8552_v12  ;;  %v5358_v0 = vpop.permute.xlu1 %5357  ;;  %v13492_v12 = vld [vmem:[#allocation65_spill] sm:$0xff] }
 0x69e   : > { %v5371_v30 = vsel %vm1463_vm8, %v5358_v0, %v5366_v43  ;;  %v5375_v16 = vsel %vm1463_vm8, %v5350_v15, %v5358_v0  ;;  %6947 = vperm.xlu1 %8294, %v11622_v32   ;;  %v13486_v43 = vld [vmem:[#allocation8_spill] sm:$0xff]  ;;  %v13490_v15 = vld [vmem:[#allocation21_spill] sm:$0xff] }
 0x69f   : > { %v11744_v14 = vadd.f32 %v5375_v16, %v5216_v5  ;;  %v11746_v9 = vadd.f32 %v5371_v30, %v5217_v8  ;;  %v5360_v46 = vpop.permute.xlu0 %5359  ;;  %8304 = vset.pattern.permute.xlu0 %v8553_v42  ;;  %v8554_v8 = vmov 12   ;;  %v11784_v20 = vmul.f32 %v13482_v18, %v13486_v43  ;;  %v13493_v0 = vld [vmem:[#allocation56_spill] sm:$0xff]  ;;  %v13496_v42 = vld [vmem:[#allocation19_spill] sm:$0xff] }
 0x6a0   : > { %v5372_v38 = vsel %vm1463_vm8, %v5360_v46, %v5368_v50  ;;  %v5376_v13 = vsel %vm1463_vm8, %v5352_v19, %v5360_v46  ;;  %7167 = vperm.xlu0 %8304, %v11622_v32   ;;  %v13488_v50 = vld [vmem:[#allocation3_spill] sm:$0xff]  ;;  %v11797_v54 = vmul.f32 %v13489_v39, %v13486_v43  ;;  %v11801_v62 = vmul.f32 %v13490_v15, %v13481_v6 }
 0x6a1   : > { %13476 = vst [vmem:[#allocation44_spill] sm:$0xff] %v11744_v14  ;;  %13477 = vst [vmem:[#allocation43_spill] sm:$0xff] %v11746_v9  ;;  %v11757_v1 = vadd.f32 %v5376_v13, %v5219_v4  ;;  %v11759_v55 = vadd.f32 %v5372_v38, %v5220_v22  ;;  %v11761_v5 = vpop.permute.xlu1 %5516  ;;  %v5933_v4 = vsel %vm550_vm4, %v13484_v17, %v13479_v48  ;;  %v8556_v48 = vmov 13  }
 0x6a2   : > { %8296 = vset.pattern.permute.xlu1 %v8554_v8  ;;  %13487 = vst [vmem:[#allocation52_spill] sm:$0xff] %v11784_v20  ;;  %v5941_v61 = vrot.slane %v5932_v40, %v13488_v50  ;;  %13491 = vst [vmem:[#allocation45_spill] sm:$0xff] %v11801_v62  ;;  %v5937_v19 = vrot.slane %v5933_v4, %v13488_v50  ;;  %v5945_v63 = vrot.slane %v5931_v57, %v13488_v50  ;;  %v13500_v8 = vld [vmem:[#allocation58_spill] sm:$0xff]  ;;  %v13501_v57 = vld [vmem:[#allocation47_spill] sm:$0xff] }
 0x6a3   : > { %13480 = vst [vmem:[#allocation24_spill] sm:$0xff] %v11757_v1  ;;  %v11775_v22 = vpop.permute.xlu0 %5518  ;;  %6991 = vperm.xlu1 %8296, %v11622_v32   ;;  %v5978_v30 = vsel %vm568_vm3, %v13493_v0, %v13492_v12  ;;  %v11814_v16 = vmul.f32 %v13490_v15, %v13405_v31  ;;  %v11818_v46 = vmul.f32 %v13490_v15, %v13486_v43  ;;  %v8557_v15 = vmov 26   ;;  %v13506_v62 = vld [vmem:[#allocation25_spill] sm:$0xff] }
 0x6a4   : > { %8307 = vset.pattern.permute.xlu0 %v8555_v35  ;;  %v11822_v38 = vmul.f32 %v13496_v42, %v13481_v6  ;;  %v11826_v13 = vmul.f32 %v13496_v42, %v13405_v31  ;;  %v11832_v40 = vmul.f32 %v13496_v42, %v13486_v43  ;;  %v5976_v18 = vsel %vm568_vm3, %v13500_v8, %v13493_v0  ;;  %v13502_v42 = vld [vmem:[#allocation46_spill] sm:$0xff]  ;;  %v13514_v20 = vld [vmem:[#allocation37_spill] sm:$0xff] }
 0x6a5   : > { %v11803_v44 = vpop.permute.xlu1 %5524  ;;  %7233 = vperm.xlu0 %8307, %v11622_v32   ;;  %13494 = vst [vmem:[#allocation3_spill] sm:$0xff] %v11814_v16  ;;  %13495 = vst [vmem:[#allocation50_spill] sm:$0xff] %v11818_v46  ;;  %v5977_v17 = vsel %vm568_vm3, %v13492_v12, %v13500_v8  ;;  %v11844_v4 = vmul.f32 %v5941_v61, %v13501_v57  ;;  %v5982_v35 = vrot.slane %v5978_v30, %v13488_v50  ;;  %v13504_v0 = vld [vmem:[#allocation54_spill] sm:$0xff] }
 0x6a6   : > { %13497 = vst [vmem:[#allocation21_spill] sm:$0xff] %v11822_v38  ;;  %13498 = vst [vmem:[#allocation65_spill] sm:$0xff] %v11826_v13  ;;  %v11853_v16 = vmul.f32 %v5941_v61, %v13504_v0  ;;  %v13507_v46 = vld [vmem:[#allocation26_spill] sm:$0xff]  ;;  %v11861_v8 = vmul.f32 %v5937_v19, %v13501_v57  ;;  %v11864_v30 = vmul.f32 %v5945_v63, %v13501_v57 }
 0x6a7   : > { %v11828_v59 = vpop.permute.xlu0 %5526  ;;  %8297 = vset.pattern.permute.xlu1 %v8556_v48  ;;  %13499 = vst [vmem:[#allocation56_spill] sm:$0xff] %v11832_v40  ;;  %v11850_v48 = vmul.f32 %v5941_v61, %v13502_v42  ;;  %v6022_v12 = vsel %vm845_vm5, %v13507_v46, %v13506_v62  ;;  %v5986_v31 = vrot.slane %v5977_v17, %v13488_v50  ;;  %v8558_v40 = vmov 15  }
 0x6a8   : > { %7013 = vperm.xlu1 %8297, %v11622_v32   ;;  %13505 = vst [vmem:[#allocation58_spill] sm:$0xff] %v11853_v16  ;;  %v5990_v6 = vrot.slane %v5976_v18, %v13488_v50  ;;  %v11874_v38 = vmul.f32 %v5937_v19, %v13502_v42  ;;  %v11877_v16 = vmul.f32 %v5945_v63, %v13502_v42  ;;  %v13515_v42 = vld [vmem:[#allocation36_spill] sm:$0xff] }
 0x6a9   : > { %v11847_v39 = vpop.permute.xlu1 %5536  ;;  %8310 = vset.pattern.permute.xlu0 %v8557_v15  ;;  %13503 = vst [vmem:[#allocation19_spill] sm:$0xff] %v11850_v48  ;;  %v13508_v15 = vld [vmem:[#allocation17_spill] sm:$0xff]  ;;  %v11880_v57 = vmul.f32 %v5945_v63, %v13504_v0  ;;  %v6031_v18 = vrot.slane %v6022_v12, %v13488_v50  ;;  %v11896_v1 = vmul.f32 %v5982_v35, %v13515_v42 }
 0x6aa   : > { %7299 = vperm.xlu0 %8310, %v11622_v32   ;;  %v11867_v43 = vmul.f32 %v5941_v61, %v13508_v15  ;;  %13510 = vst [vmem:[#allocation46_spill] sm:$0xff] %v11877_v16  ;;  %v11883_v61 = vmul.f32 %v5937_v19, %v13504_v0  ;;  %v11886_v17 = vmul.f32 %v5945_v63, %v13508_v15  ;;  %v8559_v0 = vmov 29   ;;  %v13575_v16 = vld [vmem:[#allocation10_spill] sm:$0xff] }
 0x6ab   : > { %v11871_v13 = vpop.permute.xlu0 %5538  ;;  %13511 = vst [vmem:[#allocation54_spill] sm:$0xff] %v11880_v57  ;;  %v11899_v57 = vmul.f32 %v5937_v19, %v13508_v15  ;;  %v11902_v63 = vmul.f32 %v5986_v31, %v13514_v20  ;;  %v6023_v14 = vsel %vm845_vm5, %v13521_v7, %v13507_v46  ;;  %v11918_v19 = vmul.f32 %v5990_v6, %v13514_v20 }
 0x6ac   : > { %13509 = vst [vmem:[#allocation47_spill] sm:$0xff] %v11867_v43  ;;  %8299 = vset.pattern.permute.xlu1 %v8558_v40  ;;  %13512 = vst [vmem:[#allocation25_spill] sm:$0xff] %v11883_v61  ;;  %v11893_v40 = vmul.f32 %v5982_v35, %v13514_v20  ;;  %v13519_v61 = vld [vmem:[#allocation32_spill] sm:$0xff]  ;;  %v11921_v15 = vmul.f32 %v5986_v31, %v13515_v42  ;;  %v4558_v46 = vsel %vm568_vm3, %v11366_v24, %v11346_v33 }
 0x6ad   : > { %13513 = vst [vmem:[#allocation26_spill] sm:$0xff] %v11886_v17  ;;  %7057 = vperm.xlu1 %8299, %v11622_v32   ;;  %v11890_v43 = vpop.permute.xlu1 %5532  ;;  %13516 = vst [vmem:[#allocation17_spill] sm:$0xff] %v11899_v57  ;;  %v13517_v17 = vld [vmem:[#allocation59_spill] sm:$0xff]  ;;  %v11908_v9 = vmul.f32 %v5982_v35, %v13519_v61  ;;  %v8560_v57 = vmov 16   ;;  %v11952_v33 = vmul.f32 %v5986_v31, %v13519_v61  ;;  %v6027_v24 = vrot.slane %v6023_v14, %v13488_v50 }
 0x6ae   : > { %8313 = vset.pattern.permute.xlu0 %v8559_v0  ;;  %v11905_v12 = vmul.f32 %v5982_v35, %v13517_v17  ;;  %13522 = vst [vmem:[#allocation59_spill] sm:$0xff] %v11921_v15  ;;  %v11924_v0 = vmul.f32 %v5990_v6, %v13515_v42  ;;  %v6021_v35 = vsel %vm845_vm5, %v13506_v62, %v13521_v7  ;;  %v8563_v15 = vmov 19  }
 0x6af   : > { %13520 = vst [vmem:[#allocation36_spill] sm:$0xff] %v11908_v9  ;;  %v11914_v51 = vpop.permute.xlu0 %5534  ;;  %7365 = vperm.xlu0 %8313, %v11622_v32   ;;  %v11935_v9 = vmul.f32 %v5990_v6, %v13517_v17  ;;  %v11938_v20 = vmul.f32 %v5986_v31, %v13517_v17  ;;  %v11949_v62 = vmul.f32 %v5990_v6, %v13519_v61  ;;  %13530 = vst [vmem:[#allocation69_spill] sm:$0xff] %v11952_v33  ;;  %v13265_v33 = vmov 31  }
 0x6b0   : > { %13518 = vst [vmem:[#allocation37_spill] sm:$0xff] %v11905_v12  ;;  %13523 = vst [vmem:[#allocation32_spill] sm:$0xff] %v11924_v0  ;;  %v13526_v12 = vld [vmem:[#allocation33_spill] sm:$0xff]  ;;  %v13527_v0 = vld [vmem:[#allocation34_spill] sm:$0xff]  ;;  %v4729_v17 = vsel %vm845_vm5, %v11403_v11, %v11384_v58  ;;  %v6035_v6 = vrot.slane %v6021_v35, %v13488_v50 }
 0x6b1   : > { %13524 = vst [vmem:[#allocation55_spill] sm:$0xff] %v11935_v9  ;;  %13525 = vst [vmem:[#allocation68_spill] sm:$0xff] %v11938_v20  ;;  %8300 = vset.pattern.permute.xlu1 %v8560_v57  ;;  %v11940_v42 = vpop.permute.xlu1 %5520  ;;  %v11943_v29 = vmul.f32 %v6031_v18, %v13526_v12  ;;  %v11946_v7 = vmul.f32 %v6031_v18, %v13527_v0  ;;  %v4399_v57 = vsel %vm550_vm4, %v11310_v45, %v11302_v27  ;;  %v13532_v20 = vld [vmem:[#allocation57_spill] sm:$0xff]  ;;  %v13534_v58 = vld [vmem:[#allocation35_spill] sm:$0xff] }
 0x6b2   : > { %13529 = vst [vmem:[#allocation34_spill] sm:$0xff] %v11949_v62  ;;  %7079 = vperm.xlu1 %8300, %v11622_v32   ;;  %v13531_v62 = vld [vmem:[#allocation27_spill] sm:$0xff]  ;;  %v4562_v14 = vadd.f32 %v4558_v46, %v4399_v57  ;;  %v4900_v27 = vsel %vm1002_vm6, %v11474_v3, %v11423_v26  ;;  %v11981_v11 = vmul.f32 %v6031_v18, %v13534_v58  ;;  %v13536_v35 = vld [vmem:[#allocation61_spill] sm:$0xff]  ;;  %v13538_v57 = vld [vmem:[#allocation28_spill] sm:$0xff] }
 0x6b3   : > { %13528 = vst [vmem:[#allocation33_spill] sm:$0xff] %v11946_v7  ;;  %v6068_v31 = vsel %vm1002_vm6, %v13532_v20, %v13531_v62  ;;  %v11969_v61 = vpop.permute.xlu0 %5522  ;;  %8316 = vset.pattern.permute.xlu0 %v13265_v33  ;;  %v11984_v46 = vmul.f32 %v6031_v18, %v13536_v35  ;;  %v6067_v33 = vsel %vm1002_vm6, %v13531_v62, %v13538_v57 }
 0x6b4   : > { %13533 = vst [vmem:[#allocation27_spill] sm:$0xff] %v11969_v61  ;;  %v5551_v45 = vsel %vm1620_vm9, %v11871_v13, %v11969_v61  ;;  %13535 = vst [vmem:[#allocation57_spill] sm:$0xff] %v11981_v11  ;;  %v4733_v9 = vadd.f32 %v4729_v17, %v4562_v14  ;;  %v11996_v3 = vmul.f32 %v6027_v24, %v13526_v12 }
 0x6b5   : > { %13537 = vst [vmem:[#allocation35_spill] sm:$0xff] %v11984_v46  ;;  %v11991_v7 = vadd.f32 %v5551_v45, %v11737_v60  ;;  %v11993_v26 = vpop.permute.xlu1 %5528  ;;  %v6072_v61 = vrot.slane %v6068_v31, %v13488_v50  ;;  %v6066_v18 = vsel %vm1002_vm6, %v13538_v57, %v13532_v20  ;;  %v8562_v46 = vmov 18   ;;  %v13546_v57 = vld [vmem:[#allocation30_spill] sm:$0xff] }
 0x6b6   : > { %8302 = vset.pattern.permute.xlu1 %v8562_v46  ;;  %v12004_v62 = vmul.f32 %v6035_v6, %v13526_v12  ;;  %v12007_v60 = vmul.f32 %v6027_v24, %v13527_v0  ;;  %v4904_v17 = vadd.f32 %v4900_v27, %v4733_v9  ;;  %v12013_v31 = vmul.f32 %v6035_v6, %v13527_v0  ;;  %v13545_v0 = vld [vmem:[#allocation29_spill] sm:$0xff] }
 0x6b7   : > { %13539 = vst [vmem:[#allocation61_spill] sm:$0xff] %v11991_v7  ;;  %v12009_v14 = vpop.permute.xlu0 %5530  ;;  %7123 = vperm.xlu1 %8302, %v11622_v32   ;;  %v12016_v45 = vmul.f32 %v6035_v6, %v13534_v58  ;;  %v12019_v20 = vmul.f32 %v6027_v24, %v13534_v58  ;;  %v6076_v12 = vrot.slane %v6067_v33, %v13488_v50 }
 0x6b8   : > { %13540 = vst [vmem:[#allocation28_spill] sm:$0xff] %v12009_v14  ;;  %13541 = vst [vmem:[#allocation70_spill] sm:$0xff] %v12013_v31  ;;  %v5543_v9 = vsel %vm1620_vm9, %v12009_v14, %v11871_v13  ;;  %v12027_v27 = vmul.f32 %v6035_v6, %v13536_v35  ;;  %v6080_v46 = vrot.slane %v6066_v18, %v13488_v50  ;;  %v13550_v6 = vld [vmem:[#allocation20_spill] sm:$0xff]  ;;  %v13552_v18 = vld [vmem:[#allocation22_spill] sm:$0xff] }
 0x6b9   : > { %13542 = vst [vmem:[#allocation71_spill] sm:$0xff] %v12016_v45  ;;  %13543 = vst [vmem:[#allocation72_spill] sm:$0xff] %v12019_v20  ;;  %v6136_v7 = vsel %vm1306_vm7, %v13546_v57, %v13545_v0  ;;  %v12035_v58 = vadd.f32 %v5543_v9, %v11759_v55  ;;  %v12037_v11 = vpop.permute.xlu1 %5687  ;;  %v12040_v33 = vmul.f32 %v6027_v24, %v13536_v35  ;;  %v13549_v20 = vld [vmem:[#allocation49_spill] sm:$0xff]  ;;  %v13554_v9 = vld [vmem:[#allocation48_spill] sm:$0xff] }
 0x6ba   : > { %13544 = vst [vmem:[#allocation73_spill] sm:$0xff] %v12027_v27  ;;  %v12043_v13 = vmul.f32 %v6072_v61, %v13549_v20  ;;  %v12046_v27 = vmul.f32 %v6072_v61, %v13550_v6  ;;  %v12049_v45 = vmul.f32 %v6072_v61, %v13552_v18  ;;  %v5202_v55 = vsel %vm1306_vm7, %v11550_v47, %v11587_v37  ;;  %v13558_v37 = vld [vmem:[#allocation31_spill] sm:$0xff] }
 0x6bb   : > { %13547 = vst [vmem:[#allocation29_spill] sm:$0xff] %v12035_v58  ;;  %13548 = vst [vmem:[#allocation30_spill] sm:$0xff] %v12040_v33  ;;  %v12056_v58 = vmul.f32 %v6072_v61, %v13554_v9  ;;  %v12059_v24 = vmul.f32 %v6076_v12, %v13549_v20  ;;  %v12062_v35 = vmul.f32 %v6080_v46, %v13549_v20  ;;  %v13556_v33 = vld [vmem:[#allocation42_spill] sm:$0xff]  ;;  %v12065_v14 = vpop.permute.xlu0 %6221  ;;  %8303 = vset.pattern.permute.xlu1 %v8563_v15 }
 0x6bc   : > { %13551 = vst [vmem:[#allocation49_spill] sm:$0xff] %v12046_v27  ;;  %13553 = vst [vmem:[#allocation20_spill] sm:$0xff] %v12049_v45  ;;  %v5039_v31 = vadd.f32 %v13556_v33, %v4904_v17  ;;  %v12068_v45 = vmul.f32 %v6076_v12, %v13550_v6  ;;  %v6141_v47 = vrot.slane %v6136_v7, %v13488_v50  ;;  %7145 = vperm.xlu1 %8303, %v11622_v32  }
 0x6bd   : > { %13555 = vst [vmem:[#allocation22_spill] sm:$0xff] %v12056_v58  ;;  %v6135_v61 = vsel %vm1306_vm7, %v13545_v0, %v13558_v37  ;;  %v5373_v20 = vsel %vm1463_vm8, %v11702_v34, %v11707_v25  ;;  %v12081_v17 = vmul.f32 %v6080_v46, %v13550_v6  ;;  %v6137_v15 = vsel %vm1306_vm7, %v13558_v37, %v13546_v57  ;;  %v12087_v33 = vpop.permute.xlu1 %5707 }
 0x6be   : > { %13557 = vst [vmem:[#allocation48_spill] sm:$0xff] %v12068_v45  ;;  %v5210_v7 = vadd.f32 %v5202_v55, %v5039_v31  ;;  %13560 = vst [vmem:[#allocation31_spill] sm:$0xff] %v12087_v33  ;;  %v12090_v0 = vmul.f32 %v6076_v12, %v13552_v18  ;;  %v12093_v58 = vmul.f32 %v6080_v46, %v13552_v18  ;;  %v13565_v31 = vld [vmem:[#allocation51_spill] sm:$0xff]  ;;  %v13566_v18 = vld [vmem:[#allocation53_spill] sm:$0xff] }
 0x6bf   : > { %13559 = vst [vmem:[#allocation42_spill] sm:$0xff] %v12081_v17  ;;  %v12096_v45 = vmul.f32 %v6076_v12, %v13554_v9  ;;  %v5544_v6 = vsel %vm1620_vm9, %v11761_v5, %v11803_v44  ;;  %v12103_v17 = vmul.f32 %v6080_v46, %v13554_v9  ;;  %v12106_v57 = vmul.f32 %v6141_v47, %v13565_v31 }
 0x6c0   : > { %13561 = vst [vmem:[#allocation74_spill] sm:$0xff] %v12090_v0  ;;  %13562 = vst [vmem:[#allocation75_spill] sm:$0xff] %v12093_v58  ;;  %v6145_v55 = vrot.slane %v6135_v61, %v13488_v50  ;;  %v5381_v37 = vadd.f32 %v5373_v20, %v5210_v7  ;;  %v12109_v0 = vpop.permute.xlu0 %6264  ;;  %v12112_v58 = vmul.f32 %v6141_v47, %v13566_v18  ;;  %v8564_v9 = vmov 21   ;;  %v13568_v61 = vld [vmem:[#allocation23_spill] sm:$0xff]  ;;  %v13570_v7 = vld [vmem:[#allocation62_spill] sm:$0xff] }
 0x6c1   : > { %13563 = vst [vmem:[#allocation76_spill] sm:$0xff] %v12096_v45  ;;  %13564 = vst [vmem:[#allocation77_spill] sm:$0xff] %v12103_v17  ;;  %v6149_v12 = vrot.slane %v6137_v15, %v13488_v50  ;;  %v5369_v45 = vsel %vm1463_vm8, %v11707_v25, %v11719_v49  ;;  %v5377_v46 = vsel %vm1463_vm8, %v11719_v49, %v11702_v34  ;;  %8305 = vset.pattern.permute.xlu1 %v8564_v9  ;;  %v5696_v25 = vpop.permute.xlu1 %5695  ;;  %v13572_v9 = vld [vmem:[#allocation9_spill] sm:$0xff] }
 0x6c2   : > { %13567 = vst [vmem:[#allocation51_spill] sm:$0xff] %v12112_v58  ;;  %v12124_v20 = vmul.f32 %v6141_v47, %v13568_v61  ;;  %v12127_v17 = vmul.f32 %v6141_v47, %v13570_v7  ;;  %v12130_v15 = vmul.f32 %v6145_v55, %v13565_v31  ;;  %v5552_v33 = vadd.f32 %v5544_v6, %v5381_v37 }
 0x6c3   : > { %7189 = vperm.xlu1 %8305, %v11622_v32   ;;  %v5540_v34 = vsel %vm1620_vm9, %v11803_v44, %v11890_v43  ;;  %v5548_v49 = vsel %vm1620_vm9, %v11890_v43, %v11761_v5  ;;  %v5715_v47 = vsel %vm1777_vm10, %v12037_v11, %v5696_v25  ;;  %v5382_v37 = vadd.f32 %v5369_v45, %v11668_v56 }
 0x6c4   : > { %13569 = vst [vmem:[#allocation53_spill] sm:$0xff] %v12124_v20  ;;  %13571 = vst [vmem:[#allocation23_spill] sm:$0xff] %v12127_v17  ;;  %v13573_v17 = vld [vmem:[#allocation60_spill] sm:$0xff]  ;;  %v5383_v20 = vadd.f32 %v5377_v46, %v11670_v52  ;;  %v5723_v58 = vadd.f32 %v5715_v47, %v5552_v33  ;;  %v12150_v44 = vpop.permute.xlu0 %6268  ;;  %v12153_v27 = vmul.f32 %v6149_v12, %v13565_v31  ;;  %v8565_v31 = vmov 22  }
 0x6c5   : > { %v6181_v6 = vsel %vm1463_vm8, %v13573_v17, %v13572_v9  ;;  %v12156_v5 = vmul.f32 %v6145_v55, %v13566_v18  ;;  %v12159_v43 = vmul.f32 %v6149_v12, %v13566_v18  ;;  %v6182_v48 = vsel %vm1463_vm8, %v13575_v16, %v13573_v17  ;;  %v5704_v46 = vpop.permute.xlu1 %5703 }
 0x6c6   : > { %v6180_v56 = vsel %vm1463_vm8, %v13572_v9, %v13575_v16  ;;  %v5553_v52 = vadd.f32 %v5540_v34, %v5382_v37  ;;  %v5554_v45 = vadd.f32 %v5548_v49, %v5383_v20  ;;  %v5958_v33 = vadd.f32 %v11861_v8, %v5723_v58 }
 0x6c7   : > { %13574 = vst [vmem:[#allocation62_spill] sm:$0xff] %v12159_v43  ;;  %8306 = vset.pattern.permute.xlu1 %v8565_v31  ;;  %v12171_v18 = vmul.f32 %v6145_v55, %v13568_v61  ;;  %v6186_v47 = vrot.slane %v6181_v6, %v13488_v50  ;;  %v5711_v17 = vsel %vm1777_vm10, %v5696_v25, %v5704_v46  ;;  %v13579_v31 = vld [vmem:[#allocation16_spill] sm:$0xff] }
 0x6c8   : > { %v5719_v43 = vsel %vm1777_vm10, %v5704_v46, %v12037_v11  ;;  %7211 = vperm.xlu1 %8306, %v11622_v32   ;;  %v6003_v16 = vadd.f32 %v11893_v40, %v5958_v33  ;;  %v5724_v8 = vadd.f32 %v5711_v17, %v5553_v52  ;;  %v5690_v20 = vpop.permute.xlu0 %5689  ;;  %v12182_v34 = vmul.f32 %v6149_v12, %v13568_v61  ;;  %v13576_v11 = vld [vmem:[#allocation14_spill] sm:$0xff] }
 0x6c9   : > { %v5725_v58 = vadd.f32 %v5719_v43, %v5554_v45  ;;  %v12185_v49 = vmul.f32 %v6145_v55, %v13570_v7  ;;  %v6194_v9 = vrot.slane %v6182_v48, %v13488_v50  ;;  %v6190_v25 = vrot.slane %v6180_v56, %v13488_v50  ;;  %v6220_v52 = vpop.permute.xlu1 %6219  ;;  %v13578_v48 = vld [vmem:[#allocation12_spill] sm:$0xff] }
 0x6ca   : > { %v12190_v6 = vmul.f32 %v6149_v12, %v13570_v7  ;;  %v12193_v37 = vmul.f32 %v6186_v47, %v13576_v11  ;;  %v5959_v40 = vadd.f32 %v11844_v4, %v5724_v8  ;;  %v6048_v55 = vadd.f32 %v11996_v3, %v6003_v16 }
 0x6cb   : > { %v5960_v43 = vadd.f32 %v11864_v30, %v5725_v58  ;;  %v12198_v61 = vmul.f32 %v6190_v25, %v13576_v11  ;;  %v8566_v45 = vmov 24   ;;  %v12202_v56 = vmul.f32 %v6186_v47, %v13578_v48 }
 0x6cc   : > { %8308 = vset.pattern.permute.xlu1 %v8566_v45  ;;  %v12205_v12 = vmul.f32 %v6190_v25, %v13578_v48  ;;  %v5545_v4 = vsel %vm1620_vm9, %v11775_v22, %v11828_v59  ;;  %v6004_v30 = vadd.f32 %v11902_v63, %v5959_v40  ;;  %v12213_v33 = vpop.permute.xlu0 %5709  ;;  %v12217_v3 = vmul.f32 %v6194_v9, %v13578_v48  ;;  %v13580_v40 = vld [vmem:[#allocation18_spill] sm:$0xff] }
 0x6cd   : > { %13577 = vst [vmem:[#allocation9_spill] sm:$0xff] %v12198_v61  ;;  %v6005_v7 = vadd.f32 %v11918_v19, %v5960_v43  ;;  %7255 = vperm.xlu1 %8308, %v11622_v32   ;;  %v12220_v46 = vmul.f32 %v6186_v47, %v13579_v31  ;;  %v12223_v17 = vmul.f32 %v6190_v25, %v13579_v31  ;;  %v6224_v58 = vpop.permute.xlu1 %6223 }
 0x6ce   : > { %v12226_v16 = vmul.f32 %v6194_v9, %v13579_v31  ;;  %v5370_v63 = vsel %vm1463_vm8, %v11710_v41, %v11722_v21  ;;  %v6049_v19 = vadd.f32 %v11943_v29, %v6004_v30  ;;  %v12235_v43 = vmul.f32 %v6186_v47, %v13580_v40 }
 0x6cf   : > { %v6050_v8 = vadd.f32 %v12004_v62, %v6005_v7  ;;  %v5555_v45 = vadd.f32 %v5545_v4, %v11717_v10  ;;  %v6093_v48 = vadd.f32 %v12043_v13, %v6048_v55  ;;  %v12240_v31 = vmul.f32 %v6190_v25, %v13580_v40 }
 0x6d0   : > { %v12243_v61 = vmul.f32 %v6194_v9, %v13580_v40  ;;  %v5541_v41 = vsel %vm1620_vm9, %v11828_v59, %v11914_v51  ;;  %v5549_v21 = vsel %vm1620_vm9, %v11914_v51, %v11775_v22  ;;  %v6094_v10 = vadd.f32 %v12059_v24, %v6049_v19  ;;  %v5698_v62 = vpop.permute.xlu0 %5697 }
 0x6d1   : > { %v6095_v29 = vadd.f32 %v12062_v35, %v6050_v8  ;;  %v8567_v13 = vmov 25   ;;  %v5385_v47 = vadd.f32 %v5370_v63, %v11678_v2  ;;  %v5716_v25 = vsel %vm1777_vm10, %v5690_v20, %v5698_v62  ;;  %v6267_v24 = vpop.permute.xlu1 %6266 }
 0x6d2   : > { %8309 = vset.pattern.permute.xlu1 %v8567_v13  ;;  %v12260_v59 = vmul.f32 %v6194_v9, %v13576_v11  ;;  %v6118_v55 = vadd.f32 %v11793_v53, %v6094_v10  ;;  %v5726_v22 = vadd.f32 %v5716_v25, %v5555_v45  ;;  %v5557_v4 = vadd.f32 %v5549_v21, %v11727_v36  ;;  %v13582_v10 = vld [vmem:[#allocation46_spill] sm:$0xff]  ;;  %v13584_v13 = vld [vmem:[#allocation59_spill] sm:$0xff] }
 0x6d3   : > { %7277 = vperm.xlu1 %8309, %v11622_v32   ;;  %v6119_v51 = vadd.f32 %v11797_v54, %v6095_v29  ;;  %v5556_v35 = vadd.f32 %v5541_v41, %v5385_v47  ;;  %v6117_v30 = vadd.f32 %v11789_v28, %v6093_v48  ;;  %v5550_v2 = vsel %vm1620_vm9, %v11847_v39, %v11940_v42  ;;  %v13581_v48 = vld [vmem:[#allocation19_spill] sm:$0xff] }
 0x6d4   : > { %v6226_v9 = vsel %vm1620_vm9, %v6220_v52, %v12065_v14  ;;  %v6225_v53 = vsel %vm1620_vm9, %v12065_v14, %v6224_v58  ;;  %v5961_v54 = vadd.f32 %v11874_v38, %v5726_v22  ;;  %v5706_v11 = vpop.permute.xlu0 %5705  ;;  %v6227_v36 = vsel %vm1620_vm9, %v6224_v58, %v6220_v52  ;;  %v13585_v22 = vld [vmem:[#allocation32_spill] sm:$0xff] }
 0x6d5   : > { %v6271_v28 = vsel %vm1777_vm10, %v12109_v0, %v6267_v24  ;;  %v5712_v7 = vsel %vm1777_vm10, %v5698_v62, %v5706_v11  ;;  %v5720_v63 = vsel %vm1777_vm10, %v5706_v11, %v5690_v20  ;;  %v8568_v19 = vmov 27  }
 0x6d6   : > { %v6006_v14 = vadd.f32 %v11896_v1, %v5961_v54  ;;  %v5727_v8 = vadd.f32 %v5712_v7, %v5556_v35  ;;  %v6163_v38 = vadd.f32 %v12130_v15, %v6118_v55  ;;  %v6164_v52 = vadd.f32 %v12153_v27, %v6119_v51  ;;  %v13588_v54 = vld [vmem:[#allocation33_spill] sm:$0xff]  ;;  %v13591_v7 = vld [vmem:[#allocation70_spill] sm:$0xff] }
 0x6d7   : > { %8311 = vset.pattern.permute.xlu1 %v8568_v19  ;;  %v5546_v58 = vsel %vm1620_vm9, %v11940_v42, %v11993_v26  ;;  %v12295_v40 = vrot.slane %v6225_v53, %v13488_v50  ;;  %v5728_v20 = vadd.f32 %v5720_v63, %v5557_v4  ;;  %v6162_v45 = vadd.f32 %v12106_v57, %v6117_v30  ;;  %v13587_v30 = vld [vmem:[#allocation64_spill] sm:$0xff] }
 0x6d8   : > { %7321 = vperm.xlu1 %8311, %v11622_v32   ;;  %v6272_v1 = vsel %vm1777_vm10, %v12150_v44, %v12109_v0  ;;  %v12303_v15 = vrot.slane %v6227_v36, %v13488_v50  ;;  %v6051_v27 = vadd.f32 %v12007_v60, %v6006_v14  ;;  %v5962_v41 = vadd.f32 %v13581_v48, %v5727_v8  ;;  %v13583_v0 = vld [vmem:[#allocation49_spill] sm:$0xff]  ;;  %v13589_v36 = vld [vmem:[#allocation28_spill] sm:$0xff]  ;;  %v13596_v48 = vld [vmem:[#allocation42_spill] sm:$0xff] }
 0x6d9   : > { %v12308_v42 = vrot.slane %v6226_v9, %v13488_v50  ;;  %v6270_v21 = vsel %vm1777_vm10, %v6267_v24, %v12150_v44  ;;  %v12314_v57 = vrot.slane %v6271_v28, %v13488_v50  ;;  %v5963_v29 = vadd.f32 %v13582_v10, %v5728_v20  ;;  %v13586_v24 = vld [vmem:[#allocation63_spill] sm:$0xff]  ;;  %v13592_v14 = vld [vmem:[#allocation48_spill] sm:$0xff]  ;;  %v13593_v20 = vld [vmem:[#allocation38_spill] sm:$0xff] }
 0x6da   : > { %v6096_v62 = vadd.f32 %v13583_v0, %v6051_v27  ;;  %v6007_v47 = vadd.f32 %v13584_v13, %v5962_v41  ;;  %v8569_v25 = vmov 28   ;;  %v6208_v60 = vadd.f32 %v12205_v12, %v6163_v38 }
 0x6db   : > { %v6209_v55 = vadd.f32 %v12217_v3, %v6164_v52  ;;  %v6284_v51 = vrot.slane %v6272_v1, %v13488_v50  ;;  %v6008_v35 = vadd.f32 %v13585_v22, %v5963_v29  ;;  %v6207_v44 = vadd.f32 %v12202_v56, %v6162_v45  ;;  %v13590_v56 = vld [vmem:[#allocation27_spill] sm:$0xff]  ;;  %v13597_v29 = vld [vmem:[#allocation40_spill] sm:$0xff] }
 0x6dc   : > { %8312 = vset.pattern.permute.xlu1 %v8569_v25  ;;  %v6241_v4 = vmul.f32 %v12295_v40, %v13586_v24  ;;  %v6120_v9 = vadd.f32 %v13587_v30, %v6096_v62  ;;  %v12329_v53 = vrot.slane %v6270_v21, %v13488_v50  ;;  %v6052_v12 = vadd.f32 %v13588_v54, %v6007_v47  ;;  %v13594_v1 = vld [vmem:[#allocation11_spill] sm:$0xff]  ;;  %v13601_v22 = vld [vmem:[#allocation52_spill] sm:$0xff] }
 0x6dd   : > { %7343 = vperm.xlu1 %8312, %v11622_v32   ;;  %v6242_v3 = vmul.f32 %v12303_v15, %v13586_v24  ;;  %v5542_v11 = vsel %vm1620_vm9, %v11993_v26, %v11847_v39  ;;  %v5547_v28 = vsel %vm1620_vm9, %v13590_v56, %v13589_v36  ;;  %v6053_v63 = vadd.f32 %v13591_v7, %v6008_v35  ;;  %v13595_v39 = vld [vmem:[#allocation44_spill] sm:$0xff]  ;;  %v13598_v47 = vld [vmem:[#allocation51_spill] sm:$0xff]  ;;  %v13605_v36 = vld [vmem:[#allocation62_spill] sm:$0xff] }
 0x6de   : > { %v6240_v19 = vmul.f32 %v12308_v42, %v13586_v24  ;;  %v6097_v8 = vadd.f32 %v13592_v14, %v6052_v12  ;;  %v6253_v38 = vadd.f32 %v6241_v4, %v6208_v60  ;;  %v6285_v45 = vmul.f32 %v12314_v57, %v13593_v20  ;;  %v13602_v24 = vld [vmem:[#allocation2_spill] sm:$0xff]  ;;  %v13606_v56 = vld [vmem:[#allocation39_spill] sm:$0xff] }
 0x6df   : > { %v6254_v52 = vadd.f32 %v6242_v3, %v6209_v55  ;;  %v5560_v27 = vadd.f32 %v5550_v2, %v13594_v1  ;;  %v12350_v26 = vadd.f32 %v5546_v58, %v13595_v39  ;;  %v6098_v41 = vadd.f32 %v13596_v48, %v6053_v63  ;;  %v13599_v2 = vld [vmem:[#allocation43_spill] sm:$0xff]  ;;  %v13600_v58 = vld [vmem:[#allocation24_spill] sm:$0xff] }
 0x6e0   : > { %v8570_v21 = vmov 30   ;;  %v6287_v10 = vmul.f32 %v6284_v51, %v13593_v20  ;;  %v6121_v0 = vadd.f32 %v13597_v29, %v6097_v8  ;;  %v6252_v62 = vadd.f32 %v6240_v19, %v6207_v44  ;;  %v13614_v29 = vld [vmem:[#allocation15_spill] sm:$0xff] }
 0x6e1   : > { %8314 = vset.pattern.permute.xlu1 %v8570_v21  ;;  %v6286_v13 = vmul.f32 %v12329_v53, %v13593_v20  ;;  %v6165_v25 = vadd.f32 %v13598_v47, %v6120_v9  ;;  %v12360_v60 = vadd.f32 %v5542_v11, %v13599_v2  ;;  %v12363_v55 = vadd.f32 %v5547_v28, %v13600_v58  ;;  %v13609_v20 = vld [vmem:[#allocation67_spill] sm:$0xff]  ;;  %v13616_v47 = vld [vmem:[#allocation41_spill] sm:$0xff] }
 0x6e2   : > { %7387 = vperm.xlu1 %8314, %v11622_v32   ;;  %v6122_v35 = vadd.f32 %v13601_v22, %v6098_v41  ;;  %v12367_v4 = vsub.s32 3, %v13602_v24  ;;  %v6297_v30 = vadd.f32 %v6285_v45, %v6252_v62  ;;  %v6299_v12 = vadd.f32 %v6287_v10, %v6254_v52  ;;  %v6316_v3 = vpop.permute.xlu1 %6315  ;;  %v13613_v10 = vld [vmem:[#allocation13_spill] sm:$0xff] }
 0x6e3   : > { %v6298_v54 = vadd.f32 %v6286_v13, %v6253_v38  ;;  %v12370_v44 = vsub.s32 4, %v13602_v24  ;;  %v6166_v9 = vadd.f32 %v12156_v5, %v6121_v0  ;;  %v6290_v7 = vmul.f32 %v6284_v51, %v13606_v56  ;;  %v13610_v5 = vld [vmem:[#allocation66_spill] sm:$0xff] }
 0x6e4   : > { %13603 = vst [vmem:[#allocation60_spill] sm:$0xff] %v12367_v4  ;;  %v6167_v11 = vadd.f32 %v13605_v36, %v6122_v35  ;;  %v12376_v28 = vsub.s32 6, %v13602_v24  ;;  %v6333_v63 = vmul.f32 %v6316_v3, %v6297_v30  ;;  %v6335_v14 = vmul.f32 %v6316_v3, %v6299_v12  ;;  %v6352_v52 = vpop.permute.xlu0 %6351 }
 0x6e5   : > { %13604 = vst [vmem:[#allocation10_spill] sm:$0xff] %v12370_v44  ;;  %v6334_v19 = vmul.f32 %v6316_v3, %v6298_v54  ;;  %v13608_v8 = vmov 31   ;;  %v6210_v38 = vadd.f32 %v12220_v46, %v6165_v25  ;;  %v12382_v45 = vmul.f32 %v6284_v51, %v13609_v20  ;;  %v13621_v44 = vld [vmem:[#allocation55_spill] sm:$0xff] }
 0x6e6   : > { %13607 = vst [vmem:[#allocation14_spill] sm:$0xff] %v12376_v28  ;;  %8315 = vset.pattern.permute.xlu1 %v13608_v8  ;;  %v12385_v1 = vmul.f32 %v6284_v51, %v13610_v5  ;;  %v12388_v39 = vsub.s32 7, %v13602_v24  ;;  %v12391_v48 = vsub.s32 5, %v13602_v24  ;;  %v12393_v41 = vadd.f32 %v6352_v52, %v6333_v63  ;;  %v5692_v51 = vpop.permute.xlu1 %5691 }
 0x6e7   : > { %7409 = vperm.xlu1 %8315, %v11622_v32   ;;  %v12395_v21 = vadd.f32 %v6352_v52, %v6334_v19  ;;  %v12397_v46 = vadd.f32 %v6352_v52, %v6335_v14  ;;  %v6243_v32 = vmul.f32 %v12308_v42, %v13613_v10  ;;  %v12403_v0 = vmul.f32 %v12308_v42, %v13614_v29 }
 0x6e8   : > { %13611 = vst [vmem:[#allocation12_spill] sm:$0xff] %v12388_v39  ;;  %13612 = vst [vmem:[#allocation16_spill] sm:$0xff] %v12391_v48  ;;  %v6211_v62 = vadd.f32 %v12223_v17, %v6166_v9  ;;  %v6212_v13 = vadd.f32 %v12226_v16, %v6167_v11  ;;  %v12409_v25 = vmul.f32 %v12308_v42, %v13616_v47  ;;  %v12416_v58 = vmul.f32 0.70710677, %v12393_v41  ;;  %v13618_v16 = vld [vmem:[#allocation31_spill] sm:$0xff] }
 0x6e9   : > { %13615 = vst [vmem:[#allocation18_spill] sm:$0xff] %v12403_v0  ;;  %v12413_v2 = vmul.f32 %v12295_v40, %v13614_v29  ;;  %v6244_v22 = vmul.f32 %v12295_v40, %v13613_v10  ;;  %v6255_v35 = vadd.f32 %v6243_v32, %v6210_v38  ;;  %v12421_v24 = vmul.f32 0.70710677, %v12395_v21  ;;  %v13620_v38 = vld [vmem:[#allocation54_spill] sm:$0xff] }
 0x6ea   : > { %v12424_v17 = vmul.f32 0.70710677, %v12397_v46  ;;  %v5721_v42 = vsel %vm1777_vm10, %v13618_v16, %v5692_v51  ;;  %v6245_v30 = vmul.f32 %v12303_v15, %v13613_v10  ;;  %v12433_v54 = vmul.f32 %v12314_v57, %v13610_v5  ;;  %v5700_v63 = vpop.permute.xlu1 %5699 }
 0x6eb   : > { %13617 = vst [vmem:[#allocation19_spill] sm:$0xff] %v12413_v2  ;;  %v6405_v12 = vand.u32 2147483647, %v12416_v58  ;;  %v5731_v3 = vadd.f32 %v5721_v42, %v5560_v27  ;;  %v6288_v9 = vmul.f32 %v12314_v57, %v13606_v56  ;;  %v6406_v36 = vand.u32 2147483647, %v12421_v24 }
 0x6ec   : > { %13619 = vst [vmem:[#allocation46_spill] sm:$0xff] %v12433_v54  ;;  %v6407_v11 = vand.u32 2147483647, %v12424_v17  ;;  %v6256_v19 = vadd.f32 %v6244_v22, %v6211_v62  ;;  %v6257_v14 = vadd.f32 %v6245_v30, %v6212_v13  ;;  %v6289_v10 = vmul.f32 %v12329_v53, %v13606_v56 }
 0x6ed   : > { %v6417_v8 = vmul.f32 0.3275911, %v6405_v12  ;;  %v5966_v52 = vadd.f32 %v13620_v38, %v5731_v3  ;;  %v6300_v32 = vadd.f32 %v6288_v9, %v6255_v35  ;;  %v6418_v48 = vmul.f32 0.3275911, %v6406_v36  ;;  %v13622_v9 = vld [vmem:[#allocation71_spill] sm:$0xff] }
 0x6ee   : > { %v6419_v39 = vmul.f32 0.3275911, %v6407_v11  ;;  %v6573_v27 = vsub.f32 0.0, %v6405_v12  ;;  %v6574_v42 = vsub.f32 0.0, %v6406_v36  ;;  %v5713_v54 = vsel %vm1777_vm10, %v5700_v63, %v13618_v16  ;;  %v6321_v56 = vpop.permute.xlu1 %6320  ;;  %v13623_v16 = vld [vmem:[#allocation75_spill] sm:$0xff] }
 0x6ef   : > { %v6429_v28 = vadd.f32 1.0, %v6417_v8  ;;  %v6011_v4 = vadd.f32 %v13621_v44, %v5966_v52  ;;  %v5717_v62 = vsel %vm1777_vm10, %v5692_v51, %v5700_v63  ;;  %v6430_v13 = vadd.f32 1.0, %v6418_v48  ;;  %v13624_v51 = vld [vmem:[#allocation25_spill] sm:$0xff]  ;;  %v13625_v63 = vld [vmem:[#allocation58_spill] sm:$0xff] }
 0x6f0   : > { %v6431_v22 = vadd.f32 1.0, %v6419_v39  ;;  %v6301_v30 = vadd.f32 %v6289_v10, %v6256_v19  ;;  %v6302_v3 = vadd.f32 %v6290_v7, %v6257_v14  ;;  %v6575_v35 = vsub.f32 0.0, %v6407_v11  ;;  %v13626_v14 = vld [vmem:[#allocation56_spill] sm:$0xff] }
 0x6f1   : > { %8467 = vrcp.f32 %v6429_v28  ;;  %v6056_v38 = vadd.f32 %v13622_v9, %v6011_v4  ;;  %v5729_v8 = vadd.f32 %v5717_v62, %v12350_v26  ;;  %v6585_v44 = vmul.f32 %v6573_v27, %v6405_v12  ;;  %v6357_v28 = vpop.permute.xlu0 %6356  ;;  %v13628_v27 = vld [vmem:[#allocation68_spill] sm:$0xff] }
 0x6f2   : > { %8469 = vrcp.f32 %v6430_v13  ;;  %v6586_v52 = vmul.f32 %v6574_v42, %v6406_v36  ;;  %v5730_v2 = vadd.f32 %v5713_v54, %v12360_v60  ;;  %v6336_v39 = vmul.f32 %v6321_v56, %v6300_v32  ;;  %v13627_v36 = vld [vmem:[#allocation37_spill] sm:$0xff] }
 0x6f3   : > { %8471 = vrcp.f32 %v6431_v22  ;;  %v6101_v0 = vadd.f32 %v13623_v16, %v6056_v38  ;;  %v5964_v48 = vadd.f32 %v13624_v51, %v5729_v8  ;;  %v12456_v7 = vmul.f32 %v12329_v53, %v13610_v5  ;;  %v13629_v22 = vld [vmem:[#allocation72_spill] sm:$0xff]  ;;  %v13632_v16 = vld [vmem:[#allocation74_spill] sm:$0xff] }
 0x6f4   : > { %v5965_v4 = vadd.f32 %v13625_v63, %v5730_v2  ;;  %v6337_v19 = vmul.f32 %v6321_v56, %v6301_v30  ;;  %v6338_v26 = vmul.f32 %v6321_v56, %v6302_v3  ;;  %v12461_v60 = vadd.f32 %v6357_v28, %v6336_v39  ;;  %v13630_v3 = vld [vmem:[#allocation57_spill] sm:$0xff]  ;;  %v13631_v8 = vld [vmem:[#allocation20_spill] sm:$0xff] }
 0x6f5   : > { %v6125_v12 = vadd.f32 %v13626_v14, %v6101_v0  ;;  %v6009_v10 = vadd.f32 %v13627_v36, %v5964_v48  ;;  %v12465_v54 = vmul.f32 %v12295_v40, %v13616_v47  ;;  %v6597_v32 = vmul.f32 1.442695, %v6585_v44 }
 0x6f6   : > { %v6010_v42 = vadd.f32 %v13628_v27, %v5965_v4  ;;  %v12468_v5 = vadd.f32 %v6357_v28, %v6337_v19  ;;  %v12470_v62 = vadd.f32 %v6357_v28, %v6338_v26  ;;  %v6587_v2 = vmul.f32 %v6575_v35, %v6407_v11  ;;  %v13633_v19 = vld [vmem:[#allocation21_spill] sm:$0xff] }
 0x6f7   : > { %v6599_v13 = vmul.f32 1.442695, %v6586_v52  ;;  %v6054_v30 = vadd.f32 %v13629_v22, %v6009_v10  ;;  %v12474_v0 = vmul.f32 0.70710677, %v12461_v60  ;;  %v6170_v40 = vadd.f32 %v12182_v34, %v6125_v12 }
 0x6f8   : > { %v6055_v56 = vadd.f32 %v13630_v3, %v6010_v42  ;;  %v12478_v9 = vmul.f32 0.70710677, %v12468_v5  ;;  %v6248_v38 = vmul.f32 %v12303_v15, %v13616_v47  ;;  %v12485_v11 = vmul.f32 0.70710677, %v12470_v62 }
 0x6f9   : > { %v6099_v44 = vadd.f32 %v13631_v8, %v6054_v30  ;;  %v6408_v35 = vand.u32 2147483647, %v12474_v0  ;;  %v12490_v52 = vmul.f32 %v12314_v57, %v13609_v20  ;;  %8473 = vpow2.f32 %v6597_v32 }
 0x6fa   : > { %v6100_v51 = vadd.f32 %v13632_v16, %v6055_v56  ;;  %v6409_v48 = vand.u32 2147483647, %v12478_v9  ;;  %v12496_v34 = vmul.f32 %v12329_v53, %v13609_v20  ;;  %8475 = vpow2.f32 %v6599_v13 }
 0x6fb   : > { %v12498_v47 = vpop.eup %8467  ;;  %v6601_v39 = vmul.f32 1.442695, %v6587_v2  ;;  %v6410_v28 = vand.u32 2147483647, %v12485_v11  ;;  %v6420_v63 = vmul.f32 0.3275911, %v6408_v35  ;;  %v6123_v26 = vadd.f32 %v13633_v19, %v6099_v44 }
 0x6fc   : > { %v12501_v4 = vpop.eup %8469  ;;  %v6465_v57 = vmul.f32 1.0614054, %v12498_v47  ;;  %v6421_v14 = vmul.f32 0.3275911, %v6409_v48  ;;  %v6215_v12 = vadd.f32 %v12243_v61, %v6170_v40  ;;  %v6576_v32 = vsub.f32 0.0, %v6408_v35  ;;  %v13634_v2 = vld [vmem:[#allocation65_spill] sm:$0xff] }
 0x6fd   : > { %v12506_v36 = vpop.eup %8471  ;;  %v6466_v53 = vmul.f32 1.0614054, %v12501_v4  ;;  %v6422_v20 = vmul.f32 0.3275911, %v6410_v28  ;;  %v6432_v10 = vadd.f32 1.0, %v6420_v63  ;;  %v6124_v13 = vadd.f32 %v13634_v2, %v6100_v51 }
 0x6fe   : > { %v6467_v27 = vmul.f32 1.0614054, %v12506_v36  ;;  %v6477_v42 = vadd.f32 -1.4531521, %v6465_v57  ;;  %v6433_v22 = vadd.f32 1.0, %v6421_v14  ;;  %v6577_v56 = vsub.f32 0.0, %v6409_v48  ;;  %v12521_v14 = vpop.permute.xlu0 %6361 }
 0x6ff   : > { %v6478_v30 = vadd.f32 -1.4531521, %v6466_v53  ;;  %v6434_v3 = vadd.f32 1.0, %v6422_v20  ;;  %8477 = vrcp.f32 %v6432_v10  ;;  %v6578_v40 = vsub.f32 0.0, %v6410_v28  ;;  %v13635_v10 = vld [vmem:[#allocation53_spill] sm:$0xff] }
 0x700   : > { %v6479_v8 = vadd.f32 -1.4531521, %v6467_v27  ;;  %v6489_v61 = vmul.f32 %v12498_v47, %v6477_v42  ;;  %8479 = vrcp.f32 %v6433_v22  ;;  %v6588_v16 = vmul.f32 %v6576_v32, %v6408_v35 }
 0x701   : > { %v6490_v44 = vmul.f32 %v12501_v4, %v6478_v30  ;;  %8481 = vrcp.f32 %v6434_v3  ;;  %v12515_v63 = vmul.f32 %v12303_v15, %v13614_v29  ;;  %v12518_v51 = vmul.f32 0.5, %v12393_v41 }
 0x702   : > { %v6491_v57 = vmul.f32 %v12506_v36, %v6479_v8  ;;  %v6501_v19 = vadd.f32 1.4214138, %v6489_v61  ;;  %8483 = vpow2.f32 %v6601_v39  ;;  %v6589_v20 = vmul.f32 %v6577_v56, %v6409_v48 }
 0x703   : > { %v6502_v53 = vadd.f32 1.4214138, %v6490_v44  ;;  %v6168_v27 = vadd.f32 %v13635_v10, %v6123_v26  ;;  %v6169_v42 = vadd.f32 %v12171_v18, %v6124_v13  ;;  %v8474_v35 = vpop.eup %8473  ;;  %v6590_v29 = vmul.f32 %v6578_v40, %v6410_v28 }
 0x704   : > { %v6503_v32 = vadd.f32 1.4214138, %v6491_v57  ;;  %v6513_v15 = vmul.f32 %v12498_v47, %v6501_v19  ;;  %v6260_v2 = vadd.f32 %v6248_v38, %v6215_v12  ;;  %v8476_v41 = vpop.eup %8475  ;;  %v6603_v30 = vmul.f32 1.442695, %v6588_v16  ;;  %v6326_v16 = vpop.permute.xlu1 %6325 }
 0x705   : > { %v6514_v22 = vmul.f32 %v12501_v4, %v6502_v53  ;;  %v6213_v39 = vadd.f32 %v12235_v43, %v6168_v27  ;;  %v6214_v3 = vadd.f32 %v12240_v31, %v6169_v42  ;;  %v12530_v48 = vmul.f32 0.5, %v12395_v21  ;;  %v12540_v21 = vpop.permute.xlu0 %6366 }
 0x706   : > { %v6515_v26 = vmul.f32 %v12506_v36, %v6503_v32  ;;  %v6525_v18 = vadd.f32 -0.28449672, %v6513_v15  ;;  %v6305_v13 = vadd.f32 %v12382_v45, %v6260_v2  ;;  %v12535_v56 = vmul.f32 0.5, %v12397_v46 }
 0x707   : > { %v6526_v38 = vadd.f32 -0.28449672, %v6514_v22  ;;  %v6258_v28 = vadd.f32 %v12409_v25, %v6213_v39  ;;  %v6259_v12 = vadd.f32 %v12465_v54, %v6214_v3  ;;  %v6605_v31 = vmul.f32 1.442695, %v6589_v20 }
 0x708   : > { %v6527_v8 = vadd.f32 -0.28449672, %v6515_v26  ;;  %v6537_v43 = vmul.f32 %v12498_v47, %v6525_v18  ;;  %v6607_v61 = vmul.f32 1.442695, %v6590_v29  ;;  %8485 = vpow2.f32 %v6603_v30 }
 0x709   : > { %v12542_v40 = vpop.eup %8477  ;;  %v6538_v44 = vmul.f32 %v12501_v4, %v6526_v38  ;;  %v6303_v45 = vadd.f32 %v12490_v52, %v6258_v28  ;;  %v6304_v46 = vadd.f32 %v12496_v34, %v6259_v12  ;;  %v6341_v53 = vmul.f32 %v6326_v16, %v6305_v13  ;;  %v12563_v38 = vpop.permute.xlu0 %5693 }
 0x70a   : > { %v12547_v25 = vpop.eup %8479  ;;  %v6539_v54 = vmul.f32 %v12506_v36, %v6527_v8  ;;  %v6549_v57 = vadd.f32 0.2548296, %v6537_v43  ;;  %v6468_v19 = vmul.f32 1.0614054, %v12542_v40  ;;  %vm6645_vm3 = vcmp.lt.f32.partialorder %v12416_v58, 0.0  ;;  %v12573_v8 = vpop.permute.xlu1 %6330 }
 0x70b   : > { %v12551_v20 = vpop.eup %8481  ;;  %v6550_v10 = vadd.f32 0.2548296, %v6538_v44  ;;  %v6469_v27 = vmul.f32 1.0614054, %v12547_v25  ;;  %v6339_v42 = vmul.f32 %v6326_v16, %v6303_v45  ;;  %v6340_v32 = vmul.f32 %v6326_v16, %v6304_v46 }
 0x70c   : > { %v8484_v15 = vpop.eup %8483  ;;  %v6551_v52 = vadd.f32 0.2548296, %v6539_v54  ;;  %v6561_v34 = vmul.f32 %v12498_v47, %v6549_v57  ;;  %v6470_v29 = vmul.f32 1.0614054, %v12551_v20  ;;  %v6480_v2 = vadd.f32 -1.4531521, %v6468_v19 }
 0x70d   : > { %v6562_v22 = vmul.f32 %v12501_v4, %v6550_v10  ;;  %v6481_v30 = vadd.f32 -1.4531521, %v6469_v27  ;;  %8487 = vpow2.f32 %v6605_v31  ;;  %v12559_v39 = vadd.f32 %v12521_v14, %v6339_v42 }
 0x70e   : > { %v6563_v3 = vmul.f32 %v12506_v36, %v6551_v52  ;;  %v6621_v26 = vmul.f32 %v8474_v35, %v6561_v34  ;;  %v6482_v18 = vadd.f32 -1.4531521, %v6470_v29  ;;  %v6492_v13 = vmul.f32 %v12542_v40, %v6480_v2  ;;  %v13636_v2 = vld [vmem:[#allocation61_spill] sm:$0xff] }
 0x70f   : > { %v6622_v47 = vmul.f32 %v8476_v41, %v6562_v22  ;;  %vm6646_vm4 = vcmp.lt.f32.partialorder %v12421_v24, 0.0  ;;  %v6493_v4 = vmul.f32 %v12547_v25, %v6481_v30  ;;  %v12568_v28 = vadd.f32 %v12521_v14, %v6340_v32  ;;  %v12598_v30 = vpop.permute.xlu1 %6727 }
 0x710   : > { %v12571_v12 = vadd.f32 %v12521_v14, %v6341_v53  ;;  %v6623_v36 = vmul.f32 %v8484_v15, %v6563_v3  ;;  %v6633_v35 = vsub.f32 1.0, %v6621_v26  ;;  %v6494_v43 = vmul.f32 %v12551_v20, %v6482_v18 }
 0x711   : > { %v6504_v31 = vadd.f32 1.4214138, %v6492_v13  ;;  %v6634_v44 = vsub.f32 1.0, %v6622_v47  ;;  %v6505_v45 = vadd.f32 1.4214138, %v6493_v4  ;;  %v5722_v46 = vsel %vm1777_vm10, %v12213_v33, %v12563_v38 }
 0x712   : > { %v12577_v41 = vmul.f32 0.70710677, %v12559_v39  ;;  %v6635_v16 = vsub.f32 1.0, %v6623_v36  ;;  %v6657_v14 = vsub.f32 0.0, %v6633_v35  ;;  %v6506_v54 = vadd.f32 1.4214138, %v6494_v43  ;;  %v8486_v19 = vpop.eup %8485 }
 0x713   : > { %v6516_v57 = vmul.f32 %v12542_v40, %v6504_v31  ;;  %vm6647_vm5 = vcmp.lt.f32.partialorder %v12424_v17, 0.0  ;;  %v6517_v53 = vmul.f32 %v12547_v25, %v6505_v45  ;;  %8489 = vpow2.f32 %v6607_v61 }
 0x714   : > { %v12587_v10 = vmul.f32 0.70710677, %v12568_v28  ;;  %v6658_v27 = vsub.f32 0.0, %v6634_v44  ;;  %v6518_v42 = vmul.f32 %v12551_v20, %v6506_v54  ;;  %v12591_v15 = vmul.f32 0.70710677, %v12571_v12 }
 0x715   : > { %v6528_v32 = vadd.f32 -0.28449672, %v6516_v57  ;;  %v12594_v52 = vmul.f32 0.5, %v12461_v60  ;;  %v6529_v34 = vadd.f32 -0.28449672, %v6517_v53  ;;  %v5734_v22 = vadd.f32 %v5722_v46, %v13636_v2 }
 0x716   : > { %v6411_v29 = vand.u32 2147483647, %v12577_v41  ;;  %v6659_v61 = vsub.f32 0.0, %v6635_v16  ;;  %v6669_v3 = vsel %vm6645_vm3, %v6657_v14, %v6633_v35  ;;  %v6530_v26 = vadd.f32 -0.28449672, %v6518_v42 }
 0x717   : > { %v6540_v18 = vmul.f32 %v12542_v40, %v6528_v32  ;;  %v8488_v13 = vpop.eup %8487  ;;  %v12604_v47 = vmul.f32 0.5, %v12468_v5  ;;  %v12607_v60 = vmul.f32 0.5, %v12470_v62  ;;  %v6541_v4 = vmul.f32 %v12547_v25, %v6529_v34  ;;  %v13637_v5 = vld [vmem:[#allocation26_spill] sm:$0xff]  ;;  %v12621_v34 = vpop.permute.xlu1 %6749 }
 0x718   : > { %v6412_v36 = vand.u32 2147483647, %v12587_v10  ;;  %v6670_v43 = vsel %vm6646_vm4, %v6658_v27, %v6634_v44  ;;  %v6542_v58 = vmul.f32 %v12551_v20, %v6530_v26  ;;  %v6413_v31 = vand.u32 2147483647, %v12591_v15 }
 0x719   : > { %v6552_v35 = vadd.f32 0.2548296, %v6540_v18  ;;  %v6681_v45 = vadd.f32 1.0, %v6669_v3  ;;  %v6553_v46 = vadd.f32 0.2548296, %v6541_v4  ;;  %v5969_v54 = vadd.f32 %v13637_v5, %v5734_v22 }
 0x71a   : > { %v6423_v14 = vmul.f32 0.3275911, %v6411_v29  ;;  %v6671_v62 = vsel %vm6647_vm5, %v6659_v61, %v6635_v16  ;;  %v6554_v57 = vadd.f32 0.2548296, %v6542_v58  ;;  %v6424_v42 = vmul.f32 0.3275911, %v6412_v36 }
 0x71b   : > { %v6564_v53 = vmul.f32 %v12542_v40, %v6552_v35  ;;  %v6682_v32 = vadd.f32 1.0, %v6670_v43  ;;  %v6565_v24 = vmul.f32 %v12547_v25, %v6553_v46  ;;  %vm6648_vm6 = vcmp.lt.f32.partialorder %v12474_v0, 0.0  ;;  %v5702_v46 = vpop.permute.xlu0 %5701 }
 0x71c   : > { %v6425_v44 = vmul.f32 0.3275911, %v6413_v31  ;;  %v6435_v27 = vadd.f32 1.0, %v6423_v14  ;;  %v6566_v2 = vmul.f32 %v12551_v20, %v6554_v57  ;;  %v6436_v22 = vadd.f32 1.0, %v6424_v42  ;;  %v12628_v57 = vpop.permute.xlu1 %6793 }
 0x71d   : > { %v6624_v3 = vmul.f32 %v8486_v19, %v6564_v53  ;;  %v6579_v26 = vsub.f32 0.0, %v6411_v29  ;;  %v8490_v17 = vpop.eup %8489  ;;  %v6625_v16 = vmul.f32 %v8488_v13, %v6565_v24  ;;  %v6580_v40 = vsub.f32 0.0, %v6412_v36  ;;  %v13638_v24 = vld [vmem:[#allocation34_spill] sm:$0xff] }
 0x71e   : > { %v6437_v61 = vadd.f32 1.0, %v6425_v44  ;;  %8491 = vrcp.f32 %v6435_v27  ;;  %v6683_v18 = vadd.f32 1.0, %v6671_v62  ;;  %v6626_v4 = vmul.f32 %v8490_v17, %v6566_v2  ;;  %v13640_v2 = vld [vmem:[#allocation6_spill] sm:$0xff] }
 0x71f   : > { %v6636_v43 = vsub.f32 1.0, %v6624_v3  ;;  %8493 = vrcp.f32 %v6436_v22  ;;  %v6637_v25 = vsub.f32 1.0, %v6625_v16  ;;  %v6581_v58 = vsub.f32 0.0, %v6413_v31  ;;  %v13641_v3 = vld [vmem:[#allocation73_spill] sm:$0xff] }
 0x720   : > { %8495 = vrcp.f32 %v6437_v61  ;;  %v6591_v35 = vmul.f32 %v6579_v26, %v6411_v29  ;;  %v6693_v14 = vmul.f32 %v6681_v45, %v12518_v51  ;;  %v6638_v20 = vsub.f32 1.0, %v6626_v4  ;;  %v13642_v26 = vld [vmem:[#allocation8_spill] sm:$0xff]  ;;  %v13643_v16 = vld [vmem:[#allocation29_spill] sm:$0xff]  ;;  %v12668_v4 = vpop.permute.xlu1 %6815 }
 0x721   : > { %vm6649_vm7 = vcmp.lt.f32.partialorder %v12478_v9, 0.0  ;;  %v6660_v19 = vsub.f32 0.0, %v6636_v43  ;;  %v6694_v13 = vmul.f32 %v6682_v32, %v12530_v48  ;;  %vm6650_vm8 = vcmp.lt.f32.partialorder %v12485_v11, 0.0  ;;  %v13644_v9 = vld [vmem:[#allocation77_spill] sm:$0xff] }
 0x722   : > { %v6661_v5 = vsub.f32 0.0, %v6637_v25  ;;  %v6592_v62 = vmul.f32 %v6580_v40, %v6412_v36  ;;  %v6695_v53 = vmul.f32 %v6683_v18, %v12535_v56  ;;  %v6662_v42 = vsub.f32 0.0, %v6638_v20  ;;  %v13639_v36 = vld [vmem:[#allocation5_spill] sm:$0xff] }
 0x723   : > { %v12632_v29 = vmul.f32 0.5, %v12559_v39  ;;  %v5714_v51 = vsel %vm1777_vm10, %v5702_v46, %v12213_v33  ;;  %v12638_v45 = vmul.f32 0.5, %v12568_v28  ;;  %v6593_v48 = vmul.f32 %v6581_v58, %v6413_v31  ;;  %v13645_v11 = vld [vmem:[#allocation17_spill] sm:$0xff] }
 0x724   : > { %v6609_v32 = vmul.f32 1.442695, %v6591_v35  ;;  %v6014_v44 = vadd.f32 %v13638_v24, %v5969_v54  ;;  %v12642_v27 = vmul.f32 %v6693_v14, %v13639_v36  ;;  %v6672_v56 = vsel %vm6648_vm6, %v6660_v19, %v6636_v43 }
 0x725   : > { %v12647_v39 = vmul.f32 0.5, %v12571_v12  ;;  %v5718_v33 = vsel %vm1777_vm10, %v12563_v38, %v5702_v46  ;;  %v12653_v28 = vmul.f32 %v6694_v13, %v13640_v2  ;;  %v6673_v31 = vsel %vm6649_vm7, %v6661_v5, %v6637_v25  ;;  %v13646_v46 = vld [vmem:[#allocation47_spill] sm:$0xff]  ;;  %v13647_v13 = vld [vmem:[#allocation50_spill] sm:$0xff] }
 0x726   : > { %v6611_v54 = vmul.f32 1.442695, %v6592_v62  ;;  %v6059_v22 = vadd.f32 %v13641_v3, %v6014_v44  ;;  %v12659_v17 = vmul.f32 %v6695_v53, %v13642_v26  ;;  %v6674_v0 = vsel %vm6650_vm8, %v6662_v42, %v6638_v20  ;;  %v13648_v42 = vld [vmem:[#allocation36_spill] sm:$0xff]  ;;  %v13650_v3 = vld [vmem:[#allocation30_spill] sm:$0xff] }
 0x727   : > { %v5732_v12 = vadd.f32 %v5718_v33, %v12363_v55  ;;  %v5733_v23 = vadd.f32 %v5714_v51, %v13643_v16  ;;  %v6684_v61 = vadd.f32 1.0, %v6672_v56  ;;  %8497 = vpow2.f32 %v6609_v32 }
 0x728   : > { %v12665_v38 = vpop.eup %8491  ;;  %v6613_v40 = vmul.f32 1.442695, %v6593_v48  ;;  %v6104_v18 = vadd.f32 %v13644_v9, %v6059_v22  ;;  %v6685_v25 = vadd.f32 1.0, %v6673_v31  ;;  %v6686_v20 = vadd.f32 1.0, %v6674_v0  ;;  %v13649_v48 = vld [vmem:[#allocation69_spill] sm:$0xff]  ;;  %v13651_v22 = vld [vmem:[#allocation35_spill] sm:$0xff] }
 0x729   : > { %v12670_v43 = vpop.eup %8493  ;;  %v6471_v58 = vmul.f32 1.0614054, %v12665_v38  ;;  %v5967_v35 = vadd.f32 %v13645_v11, %v5732_v12  ;;  %v5968_v55 = vadd.f32 %v13646_v46, %v5733_v23  ;;  %8499 = vpow2.f32 %v6611_v54  ;;  %v13652_v9 = vld [vmem:[#allocation22_spill] sm:$0xff] }
 0x72a   : > { %v12675_v14 = vpop.eup %8495  ;;  %v6472_v19 = vmul.f32 1.0614054, %v12670_v43  ;;  %v6128_v5 = vadd.f32 %v13647_v13, %v6104_v18  ;;  %v6696_v24 = vmul.f32 %v6684_v61, %v12594_v52  ;;  %8501 = vpow2.f32 %v6613_v40  ;;  %v12692_v61 = vpop.permute.xlu1 %6859 }
 0x72b   : > { %v6473_v62 = vmul.f32 1.0614054, %v12675_v14  ;;  %v6483_v53 = vadd.f32 -1.4531521, %v6471_v58  ;;  %v6012_v51 = vadd.f32 %v13648_v42, %v5967_v35  ;;  %v6013_v32 = vadd.f32 %v13649_v48, %v5968_v55  ;;  %v13653_v58 = vld [vmem:[#allocation76_spill] sm:$0xff] }
 0x72c   : > { %v6484_v44 = vadd.f32 -1.4531521, %v6472_v19  ;;  %v6173_v56 = vadd.f32 %v12190_v6, %v6128_v5  ;;  %v6697_v12 = vmul.f32 %v6685_v25, %v12604_v47  ;;  %v6733_v52 = vrot.slane %v12642_v27, %v13488_v50  ;;  %v13654_v19 = vld [vmem:[#allocation45_spill] sm:$0xff]  ;;  %v13655_v5 = vld [vmem:[#allocation3_spill] sm:$0xff] }
 0x72d   : > { %v6485_v33 = vadd.f32 -1.4531521, %v6473_v62  ;;  %v6495_v31 = vmul.f32 %v12665_v38, %v6483_v53  ;;  %v6057_v54 = vadd.f32 %v13650_v3, %v6012_v51  ;;  %v6058_v0 = vadd.f32 %v13651_v22, %v6013_v32  ;;  %v13656_v32 = vld [vmem:[#allocation23_spill] sm:$0xff] }
 0x72e   : > { %v6496_v16 = vmul.f32 %v12670_v43, %v6484_v44  ;;  %v6218_v23 = vadd.f32 %v12260_v59, %v6173_v56  ;;  %v6698_v35 = vmul.f32 %v6686_v20, %v12607_v60  ;;  %v12699_v47 = vmul.f32 %v6696_v24, %v13639_v36 }
 0x72f   : > { %v6497_v6 = vmul.f32 %v12675_v14, %v6485_v33  ;;  %v6507_v40 = vadd.f32 1.4214138, %v6495_v31  ;;  %v6102_v18 = vadd.f32 %v13652_v9, %v6057_v54  ;;  %v6103_v11 = vadd.f32 %v13653_v58, %v6058_v0 }
 0x730   : > { %v6508_v25 = vadd.f32 1.4214138, %v6496_v16  ;;  %v6263_v59 = vadd.f32 %v12515_v63, %v6218_v23  ;;  %v12706_v42 = vmul.f32 %v6697_v12, %v13640_v2  ;;  %v6737_v20 = vrot.slane %v12653_v28, %v13488_v50  ;;  %v13657_v16 = vld [vmem:[#allocation9_spill] sm:$0xff] }
 0x731   : > { %v6509_v46 = vadd.f32 1.4214138, %v6497_v6  ;;  %v6519_v55 = vmul.f32 %v12665_v38, %v6507_v40  ;;  %v6126_v13 = vadd.f32 %v13654_v19, %v6102_v18  ;;  %v6127_v62 = vadd.f32 %v13655_v5, %v6103_v11  ;;  %v8498_v53 = vpop.eup %8497  ;;  %v13658_v11 = vld [vmem:[#allocation18_spill] sm:$0xff] }
 0x732   : > { %v6520_v51 = vmul.f32 %v12670_v43, %v6508_v25  ;;  %v6308_v60 = vadd.f32 %v12385_v1, %v6263_v59  ;;  %v6741_v3 = vrot.slane %v12659_v17, %v13488_v50  ;;  %v6742_v54 = vmul.f32 %v6733_v52, %v12598_v30  ;;  %v12719_v1 = vpop.permute.xlu1 %6881  ;;  %v13659_v59 = vld [vmem:[#allocation19_spill] sm:$0xff] }
 0x733   : > { %v6521_v63 = vmul.f32 %v12675_v14, %v6509_v46  ;;  %v6531_v48 = vadd.f32 -0.28449672, %v6519_v55  ;;  %v6171_v24 = vadd.f32 %v13656_v32, %v6126_v13  ;;  %v6172_v44 = vadd.f32 %v12185_v49, %v6127_v62  ;;  %v8500_v56 = vpop.eup %8499  ;;  %v13661_v32 = vld [vmem:[#allocation4_spill] sm:$0xff] }
 0x734   : > { %v6532_v33 = vadd.f32 -0.28449672, %v6520_v51  ;;  %v6344_v31 = vmul.f32 %v12573_v8, %v6308_v60  ;;  %v8502_v6 = vpop.eup %8501  ;;  %v12725_v49 = vmul.f32 %v6698_v35, %v13642_v26  ;;  %v6743_v18 = vmul.f32 %v6737_v20, %v12598_v30  ;;  %v13660_v51 = vld [vmem:[#allocation46_spill] sm:$0xff] }
 0x735   : > { %v6533_v22 = vadd.f32 -0.28449672, %v6521_v63  ;;  %v6543_v0 = vmul.f32 %v12665_v38, %v6531_v48  ;;  %v6216_v12 = vadd.f32 %v12193_v37, %v6171_v24  ;;  %v6217_v23 = vadd.f32 %v13657_v16, %v6172_v44  ;;  %v6722_v37 = vpop.permute.xlu0 %6721 }
 0x736   : > { %v6544_v40 = vmul.f32 %v12670_v43, %v6532_v33  ;;  %v6380_v9 = vadd.f32 %v12540_v21, %v6344_v31  ;;  %vm6651_vm9 = vcmp.lt.f32.partialorder %v12577_v41, 0.0  ;;  %v6744_v35 = vmul.f32 %v6741_v3, %v12598_v30  ;;  %v12746_v33 = vpop.permute.xlu1 %6925  ;;  %v13662_v41 = vld [vmem:[#allocation60_spill] sm:$0xff] }
 0x737   : > { %v6545_v52 = vmul.f32 %v12675_v14, %v6533_v22  ;;  %v6555_v58 = vadd.f32 0.2548296, %v6543_v0  ;;  %v6261_v25 = vadd.f32 %v13658_v11, %v6216_v12  ;;  %v6262_v46 = vadd.f32 %v13659_v59, %v6217_v23 }
 0x738   : > { %v6556_v55 = vadd.f32 0.2548296, %v6544_v40  ;;  %v12734_v19 = vmul.f32 0.70710677, %v6380_v9  ;;  %v6745_v13 = vadd.f32 %v6742_v54, %v6722_v37  ;;  %v6755_v24 = vrot.slane %v12642_v27, %v13661_v32 }
 0x739   : > { %v6557_v5 = vadd.f32 0.2548296, %v6545_v52  ;;  %v6567_v62 = vmul.f32 %v12665_v38, %v6555_v58  ;;  %v6306_v60 = vadd.f32 %v13660_v51, %v6261_v25  ;;  %v6307_v20 = vadd.f32 %v12456_v7, %v6262_v46 }
 0x73a   : > { %v6568_v63 = vmul.f32 %v12670_v43, %v6556_v55  ;;  %v6416_v48 = vand.u32 2147483647, %v12734_v19  ;;  %v6759_v44 = vrot.slane %v12653_v28, %v13661_v32  ;;  %vm6652_vm10 = vcmp.lt.f32.partialorder %v12587_v10, 0.0  ;;  %v12763_v46 = vpop.permute.xlu1 %6947 }
 0x73b   : > { %v6569_v30 = vmul.f32 %v12675_v14, %v6557_v5  ;;  %v6627_v31 = vmul.f32 %v8498_v53, %v6567_v62  ;;  %v6342_v38 = vmul.f32 %v12573_v8, %v6306_v60  ;;  %v6343_v7 = vmul.f32 %v12573_v8, %v6307_v20 }
 0x73c   : > { %v6628_v43 = vmul.f32 %v8500_v56, %v6568_v63  ;;  %vm6653_vm0 = vcmp.lt.f32.partialorder %v12591_v15, 0.0  ;;  %v6428_v3 = vmul.f32 0.3275911, %v6416_v48  ;;  %v6584_v54 = vsub.f32 0.0, %v6416_v48 }
 0x73d   : > { %v6763_v22 = vrot.slane %v12659_v17, %v13661_v32  ;;  %v6629_v0 = vmul.f32 %v8502_v6, %v6569_v30  ;;  %v6639_v12 = vsub.f32 1.0, %v6627_v31  ;;  %v6378_v16 = vadd.f32 %v12540_v21, %v6342_v38 }
 0x73e   : > { %v12757_v14 = vadd.f32 %v12540_v21, %v6343_v7  ;;  %v6640_v53 = vsub.f32 1.0, %v6628_v43  ;;  %v6440_v23 = vadd.f32 1.0, %v6428_v3  ;;  %v6596_v40 = vmul.f32 %v6584_v54, %v6416_v48  ;;  %v12791_v54 = vpop.permute.xlu1 %6991 }
 0x73f   : > { %v6746_v52 = vadd.f32 %v6743_v18, %v6722_v37  ;;  %v6641_v8 = vsub.f32 1.0, %v6629_v0  ;;  %v6663_v56 = vsub.f32 0.0, %v6639_v12  ;;  %v6747_v58 = vadd.f32 %v6744_v35, %v6722_v37 }
 0x740   : > { %v6764_v11 = vmul.f32 %v6755_v24, %v12621_v34  ;;  %v6664_v25 = vsub.f32 0.0, %v6640_v53  ;;  %8503 = vrcp.f32 %v6440_v23  ;;  %v12760_v59 = vmul.f32 0.70710677, %v6378_v16 }
 0x741   : > { %v6765_v6 = vmul.f32 %v6759_v44, %v12621_v34  ;;  %v6665_v55 = vsub.f32 0.0, %v6641_v8  ;;  %v6675_v21 = vsel %vm6651_vm9, %v6663_v56, %v6639_v12  ;;  %v12768_v5 = vmul.f32 0.70710677, %v12757_v14 }
 0x742   : > { %v6766_v18 = vmul.f32 %v6763_v22, %v12621_v34  ;;  %v12771_v37 = vmul.f32 0.5, %v6380_v9  ;;  %v6619_v35 = vmul.f32 1.442695, %v6596_v40  ;;  %v6414_v62 = vand.u32 2147483647, %v12760_v59 }
 0x743   : > { %v12774_v51 = vadd.f32 %v6764_v11, %v6745_v13  ;;  %v6415_v60 = vand.u32 2147483647, %v12768_v5  ;;  %v12777_v20 = vadd.f32 %v6765_v6, %v6746_v52  ;;  %v6799_v48 = vrot.slane %v12642_v27, %v13662_v41  ;;  %v6772_v6 = vpop.permute.xlu0 %6771 }
 0x744   : > { %v12779_v63 = vadd.f32 %v6766_v18, %v6747_v58  ;;  %v6676_v24 = vsel %vm6652_vm10, %v6664_v25, %v6640_v53  ;;  %v6687_v34 = vadd.f32 1.0, %v6675_v21  ;;  %v6426_v9 = vmul.f32 0.3275911, %v6414_v62  ;;  %v13665_v58 = vld [vmem:[#allocation10_spill] sm:$0xff] }
 0x745   : > { %v6582_v44 = vsub.f32 0.0, %v6414_v62  ;;  %v6677_v30 = vsel %vm6653_vm0, %v6665_v55, %v6641_v8  ;;  %v6427_v13 = vmul.f32 0.3275911, %v6415_v60  ;;  %v6583_v31 = vsub.f32 0.0, %v6415_v60  ;;  %v13666_v21 = vld [vmem:[#allocation14_spill] sm:$0xff] }
 0x746   : > { %v6803_v38 = vrot.slane %v12653_v28, %v13662_v41  ;;  %8505 = vpow2.f32 %v6619_v35  ;;  %v12789_v7 = vmul.f32 0.5, %v6378_v16  ;;  %v6438_v43 = vadd.f32 1.0, %v6426_v9 }
 0x747   : > { %v6594_v3 = vmul.f32 %v6582_v44, %v6414_v62  ;;  %v12793_v10 = vadd.f32 1.0, %v6676_v24  ;;  %v6439_v22 = vadd.f32 1.0, %v6427_v13  ;;  %v6595_v0 = vmul.f32 %v6583_v31, %v6415_v60  ;;  %v13668_v44 = vld [vmem:[#allocation7_spill] sm:$0xff] }
 0x748   : > { %13663 = vst [vmem:[#allocation49_spill] sm:$0xff] %v12789_v7  ;;  %v6807_v15 = vrot.slane %v12659_v17, %v13662_v41  ;;  %v12797_v12 = vadd.f32 1.0, %v6677_v30  ;;  %v12800_v53 = vmul.f32 %v6687_v34, %v12632_v29  ;;  %8507 = vrcp.f32 %v6438_v43  ;;  %v13669_v43 = vld [vmem:[#allocation12_spill] sm:$0xff] }
 0x749   : > { %v6615_v23 = vmul.f32 1.442695, %v6594_v3  ;;  %8509 = vrcp.f32 %v6439_v22  ;;  %v6617_v16 = vmul.f32 1.442695, %v6595_v0  ;;  %v6808_v40 = vmul.f32 %v6799_v48, %v12628_v57  ;;  %v12822_v48 = vpop.permute.xlu1 %7013 }
 0x74a   : > { %13664 = vst [vmem:[#allocation59_spill] sm:$0xff] %v12800_v53  ;;  %v6809_v52 = vmul.f32 %v6803_v38, %v12628_v57  ;;  %v12804_v8 = vpop.eup %8503  ;;  %v6810_v56 = vmul.f32 %v6807_v15, %v12628_v57  ;;  %v6821_v11 = vrot.slane %v12642_v27, %v13665_v58  ;;  %v6825_v25 = vrot.slane %v12653_v28, %v13665_v58 }
 0x74b   : > { %v6829_v29 = vrot.slane %v12659_v17, %v13665_v58  ;;  %v6476_v55 = vmul.f32 1.0614054, %v12804_v8  ;;  %8511 = vpow2.f32 %v6615_v23  ;;  %v6865_v18 = vrot.slane %v12642_v27, %v13666_v21  ;;  %13667 = vst [vmem:[#allocation32_spill] sm:$0xff] %v12822_v48 }
 0x74c   : > { %v6869_v35 = vrot.slane %v12653_v28, %v13666_v21  ;;  %8513 = vpow2.f32 %v6617_v16  ;;  %v6830_v57 = vmul.f32 %v6821_v11, %v12668_v4  ;;  %v6831_v62 = vmul.f32 %v6825_v25, %v12668_v4 }
 0x74d   : > { %v6873_v60 = vrot.slane %v12659_v17, %v13666_v21  ;;  %v6488_v24 = vadd.f32 -1.4531521, %v6476_v55  ;;  %v6832_v34 = vmul.f32 %v6829_v29, %v12668_v4  ;;  %v6874_v9 = vmul.f32 %v6865_v18, %v12692_v61  ;;  %v6838_v29 = vpop.permute.xlu0 %6837  ;;  %v13670_v55 = vld [vmem:[#allocation16_spill] sm:$0xff] }
 0x74e   : > { %v6777_v30 = vrot.slane %v12642_v27, %v13668_v44  ;;  %v6875_v13 = vmul.f32 %v6869_v35, %v12692_v61  ;;  %v6781_v31 = vrot.slane %v12653_v28, %v13668_v44  ;;  %v6785_v38 = vrot.slane %v12659_v17, %v13668_v44 }
 0x74f   : > { %v6887_v3 = vrot.slane %v12642_v27, %v13669_v43  ;;  %v6500_v22 = vmul.f32 %v12804_v8, %v6488_v24  ;;  %v6876_v4 = vmul.f32 %v6873_v60, %v12692_v61  ;;  %v6891_v15 = vrot.slane %v12653_v28, %v13669_v43 }
 0x750   : > { %v6786_v0 = vmul.f32 %v6777_v30, %v6772_v6  ;;  %v8506_v23 = vpop.eup %8505  ;;  %v6787_v16 = vmul.f32 %v6781_v31, %v6772_v6  ;;  %v6788_v11 = vmul.f32 %v6785_v38, %v6772_v6  ;;  %v6895_v25 = vrot.slane %v12659_v17, %v13669_v43 }
 0x751   : > { %v6843_v18 = vrot.slane %v12642_v27, %v13670_v55  ;;  %v6512_v35 = vadd.f32 1.4214138, %v6500_v22  ;;  %v6896_v24 = vmul.f32 %v6887_v3, %v12719_v1  ;;  %v6897_v61 = vmul.f32 %v6891_v15, %v12719_v1  ;;  %v12854_v27 = vpop.permute.xlu1 %7057 }
 0x752   : > { %v6789_v7 = vadd.f32 %v6786_v0, %v12774_v51  ;;  %v12846_v60 = vpop.eup %8507  ;;  %v6790_v30 = vadd.f32 %v6787_v16, %v12777_v20  ;;  %v6791_v6 = vadd.f32 %v6788_v11, %v12779_v63  ;;  %v6847_v31 = vrot.slane %v12653_v28, %v13670_v55  ;;  %13671 = vst [vmem:[#allocation63_spill] sm:$0xff] %v12854_v27 }
 0x753   : > { %v6851_v38 = vrot.slane %v12659_v17, %v13670_v55  ;;  %v12856_v22 = vpop.eup %8509  ;;  %v6524_v51 = vmul.f32 %v12804_v8, %v6512_v35  ;;  %v6474_v3 = vmul.f32 1.0614054, %v12846_v60  ;;  %v6852_v15 = vmul.f32 %v6843_v18, %v6838_v29 }
 0x754   : > { %v6811_v0 = vadd.f32 %v6808_v40, %v6789_v7  ;;  %v6475_v20 = vmul.f32 1.0614054, %v12856_v22  ;;  %v6812_v16 = vadd.f32 %v6809_v52, %v6790_v30  ;;  %v6813_v63 = vadd.f32 %v6810_v56, %v6791_v6 }
 0x755   : > { %v6853_v11 = vmul.f32 %v6847_v31, %v6838_v29  ;;  %v12861_v43 = vpop.eup %8511  ;;  %v6536_v28 = vadd.f32 -0.28449672, %v6524_v51  ;;  %v6486_v48 = vadd.f32 -1.4531521, %v6474_v3  ;;  %v6854_v26 = vmul.f32 %v6851_v38, %v6838_v29  ;;  %v12873_v31 = vpop.permute.xlu1 %7079 }
 0x756   : > { %v6833_v17 = vadd.f32 %v6830_v57, %v6811_v0  ;;  %v12863_v27 = vpop.eup %8513  ;;  %v6487_v2 = vadd.f32 -1.4531521, %v6475_v20  ;;  %v6834_v53 = vadd.f32 %v6831_v62, %v6812_v16  ;;  %v6835_v35 = vadd.f32 %v6832_v34, %v6813_v63  ;;  %v6904_v63 = vpop.permute.xlu0 %6903 }
 0x757   : > { %v6931_v7 = vrot.slane %v12699_v47, %v13661_v32  ;;  %v6548_v40 = vmul.f32 %v12804_v8, %v6536_v28  ;;  %v6498_v52 = vmul.f32 %v12846_v60, %v6486_v48  ;;  %v6935_v18 = vrot.slane %v12706_v42, %v13661_v32 }
 0x758   : > { %v6855_v56 = vadd.f32 %v6852_v15, %v6833_v17  ;;  %v6499_v30 = vmul.f32 %v12856_v22, %v6487_v2  ;;  %v6898_v57 = vmul.f32 %v6895_v25, %v12719_v1  ;;  %v6856_v29 = vadd.f32 %v6853_v11, %v6834_v53 }
 0x759   : > { %v6857_v6 = vadd.f32 %v6854_v26, %v6835_v35  ;;  %v6560_v62 = vadd.f32 0.2548296, %v6548_v40  ;;  %v6510_v34 = vadd.f32 1.4214138, %v6498_v52  ;;  %v6939_v51 = vrot.slane %v12725_v49, %v13661_v32  ;;  %v12893_v35 = vpop.permute.xlu1 %7123 }
 0x75a   : > { %v6877_v38 = vadd.f32 %v6874_v9, %v6855_v56  ;;  %v6511_v3 = vadd.f32 1.4214138, %v6499_v30  ;;  %v6878_v48 = vadd.f32 %v6875_v13, %v6856_v29  ;;  %v6940_v15 = vmul.f32 %v6931_v7, %v12746_v33 }
 0x75b   : > { %v6879_v0 = vadd.f32 %v6876_v4, %v6857_v6  ;;  %v6572_v20 = vmul.f32 %v12804_v8, %v6560_v62  ;;  %vm6656_vm15 = vcmp.lt.f32.partialorder %v12734_v19, 0.0  ;;  %v6522_v2 = vmul.f32 %v12846_v60, %v6510_v34 }
 0x75c   : > { %v6941_v26 = vmul.f32 %v6935_v18, %v12746_v33  ;;  %v6899_v1 = vadd.f32 %v6896_v24, %v6877_v38  ;;  %v6523_v53 = vmul.f32 %v12856_v22, %v6511_v3  ;;  %v6900_v9 = vadd.f32 %v6897_v61, %v6878_v48 }
 0x75d   : > { %v6901_v25 = vadd.f32 %v6898_v57, %v6879_v0  ;;  %v6909_v16 = vrot.slane %v12699_v47, %v13488_v50  ;;  %v6632_v13 = vmul.f32 %v8506_v23, %v6572_v20  ;;  %v6534_v4 = vadd.f32 -0.28449672, %v6522_v2 }
 0x75e   : > { %v6913_v8 = vrot.slane %v12706_v42, %v13488_v50  ;;  %v6917_v11 = vrot.slane %v12725_v49, %v13488_v50  ;;  %v6535_v28 = vadd.f32 -0.28449672, %v6523_v53  ;;  %v6953_v24 = vrot.slane %v12699_v47, %v13668_v44 }
 0x75f   : > { %v6918_v17 = vmul.f32 %v6909_v16, %v6904_v63  ;;  %v6957_v61 = vrot.slane %v12706_v42, %v13668_v44  ;;  %v6644_v7 = vsub.f32 1.0, %v6632_v13  ;;  %v6546_v23 = vmul.f32 %v12846_v60, %v6534_v4 }
 0x760   : > { %v6919_v40 = vmul.f32 %v6913_v8, %v6904_v63  ;;  %v6920_v52 = vmul.f32 %v6917_v11, %v6904_v63  ;;  %v6547_v56 = vmul.f32 %v12856_v22, %v6535_v28  ;;  %v6942_v18 = vmul.f32 %v6939_v51, %v12746_v33 }
 0x761   : > { %v6921_v30 = vadd.f32 %v6918_v17, %v6899_v1  ;;  %v6961_v57 = vrot.slane %v12725_v49, %v13668_v44  ;;  %v6668_v29 = vsub.f32 0.0, %v6644_v7  ;;  %v6558_v6 = vadd.f32 0.2548296, %v6546_v23 }
 0x762   : > { %v6922_v62 = vadd.f32 %v6919_v40, %v6900_v9  ;;  %v6923_v34 = vadd.f32 %v6920_v52, %v6901_v25  ;;  %v6559_v38 = vadd.f32 0.2548296, %v6547_v56  ;;  %vm6654_vm1 = vcmp.lt.f32.partialorder %v12760_v59, 0.0 }
 0x763   : > { %v6943_v3 = vadd.f32 %v6940_v15, %v6921_v30  ;;  %v6962_v48 = vmul.f32 %v6953_v24, %v12763_v46  ;;  %v6963_v0 = vmul.f32 %v6957_v61, %v12763_v46  ;;  %v6570_v20 = vmul.f32 %v12846_v60, %v6558_v6  ;;  %v12910_v15 = vpop.permute.xlu1 %7145  ;;  %v6970_v60 = vpop.permute.xlu0 %6969 }
 0x764   : > { %v6944_v2 = vadd.f32 %v6941_v26, %v6922_v62  ;;  %v6945_v33 = vadd.f32 %v6942_v18, %v6923_v34  ;;  %v6964_v51 = vmul.f32 %v6961_v57, %v12763_v46  ;;  %v6680_v1 = vsel %vm6656_vm15, %v6668_v29, %v6644_v7 }
 0x765   : > { %v6571_v53 = vmul.f32 %v12856_v22, %v6559_v38  ;;  %v6965_v9 = vadd.f32 %v6962_v48, %v6943_v3  ;;  %v6975_v25 = vrot.slane %v12699_v47, %v13662_v41  ;;  %v6630_v16 = vmul.f32 %v12861_v43, %v6570_v20 }
 0x766   : > { %v6966_v13 = vadd.f32 %v6963_v0, %v6944_v2  ;;  %v6967_v4 = vadd.f32 %v6964_v51, %v6945_v33  ;;  %v6979_v26 = vrot.slane %v12706_v42, %v13662_v41  ;;  %v6700_v19 = vmul.f32 %v12793_v10, %v12638_v45  ;;  %v13672_v2 = vld [vmem:[#allocation59_spill] sm:$0xff]  ;;  %v13673_v51 = vld [vmem:[#allocation6_spill] sm:$0xff] }
 0x767   : > { %v6631_v46 = vmul.f32 %v12863_v27, %v6571_v53  ;;  %v6983_v22 = vrot.slane %v12725_v49, %v13662_v41  ;;  %v6984_v63 = vmul.f32 %v6975_v25, %v6970_v60  ;;  %v6642_v8 = vsub.f32 1.0, %v6630_v16  ;;  %v12929_v18 = vpop.permute.xlu1 %7189  ;;  %v7036_v0 = vpop.permute.xlu0 %7035  ;;  %v13674_v53 = vld [vmem:[#allocation8_spill] sm:$0xff] }
 0x768   : > { %v6985_v11 = vmul.f32 %v6979_v26, %v6970_v60  ;;  %v6997_v43 = vrot.slane %v12699_v47, %v13665_v58  ;;  %v7001_v28 = vrot.slane %v12706_v42, %v13665_v58  ;;  %v6692_v17 = vadd.f32 1.0, %v6680_v1 }
 0x769   : > { %v6643_v24 = vsub.f32 1.0, %v6631_v46  ;;  %v6986_v61 = vmul.f32 %v6983_v22, %v6970_v60  ;;  %v6987_v7 = vadd.f32 %v6984_v63, %v6965_v9  ;;  %v6666_v23 = vsub.f32 0.0, %v6642_v8  ;;  %v13676_v46 = vld [vmem:[#allocation49_spill] sm:$0xff] }
 0x76a   : > { %v6988_v45 = vadd.f32 %v6985_v11, %v6966_v13  ;;  %v7005_v10 = vrot.slane %v12725_v49, %v13665_v58  ;;  %v7006_v27 = vmul.f32 %v6997_v43, %v12791_v54  ;;  %vm6655_vm2 = vcmp.lt.f32.partialorder %v12768_v5, 0.0  ;;  %v13675_v13 = vld [vmem:[#allocation32_spill] sm:$0xff] }
 0x76b   : > { %v6667_v40 = vsub.f32 0.0, %v6643_v24  ;;  %v6989_v52 = vadd.f32 %v6986_v61, %v6967_v4  ;;  %v7007_v56 = vmul.f32 %v7001_v28, %v12791_v54  ;;  %v6701_v30 = vmul.f32 %v12797_v12, %v12647_v39  ;;  %v12965_v26 = vpop.permute.xlu1 %7211 }
 0x76c   : > { %v6678_v57 = vsel %vm6654_vm1, %v6666_v23, %v6642_v8  ;;  %v7008_v29 = vmul.f32 %v7005_v10, %v12791_v54  ;;  %v7009_v6 = vadd.f32 %v7006_v27, %v6987_v7  ;;  %v6704_v62 = vmul.f32 %v6692_v17, %v12771_v37  ;;  %v13677_v17 = vld [vmem:[#allocation12_spill] sm:$0xff]  ;;  %v7102_v10 = vpop.permute.xlu0 %7101 }
 0x76d   : > { %v6679_v34 = vsel %vm6655_vm2, %v6667_v40, %v6643_v24  ;;  %v7010_v38 = vadd.f32 %v7007_v56, %v6988_v45  ;;  %v7041_v5 = vrot.slane %v12699_v47, %v13666_v21  ;;  %v6690_v3 = vadd.f32 1.0, %v6678_v57  ;;  %v13678_v56 = vld [vmem:[#allocation63_spill] sm:$0xff] }
 0x76e   : > { %v7011_v48 = vadd.f32 %v7008_v29, %v6989_v52  ;;  %v7045_v20 = vrot.slane %v12706_v42, %v13666_v21  ;;  %v7049_v39 = vrot.slane %v12725_v49, %v13666_v21  ;;  %v6391_v59 = vmul.f32 0.5, %v12757_v14 }
 0x76f   : > { %v6691_v54 = vadd.f32 1.0, %v6679_v34  ;;  %v7019_v37 = vrot.slane %v12699_v47, %v13670_v55  ;;  %v7023_v12 = vrot.slane %v12706_v42, %v13670_v55  ;;  %v12950_v33 = vmul.f32 %v13672_v2, %v13639_v36 }
 0x770   : > { %v12953_v1 = vmul.f32 %v6700_v19, %v13673_v51  ;;  %v12956_v9 = vmul.f32 %v6701_v30, %v13674_v53  ;;  %v7027_v14 = vrot.slane %v12725_v49, %v13670_v55  ;;  %v12961_v25 = vmul.f32 %v6704_v62, %v13674_v53 }
 0x771   : > { %v7050_v16 = vmul.f32 %v7041_v5, %v7036_v0  ;;  %v7028_v4 = vmul.f32 %v7019_v37, %v13675_v13  ;;  %v7029_v60 = vmul.f32 %v7023_v12, %v13675_v13  ;;  %v6702_v22 = vmul.f32 %v6690_v3, %v13676_v46 }
 0x772   : > { %v7051_v19 = vmul.f32 %v7045_v20, %v7036_v0  ;;  %v7052_v63 = vmul.f32 %v7049_v39, %v7036_v0  ;;  %v7030_v8 = vmul.f32 %v7027_v14, %v13675_v13  ;;  %v6703_v11 = vmul.f32 %v6691_v54, %v6391_v59  ;;  %v7168_v14 = vpop.permute.xlu0 %7167 }
 0x773   : > { %v7031_v43 = vadd.f32 %v7028_v4, %v7009_v6  ;;  %v7032_v28 = vadd.f32 %v7029_v60, %v7010_v38  ;;  %v7063_v24 = vrot.slane %v12699_v47, %v13677_v17  ;;  %v7107_v7 = vrot.slane %v12950_v33, %v13661_v32  ;;  %v12991_v38 = vpop.permute.xlu1 %7255 }
 0x774   : > { %v7033_v61 = vadd.f32 %v7030_v8, %v7011_v48  ;;  %v7067_v23 = vrot.slane %v12706_v42, %v13677_v17  ;;  %v7071_v45 = vrot.slane %v12725_v49, %v13677_v17  ;;  %v7111_v27 = vrot.slane %v12953_v1, %v13661_v32 }
 0x775   : > { %v7053_v40 = vadd.f32 %v7050_v16, %v7031_v43  ;;  %v7054_v52 = vadd.f32 %v7051_v19, %v7032_v28  ;;  %v7072_v30 = vmul.f32 %v7063_v24, %v13678_v56  ;;  %v12981_v47 = vmul.f32 %v6702_v22, %v13639_v36 }
 0x776   : > { %v7055_v57 = vadd.f32 %v7052_v63, %v7033_v61  ;;  %v7073_v29 = vmul.f32 %v7067_v23, %v13678_v56  ;;  %v7074_v6 = vmul.f32 %v7071_v45, %v13678_v56  ;;  %v7115_v42 = vrot.slane %v12956_v9, %v13661_v32 }
 0x777   : > { %v7075_v49 = vadd.f32 %v7072_v30, %v7053_v40  ;;  %v7173_v62 = vrot.slane %v12950_v33, %v13665_v58  ;;  %v7085_v34 = vrot.slane %v12950_v33, %v13488_v50  ;;  %v7177_v3 = vrot.slane %v12953_v1, %v13665_v58  ;;  %v13016_v43 = vpop.permute.xlu1 %7277 }
 0x778   : > { %v7076_v5 = vadd.f32 %v7073_v29, %v7054_v52  ;;  %v7077_v36 = vadd.f32 %v7074_v6, %v7055_v57  ;;  %v7089_v48 = vrot.slane %v12953_v1, %v13488_v50  ;;  %v12998_v0 = vmul.f32 %v6703_v11, %v13673_v51  ;;  %v7234_v6 = vpop.permute.xlu0 %7233 }
 0x779   : > { %v7116_v20 = vmul.f32 %v7107_v7, %v7102_v10  ;;  %v7093_v39 = vrot.slane %v12956_v9, %v13488_v50  ;;  %v7094_v59 = vmul.f32 %v7085_v34, %v12873_v31  ;;  %v7117_v54 = vmul.f32 %v7111_v27, %v7102_v10 }
 0x77a   : > { %v7095_v37 = vmul.f32 %v7089_v48, %v12873_v31  ;;  %v7129_v12 = vrot.slane %v12950_v33, %v13668_v44  ;;  %v7133_v2 = vrot.slane %v12953_v1, %v13668_v44  ;;  %v7118_v53 = vmul.f32 %v7115_v42, %v7102_v10 }
 0x77b   : > { %v7181_v51 = vrot.slane %v12956_v9, %v13665_v58  ;;  %v7096_v16 = vmul.f32 %v7093_v39, %v12873_v31  ;;  %v7097_v13 = vadd.f32 %v7094_v59, %v7075_v49  ;;  %v7182_v4 = vmul.f32 %v7173_v62, %v7168_v14  ;;  %v7322_v48 = vpop.permute.xlu1 %7321 }
 0x77c   : > { %v7183_v60 = vmul.f32 %v7177_v3, %v7168_v14  ;;  %v7098_v46 = vadd.f32 %v7095_v37, %v7076_v5  ;;  %v7137_v22 = vrot.slane %v12956_v9, %v13668_v44  ;;  %v7138_v8 = vmul.f32 %v7129_v12, %v12893_v35 }
 0x77d   : > { %v7099_v19 = vadd.f32 %v7096_v16, %v7077_v36  ;;  %v7119_v63 = vadd.f32 %v7116_v20, %v7097_v13  ;;  %v7151_v11 = vrot.slane %v12950_v33, %v13662_v41  ;;  %v7139_v24 = vmul.f32 %v7133_v2, %v12893_v35 }
 0x77e   : > { %v7120_v28 = vadd.f32 %v7117_v54, %v7098_v46  ;;  %v7140_v31 = vmul.f32 %v7137_v22, %v12893_v35  ;;  %v7155_v61 = vrot.slane %v12953_v1, %v13662_v41  ;;  %v7159_v45 = vrot.slane %v12956_v9, %v13662_v41 }
 0x77f   : > { %v7121_v7 = vadd.f32 %v7118_v53, %v7099_v19  ;;  %v7141_v23 = vadd.f32 %v7138_v8, %v7119_v63  ;;  %v7160_v10 = vmul.f32 %v7151_v11, %v12910_v15  ;;  %v7184_v27 = vmul.f32 %v7181_v51, %v7168_v14  ;;  %v7300_v51 = vpop.permute.xlu0 %7299 }
 0x780   : > { %v7239_v40 = vrot.slane %v12950_v33, %v13677_v17  ;;  %v7142_v52 = vadd.f32 %v7139_v24, %v7120_v28  ;;  %v7161_v56 = vmul.f32 %v7155_v61, %v12910_v15  ;;  %v7243_v35 = vrot.slane %v12953_v1, %v13677_v17 }
 0x781   : > { %v7143_v30 = vadd.f32 %v7140_v31, %v7121_v7  ;;  %v7162_v57 = vmul.f32 %v7159_v45, %v12910_v15  ;;  %v7163_v29 = vadd.f32 %v7160_v10, %v7141_v23  ;;  %v7247_v42 = vrot.slane %v12956_v9, %v13677_v17  ;;  %v7344_v31 = vpop.permute.xlu1 %7343 }
 0x782   : > { %v7164_v49 = vadd.f32 %v7161_v56, %v7142_v52  ;;  %v7195_v62 = vrot.slane %v12950_v33, %v13670_v55  ;;  %v7199_v34 = vrot.slane %v12953_v1, %v13670_v55  ;;  %v7305_v36 = vrot.slane %v12981_v47, %v13668_v44 }
 0x783   : > { %v7165_v5 = vadd.f32 %v7162_v57, %v7143_v30  ;;  %v7185_v3 = vadd.f32 %v7182_v4, %v7163_v29  ;;  %v7203_v15 = vrot.slane %v12956_v9, %v13670_v55  ;;  %v7309_v20 = vrot.slane %v12998_v0, %v13668_v44 }
 0x784   : > { %v7186_v39 = vadd.f32 %v7183_v60, %v7164_v49  ;;  %v7204_v59 = vmul.f32 %v7195_v62, %v12929_v18  ;;  %v7205_v54 = vmul.f32 %v7199_v34, %v12929_v18  ;;  %v7248_v37 = vmul.f32 %v7239_v40, %v7234_v6 }
 0x785   : > { %v7313_v12 = vrot.slane %v12961_v25, %v13668_v44  ;;  %v7187_v2 = vadd.f32 %v7184_v27, %v7165_v5  ;;  %v7206_v53 = vmul.f32 %v7203_v15, %v12929_v18  ;;  %v7249_v14 = vmul.f32 %v7243_v35, %v7234_v6  ;;  %v7388_v5 = vpop.permute.xlu1 %7387 }
 0x786   : > { %v7207_v16 = vadd.f32 %v7204_v59, %v7185_v3  ;;  %v7208_v13 = vadd.f32 %v7205_v54, %v7186_v39  ;;  %v7217_v4 = vrot.slane %v12950_v33, %v13666_v21  ;;  %v7250_v46 = vmul.f32 %v7247_v42, %v7234_v6  ;;  %v7366_v54 = vpop.permute.xlu0 %7365 }
 0x787   : > { %v7314_v60 = vmul.f32 %v7305_v36, %v7300_v51  ;;  %v7209_v22 = vadd.f32 %v7206_v53, %v7187_v2  ;;  %v7221_v19 = vrot.slane %v12953_v1, %v13666_v21  ;;  %v7315_v63 = vmul.f32 %v7309_v20, %v7300_v51 }
 0x788   : > { %v7225_v44 = vrot.slane %v12956_v9, %v13666_v21  ;;  %v7226_v8 = vmul.f32 %v7217_v4, %v12965_v26  ;;  %v7261_v18 = vrot.slane %v12981_v47, %v13488_v50  ;;  %v7316_v11 = vmul.f32 %v7313_v12, %v7300_v51 }
 0x789   : > { %v7227_v28 = vmul.f32 %v7221_v19, %v12965_v26  ;;  %v7265_v33 = vrot.slane %v12998_v0, %v13488_v50  ;;  %v7269_v24 = vrot.slane %v12961_v25, %v13488_v50  ;;  %v7283_v7 = vrot.slane %v12981_v47, %v13661_v32 }
 0x78a   : > { %v7228_v1 = vmul.f32 %v7225_v44, %v12965_v26  ;;  %v7229_v61 = vadd.f32 %v7226_v8, %v7207_v16  ;;  %v7270_v9 = vmul.f32 %v7261_v18, %v12991_v38  ;;  %v7287_v27 = vrot.slane %v12998_v0, %v13661_v32 }
 0x78b   : > { %v7230_v23 = vadd.f32 %v7227_v28, %v7208_v13  ;;  %v7271_v45 = vmul.f32 %v7265_v33, %v12991_v38  ;;  %v7272_v10 = vmul.f32 %v7269_v24, %v12991_v38  ;;  %v7291_v50 = vrot.slane %v12961_v25, %v13661_v32 }
 0x78c   : > { %v7231_v40 = vadd.f32 %v7228_v1, %v7209_v22  ;;  %v7251_v52 = vadd.f32 %v7248_v37, %v7229_v61  ;;  %v7292_v26 = vmul.f32 %v7283_v7, %v13016_v43  ;;  %v7371_v56 = vrot.slane %v12981_v47, %v13670_v55 }
 0x78d   : > { %v7375_v35 = vrot.slane %v12998_v0, %v13670_v55  ;;  %v7252_v30 = vadd.f32 %v7249_v14, %v7230_v23  ;;  %v7293_v57 = vmul.f32 %v7287_v27, %v13016_v43  ;;  %v7294_v6 = vmul.f32 %v7291_v50, %v13016_v43 }
 0x78e   : > { %v7253_v38 = vadd.f32 %v7250_v46, %v7231_v40  ;;  %v7273_v29 = vadd.f32 %v7270_v9, %v7251_v52  ;;  %v7327_v42 = vrot.slane %v12981_v47, %v13662_v41  ;;  %v7379_v32 = vrot.slane %v12961_v25, %v13670_v55 }
 0x78f   : > { %v7274_v49 = vadd.f32 %v7271_v45, %v7252_v30  ;;  %v7331_v62 = vrot.slane %v12998_v0, %v13662_v41  ;;  %v7335_v34 = vrot.slane %v12961_v25, %v13662_v41  ;;  %v7349_v43 = vrot.slane %v12981_v47, %v13665_v58 }
 0x790   : > { %v7275_v36 = vadd.f32 %v7272_v10, %v7253_v38  ;;  %v7295_v3 = vadd.f32 %v7292_v26, %v7273_v29  ;;  %v7336_v15 = vmul.f32 %v7327_v42, %v7322_v48  ;;  %v7353_v55 = vrot.slane %v12998_v0, %v13665_v58 }
 0x791   : > { %v7296_v20 = vadd.f32 %v7293_v57, %v7274_v49  ;;  %v7337_v39 = vmul.f32 %v7331_v62, %v7322_v48  ;;  %v7338_v59 = vmul.f32 %v7335_v34, %v7322_v48  ;;  %v7357_v2 = vrot.slane %v12961_v25, %v13665_v58  ;;  %v7410_v58 = vpop.permute.xlu1 %7409 }
 0x792   : > { %v7297_v37 = vadd.f32 %v7294_v6, %v7275_v36  ;;  %v7317_v12 = vadd.f32 %v7314_v60, %v7295_v3  ;;  %v7358_v41 = vmul.f32 %v7349_v43, %v7344_v31  ;;  %v7380_v53 = vmul.f32 %v7371_v56, %v7366_v54 }
 0x793   : > { %v7381_v14 = vmul.f32 %v7375_v35, %v7366_v54  ;;  %v7318_v51 = vadd.f32 %v7315_v63, %v7296_v20  ;;  %v7359_v16 = vmul.f32 %v7353_v55, %v7344_v31  ;;  %v7360_v46 = vmul.f32 %v7357_v2, %v7344_v31 }
 0x794   : > { %v7319_v13 = vadd.f32 %v7316_v11, %v7297_v37  ;;  %v7339_v4 = vadd.f32 %v7336_v15, %v7317_v12  ;;  %v7393_v48 = vrot.slane %v12981_v47, %v13666_v21  ;;  %v7382_v22 = vmul.f32 %v7379_v32, %v7366_v54 }
 0x795   : > { %v7340_v19 = vadd.f32 %v7337_v39, %v7318_v51  ;;  %v7397_v44 = vrot.slane %v12998_v0, %v13666_v21  ;;  %v7401_v60 = vrot.slane %v12961_v25, %v13666_v21  ;;  %v7415_v63 = vrot.slane %v12981_v47, %v13677_v17 }
 0x796   : > { %v7341_v8 = vadd.f32 %v7338_v59, %v7319_v13  ;;  %v7361_v18 = vadd.f32 %v7358_v41, %v7339_v4  ;;  %v7402_v28 = vmul.f32 %v7393_v48, %v7388_v5  ;;  %v7419_v31 = vrot.slane %v12998_v0, %v13677_v17 }
 0x797   : > { %v7362_v11 = vadd.f32 %v7359_v16, %v7340_v19  ;;  %v7403_v33 = vmul.f32 %v7397_v44, %v7388_v5  ;;  %v7404_v24 = vmul.f32 %v7401_v60, %v7388_v5  ;;  %v7423_v9 = vrot.slane %v12961_v25, %v13677_v17 }
 0x798   : > { %v7363_v1 = vadd.f32 %v7360_v46, %v7341_v8  ;;  %v7383_v61 = vadd.f32 %v7380_v53, %v7361_v18  ;;  %v7424_v21 = vmul.f32 %v7415_v63, %v7410_v58  ;;  %v7425_v23 = vmul.f32 %v7419_v31, %v7410_v58 }
 0x799   : > { %v7384_v7 = vadd.f32 %v7381_v14, %v7362_v11  ;;  %v7426_v27 = vmul.f32 %v7423_v9, %v7410_v58 }
 0x79a   : > { %v7385_v45 = vadd.f32 %v7382_v22, %v7363_v1  ;;  %v7405_v10 = vadd.f32 %v7402_v28, %v7383_v61 }
 0x79b   : > { %v7406_v40 = vadd.f32 %v7403_v33, %v7384_v7 }
 0x79c   : > { %v7407_v47 = vadd.f32 %v7404_v24, %v7385_v45  ;;  %v7427_v52 = vadd.f32 %v7424_v21, %v7405_v10 }
 0x79d   : > { %v7428_v50 = vadd.f32 %v7425_v23, %v7406_v40 }
 0x79e   : > { %v7429_v26 = vadd.f32 %v7426_v27, %v7407_v47  ;;  %8515 = vtanh.f32 %v7427_v52 }
 0x79f   : > { %8517 = vtanh.f32 %v7428_v50 }
 0x7a0   : > { %8519 = vtanh.f32 %v7429_v26 }
 0x7a8   : > { %v8516_v0 = vpop.eup %8515 }
 0x7a9   : > { %v8518_v25 = vpop.eup %8517 }
 0x7aa   : > { %v8520_v17 = vpop.eup %8519  ;;  %v7435_v56 = vcombine.low %v8516_v0, %v8518_v25 }
 0x7ab   : > { %7438 = vst [vmem:[%s508_s25 + $0x8] sm:$0x7] %v8520_v17 }
 0x7ac   : > { %7437 = vst [vmem:[%s508_s25] sm:$0x77] %v7435_v56 }
 0x7ad PF: > { %s25_s18 = sadd.s32 1, %s8528_s18  }
 0x7ae   : > { %p22_p4 = scmp.ge.s32.totalorder %s25_s18, 4  }
 0x7b0   :  { %24 = sbr.rel (!%p22_p4) target bundleno = 1 (0x1), region = 137 }

</bundles_post_ra>
